<compile_context>
chip_gen: v7x
topology: tpu7x:2x2x1
jax: 0.10.0
libtpu: 0.0.40
codegen_flags: <defaults>
</compile_context>

<pallas_src>
import functools
import math

import jax
import jax.numpy as jnp
from jax import lax
from jax.experimental import pallas as pl
from jax.experimental.pallas import tpu as pltpu


def _round_up(n, m):
    return (n + m - 1) // m * m


def _vmem_limit_bytes():
    """Generation-aware scoped-VMEM budget: ~75% of physical, capped at 100 MiB.

    v5e/v6e (128 MiB physical) -> 96 MiB; v7x (64 MiB per TC) -> 48 MiB.
    Falls back to 48 MiB if the hardware query is unavailable.
    """
    phys = 64 * 1024 * 1024
    try:
        info = pltpu.get_tpu_info()
        phys = int(getattr(info, "vmem_capacity_bytes", phys))
    except Exception:
        pass
    return int(min(phys * 3 // 4, 100 * 1024 * 1024))


# ==========================================================================
# Single fused kernel: per-group projection + deformable bilinear sampling
# + out projection accumulated over the group axis.
#   grid = (B, G); G is the "arbitrary" reduction axis.
#   wT_ref  : (Rp, Cin)   fused per-group projection weights (transposed)
#   b_ref   : (Rp, 1)     fused bias (prior / scale_param already folded in)
#   xT_ref  : (Cin, P)    input, lane-dense; resident across the G axis
#   px_ref  : (1, P)      pixel x coordinate (f32 constant)
#   py_ref  : (1, P)      pixel y coordinate (f32 constant)
#   owt_ref : (Cin, Cp)   out-projection weights for this group (transposed)
#   ob_ref  : (Cin, 1)    out-projection bias
#   o_ref   : (Cin, P)    lane-dense output (written once, on the last group)
#   acc_ref : (Cin, P)    f32 VMEM scratch accumulator
# Row layout of blk: [ v(Cp) | dx(Kp) | dy(Kp) | s(Kp) | w(Kp) ], 8-aligned.
# ==========================================================================
def _dcn_fused_kernel(wT_ref, b_ref, xT_ref, px_ref, py_ref, owt_ref, ob_ref,
                      o_ref, acc_ref, *, H, W, Cp, K, Kp, max_scale):
    P = H * W
    g = pl.program_id(1)

    @pl.when(g == 0)
    def _init():
        acc_ref[...] = jnp.zeros_like(acc_ref)

    # ---- fused projection (replaces the four nn.Linear launches) ---------
    blk = (jnp.dot(wT_ref[...], xT_ref[...],
                   preferred_element_type=jnp.float32) + b_ref[...])   # (Rp, P)

    v = blk[0:Cp, :]                                   # (Cp, P)
    dx = blk[Cp:Cp + Kp, :]                            # (Kp, P)  8-aligned views
    dy = blk[Cp + Kp:Cp + 2 * Kp, :]
    sc = blk[Cp + 2 * Kp:Cp + 3 * Kp, :]
    wt = blk[Cp + 3 * Kp:Cp + 4 * Kp, :]

    # offsets = (d + prior) * sigmoid(s + scale_param) * max_scale
    # (prior / scale_param were folded into the fused projection bias)
    amp = jax.nn.sigmoid(sc) * max_scale               # (Kp, P) -- EUP

    px = px_ref[...]                                   # (1, P) f32 constants
    py = py_ref[...]
    sx = px + dx * amp                                 # (Kp, P)
    sy = py + dy * amp
    x0 = jnp.floor(sx)
    y0 = jnp.floor(sy)
    fx = sx - x0
    fy = sy - y0

    # Loop-invariant source-pixel iota, built ONCE per kernel body.
    q_iota = lax.broadcasted_iota(jnp.int32, (P, P), 0)

    sampled = jnp.zeros((Cp, P), jnp.float32)          # (Cp, P) accumulator

    corners = (
        (x0, y0, (1.0 - fx) * (1.0 - fy)),
        (x0 + 1.0, y0, fx * (1.0 - fy)),
        (x0, y0 + 1.0, (1.0 - fx) * fy),
        (x0 + 1.0, y0 + 1.0, fx * fy),
    )
    for cx, cy, cw in corners:
        inb = (cx >= 0.0) & (cx <= W - 1.0) & (cy >= 0.0) & (cy <= H - 1.0)
        coeff = jnp.where(inb, cw * wt, 0.0)           # (Kp, P) zero-pad OOB
        qidx = (jnp.clip(cy, 0.0, H - 1.0).astype(jnp.int32) * W
                + jnp.clip(cx, 0.0, W - 1.0).astype(jnp.int32))        # (Kp, P)

        # Fold all K taps + bilinear coefficients into ONE weighted selection
        # matrix for this corner: sel[q, p] = sum_k coeff[k,p] * (q == qidx[k,p]).
        sel = jnp.zeros((P, P), jnp.float32)
        for k in range(K):                             # only the real taps
            sel = sel + jnp.where(q_iota == qidx[k:k + 1, :],
                                  coeff[k:k + 1, :], 0.0)

        # Gather-by-matmul: one MXU push per corner.  f32 keeps the bilinear
        # weights exact (no bf16 rounding of v or the coefficients).
        sampled = sampled + jnp.dot(v, sel, preferred_element_type=jnp.float32)

    # Fused out-projection for this group, accumulated over the G axis.
    acc_ref[...] += jnp.dot(owt_ref[...], sampled,
                            preferred_element_type=jnp.float32)

    @pl.when(g == pl.num_programs(1) - 1)
    def _finalize():
        o_ref[...] = acc_ref[...] + ob_ref[...]


def _dcn_forward_fused(xT, px, py, wT_all, b_all, out_wT, out_b2,
                       H, W, Cp, K, Kp, max_scale):
    """xT: (B,Cin,P); wT_all: (G,Rp,Cin); b_all: (G,Rp,1);
    out_wT: (G,Cin,Cp); out_b2: (Cin,1) -> (B,Cin,P)."""
    B, Cin, P = xT.shape
    G, Rp, _ = wT_all.shape
    kernel = functools.partial(_dcn_fused_kernel, H=H, W=W, Cp=Cp, K=K, Kp=Kp,
                               max_scale=float(max_scale))
    return pl.pallas_call(
        kernel,
        grid=(B, G),
        in_specs=[
            pl.BlockSpec((None, Rp, Cin), lambda b, g: (g, 0, 0)),
            pl.BlockSpec((None, Rp, 1), lambda b, g: (g, 0, 0)),
            # index depends only on b -> block stays VMEM-resident across G
            pl.BlockSpec((None, Cin, P), lambda b, g: (b, 0, 0)),
            pl.BlockSpec((1, P), lambda b, g: (0, 0)),
            pl.BlockSpec((1, P), lambda b, g: (0, 0)),
            pl.BlockSpec((None, Cin, Cp), lambda b, g: (g, 0, 0)),
            pl.BlockSpec((Cin, 1), lambda b, g: (0, 0)),
        ],
        out_specs=pl.BlockSpec((None, Cin, P), lambda b, g: (b, 0, 0)),
        out_shape=jax.ShapeDtypeStruct((B, Cin, P), jnp.float32),
        scratch_shapes=[pltpu.VMEM((Cin, P), jnp.float32)],
        compiler_params=pltpu.CompilerParams(
            dimension_semantics=("parallel", "arbitrary"),
            vmem_limit_bytes=_vmem_limit_bytes()),
    )(wT_all, b_all, xT, px, py, out_wT, out_b2)


# ==========================================================================
# Host-side parameter fusion (one-time): concat the four Linear weights per
# group into an 8-sublane-aligned row layout and fold deformables_prior /
# deformables_scale into the bias.
# ==========================================================================
def _prepare_fused_params(params, Cin, G, C, K, Cp, Kp):
    def pad_last(a, n):
        return jnp.pad(a, [(0, 0)] * (a.ndim - 1) + [(0, n - a.shape[-1])])

    Rp = Cp + 4 * Kp

    vw = params["v_w"].reshape(Cin, G, C)
    dw = params["qkd_w"].reshape(Cin, G, K, 2)
    sw = params["qks_w"].reshape(Cin, G, K)
    ww = params["qkw_w"].reshape(Cin, G, K)
    w_all = jnp.concatenate(
        [pad_last(vw, Cp), pad_last(dw[..., 0], Kp), pad_last(dw[..., 1], Kp),
         pad_last(sw, Kp), pad_last(ww, Kp)], axis=-1)           # (Cin, G, Rp)
    wT_all = jnp.transpose(w_all, (1, 2, 0))                      # (G, Rp, Cin)

    prior = params["deformables_prior"]                            # (K, 2)
    vb = params["v_b"].reshape(G, C)
    db = params["qkd_b"].reshape(G, K, 2)
    dxb = db[..., 0] + prior[None, :, 0]
    dyb = db[..., 1] + prior[None, :, 1]
    sb = jnp.broadcast_to(params["deformables_scale"].reshape(G, 1), (G, K))
    wb = params["qkw_b"].reshape(G, K)
    b_all = jnp.concatenate(
        [pad_last(vb, Cp), pad_last(dxb, Kp), pad_last(dyb, Kp),
         pad_last(sb, Kp), pad_last(wb, Kp)], axis=-1).reshape(G, Rp, 1)

    out_w = jnp.pad(params["out_w"].reshape(G, C, Cin),
                    ((0, 0), (0, Cp - C), (0, 0)))                 # (G, Cp, Cin)
    out_wT = jnp.transpose(out_w, (0, 2, 1))                        # (G, Cin, Cp)
    out_b2 = params["out_b"].reshape(Cin, 1)
    return (wT_all.astype(jnp.float32), b_all.astype(jnp.float32),
            out_wT.astype(jnp.float32), out_b2.astype(jnp.float32))


# ==========================================================================
# Full MultiScaleDCN forward (Pallas path).
# ==========================================================================
def multiscale_dcn_forward(x, params, groups, channels, kernels, max_scale=6.0):
    B, H, W, Cin = x.shape
    P = H * W
    G, C, K = groups, channels, kernels
    Cp = _round_up(C, 8)
    Kp = _round_up(K, 8)

    wT_all, b_all, out_wT, out_b2 = _prepare_fused_params(
        params, Cin, G, C, K, Cp, Kp)

    # Single transpose of the raw input; everything else stays lane-dense.
    xT = jnp.swapaxes(x.reshape(B, P, Cin).astype(jnp.float32), 1, 2)  # (B,Cin,P)

    # Pixel coordinates precomputed once on the host (no in-kernel div/mod).
    p = jnp.arange(P, dtype=jnp.int32)
    px = (p % W).astype(jnp.float32).reshape(1, P)
    py = (p // W).astype(jnp.float32).reshape(1, P)

    out_cp = _dcn_forward_fused(xT, px, py, wT_all, b_all, out_wT, out_b2,
                                H, W, Cp, K, Kp, max_scale)        # (B,Cin,P)
    return jnp.swapaxes(out_cp, 1, 2).reshape(B, H, W, Cin)


# ==========================================================================
# Pure-JAX f32 reference that mirrors the PyTorch module (for validation).
# ==========================================================================
def _dcn_sample_ref(v_arr, dx, dy, wts, H, W):
    B, G, P, C = v_arr.shape
    p = jnp.arange(P)
    px = (p % W).astype(jnp.float32)[None, None, :, None]
    py = (p // W).astype(jnp.float32)[None, None, :, None]
    sx = px + dx
    sy = py + dy
    x0 = jnp.floor(sx)
    y0 = jnp.floor(sy)
    fx = sx - x0
    fy = sy - y0

    gather = jax.vmap(jax.vmap(lambda v_pc, idx_pk: v_pc[idx_pk]))
    out = jnp.zeros((B, G, P, C), jnp.float32)
    corners = (
        (x0, y0, (1.0 - fx) * (1.0 - fy)),
        (x0 + 1.0, y0, fx * (1.0 - fy)),
        (x0, y0 + 1.0, (1.0 - fx) * fy),
        (x0 + 1.0, y0 + 1.0, fx * fy),
    )
    for cx, cy, cw in corners:
        inb = (cx >= 0.0) & (cx <= W - 1.0) & (cy >= 0.0) & (cy <= H - 1.0)
        coeff = jnp.where(inb, cw * wts, 0.0)
        qidx = (
            jnp.clip(cy, 0.0, H - 1.0) * W + jnp.clip(cx, 0.0, W - 1.0)
        ).astype(jnp.int32)
        g = gather(v_arr, qidx)                                     # (B,G,P,K,C)
        out = out + jnp.sum(coeff[..., None] * g, axis=3)
    return out


def multiscale_dcn_reference(x, params, groups, channels, kernels, max_scale=6.0):
    B, H, W, Cin = x.shape
    P = H * W
    G, C, K = groups, channels, kernels
    xf = x.reshape(B * P, Cin).astype(jnp.float32)

    v = (xf @ params["v_w"] + params["v_b"]).reshape(B, P, G, C)
    d = (xf @ params["qkd_w"] + params["qkd_b"]).reshape(B, P, G, K, 2)
    s = (xf @ params["qks_w"]).reshape(B, P, G, K, 1) \
        + params["deformables_scale"].reshape(1, 1, G, 1, 1)
    d = (d + params["deformables_prior"].reshape(1, 1, 1, K, 2)) \
        * jax.nn.sigmoid(s) * max_scale
    wgt = (xf @ params["qkw_w"] + params["qkw_b"]).reshape(B, P, G, K)

    v_arr = jnp.transpose(v, (0, 2, 1, 3))
    dx = jnp.transpose(d[..., 0], (0, 2, 1, 3))
    dy = jnp.transpose(d[..., 1], (0, 2, 1, 3))
    wts = jnp.transpose(wgt, (0, 2, 1, 3))

    samp = _dcn_sample_ref(v_arr, dx, dy, wts, H, W)                # (B,G,P,C)
    out = jnp.transpose(samp, (0, 2, 1, 3)).reshape(B * P, G * C)
    out = out @ params["out_w"] + params["out_b"]
    return out.reshape(B, H, W, Cin)


# ==========================================================================
# Deterministic parameter init (shapes from MultiScaleDCN.__init__).
# Non-zero random values are used where the PyTorch init zeroes weights, so
# the deformable-sampling path is actually exercised by data-dependent
# offsets/weights.
# ==========================================================================
def init_params(key, in_channels, groups, channels, kernels):
    G, C, K = groups, channels, kernels
    keys = jax.random.split(key, 8)

    def rnd(k, shape, scale):
        return (scale * jax.random.normal(k, shape)).astype(jnp.float32)

    params = dict(
        v_w=rnd(keys[0], (in_channels, G * C), 0.05),
        v_b=jnp.zeros((G * C,), jnp.float32),
        qkd_w=rnd(keys[1], (in_channels, G * K * 2), 0.02),
        qkd_b=jnp.zeros((G * K * 2,), jnp.float32),
        qks_w=rnd(keys[2], (in_channels, G * K), 0.02),          # no bias
        qkw_w=rnd(keys[3], (in_channels, G * K), 0.05),
        qkw_b=rnd(keys[4], (G * K,), 0.1),
        out_w=rnd(keys[5], (G * C, in_channels), 0.05),
        out_b=jnp.zeros((in_channels,), jnp.float32),
    )

    # deformables_prior: randn, first num_prior^2 taps set to a [-1,1] grid.
    num_prior = int(K ** 0.5)
    prior = jax.random.normal(keys[6], (K, 2)).astype(jnp.float32)
    lin = jnp.linspace(-1.0, 1.0, num_prior)
    gx, gy = jnp.meshgrid(lin, lin, indexing="xy")
    dxy = jnp.stack([gx, gy], axis=-1).reshape(-1, 2).astype(jnp.float32)
    prior = prior.at[: num_prior * num_prior].set(dxy)
    params["deformables_prior"] = prior

    # deformables_scale: per-group inverse-sigmoid of (i+1)/G - 1e-4.
    inv = []
    for i in range(G):
        sc = (i + 1) / G - 1e-4
        inv.append(math.log(sc / (1.0 - sc)))
    params["deformables_scale"] = jnp.array(inv, jnp.float32)
    return params


if __name__ == "__main__":
    B, H, W = 2, 16, 16
    in_channels, groups, channels, kernels = 16, 4, 8, 4

    key = jax.random.PRNGKey(0)
    kx, kp = jax.random.split(key)
    x = jax.random.normal(kx, (B, H, W, in_channels), jnp.float32)
    params = init_params(kp, in_channels, groups, channels, kernels)

    fwd = jax.jit(functools.partial(
        multiscale_dcn_forward, groups=groups, channels=channels,
        kernels=kernels))
    out = jax.block_until_ready(fwd(x, params))
    assert out.shape == (B, H, W, in_channels), out.shape

    ref = jax.block_until_ready(
        multiscale_dcn_reference(x, params, groups, channels, kernels))

    err = float(jnp.max(jnp.abs(out - ref)))
    # Kernel keeps the whole path in f32; the remaining tolerance covers the
    # XLA reference's default (lower-precision) matmul path.
    if not (err < 5e-3):
        raise AssertionError(f"Pallas kernel mismatch vs reference, max err={err}")
    print("KERNEL_OK")
</pallas_src>

<mosaic_0001>
module attributes {stable_mosaic.version = 11 : i64} {
  func.func @_dcn_fused_kernel(%arg0: i32, %arg1: i32, %arg2: memref<1x40x16xf32, #tpu.memory_space<vmem>>, %arg3: memref<1x40x1xf32, #tpu.memory_space<vmem>>, %arg4: memref<1x16x256xf32, #tpu.memory_space<vmem>>, %arg5: memref<1x256xf32, #tpu.memory_space<vmem>>, %arg6: memref<1x256xf32, #tpu.memory_space<vmem>>, %arg7: memref<1x16x8xf32, #tpu.memory_space<vmem>>, %arg8: memref<16x1xf32, #tpu.memory_space<vmem>>, %arg9: memref<1x16x256xf32, #tpu.memory_space<vmem>>, %arg10: memref<16x256xf32, #tpu.memory_space<vmem>>) attributes {dimension_semantics = [#tpu.dimension_semantics<parallel>, #tpu.dimension_semantics<arbitrary>], iteration_bounds = array<i64: 2, 4>, scalar_prefetch = 0 : i64, scratch_operands = 1 : i64, tpu.core_type = #tpu.core_type<tc>, window_params = [{transform_indices = @transform_0, window_bounds = array<i64: 1, 40, 16>}, {transform_indices = @transform_1, window_bounds = array<i64: 1, 40, 1>}, {transform_indices = @transform_2, window_bounds = array<i64: 1, 16, 256>}, {pipeline_mode = #tpu.pipeline_mode<synchronous>, transform_indices = @transform_3, window_bounds = array<i64: 1, 256>}, {pipeline_mode = #tpu.pipeline_mode<synchronous>, transform_indices = @transform_4, window_bounds = array<i64: 1, 256>}, {transform_indices = @transform_5, window_bounds = array<i64: 1, 16, 8>}, {pipeline_mode = #tpu.pipeline_mode<synchronous>, transform_indices = @transform_6, window_bounds = array<i64: 16, 1>}, {transform_indices = @transform_7, window_bounds = array<i64: 1, 16, 256>}]} {
    %c0_i32 = arith.constant 0 : i32
    %0 = arith.cmpi eq, %arg1, %c0_i32 : i32
    %1 = arith.extui %0 : i1 to i32
    %c0_i32_0 = arith.constant 0 : i32
    %2 = arith.cmpi ne, %1, %c0_i32_0 : i32
    scf.if %2 {
      %cst_96 = arith.constant 0.000000e+00 : f32
      %331 = vector.broadcast %cst_96 : f32 to vector<16x256xf32>
      %c0_97 = arith.constant 0 : index
      %c0_98 = arith.constant 0 : index
      %332 = vector.load %arg10[%c0_97, %c0_98] : memref<16x256xf32, #tpu.memory_space<vmem>>, vector<16x256xf32>
      tpu.vector_store %arg10[%c0_97, %c0_98], %331 {strides = array<i32>} : memref<16x256xf32, #tpu.memory_space<vmem>>, vector<16x256xf32>,
    } else {
    }
    %c0 = arith.constant 0 : index
    %c0_1 = arith.constant 0 : index
    %c0_2 = arith.constant 0 : index
    %3 = vector.load %arg2[%c0, %c0_1, %c0_2] : memref<1x40x16xf32, #tpu.memory_space<vmem>>, vector<1x40x16xf32>
    %4 = vector.shape_cast %3 : vector<1x40x16xf32> to vector<40x16xf32>
    %c0_3 = arith.constant 0 : index
    %c0_4 = arith.constant 0 : index
    %c0_5 = arith.constant 0 : index
    %5 = vector.load %arg4[%c0_3, %c0_4, %c0_5] : memref<1x16x256xf32, #tpu.memory_space<vmem>>, vector<1x16x256xf32>
    %6 = vector.shape_cast %5 : vector<1x16x256xf32> to vector<16x256xf32>
    %cst = arith.constant dense<0.000000e+00> : vector<40x256xf32>
    %7 = tpu.matmul %4, %6, %cst {dimension_numbers = #tpu.dot_dimension_numbers<[1], [0], [0], [1], [0, 0, 1, 1], [], []>} : vector<40x16xf32>, vector<16x256xf32>, vector<40x256xf32> -> vector<40x256xf32>
    %c0_6 = arith.constant 0 : index
    %c0_7 = arith.constant 0 : index
    %c0_8 = arith.constant 0 : index
    %8 = vector.load %arg3[%c0_6, %c0_7, %c0_8] : memref<1x40x1xf32, #tpu.memory_space<vmem>>, vector<1x40x1xf32>
    %9 = vector.shape_cast %8 : vector<1x40x1xf32> to vector<40x1xf32>
    %10 = vector.broadcast %9 : vector<40x1xf32> to vector<40x256xf32>
    %11 = arith.addf %7, %10 : vector<40x256xf32>
    %12 = vector.extract_strided_slice %11 {offsets = [0, 0], sizes = [8, 256], strides = [1, 1]} : vector<40x256xf32> to vector<8x256xf32>
    %13 = vector.extract_strided_slice %11 {offsets = [8, 0], sizes = [8, 256], strides = [1, 1]} : vector<40x256xf32> to vector<8x256xf32>
    %14 = vector.extract_strided_slice %11 {offsets = [16, 0], sizes = [8, 256], strides = [1, 1]} : vector<40x256xf32> to vector<8x256xf32>
    %15 = vector.extract_strided_slice %11 {offsets = [24, 0], sizes = [8, 256], strides = [1, 1]} : vector<40x256xf32> to vector<8x256xf32>
    %16 = vector.extract_strided_slice %11 {offsets = [32, 0], sizes = [8, 256], strides = [1, 1]} : vector<40x256xf32> to vector<8x256xf32>
    %17 = arith.negf %15 : vector<8x256xf32>
    %18 = math.exp %17 : vector<8x256xf32>
    %cst_9 = arith.constant 1.000000e+00 : f32
    %19 = vector.broadcast %cst_9 : f32 to vector<8x256xf32>
    %20 = arith.addf %19, %18 : vector<8x256xf32>
    %21 = arith.divf %19, %20 : vector<8x256xf32>
    %cst_10 = arith.constant 6.000000e+00 : f32
    %22 = vector.broadcast %cst_10 : f32 to vector<8x256xf32>
    %23 = arith.mulf %21, %22 : vector<8x256xf32>
    %c0_11 = arith.constant 0 : index
    %c0_12 = arith.constant 0 : index
    %24 = vector.load %arg5[%c0_11, %c0_12] : memref<1x256xf32, #tpu.memory_space<vmem>>, vector<1x256xf32>
    %c0_13 = arith.constant 0 : index
    %c0_14 = arith.constant 0 : index
    %25 = vector.load %arg6[%c0_13, %c0_14] : memref<1x256xf32, #tpu.memory_space<vmem>>, vector<1x256xf32>
    %26 = arith.mulf %13, %23 : vector<8x256xf32>
    %27 = vector.broadcast %24 : vector<1x256xf32> to vector<8x256xf32>
    %28 = arith.addf %27, %26 : vector<8x256xf32>
    %29 = arith.mulf %14, %23 : vector<8x256xf32>
    %30 = vector.broadcast %25 : vector<1x256xf32> to vector<8x256xf32>
    %31 = arith.addf %30, %29 : vector<8x256xf32>
    %32 = math.floor %28 : vector<8x256xf32>
    %33 = math.floor %31 : vector<8x256xf32>
    %34 = arith.subf %28, %32 : vector<8x256xf32>
    %35 = arith.subf %31, %33 : vector<8x256xf32>
    %36 = tpu.iota {dimensions = array<i32: 0>} : vector<256x256xi32>
    %cst_15 = arith.constant 0.000000e+00 : f32
    %37 = vector.broadcast %cst_15 : f32 to vector<8x256xf32>
    %cst_16 = arith.constant 1.000000e+00 : f32
    %38 = vector.broadcast %cst_16 : f32 to vector<8x256xf32>
    %39 = arith.subf %38, %34 : vector<8x256xf32>
    %cst_17 = arith.constant 1.000000e+00 : f32
    %40 = vector.broadcast %cst_17 : f32 to vector<8x256xf32>
    %41 = arith.subf %40, %35 : vector<8x256xf32>
    %42 = arith.mulf %39, %41 : vector<8x256xf32>
    %cst_18 = arith.constant 1.000000e+00 : f32
    %43 = vector.broadcast %cst_18 : f32 to vector<8x256xf32>
    %44 = arith.addf %32, %43 : vector<8x256xf32>
    %cst_19 = arith.constant 1.000000e+00 : f32
    %45 = vector.broadcast %cst_19 : f32 to vector<8x256xf32>
    %46 = arith.subf %45, %35 : vector<8x256xf32>
    %47 = arith.mulf %34, %46 : vector<8x256xf32>
    %cst_20 = arith.constant 1.000000e+00 : f32
    %48 = vector.broadcast %cst_20 : f32 to vector<8x256xf32>
    %49 = arith.addf %33, %48 : vector<8x256xf32>
    %cst_21 = arith.constant 1.000000e+00 : f32
    %50 = vector.broadcast %cst_21 : f32 to vector<8x256xf32>
    %51 = arith.subf %50, %34 : vector<8x256xf32>
    %52 = arith.mulf %51, %35 : vector<8x256xf32>
    %cst_22 = arith.constant 1.000000e+00 : f32
    %53 = vector.broadcast %cst_22 : f32 to vector<8x256xf32>
    %54 = arith.addf %32, %53 : vector<8x256xf32>
    %cst_23 = arith.constant 1.000000e+00 : f32
    %55 = vector.broadcast %cst_23 : f32 to vector<8x256xf32>
    %56 = arith.addf %33, %55 : vector<8x256xf32>
    %57 = arith.mulf %34, %35 : vector<8x256xf32>
    %cst_24 = arith.constant 0.000000e+00 : f32
    %58 = vector.broadcast %cst_24 : f32 to vector<8x256xf32>
    %59 = arith.cmpf oge, %32, %58 : vector<8x256xf32>
    %cst_25 = arith.constant 1.500000e+01 : f32
    %60 = vector.broadcast %cst_25 : f32 to vector<8x256xf32>
    %61 = arith.cmpf ole, %32, %60 : vector<8x256xf32>
    %62 = arith.andi %59, %61 : vector<8x256xi1>
    %cst_26 = arith.constant 0.000000e+00 : f32
    %63 = vector.broadcast %cst_26 : f32 to vector<8x256xf32>
    %64 = arith.cmpf oge, %33, %63 : vector<8x256xf32>
    %65 = arith.andi %62, %64 : vector<8x256xi1>
    %cst_27 = arith.constant 1.500000e+01 : f32
    %66 = vector.broadcast %cst_27 : f32 to vector<8x256xf32>
    %67 = arith.cmpf ole, %33, %66 : vector<8x256xf32>
    %68 = arith.andi %65, %67 : vector<8x256xi1>
    %69 = arith.mulf %42, %16 : vector<8x256xf32>
    %cst_28 = arith.constant 0.000000e+00 : f32
    %70 = vector.broadcast %cst_28 : f32 to vector<8x256xf32>
    %71 = arith.select %68, %69, %70 : vector<8x256xi1>, vector<8x256xf32>
    %cst_29 = arith.constant 0.000000e+00 : f32
    %cst_30 = arith.constant 1.500000e+01 : f32
    %72 = vector.broadcast %cst_29 : f32 to vector<8x256xf32>
    %73 = arith.maximumf %72, %33 : vector<8x256xf32>
    %74 = vector.broadcast %cst_30 : f32 to vector<8x256xf32>
    %75 = arith.minimumf %74, %73 : vector<8x256xf32>
    %76 = arith.fptosi %75 : vector<8x256xf32> to vector<8x256xi32>
    %c16_i32 = arith.constant 16 : i32
    %77 = vector.broadcast %c16_i32 : i32 to vector<8x256xi32>
    %78 = arith.muli %76, %77 : vector<8x256xi32>
    %cst_31 = arith.constant 0.000000e+00 : f32
    %cst_32 = arith.constant 1.500000e+01 : f32
    %79 = vector.broadcast %cst_31 : f32 to vector<8x256xf32>
    %80 = arith.maximumf %79, %32 : vector<8x256xf32>
    %81 = vector.broadcast %cst_32 : f32 to vector<8x256xf32>
    %82 = arith.minimumf %81, %80 : vector<8x256xf32>
    %83 = arith.fptosi %82 : vector<8x256xf32> to vector<8x256xi32>
    %84 = arith.addi %78, %83 : vector<8x256xi32>
    %cst_33 = arith.constant 0.000000e+00 : f32
    %85 = vector.broadcast %cst_33 : f32 to vector<256x256xf32>
    %86 = vector.extract_strided_slice %84 {offsets = [0, 0], sizes = [1, 256], strides = [1, 1]} : vector<8x256xi32> to vector<1x256xi32>
    %87 = vector.broadcast %86 : vector<1x256xi32> to vector<256x256xi32>
    %88 = arith.cmpi eq, %36, %87 : vector<256x256xi32>
    %89 = vector.extract_strided_slice %71 {offsets = [0, 0], sizes = [1, 256], strides = [1, 1]} : vector<8x256xf32> to vector<1x256xf32>
    %cst_34 = arith.constant 0.000000e+00 : f32
    %90 = vector.shape_cast %89 : vector<1x256xf32> to vector<1x256xf32>
    %91 = vector.broadcast %90 : vector<1x256xf32> to vector<256x256xf32>
    %92 = vector.broadcast %cst_34 : f32 to vector<256x256xf32>
    %93 = arith.select %88, %91, %92 : vector<256x256xi1>, vector<256x256xf32>
    %94 = arith.addf %85, %93 : vector<256x256xf32>
    %95 = vector.extract_strided_slice %84 {offsets = [1, 0], sizes = [1, 256], strides = [1, 1]} : vector<8x256xi32> to vector<1x256xi32>
    %96 = vector.broadcast %95 : vector<1x256xi32> to vector<256x256xi32>
    %97 = arith.cmpi eq, %36, %96 : vector<256x256xi32>
    %98 = vector.extract_strided_slice %71 {offsets = [1, 0], sizes = [1, 256], strides = [1, 1]} : vector<8x256xf32> to vector<1x256xf32>
    %cst_35 = arith.constant 0.000000e+00 : f32
    %99 = vector.shape_cast %98 : vector<1x256xf32> to vector<1x256xf32>
    %100 = vector.broadcast %99 : vector<1x256xf32> to vector<256x256xf32>
    %101 = vector.broadcast %cst_35 : f32 to vector<256x256xf32>
    %102 = arith.select %97, %100, %101 : vector<256x256xi1>, vector<256x256xf32>
    %103 = arith.addf %94, %102 : vector<256x256xf32>
    %104 = vector.extract_strided_slice %84 {offsets = [2, 0], sizes = [1, 256], strides = [1, 1]} : vector<8x256xi32> to vector<1x256xi32>
    %105 = vector.broadcast %104 : vector<1x256xi32> to vector<256x256xi32>
    %106 = arith.cmpi eq, %36, %105 : vector<256x256xi32>
    %107 = vector.extract_strided_slice %71 {offsets = [2, 0], sizes = [1, 256], strides = [1, 1]} : vector<8x256xf32> to vector<1x256xf32>
    %cst_36 = arith.constant 0.000000e+00 : f32
    %108 = vector.shape_cast %107 : vector<1x256xf32> to vector<1x256xf32>
    %109 = vector.broadcast %108 : vector<1x256xf32> to vector<256x256xf32>
    %110 = vector.broadcast %cst_36 : f32 to vector<256x256xf32>
    %111 = arith.select %106, %109, %110 : vector<256x256xi1>, vector<256x256xf32>
    %112 = arith.addf %103, %111 : vector<256x256xf32>
    %113 = vector.extract_strided_slice %84 {offsets = [3, 0], sizes = [1, 256], strides = [1, 1]} : vector<8x256xi32> to vector<1x256xi32>
    %114 = vector.broadcast %113 : vector<1x256xi32> to vector<256x256xi32>
    %115 = arith.cmpi eq, %36, %114 : vector<256x256xi32>
    %116 = vector.extract_strided_slice %71 {offsets = [3, 0], sizes = [1, 256], strides = [1, 1]} : vector<8x256xf32> to vector<1x256xf32>
    %cst_37 = arith.constant 0.000000e+00 : f32
    %117 = vector.shape_cast %116 : vector<1x256xf32> to vector<1x256xf32>
    %118 = vector.broadcast %117 : vector<1x256xf32> to vector<256x256xf32>
    %119 = vector.broadcast %cst_37 : f32 to vector<256x256xf32>
    %120 = arith.select %115, %118, %119 : vector<256x256xi1>, vector<256x256xf32>
    %121 = arith.addf %112, %120 : vector<256x256xf32>
    %cst_38 = arith.constant dense<0.000000e+00> : vector<8x256xf32>
    %122 = tpu.matmul %12, %121, %cst_38 {dimension_numbers = #tpu.dot_dimension_numbers<[1], [0], [0], [1], [0, 0, 1, 1], [], []>} : vector<8x256xf32>, vector<256x256xf32>, vector<8x256xf32> -> vector<8x256xf32>
    %123 = arith.addf %37, %122 : vector<8x256xf32>
    %cst_39 = arith.constant 0.000000e+00 : f32
    %124 = vector.broadcast %cst_39 : f32 to vector<8x256xf32>
    %125 = arith.cmpf oge, %44, %124 : vector<8x256xf32>
    %cst_40 = arith.constant 1.500000e+01 : f32
    %126 = vector.broadcast %cst_40 : f32 to vector<8x256xf32>
    %127 = arith.cmpf ole, %44, %126 : vector<8x256xf32>
    %128 = arith.andi %125, %127 : vector<8x256xi1>
    %cst_41 = arith.constant 0.000000e+00 : f32
    %129 = vector.broadcast %cst_41 : f32 to vector<8x256xf32>
    %130 = arith.cmpf oge, %33, %129 : vector<8x256xf32>
    %131 = arith.andi %128, %130 : vector<8x256xi1>
    %cst_42 = arith.constant 1.500000e+01 : f32
    %132 = vector.broadcast %cst_42 : f32 to vector<8x256xf32>
    %133 = arith.cmpf ole, %33, %132 : vector<8x256xf32>
    %134 = arith.andi %131, %133 : vector<8x256xi1>
    %135 = arith.mulf %47, %16 : vector<8x256xf32>
    %cst_43 = arith.constant 0.000000e+00 : f32
    %136 = vector.broadcast %cst_43 : f32 to vector<8x256xf32>
    %137 = arith.select %134, %135, %136 : vector<8x256xi1>, vector<8x256xf32>
    %cst_44 = arith.constant 0.000000e+00 : f32
    %cst_45 = arith.constant 1.500000e+01 : f32
    %138 = vector.broadcast %cst_44 : f32 to vector<8x256xf32>
    %139 = arith.maximumf %138, %33 : vector<8x256xf32>
    %140 = vector.broadcast %cst_45 : f32 to vector<8x256xf32>
    %141 = arith.minimumf %140, %139 : vector<8x256xf32>
    %142 = arith.fptosi %141 : vector<8x256xf32> to vector<8x256xi32>
    %c16_i32_46 = arith.constant 16 : i32
    %143 = vector.broadcast %c16_i32_46 : i32 to vector<8x256xi32>
    %144 = arith.muli %142, %143 : vector<8x256xi32>
    %cst_47 = arith.constant 0.000000e+00 : f32
    %cst_48 = arith.constant 1.500000e+01 : f32
    %145 = vector.broadcast %cst_47 : f32 to vector<8x256xf32>
    %146 = arith.maximumf %145, %44 : vector<8x256xf32>
    %147 = vector.broadcast %cst_48 : f32 to vector<8x256xf32>
    %148 = arith.minimumf %147, %146 : vector<8x256xf32>
    %149 = arith.fptosi %148 : vector<8x256xf32> to vector<8x256xi32>
    %150 = arith.addi %144, %149 : vector<8x256xi32>
    %cst_49 = arith.constant 0.000000e+00 : f32
    %151 = vector.broadcast %cst_49 : f32 to vector<256x256xf32>
    %152 = vector.extract_strided_slice %150 {offsets = [0, 0], sizes = [1, 256], strides = [1, 1]} : vector<8x256xi32> to vector<1x256xi32>
    %153 = vector.broadcast %152 : vector<1x256xi32> to vector<256x256xi32>
    %154 = arith.cmpi eq, %36, %153 : vector<256x256xi32>
    %155 = vector.extract_strided_slice %137 {offsets = [0, 0], sizes = [1, 256], strides = [1, 1]} : vector<8x256xf32> to vector<1x256xf32>
    %cst_50 = arith.constant 0.000000e+00 : f32
    %156 = vector.shape_cast %155 : vector<1x256xf32> to vector<1x256xf32>
    %157 = vector.broadcast %156 : vector<1x256xf32> to vector<256x256xf32>
    %158 = vector.broadcast %cst_50 : f32 to vector<256x256xf32>
    %159 = arith.select %154, %157, %158 : vector<256x256xi1>, vector<256x256xf32>
    %160 = arith.addf %151, %159 : vector<256x256xf32>
    %161 = vector.extract_strided_slice %150 {offsets = [1, 0], sizes = [1, 256], strides = [1, 1]} : vector<8x256xi32> to vector<1x256xi32>
    %162 = vector.broadcast %161 : vector<1x256xi32> to vector<256x256xi32>
    %163 = arith.cmpi eq, %36, %162 : vector<256x256xi32>
    %164 = vector.extract_strided_slice %137 {offsets = [1, 0], sizes = [1, 256], strides = [1, 1]} : vector<8x256xf32> to vector<1x256xf32>
    %cst_51 = arith.constant 0.000000e+00 : f32
    %165 = vector.shape_cast %164 : vector<1x256xf32> to vector<1x256xf32>
    %166 = vector.broadcast %165 : vector<1x256xf32> to vector<256x256xf32>
    %167 = vector.broadcast %cst_51 : f32 to vector<256x256xf32>
    %168 = arith.select %163, %166, %167 : vector<256x256xi1>, vector<256x256xf32>
    %169 = arith.addf %160, %168 : vector<256x256xf32>
    %170 = vector.extract_strided_slice %150 {offsets = [2, 0], sizes = [1, 256], strides = [1, 1]} : vector<8x256xi32> to vector<1x256xi32>
    %171 = vector.broadcast %170 : vector<1x256xi32> to vector<256x256xi32>
    %172 = arith.cmpi eq, %36, %171 : vector<256x256xi32>
    %173 = vector.extract_strided_slice %137 {offsets = [2, 0], sizes = [1, 256], strides = [1, 1]} : vector<8x256xf32> to vector<1x256xf32>
    %cst_52 = arith.constant 0.000000e+00 : f32
    %174 = vector.shape_cast %173 : vector<1x256xf32> to vector<1x256xf32>
    %175 = vector.broadcast %174 : vector<1x256xf32> to vector<256x256xf32>
    %176 = vector.broadcast %cst_52 : f32 to vector<256x256xf32>
    %177 = arith.select %172, %175, %176 : vector<256x256xi1>, vector<256x256xf32>
    %178 = arith.addf %169, %177 : vector<256x256xf32>
    %179 = vector.extract_strided_slice %150 {offsets = [3, 0], sizes = [1, 256], strides = [1, 1]} : vector<8x256xi32> to vector<1x256xi32>
    %180 = vector.broadcast %179 : vector<1x256xi32> to vector<256x256xi32>
    %181 = arith.cmpi eq, %36, %180 : vector<256x256xi32>
    %182 = vector.extract_strided_slice %137 {offsets = [3, 0], sizes = [1, 256], strides = [1, 1]} : vector<8x256xf32> to vector<1x256xf32>
    %cst_53 = arith.constant 0.000000e+00 : f32
    %183 = vector.shape_cast %182 : vector<1x256xf32> to vector<1x256xf32>
    %184 = vector.broadcast %183 : vector<1x256xf32> to vector<256x256xf32>
    %185 = vector.broadcast %cst_53 : f32 to vector<256x256xf32>
    %186 = arith.select %181, %184, %185 : vector<256x256xi1>, vector<256x256xf32>
    %187 = arith.addf %178, %186 : vector<256x256xf32>
    %cst_54 = arith.constant dense<0.000000e+00> : vector<8x256xf32>
    %188 = tpu.matmul %12, %187, %cst_54 {dimension_numbers = #tpu.dot_dimension_numbers<[1], [0], [0], [1], [0, 0, 1, 1], [], []>} : vector<8x256xf32>, vector<256x256xf32>, vector<8x256xf32> -> vector<8x256xf32>
    %189 = arith.addf %123, %188 : vector<8x256xf32>
    %cst_55 = arith.constant 0.000000e+00 : f32
    %190 = vector.broadcast %cst_55 : f32 to vector<8x256xf32>
    %191 = arith.cmpf oge, %32, %190 : vector<8x256xf32>
    %cst_56 = arith.constant 1.500000e+01 : f32
    %192 = vector.broadcast %cst_56 : f32 to vector<8x256xf32>
    %193 = arith.cmpf ole, %32, %192 : vector<8x256xf32>
    %194 = arith.andi %191, %193 : vector<8x256xi1>
    %cst_57 = arith.constant 0.000000e+00 : f32
    %195 = vector.broadcast %cst_57 : f32 to vector<8x256xf32>
    %196 = arith.cmpf oge, %49, %195 : vector<8x256xf32>
    %197 = arith.andi %194, %196 : vector<8x256xi1>
    %cst_58 = arith.constant 1.500000e+01 : f32
    %198 = vector.broadcast %cst_58 : f32 to vector<8x256xf32>
    %199 = arith.cmpf ole, %49, %198 : vector<8x256xf32>
    %200 = arith.andi %197, %199 : vector<8x256xi1>
    %201 = arith.mulf %52, %16 : vector<8x256xf32>
    %cst_59 = arith.constant 0.000000e+00 : f32
    %202 = vector.broadcast %cst_59 : f32 to vector<8x256xf32>
    %203 = arith.select %200, %201, %202 : vector<8x256xi1>, vector<8x256xf32>
    %cst_60 = arith.constant 0.000000e+00 : f32
    %cst_61 = arith.constant 1.500000e+01 : f32
    %204 = vector.broadcast %cst_60 : f32 to vector<8x256xf32>
    %205 = arith.maximumf %204, %49 : vector<8x256xf32>
    %206 = vector.broadcast %cst_61 : f32 to vector<8x256xf32>
    %207 = arith.minimumf %206, %205 : vector<8x256xf32>
    %208 = arith.fptosi %207 : vector<8x256xf32> to vector<8x256xi32>
    %c16_i32_62 = arith.constant 16 : i32
    %209 = vector.broadcast %c16_i32_62 : i32 to vector<8x256xi32>
    %210 = arith.muli %208, %209 : vector<8x256xi32>
    %cst_63 = arith.constant 0.000000e+00 : f32
    %cst_64 = arith.constant 1.500000e+01 : f32
    %211 = vector.broadcast %cst_63 : f32 to vector<8x256xf32>
    %212 = arith.maximumf %211, %32 : vector<8x256xf32>
    %213 = vector.broadcast %cst_64 : f32 to vector<8x256xf32>
    %214 = arith.minimumf %213, %212 : vector<8x256xf32>
    %215 = arith.fptosi %214 : vector<8x256xf32> to vector<8x256xi32>
    %216 = arith.addi %210, %215 : vector<8x256xi32>
    %cst_65 = arith.constant 0.000000e+00 : f32
    %217 = vector.broadcast %cst_65 : f32 to vector<256x256xf32>
    %218 = vector.extract_strided_slice %216 {offsets = [0, 0], sizes = [1, 256], strides = [1, 1]} : vector<8x256xi32> to vector<1x256xi32>
    %219 = vector.broadcast %218 : vector<1x256xi32> to vector<256x256xi32>
    %220 = arith.cmpi eq, %36, %219 : vector<256x256xi32>
    %221 = vector.extract_strided_slice %203 {offsets = [0, 0], sizes = [1, 256], strides = [1, 1]} : vector<8x256xf32> to vector<1x256xf32>
    %cst_66 = arith.constant 0.000000e+00 : f32
    %222 = vector.shape_cast %221 : vector<1x256xf32> to vector<1x256xf32>
    %223 = vector.broadcast %222 : vector<1x256xf32> to vector<256x256xf32>
    %224 = vector.broadcast %cst_66 : f32 to vector<256x256xf32>
    %225 = arith.select %220, %223, %224 : vector<256x256xi1>, vector<256x256xf32>
    %226 = arith.addf %217, %225 : vector<256x256xf32>
    %227 = vector.extract_strided_slice %216 {offsets = [1, 0], sizes = [1, 256], strides = [1, 1]} : vector<8x256xi32> to vector<1x256xi32>
    %228 = vector.broadcast %227 : vector<1x256xi32> to vector<256x256xi32>
    %229 = arith.cmpi eq, %36, %228 : vector<256x256xi32>
    %230 = vector.extract_strided_slice %203 {offsets = [1, 0], sizes = [1, 256], strides = [1, 1]} : vector<8x256xf32> to vector<1x256xf32>
    %cst_67 = arith.constant 0.000000e+00 : f32
    %231 = vector.shape_cast %230 : vector<1x256xf32> to vector<1x256xf32>
    %232 = vector.broadcast %231 : vector<1x256xf32> to vector<256x256xf32>
    %233 = vector.broadcast %cst_67 : f32 to vector<256x256xf32>
    %234 = arith.select %229, %232, %233 : vector<256x256xi1>, vector<256x256xf32>
    %235 = arith.addf %226, %234 : vector<256x256xf32>
    %236 = vector.extract_strided_slice %216 {offsets = [2, 0], sizes = [1, 256], strides = [1, 1]} : vector<8x256xi32> to vector<1x256xi32>
    %237 = vector.broadcast %236 : vector<1x256xi32> to vector<256x256xi32>
    %238 = arith.cmpi eq, %36, %237 : vector<256x256xi32>
    %239 = vector.extract_strided_slice %203 {offsets = [2, 0], sizes = [1, 256], strides = [1, 1]} : vector<8x256xf32> to vector<1x256xf32>
    %cst_68 = arith.constant 0.000000e+00 : f32
    %240 = vector.shape_cast %239 : vector<1x256xf32> to vector<1x256xf32>
    %241 = vector.broadcast %240 : vector<1x256xf32> to vector<256x256xf32>
    %242 = vector.broadcast %cst_68 : f32 to vector<256x256xf32>
    %243 = arith.select %238, %241, %242 : vector<256x256xi1>, vector<256x256xf32>
    %244 = arith.addf %235, %243 : vector<256x256xf32>
    %245 = vector.extract_strided_slice %216 {offsets = [3, 0], sizes = [1, 256], strides = [1, 1]} : vector<8x256xi32> to vector<1x256xi32>
    %246 = vector.broadcast %245 : vector<1x256xi32> to vector<256x256xi32>
    %247 = arith.cmpi eq, %36, %246 : vector<256x256xi32>
    %248 = vector.extract_strided_slice %203 {offsets = [3, 0], sizes = [1, 256], strides = [1, 1]} : vector<8x256xf32> to vector<1x256xf32>
    %cst_69 = arith.constant 0.000000e+00 : f32
    %249 = vector.shape_cast %248 : vector<1x256xf32> to vector<1x256xf32>
    %250 = vector.broadcast %249 : vector<1x256xf32> to vector<256x256xf32>
    %251 = vector.broadcast %cst_69 : f32 to vector<256x256xf32>
    %252 = arith.select %247, %250, %251 : vector<256x256xi1>, vector<256x256xf32>
    %253 = arith.addf %244, %252 : vector<256x256xf32>
    %cst_70 = arith.constant dense<0.000000e+00> : vector<8x256xf32>
    %254 = tpu.matmul %12, %253, %cst_70 {dimension_numbers = #tpu.dot_dimension_numbers<[1], [0], [0], [1], [0, 0, 1, 1], [], []>} : vector<8x256xf32>, vector<256x256xf32>, vector<8x256xf32> -> vector<8x256xf32>
    %255 = arith.addf %189, %254 : vector<8x256xf32>
    %cst_71 = arith.constant 0.000000e+00 : f32
    %256 = vector.broadcast %cst_71 : f32 to vector<8x256xf32>
    %257 = arith.cmpf oge, %54, %256 : vector<8x256xf32>
    %cst_72 = arith.constant 1.500000e+01 : f32
    %258 = vector.broadcast %cst_72 : f32 to vector<8x256xf32>
    %259 = arith.cmpf ole, %54, %258 : vector<8x256xf32>
    %260 = arith.andi %257, %259 : vector<8x256xi1>
    %cst_73 = arith.constant 0.000000e+00 : f32
    %261 = vector.broadcast %cst_73 : f32 to vector<8x256xf32>
    %262 = arith.cmpf oge, %56, %261 : vector<8x256xf32>
    %263 = arith.andi %260, %262 : vector<8x256xi1>
    %cst_74 = arith.constant 1.500000e+01 : f32
    %264 = vector.broadcast %cst_74 : f32 to vector<8x256xf32>
    %265 = arith.cmpf ole, %56, %264 : vector<8x256xf32>
    %266 = arith.andi %263, %265 : vector<8x256xi1>
    %267 = arith.mulf %57, %16 : vector<8x256xf32>
    %cst_75 = arith.constant 0.000000e+00 : f32
    %268 = vector.broadcast %cst_75 : f32 to vector<8x256xf32>
    %269 = arith.select %266, %267, %268 : vector<8x256xi1>, vector<8x256xf32>
    %cst_76 = arith.constant 0.000000e+00 : f32
    %cst_77 = arith.constant 1.500000e+01 : f32
    %270 = vector.broadcast %cst_76 : f32 to vector<8x256xf32>
    %271 = arith.maximumf %270, %56 : vector<8x256xf32>
    %272 = vector.broadcast %cst_77 : f32 to vector<8x256xf32>
    %273 = arith.minimumf %272, %271 : vector<8x256xf32>
    %274 = arith.fptosi %273 : vector<8x256xf32> to vector<8x256xi32>
    %c16_i32_78 = arith.constant 16 : i32
    %275 = vector.broadcast %c16_i32_78 : i32 to vector<8x256xi32>
    %276 = arith.muli %274, %275 : vector<8x256xi32>
    %cst_79 = arith.constant 0.000000e+00 : f32
    %cst_80 = arith.constant 1.500000e+01 : f32
    %277 = vector.broadcast %cst_79 : f32 to vector<8x256xf32>
    %278 = arith.maximumf %277, %54 : vector<8x256xf32>
    %279 = vector.broadcast %cst_80 : f32 to vector<8x256xf32>
    %280 = arith.minimumf %279, %278 : vector<8x256xf32>
    %281 = arith.fptosi %280 : vector<8x256xf32> to vector<8x256xi32>
    %282 = arith.addi %276, %281 : vector<8x256xi32>
    %cst_81 = arith.constant 0.000000e+00 : f32
    %283 = vector.broadcast %cst_81 : f32 to vector<256x256xf32>
    %284 = vector.extract_strided_slice %282 {offsets = [0, 0], sizes = [1, 256], strides = [1, 1]} : vector<8x256xi32> to vector<1x256xi32>
    %285 = vector.broadcast %284 : vector<1x256xi32> to vector<256x256xi32>
    %286 = arith.cmpi eq, %36, %285 : vector<256x256xi32>
    %287 = vector.extract_strided_slice %269 {offsets = [0, 0], sizes = [1, 256], strides = [1, 1]} : vector<8x256xf32> to vector<1x256xf32>
    %cst_82 = arith.constant 0.000000e+00 : f32
    %288 = vector.shape_cast %287 : vector<1x256xf32> to vector<1x256xf32>
    %289 = vector.broadcast %288 : vector<1x256xf32> to vector<256x256xf32>
    %290 = vector.broadcast %cst_82 : f32 to vector<256x256xf32>
    %291 = arith.select %286, %289, %290 : vector<256x256xi1>, vector<256x256xf32>
    %292 = arith.addf %283, %291 : vector<256x256xf32>
    %293 = vector.extract_strided_slice %282 {offsets = [1, 0], sizes = [1, 256], strides = [1, 1]} : vector<8x256xi32> to vector<1x256xi32>
    %294 = vector.broadcast %293 : vector<1x256xi32> to vector<256x256xi32>
    %295 = arith.cmpi eq, %36, %294 : vector<256x256xi32>
    %296 = vector.extract_strided_slice %269 {offsets = [1, 0], sizes = [1, 256], strides = [1, 1]} : vector<8x256xf32> to vector<1x256xf32>
    %cst_83 = arith.constant 0.000000e+00 : f32
    %297 = vector.shape_cast %296 : vector<1x256xf32> to vector<1x256xf32>
    %298 = vector.broadcast %297 : vector<1x256xf32> to vector<256x256xf32>
    %299 = vector.broadcast %cst_83 : f32 to vector<256x256xf32>
    %300 = arith.select %295, %298, %299 : vector<256x256xi1>, vector<256x256xf32>
    %301 = arith.addf %292, %300 : vector<256x256xf32>
    %302 = vector.extract_strided_slice %282 {offsets = [2, 0], sizes = [1, 256], strides = [1, 1]} : vector<8x256xi32> to vector<1x256xi32>
    %303 = vector.broadcast %302 : vector<1x256xi32> to vector<256x256xi32>
    %304 = arith.cmpi eq, %36, %303 : vector<256x256xi32>
    %305 = vector.extract_strided_slice %269 {offsets = [2, 0], sizes = [1, 256], strides = [1, 1]} : vector<8x256xf32> to vector<1x256xf32>
    %cst_84 = arith.constant 0.000000e+00 : f32
    %306 = vector.shape_cast %305 : vector<1x256xf32> to vector<1x256xf32>
    %307 = vector.broadcast %306 : vector<1x256xf32> to vector<256x256xf32>
    %308 = vector.broadcast %cst_84 : f32 to vector<256x256xf32>
    %309 = arith.select %304, %307, %308 : vector<256x256xi1>, vector<256x256xf32>
    %310 = arith.addf %301, %309 : vector<256x256xf32>
    %311 = vector.extract_strided_slice %282 {offsets = [3, 0], sizes = [1, 256], strides = [1, 1]} : vector<8x256xi32> to vector<1x256xi32>
    %312 = vector.broadcast %311 : vector<1x256xi32> to vector<256x256xi32>
    %313 = arith.cmpi eq, %36, %312 : vector<256x256xi32>
    %314 = vector.extract_strided_slice %269 {offsets = [3, 0], sizes = [1, 256], strides = [1, 1]} : vector<8x256xf32> to vector<1x256xf32>
    %cst_85 = arith.constant 0.000000e+00 : f32
    %315 = vector.shape_cast %314 : vector<1x256xf32> to vector<1x256xf32>
    %316 = vector.broadcast %315 : vector<1x256xf32> to vector<256x256xf32>
    %317 = vector.broadcast %cst_85 : f32 to vector<256x256xf32>
    %318 = arith.select %313, %316, %317 : vector<256x256xi1>, vector<256x256xf32>
    %319 = arith.addf %310, %318 : vector<256x256xf32>
    %cst_86 = arith.constant dense<0.000000e+00> : vector<8x256xf32>
    %320 = tpu.matmul %12, %319, %cst_86 {dimension_numbers = #tpu.dot_dimension_numbers<[1], [0], [0], [1], [0, 0, 1, 1], [], []>} : vector<8x256xf32>, vector<256x256xf32>, vector<8x256xf32> -> vector<8x256xf32>
    %321 = arith.addf %255, %320 : vector<8x256xf32>
    %c0_87 = arith.constant 0 : index
    %c0_88 = arith.constant 0 : index
    %322 = vector.load %arg10[%c0_87, %c0_88] : memref<16x256xf32, #tpu.memory_space<vmem>>, vector<16x256xf32>
    %c0_89 = arith.constant 0 : index
    %c0_90 = arith.constant 0 : index
    %c0_91 = arith.constant 0 : index
    %323 = vector.load %arg7[%c0_89, %c0_90, %c0_91] : memref<1x16x8xf32, #tpu.memory_space<vmem>>, vector<1x16x8xf32>
    %324 = vector.shape_cast %323 : vector<1x16x8xf32> to vector<16x8xf32>
    %cst_92 = arith.constant dense<0.000000e+00> : vector<16x256xf32>
    %325 = tpu.matmul %324, %321, %cst_92 {dimension_numbers = #tpu.dot_dimension_numbers<[1], [0], [0], [1], [0, 0, 1, 1], [], []>} : vector<16x8xf32>, vector<8x256xf32>, vector<16x256xf32> -> vector<16x256xf32>
    %326 = arith.addf %322, %325 : vector<16x256xf32>
    %c0_93 = arith.constant 0 : index
    %c0_94 = arith.constant 0 : index
    %327 = vector.load %arg10[%c0_93, %c0_94] : memref<16x256xf32, #tpu.memory_space<vmem>>, vector<16x256xf32>
    tpu.vector_store %arg10[%c0_93, %c0_94], %326 {strides = array<i32>} : memref<16x256xf32, #tpu.memory_space<vmem>>, vector<16x256xf32>,
    %c3_i32 = arith.constant 3 : i32
    %328 = arith.cmpi eq, %arg1, %c3_i32 : i32
    %329 = arith.extui %328 : i1 to i32
    %c0_i32_95 = arith.constant 0 : i32
    %330 = arith.cmpi ne, %329, %c0_i32_95 : i32
    scf.if %330 {
      %c0_96 = arith.constant 0 : index
      %c0_97 = arith.constant 0 : index
      %331 = vector.load %arg10[%c0_96, %c0_97] : memref<16x256xf32, #tpu.memory_space<vmem>>, vector<16x256xf32>
      %c0_98 = arith.constant 0 : index
      %c0_99 = arith.constant 0 : index
      %332 = vector.load %arg8[%c0_98, %c0_99] : memref<16x1xf32, #tpu.memory_space<vmem>>, vector<16x1xf32>
      %333 = vector.broadcast %332 : vector<16x1xf32> to vector<16x256xf32>
      %334 = arith.addf %331, %333 : vector<16x256xf32>
      %c0_100 = arith.constant 0 : index
      %c0_101 = arith.constant 0 : index
      %c0_102 = arith.constant 0 : index
      %335 = vector.load %arg9[%c0_100, %c0_101, %c0_102] : memref<1x16x256xf32, #tpu.memory_space<vmem>>, vector<1x16x256xf32>
      %336 = vector.shape_cast %335 : vector<1x16x256xf32> to vector<16x256xf32>
      %337 = vector.shape_cast %334 : vector<16x256xf32> to vector<1x16x256xf32>
      tpu.vector_store %arg9[%c0_100, %c0_101, %c0_102], %337 {strides = array<i32>} : memref<1x16x256xf32, #tpu.memory_space<vmem>>, vector<1x16x256xf32>,
    } else {
    }
    return
  }
  func.func @transform_0(%arg0: i32, %arg1: i32) -> (i32, i32, i32) {
    %c0_i32 = arith.constant 0 : i32
    %c0_i32_0 = arith.constant 0 : i32
    %c0_i32_1 = arith.constant 0 : i32
    return %arg1, %c0_i32, %c0_i32_0 : i32, i32, i32
  }
  func.func @transform_1(%arg0: i32, %arg1: i32) -> (i32, i32, i32) {
    %c0_i32 = arith.constant 0 : i32
    %c0_i32_0 = arith.constant 0 : i32
    %c0_i32_1 = arith.constant 0 : i32
    return %arg1, %c0_i32, %c0_i32_0 : i32, i32, i32
  }
  func.func @transform_2(%arg0: i32, %arg1: i32) -> (i32, i32, i32) {
    %c0_i32 = arith.constant 0 : i32
    %c0_i32_0 = arith.constant 0 : i32
    %c0_i32_1 = arith.constant 0 : i32
    return %arg0, %c0_i32, %c0_i32_0 : i32, i32, i32
  }
  func.func @transform_3(%arg0: i32, %arg1: i32) -> (i32, i32) {
    %c0_i32 = arith.constant 0 : i32
    %c0_i32_0 = arith.constant 0 : i32
    %c0_i32_1 = arith.constant 0 : i32
    return %c0_i32, %c0_i32_0 : i32, i32
  }
  func.func @transform_4(%arg0: i32, %arg1: i32) -> (i32, i32) {
    %c0_i32 = arith.constant 0 : i32
    %c0_i32_0 = arith.constant 0 : i32
    %c0_i32_1 = arith.constant 0 : i32
    return %c0_i32, %c0_i32_0 : i32, i32
  }
  func.func @transform_5(%arg0: i32, %arg1: i32) -> (i32, i32, i32) {
    %c0_i32 = arith.constant 0 : i32
    %c0_i32_0 = arith.constant 0 : i32
    %c0_i32_1 = arith.constant 0 : i32
    return %arg1, %c0_i32, %c0_i32_0 : i32, i32, i32
  }
  func.func @transform_6(%arg0: i32, %arg1: i32) -> (i32, i32) {
    %c0_i32 = arith.constant 0 : i32
    %c0_i32_0 = arith.constant 0 : i32
    %c0_i32_1 = arith.constant 0 : i32
    return %c0_i32, %c0_i32_0 : i32, i32
  }
  func.func @transform_7(%arg0: i32, %arg1: i32) -> (i32, i32, i32) {
    %c0_i32 = arith.constant 0 : i32
    %c0_i32_0 = arith.constant 0 : i32
    %c0_i32_1 = arith.constant 0 : i32
    return %arg0, %c0_i32, %c0_i32_0 : i32, i32, i32
  }
}

</mosaic_0001>

<bundles_post_ra>
// kernel: multiscale_dcn_forward.1
= control target key start
LH: loop header
LB: loop body
LE: loop exit
PB: predicated region body
PF: predicated region fallthrough
CT: control target
= control target key end

     0   :  { %s4995_s24 = smov 0   ;;  %s4997_s25 = smov 0   ;;  %s8627_s0 = inlined_call_operand.vmem [shape: f32[4,40,16], index: 0, kind: input, shape index: {}]   ;;  %s8628_s1 = inlined_call_operand.vmem [shape: f32[4,40,1], index: 1, kind: input, shape index: {}]   ;;  %s8629_s2 = inlined_call_operand.vmem [shape: f32[2,16,256], index: 2, kind: input, shape index: {}]   ;;  %s8630_s3 = inlined_call_operand.vmem [shape: f32[1,256], index: 3, kind: input, shape index: {}]   ;;  %s8631_s4 = inlined_call_operand.vmem [shape: f32[1,256], index: 4, kind: input, shape index: {}]   ;;  %s8632_s5 = inlined_call_operand.vmem [shape: f32[4,16,8], index: 5, kind: input, shape index: {}]   ;;  %s8633_s6 = inlined_call_operand.vmem [shape: f32[16,1], index: 6, kind: input, shape index: {}]   ;;  %s8634_s7 = inlined_call_operand.vmem [shape: f32[2,16,256], index: 7, kind: output, shape index: {}]  }
   0x1   :  { %s4999_s26 = smov 0   ;;  %s5001_s27 = smov 0  }
   0x2   :  { %s5003_s28 = smov 0  }
   0x3 LB: > { %s26_s29 = sadd.s32 1, %s4941_s26  ;;  %s29_s30 = sadd.s32 1, %s4945_s27  ;;  %s4949_s28 = sphi %s5003_s28, %s17_s28   ;;  %s4945_s27 = sphi %s5001_s27, %s8809_s27   ;;  %s4941_s26 = sphi %s4999_s26, %s8808_s26   ;;  %s4937_s25 = sphi %s4997_s25, %s8807_s25   ;;  %s4933_s24 = sphi %s4995_s24, %s8806_s24  }
   0x4   : > { %p27_p0 = scmp.ge.s32.totalorder %s26_s29, 4  ;;  %p4548_p1 = scmp.ge.s32.totalorder %s4949_s28, 1 }
   0x5   : > { %p279_p2 = scmp.lt.s32.totalorder %s4949_s28, 9 }
   0x6   : > { %s8811_s29 = smov (%p27_p0, %s26_s29), 0  ;;  %s8813_s30 = smov (!%p27_p0, %s29_s30), %s4945_s27 }
   0x7   : > { %p280_p3 = pnand %p4548_p1, %p279_p2  ;;  %p31_p4 = scmp.ge.s32.totalorder %s8813_s30, 2 }
   0x9   : > { %s8815_s30 = smov (%p31_p4, %s8813_s30), 0  ;;  %283 = sbr.rel (%p280_p3) target bundleno = 1532 (0x5fc), region = 48 }
  0x10   : > { %p326_p5 = scmp.lt.s32.totalorder %s4933_s24, 3  ;;  %p336_p6 = scmp.lt.s32.totalorder %s4937_s25, 1 }
  0x11   : > { %p4557_p7 = scmp.ne.s32.totalorder %s4933_s24, 0 }
  0x12   : > { %s327_s8 = scalar_select %p326_p5, %s4933_s24, 3 }
  0x13   : > { %s8817_s25 = smov (!%p336_p6, %s4937_s25), 1  ;;  %354 = sbr.rel (%p4557_p7) target bundleno = 26 (0x1a), region = 52 }
  0x14   : > { %s4839_s9 = smul.u32 40, %s327_s8  ;;  %s4571_s10 = sshll.u32 %s327_s8, 4  ;;  %v4951_v0 = vmov (!%p4557_p7), 0.0  }
  0x15   : > { %s4570_s11 = sshll.u32 %s8817_s25, 5  ;;  %s5032_s14 = scalar_lea.vmem %s8632_s5, %s4571_s10  ;;  %355 = vst [vmem:[#allocation2] sm:$0xff] (!%p4557_p7), %v4951_v0  ;;  %356 = vst [vmem:[#allocation2 + $0x8] sm:$0xff] (!%p4557_p7), %v4951_v0 }
  0x16   : > { %s5037_s17 = scalar_lea.vmem %s8627_s0, %s4839_s9  ;;  %s5042_s20 = scalar_lea.vmem %s8628_s1, %s4839_s9  ;;  %357 = vst [vmem:[#allocation2 + $0x10] sm:$0xff] (!%p4557_p7), %v4951_v0  ;;  %358 = vst [vmem:[#allocation2 + $0x18] sm:$0xff] (!%p4557_p7), %v4951_v0 }
  0x17   : > { %s340_s23 = scalar_lea.vmem %s8629_s2, %s4570_s11  ;;  %s5050_s12 = scalar_lea.vmem %s8634_s7, %s4570_s11 }
  0x1a PF: > { %v365_v1 = vld [vmem:[%s340_s23 + $0x8] sm:$0xff]  ;;  %v367_v2 = vld [vmem:[%s340_s23 + $0x18] sm:$0xff]  ;;  %v364_v3 = vld [vmem:[%s340_s23] sm:$0xff]  ;;  %v8635_v6 = vmov 0.0   ;;  %v4953_v7 = vmov 0   ;;  %vm398_vm0 = vcmask 130048   ;;  %v528_v41 = vlaneseq }
  0x1b   : > { %v4573_v4 = vpack.c.bf16 %v367_v2, %v365_v1  ;;  %v366_v5 = vld [vmem:[%s340_s23 + $0x10] sm:$0xff]  ;;  %478 = vmatprep.mubr.f32.mxu1 %v8635_v6  ;;  %4900 = vset.pattern.permute.xlu0 %v4953_v7  ;;  %v371_v9 = vld [vmem:[%s5042_s20 + $0x18] sm:$0xff]  ;;  %v359_v10 = vld [vmem:[%s5037_s17] sm:$0xff]  ;;  %p4567_p8 = scmp.ne.s32.totalorder %s4933_s24, 3 }
  0x1c   : > { %v4575_v8 = vpack.c.bf16 %v366_v5, %v364_v3  ;;  %4901 = vset.pattern.permute.xlu1 %v4953_v7  ;;  %390 = vperm.xlu0 %4900, %v371_v9   ;;  %v369_v11 = vld [vmem:[%s5042_s20 + $0x8] sm:$0xff]  ;;  %v370_v12 = vld [vmem:[%s5042_s20 + $0x10] sm:$0xff]  ;;  %v372_v13 = vld [vmem:[%s5042_s20 + $0x20] sm:$0xff]  ;;  %v5079_v43 = vshrl.u32 %v528_v41, 7 }
  0x1d   : > { %4574 = vmatprep.subr.bf16.mxu1 %v4573_v4  ;;  %380 = vperm.xlu1 %4901, %v369_v11   ;;  %v360_v14 = vld [vmem:[%s5037_s17 + $0x8] sm:$0xff]  ;;  %v368_v15 = vld [vmem:[%s5042_s20] sm:$0xff]  ;;  %v361_v16 = vld [vmem:[%s5037_s17 + $0x10] sm:$0xff] }
  0x1e   : > { %4576 = vmatpush1.bf16.msra.mxu1 %v4575_v8  ;;  %v362_v17 = vld [vmem:[%s5037_s17 + $0x18] sm:$0xff]  ;;  %v363_v18 = vld [vmem:[%s5037_s17 + $0x20] sm:$0xff]  ;;  %v5082_v44 = vsub.s32 0, %v5079_v43  ;;  %v5085_v45 = vsub.s32 1, %v5079_v43  ;;  %v5098_v61 = vsub.s32 2, %v5079_v43  ;;  %v5101_v0 = vsub.s32 3, %v5079_v43 }
  0x1f   : > { %v523_v46 = vld [vmem:[%s8630_s3] sm:$0x3]  ;;  %v5104_v2 = vadd.s32 8, %v5079_v43  ;;  %v5107_v5 = vadd.s32 16, %v5079_v43  ;;  %v5110_v7 = vadd.s32 24, %v5079_v43  ;;  %v5116_v11 = vadd.s32 40, %v5079_v43 }
  0x20   : > { %385 = vperm.xlu0 %4900, %v370_v12   ;;  %v524_v47 = vld [vmem:[%s8631_s4] sm:$0x3]  ;;  %v531_v50 = vrot.slane %v523_v46, %v5082_v44  ;;  %v535_v52 = vrot.slane %v523_v46, %v5085_v45 }
  0x21   : > { %4558 = vmatmul.mubr.msk.f32.vlgmr.msra.gmra.mrb[0].mxu1 %vm398_vm0, %v359_v10  ;;  %395 = vperm.xlu1 %4901, %v372_v13   ;;  %v546_v51 = vrot.slane %v524_v47, %v5082_v44  ;;  %v550_v57 = vrot.slane %v524_v47, %v5085_v45  ;;  %v5113_v10 = vadd.s32 32, %v5079_v43 }
  0x22   : > { %484 = vmatprep.mubr.f32.mxu1 %v8635_v6 }
  0x24   : > { %375 = vperm.xlu0 %4900, %v368_v15  }
  0x25   : > { %4559 = vmatmul.mubr.msk.f32.gmra.mrb[2].mxu1 %vm398_vm0, %v360_v14 }
  0x26   : > { %490 = vmatprep.mubr.f32.mxu1 %v8635_v6 }
  0x29   : > { %4560 = vmatmul.mubr.msk.f32.gmra.mrb[4].mxu1 %vm398_vm0, %v361_v16 }
  0x2a   : > { %496 = vmatprep.mubr.f32.mxu1 %v8635_v6 }
  0x2d   : > { %4561 = vmatmul.mubr.msk.f32.gmra.mrb[6].mxu1 %vm398_vm0, %v362_v17 }
  0x2e   : > { %502 = vmatprep.mubr.f32.mxu1 %v8635_v6 }
  0x31   : > { %4562 = vmatmul.mubr.msk.f32.gmra.mrb[8].mxu1 %vm398_vm0, %v363_v18  ;;  %v5125_v18 = vadd.s32 48, %v5079_v43 }
  0x9b   : > { %v391_v19 = vpop.permute.xlu0 %390 }
  0x9c   : > { %v381_v48 = vpop.permute.xlu1 %380 }
  0x9f   : > { %v386_v20 = vpop.permute.xlu0 %385 }
  0xa0   : > { %v396_v1 = vpop.permute.xlu1 %395 }
  0xa3   : > { %v376_v21 = vpop.permute.xlu0 %375 }
  0xf4   : > { %v480_v22 = vpop.f32.mrb[0].mxu1 }
  0xf5   : > { %v5073_v23 = vadd.f32 %v480_v22, %v376_v21  ;;  %v482_v24 = vpop.f32.mrb[1].mxu1  ;;  %v5135_v22 = vadd.s32 64, %v5079_v43 }
  0xf6   : > { %v5075_v25 = vadd.f32 %v482_v24, %v376_v21  ;;  %v5138_v24 = vadd.s32 72, %v5079_v43 }
  0xf7   : > { %8702 = vst [vmem:[#allocation3_spill] sm:$0xff] %v5073_v23 }
  0xf8   : > { %8703 = vst [vmem:[#allocation4_spill] sm:$0xff] %v5075_v25  ;;  %v486_v26 = vpop.f32.mrb[2].mxu1  ;;  %2396 = vmatprep.mubr.f32.mxu0 %v5075_v25  ;;  %3392 = vmatprep.mubr.f32.mxu1 %v5075_v25 }
  0xf9   : > { %v488_v27 = vpop.f32.mrb[3].mxu1  ;;  %v487_v54 = vadd.f32 %v486_v26, %v381_v48 }
  0xfa   : > { %v489_v58 = vadd.f32 %v488_v27, %v381_v48 }
  0xfc   : > { %v492_v28 = vpop.f32.mrb[4].mxu1 }
  0xfd   : > { %v494_v29 = vpop.f32.mrb[5].mxu1  ;;  %v493_v55 = vadd.f32 %v492_v28, %v386_v20 }
  0xfe   : > { %v495_v59 = vadd.f32 %v494_v29, %v386_v20 }
 0x100   : > { %v498_v30 = vpop.f32.mrb[6].mxu1 }
 0x101   : > { %v499_v31 = vadd.f32 %v498_v30, %v391_v19  ;;  %v500_v32 = vpop.f32.mrb[7].mxu1 }
 0x102   : > { %v501_v33 = vadd.f32 %v500_v32, %v391_v19  ;;  %v5128_v19 = vadd.s32 56, %v5079_v43 }
 0x103   : > { %v4563_v34 = vmul.f32 -1.442695, %v499_v31 }
 0x104   : > { %v4564_v35 = vmul.f32 -1.442695, %v501_v33  ;;  %v504_v36 = vpop.f32.mrb[8].mxu1 }
 0x105   : > { %4902 = vpow2.f32 %v4563_v34  ;;  %v506_v37 = vpop.f32.mrb[9].mxu1  ;;  %v5118_v14 = vadd.f32 %v504_v36, %v396_v1 }
 0x106   : > { %4904 = vpow2.f32 %v4564_v35  ;;  %v5120_v15 = vadd.f32 %v506_v37, %v396_v1 }
 0x10f   : > { %v4903_v38 = vpop.eup %4902 }
 0x110   : > { %v4905_v39 = vpop.eup %4904  ;;  %v515_v40 = vadd.f32 1.0, %v4903_v38 }
 0x111   : > { %v516_v42 = vadd.f32 1.0, %v4905_v39 }
 0x112   : > { %4906 = vrcp.f32 %v515_v40 }
 0x113   : > { %4908 = vrcp.f32 %v516_v42 }
 0x11c   : > { %v4907_v49 = vpop.eup %4906 }
 0x11d   : > { %v4909_v53 = vpop.eup %4908  ;;  %v521_v56 = vmul.f32 6.0, %v4907_v49 }
 0x11e   : > { %v522_v60 = vmul.f32 6.0, %v4909_v53 }
 0x11f   : > { %v525_v62 = vmul.f32 %v521_v56, %v487_v54  ;;  %v540_v63 = vmul.f32 %v521_v56, %v493_v55 }
 0x120   : > { %v526_v3 = vmul.f32 %v522_v60, %v489_v58  ;;  %v541_v4 = vmul.f32 %v522_v60, %v495_v59 }
 0x121   : > { %v538_v8 = vadd.f32 %v531_v50, %v525_v62  ;;  %v553_v9 = vadd.f32 %v546_v51, %v540_v63 }
 0x122   : > { %v539_v12 = vadd.f32 %v535_v52, %v526_v3  ;;  %v554_v13 = vadd.f32 %v550_v57, %v541_v4 }
 0x123   : > { %v555_v16 = vfloor.f32 %v538_v8  ;;  %v5122_v17 = vfloor.f32 %v553_v9 }
 0x124   : > { %v5130_v20 = vfloor.f32 %v539_v12  ;;  %v5132_v21 = vfloor.f32 %v554_v13 }
 0x125   : > { %v559_v26 = vsub.f32 %v538_v8, %v555_v16  ;;  %v561_v27 = vsub.f32 %v553_v9, %v5122_v17  ;;  %v630_v28 = vmax.f32 %v5122_v17, 0.0  ;;  %v638_v29 = vmax.f32 %v555_v16, 0.0 }
 0x126   : > { %v5143_v30 = vsub.f32 %v539_v12, %v5130_v20  ;;  %v5146_v31 = vsub.f32 %v554_v13, %v5132_v21  ;;  %v631_v32 = vmax.f32 %v5132_v21, 0.0  ;;  %v639_v33 = vmax.f32 %v5130_v20, 0.0 }
 0x127   : > { %v632_v34 = vmin.f32 %v630_v28, 15.0  ;;  %v640_v35 = vmin.f32 %v638_v29, 15.0  ;;  %v596_v36 = vsub.f32 1.0, %v559_v26  ;;  %v598_v37 = vsub.f32 1.0, %v561_v27 }
 0x128   : > { %v633_v38 = vmin.f32 %v631_v32, 15.0  ;;  %v5150_v39 = vmin.f32 %v639_v33, 15.0  ;;  %v602_v40 = vadd.f32 1.0, %v555_v16  ;;  %v606_v41 = vadd.f32 1.0, %v5122_v17 }
 0x129   : > { %v4840_v42 = vtrunc.f32 %v632_v34  ;;  %v4844_v46 = vtrunc.f32 %v640_v35  ;;  %v600_v47 = vmul.f32 %v598_v37, %v596_v36  ;;  %v604_v48 = vmul.f32 %v598_v37, %v559_v26 }
 0x12a   : > { %v4842_v49 = vtrunc.f32 %v633_v38  ;;  %v4846_v50 = vtrunc.f32 %v5150_v39  ;;  %v608_v51 = vmul.f32 %v596_v36, %v561_v27  ;;  %v610_v52 = vmul.f32 %v561_v27, %v559_v26 }
 0x12b   : > { %v5154_v53 = vcvt.f32.s32 %v4840_v42  ;;  %vm612_vm1 = vcmp.ge.f32.partialorder %v555_v16, 0.0  ;;  %vm614_vm2 = vcmp.le.f32.partialorder %v555_v16, 15.0  ;;  %vm618_vm3 = vcmp.ge.f32.partialorder %v5122_v17, 0.0 }
 0x12c   : > { %v5157_v54 = vcvt.f32.s32 %v4842_v49  ;;  %vm5159_vm4 = vmand %vm612_vm1, %vm614_vm2  ;;  %vm622_vm5 = vcmp.le.f32.partialorder %v5122_v17, 15.0  ;;  %v626_v56 = vmul.f32 %v600_v47, %v5118_v14  ;;  %v5165_v57 = vcvt.f32.s32 %v4844_v46 }
 0x12d   : > { %v636_v58 = vmul.u32 16, %v5154_v53  ;;  %vm620_vm6 = vmand %vm5159_vm4, %vm618_vm3  ;;  %vm1478_vm7 = vcmp.ge.f32.partialorder %v602_v40, 0.0  ;;  %vm1480_vm8 = vcmp.le.f32.partialorder %v602_v40, 15.0  ;;  %v1488_v59 = vmul.f32 %v604_v48, %v5118_v14 }
 0x12e   : > { %v8639_v60 = vmul.u32 16, %v5157_v54  ;;  %vm624_vm9 = vmand %vm620_vm6, %vm622_vm5  ;;  %v1492_v62 = vmax.f32 %v602_v40, 0.0  ;;  %vm2474_vm10 = vcmp.ge.f32.partialorder %v606_v41, 0.0  ;;  %vm2478_vm11 = vcmp.le.f32.partialorder %v606_v41, 15.0 }
 0x12f   : > { %v628_v63 = vsel %vm624_vm9, %v626_v56, 0.0  ;;  %v644_v1 = vadd.s32 %v5165_v57, %v636_v58  ;;  %vm5177_vm12 = vmand %vm1478_vm7, %vm1480_vm8  ;;  %v2482_v4 = vmul.f32 %v608_v51, %v5118_v14  ;;  %v2486_v8 = vmax.f32 %v606_v41, 0.0 }
 0x130   : > { %v5183_v9 = vrot.slane %v628_v63, %v5082_v44  ;;  %v5186_v12 = vrot.slane %v628_v63, %v5085_v45  ;;  %v5189_v13 = vrot.slane %v628_v63, %v5098_v61  ;;  %v5192_v16 = vrot.slane %v628_v63, %v5101_v0  ;;  %vm1484_vm13 = vmand %vm5177_vm12, %vm618_vm3 }
 0x131   : > { %v5199_v26 = vrot.slane %v644_v1, %v5082_v44  ;;  %v5202_v27 = vrot.slane %v644_v1, %v5085_v45  ;;  %v5205_v28 = vrot.slane %v644_v1, %v5098_v61  ;;  %v5208_v29 = vrot.slane %v644_v1, %v5101_v0  ;;  %vm1486_vm14 = vmand %vm1484_vm13, %vm622_vm5 }
 0x132   : > { %8708 = vst [vmem:[#allocation5_spill] sm:$0xff] %v5183_v9  ;;  %8709 = vst [vmem:[#allocation6_spill] sm:$0xff] %v5186_v12  ;;  %v1490_v32 = vsel %vm1486_vm14, %v1488_v59, 0.0  ;;  %v1494_v33 = vmin.f32 %v1492_v62, 15.0  ;;  %v2488_v34 = vmin.f32 %v2486_v8, 15.0  ;;  %v3405_v35 = vmul.f32 %v610_v52, %v5118_v14 }
 0x133   : > { %8710 = vst [vmem:[#allocation7_spill] sm:$0xff] %v5189_v13  ;;  %8711 = vst [vmem:[#allocation8_spill] sm:$0xff] %v5192_v16  ;;  %v5217_v36 = vrot.slane %v1490_v32, %v5082_v44  ;;  %v5220_v37 = vrot.slane %v1490_v32, %v5085_v45  ;;  %v5223_v38 = vrot.slane %v1490_v32, %v5098_v61  ;;  %v597_v14 = vsub.f32 1.0, %v5143_v30 }
 0x134   : > { %8712 = vst [vmem:[#allocation9_spill] sm:$0xff] %v5199_v26  ;;  %8713 = vst [vmem:[#allocation10_spill] sm:$0xff] %v5202_v27  ;;  %v5226_v17 = vrot.slane %v1490_v32, %v5101_v0  ;;  %v4848_v40 = vtrunc.f32 %v1494_v33  ;;  %v4852_v46 = vtrunc.f32 %v2488_v34  ;;  %v599_v56 = vsub.f32 1.0, %v5146_v31 }
 0x135   : > { %8714 = vst [vmem:[#allocation11_spill] sm:$0xff] %v5205_v28  ;;  %8715 = vst [vmem:[#allocation12_spill] sm:$0xff] %v5208_v29  ;;  %v603_v8 = vadd.f32 1.0, %v5130_v20  ;;  %v5262_v33 = vadd.f32 1.0, %v5132_v21  ;;  %v609_v34 = vmul.f32 %v597_v14, %v5146_v31  ;;  %vm613_vm3 = vcmp.ge.f32.partialorder %v5130_v20, 0.0 }
 0x136   : > { %vm2476_vm15 = vmand %vm5159_vm4, %vm2474_vm10  ;;  %v4849_v52 = vcvt.f32.s32 %v4848_v40  ;;  %v4853_v53 = vcvt.f32.s32 %v4852_v46  ;;  %v605_v32 = vmul.f32 %v599_v56, %v5143_v30  ;;  %vm615_vm4 = vcmp.le.f32.partialorder %v5130_v20, 15.0 }
 0x137   : > { %vm2480_vm0 = vmand %vm2476_vm15, %vm2478_vm11  ;;  %vm619_vm6 = vcmp.ge.f32.partialorder %v5132_v21, 0.0  ;;  %vm623_vm7 = vcmp.le.f32.partialorder %v5132_v21, 15.0  ;;  %vm2475_vm15 = vcmp.ge.f32.partialorder %v5262_v33, 0.0 }
 0x138   : > { %v2484_v42 = vsel %vm2480_vm0, %v2482_v4, 0.0  ;;  %vm3401_vm1 = vmand %vm5177_vm12, %vm2474_vm10  ;;  %v1498_v3 = vadd.s32 %v4849_v52, %v636_v58  ;;  %v2492_v41 = vmul.u32 16, %v4853_v53  ;;  %v601_v4 = vmul.f32 %v599_v56, %v597_v14 }
 0x139   : > { %v5234_v47 = vrot.slane %v2484_v42, %v5082_v44  ;;  %v5237_v48 = vrot.slane %v2484_v42, %v5085_v45  ;;  %v5240_v49 = vrot.slane %v2484_v42, %v5098_v61  ;;  %v5243_v51 = vrot.slane %v2484_v42, %v5101_v0  ;;  %vm3403_vm2 = vmand %vm3401_vm1, %vm2478_vm11 }
 0x13a   : > { %v3407_v55 = vsel %vm3403_vm2, %v3405_v35, 0.0  ;;  %v611_v35 = vmul.f32 %v5146_v31, %v5143_v30  ;;  %v5268_v40 = vrot.slane %v1498_v3, %v5082_v44  ;;  %v5271_v42 = vrot.slane %v1498_v3, %v5085_v45  ;;  %vm5282_vm5 = vmand %vm613_vm3, %vm615_vm4 }
 0x13b   : > { %v5248_v59 = vrot.slane %v3407_v55, %v5082_v44  ;;  %v5251_v62 = vrot.slane %v3407_v55, %v5085_v45  ;;  %v5254_v63 = vrot.slane %v3407_v55, %v5098_v61  ;;  %v5257_v1 = vrot.slane %v3407_v55, %v5101_v0  ;;  %vm621_vm8 = vmand %vm5282_vm5, %vm619_vm6 }
 0x13c   : > { %v5274_v58 = vrot.slane %v1498_v3, %v5098_v61  ;;  %v5277_v46 = vrot.slane %v1498_v3, %v5101_v0  ;;  %v2494_v53 = vadd.s32 %v5165_v57, %v2492_v41  ;;  %v3409_v55 = vadd.s32 %v4849_v52, %v2492_v41  ;;  %vm625_vm9 = vmand %vm621_vm8, %vm623_vm7 }
 0x13d   : > { %8716 = vst [vmem:[#allocation13_spill] sm:$0xff] %v5248_v59  ;;  %8717 = vst [vmem:[#allocation14_spill] sm:$0xff] %v5251_v62  ;;  %v627_v31 = vmul.f32 %v601_v4, %v5120_v15  ;;  %v5291_v14 = vcvt.f32.s32 %v4846_v50  ;;  %vm1479_vm10 = vcmp.ge.f32.partialorder %v603_v8, 0.0  ;;  %vm1481_vm11 = vcmp.le.f32.partialorder %v603_v8, 15.0 }
 0x13e   : > { %8718 = vst [vmem:[#allocation15_spill] sm:$0xff] %v5254_v63  ;;  %8719 = vst [vmem:[#allocation16_spill] sm:$0xff] %v5257_v1  ;;  %v5294_v57 = vrot.slane %v2494_v53, %v5082_v44  ;;  %v5297_v52 = vrot.slane %v2494_v53, %v5085_v45  ;;  %v5300_v20 = vrot.slane %v2494_v53, %v5098_v61  ;;  %vm2479_vm0 = vcmp.le.f32.partialorder %v5262_v33, 15.0 }
 0x13f   : > { %v5303_v56 = vrot.slane %v2494_v53, %v5101_v0  ;;  %v5310_v39 = vrot.slane %v3409_v55, %v5082_v44  ;;  %v5313_v50 = vrot.slane %v3409_v55, %v5085_v45  ;;  %v5316_v3 = vrot.slane %v3409_v55, %v5098_v61  ;;  %vm5338_vm12 = vmand %vm1479_vm10, %vm1481_vm11 }
 0x140   : > { %v5319_v41 = vrot.slane %v3409_v55, %v5101_v0  ;;  %v629_v4 = vsel %vm625_vm9, %v627_v31, 0.0  ;;  %v645_v53 = vadd.s32 %v5291_v14, %v8639_v60  ;;  %vm1485_vm13 = vmand %vm5338_vm12, %vm619_vm6  ;;  %v2487_v59 = vmax.f32 %v5262_v33, 0.0 }
 0x141   : > { %8722 = vst [vmem:[#allocation17_spill] sm:$0xff] %v5310_v39  ;;  %8723 = vst [vmem:[#allocation18_spill] sm:$0xff] %v5313_v50  ;;  %v5327_v6 = vrot.slane %v629_v4, %v5082_v44  ;;  %v5330_v1 = vrot.slane %v629_v4, %v5085_v45  ;;  %v5333_v63 = vrot.slane %v629_v4, %v5098_v61  ;;  %v1493_v50 = vmax.f32 %v603_v8, 0.0 }
 0x142   : > { %8724 = vst [vmem:[#allocation19_spill] sm:$0xff] %v5316_v3  ;;  %8725 = vst [vmem:[#allocation20_spill] sm:$0xff] %v5319_v41  ;;  %v5336_v55 = vrot.slane %v629_v4, %v5101_v0  ;;  %v5343_v60 = vrot.slane %v645_v53, %v5082_v44  ;;  %v5346_v41 = vrot.slane %v645_v53, %v5085_v45  ;;  %v2489_v16 = vmin.f32 %v2487_v59, 15.0 }
 0x143   : > { %8726 = vst [vmem:[#allocation21_spill] sm:$0xff] %v5327_v6  ;;  %8727 = vst [vmem:[#allocation22_spill] sm:$0xff] %v5330_v1  ;;  %v5349_v3 = vrot.slane %v645_v53, %v5098_v61  ;;  %v5352_v62 = vrot.slane %v645_v53, %v5101_v0  ;;  %v1489_v4 = vmul.f32 %v605_v32, %v5120_v15  ;;  %v1495_v8 = vmin.f32 %v1493_v50, 15.0 }
 0x144   : > { %8728 = vst [vmem:[#allocation23_spill] sm:$0xff] %v5333_v63  ;;  %8729 = vst [vmem:[#allocation24_spill] sm:$0xff] %v5336_v55  ;;  %v2483_v53 = vmul.f32 %v609_v34, %v5120_v15  ;;  %v3406_v39 = vmul.f32 %v611_v35, %v5120_v15  ;;  %vm1508_vm2 = vcmp.eq.s32.totalorder %v5079_v43, %v5268_v40 }
 0x145   : > { %8732 = vst [vmem:[#allocation25_spill] sm:$0xff] %v5343_v60  ;;  %8733 = vst [vmem:[#allocation26_spill] sm:$0xff] %v5346_v41  ;;  %vm1510_vm4 = vcmp.eq.s32.totalorder %v5104_v2, %v5268_v40  ;;  %v1580_v32 = vsel %vm1508_vm2, %v5217_v36, 0.0  ;;  %v4850_v50 = vtrunc.f32 %v1495_v8  ;;  %vm1718_vm8 = vcmp.eq.s32.totalorder %v5104_v2, %v5271_v42 }
 0x146   : > { %8734 = vst [vmem:[#allocation27_spill] sm:$0xff] %v5349_v3  ;;  %8735 = vst [vmem:[#allocation28_spill] sm:$0xff] %v5352_v62  ;;  %v1582_v29 = vsel %vm1510_vm4, %v5217_v36, 0.0  ;;  %v1790_v26 = vsel %vm1718_vm8, %v5220_v37, 0.0  ;;  %vm1924_vm9 = vcmp.eq.s32.totalorder %v5079_v43, %v5274_v58  ;;  %vm1926_vm10 = vcmp.eq.s32.totalorder %v5104_v2, %v5274_v58 }
 0x147   : > { %vm1487_vm14 = vmand %vm1485_vm13, %vm623_vm7  ;;  %v4851_v8 = vcvt.f32.s32 %v4850_v50  ;;  %vm1716_vm7 = vcmp.eq.s32.totalorder %v5079_v43, %v5271_v42  ;;  %vm2134_vm4 = vcmp.eq.s32.totalorder %v5104_v2, %v5277_v46 }
 0x148   : > { %vm2477_vm1 = vmand %vm5282_vm5, %vm2475_vm15  ;;  %v1491_v21 = vsel %vm1487_vm14, %v1489_v4, 0.0 }
 0x149   : > { %vm2481_vm3 = vmand %vm2477_vm1, %vm2479_vm0  ;;  %v5378_v30 = vrot.slane %v1491_v21, %v5082_v44  ;;  %v5381_v34 = vrot.slane %v1491_v21, %v5085_v45  ;;  %v5384_v15 = vrot.slane %v1491_v21, %v5098_v61  ;;  %v5387_v35 = vrot.slane %v1491_v21, %v5101_v0 }
 0x14a   : > { %vm3402_vm5 = vmand %vm5338_vm12, %vm2475_vm15  ;;  %v2485_v4 = vsel %vm2481_vm3, %v2483_v53, 0.0  ;;  %v4854_v53 = vtrunc.f32 %v2489_v16  ;;  %vm2132_vm3 = vcmp.eq.s32.totalorder %v5079_v43, %v5277_v46 }
 0x14b   : > { %vm3404_vm6 = vmand %vm3402_vm5, %vm2479_vm0  ;;  %v5397_v13 = vrot.slane %v2485_v4, %v5082_v44  ;;  %v5400_v28 = vrot.slane %v2485_v4, %v5085_v45  ;;  %v5403_v21 = vrot.slane %v2485_v4, %v5098_v61  ;;  %v5406_v31 = vrot.slane %v2485_v4, %v5101_v0 }
 0x14c   : > { %v3408_v59 = vsel %vm3404_vm6, %v3406_v39, 0.0  ;;  %v8740_v4 = vmul.u32 16, %v5157_v54  ;;  %v4855_v16 = vcvt.f32.s32 %v4854_v53  ;;  %v1788_v39 = vsel %vm1716_vm7, %v5220_v37, 0.0 }
 0x14d   : > { %v5411_v33 = vrot.slane %v3408_v59, %v5082_v44  ;;  %v5414_v12 = vrot.slane %v3408_v59, %v5085_v45  ;;  %v5417_v27 = vrot.slane %v3408_v59, %v5098_v61  ;;  %v5420_v9 = vrot.slane %v3408_v59, %v5101_v0 }
 0x14e   : > { %v1499_v50 = vadd.s32 %v4851_v8, %v8740_v4 }
 0x14f   : > { %8736 = vst [vmem:[#allocation29_spill] sm:$0xff] %v5411_v33  ;;  %8737 = vst [vmem:[#allocation30_spill] sm:$0xff] %v5414_v12  ;;  %v1852_v33 = vadd.f32 %v1788_v39, %v1580_v32  ;;  %v1854_v32 = vadd.f32 %v1790_v26, %v1582_v29  ;;  %v1996_v39 = vsel %vm1924_vm9, %v5223_v38, 0.0 }
 0x150   : > { %8738 = vst [vmem:[#allocation31_spill] sm:$0xff] %v5417_v27  ;;  %8739 = vst [vmem:[#allocation32_spill] sm:$0xff] %v5420_v9  ;;  %v5433_v59 = vrot.slane %v1499_v50, %v5082_v44  ;;  %v5436_v54 = vrot.slane %v1499_v50, %v5085_v45  ;;  %v5439_v53 = vrot.slane %v1499_v50, %v5098_v61  ;;  %v2493_v9 = vmul.u32 16, %v4855_v16 }
 0x151   : > { %v5442_v4 = vrot.slane %v1499_v50, %v5101_v0  ;;  %v1998_v27 = vsel %vm1926_vm10, %v5223_v38, 0.0 }
 0x152   : > { %vm1509_vm11 = vcmp.eq.s32.totalorder %v5079_v43, %v5433_v59  ;;  %vm1511_vm12 = vcmp.eq.s32.totalorder %v5104_v2, %v5433_v59  ;;  %vm1717_vm13 = vcmp.eq.s32.totalorder %v5079_v43, %v5436_v54  ;;  %vm1719_vm14 = vcmp.eq.s32.totalorder %v5104_v2, %v5436_v54 }
 0x153   : > { %v2495_v50 = vadd.s32 %v5291_v14, %v2493_v9  ;;  %v3410_v16 = vadd.s32 %v4851_v8, %v2493_v9  ;;  %v1581_v26 = vsel %vm1509_vm11, %v5378_v30, 0.0  ;;  %v1583_v29 = vsel %vm1511_vm12, %v5378_v30, 0.0 }
 0x154   : > { %v1789_v12 = vsel %vm1717_vm13, %v5381_v34, 0.0  ;;  %v1791_v25 = vsel %vm1719_vm14, %v5381_v34, 0.0  ;;  %vm1925_vm15 = vcmp.eq.s32.totalorder %v5079_v43, %v5439_v53  ;;  %vm1927_vm0 = vcmp.eq.s32.totalorder %v5104_v2, %v5439_v53 }
 0x155   : > { %v5464_v23 = vrot.slane %v2495_v50, %v5082_v44  ;;  %v5467_v14 = vrot.slane %v2495_v50, %v5085_v45  ;;  %v5470_v9 = vrot.slane %v2495_v50, %v5098_v61  ;;  %v5473_v8 = vrot.slane %v2495_v50, %v5101_v0 }
 0x156   : > { %v5476_v55 = vrot.slane %v3410_v16, %v5082_v44  ;;  %v5479_v62 = vrot.slane %v3410_v16, %v5085_v45  ;;  %v5482_v63 = vrot.slane %v3410_v16, %v5098_v61  ;;  %v5485_v3 = vrot.slane %v3410_v16, %v5101_v0 }
 0x157   : > { %v1853_v1 = vadd.f32 %v1789_v12, %v1581_v26  ;;  %v1855_v6 = vadd.f32 %v1791_v25, %v1583_v29  ;;  %v1997_v41 = vsel %vm1925_vm15, %v5384_v15, 0.0  ;;  %v1999_v60 = vsel %vm1927_vm0, %v5384_v15, 0.0 }
 0x158   : > { %8741 = vst [vmem:[#allocation33_spill] sm:$0xff] %v5482_v63  ;;  %vm2133_vm1 = vcmp.eq.s32.totalorder %v5079_v43, %v5442_v4  ;;  %vm2135_vm2 = vcmp.eq.s32.totalorder %v5104_v2, %v5442_v4  ;;  %v2060_v44 = vadd.f32 %v1996_v39, %v1852_v33  ;;  %v2062_v45 = vadd.f32 %v1998_v27, %v1854_v32 }
 0x159   : > { %v2061_v50 = vadd.f32 %v1997_v41, %v1853_v1  ;;  %v2063_v61 = vadd.f32 %v1999_v60, %v1855_v6  ;;  %v2205_v63 = vsel %vm2133_vm1, %v5387_v35, 0.0  ;;  %v2207_v0 = vsel %vm2135_vm2, %v5387_v35, 0.0 }
 0x15a   : > { %vm1513_vm5 = vcmp.eq.s32.totalorder %v5107_v5, %v5433_v59  ;;  %vm1515_vm6 = vcmp.eq.s32.totalorder %v5110_v7, %v5433_v59  ;;  %v2204_v6 = vsel %vm2132_vm3, %v5226_v17, 0.0  ;;  %v2206_v60 = vsel %vm2134_vm4, %v5226_v17, 0.0 }
 0x15b   : > { %v2269_v25 = vadd.f32 %v2205_v63, %v2061_v50  ;;  %v2271_v12 = vadd.f32 %v2207_v0, %v2063_v61  ;;  %v2268_v27 = vadd.f32 %v2204_v6, %v2060_v44  ;;  %v2270_v1 = vadd.f32 %v2206_v60, %v2062_v45 }
 0x15c   : > { %v1585_v41 = vsel %vm1513_vm5, %v5378_v30, 0.0  ;;  %v1587_v33 = vsel %vm1515_vm6, %v5378_v30, 0.0  ;;  %vm1721_vm7 = vcmp.eq.s32.totalorder %v5107_v5, %v5436_v54  ;;  %vm1723_vm8 = vcmp.eq.s32.totalorder %v5110_v7, %v5436_v54 }
 0x15d   : > { %v4577_v32 = vpack.c.bf16 %v2271_v12, %v2269_v25  ;;  %vm1929_vm9 = vcmp.eq.s32.totalorder %v5107_v5, %v5439_v53  ;;  %v4579_v63 = vpack.c.bf16 %v2270_v1, %v2268_v27  ;;  %v1793_v39 = vsel %vm1721_vm7, %v5381_v34, 0.0 }
 0x15e   : > { %v1795_v16 = vsel %vm1723_vm8, %v5381_v34, 0.0  ;;  %vm1931_vm10 = vcmp.eq.s32.totalorder %v5110_v7, %v5439_v53  ;;  %v1857_v26 = vadd.f32 %v1793_v39, %v1585_v41  ;;  %v2001_v44 = vsel %vm1929_vm9, %v5384_v15, 0.0 }
 0x15f   : > { %4578 = vmatprep.subr.bf16.mxu0 %v4577_v32  ;;  %v1859_v29 = vadd.f32 %v1795_v16, %v1587_v33  ;;  %v2003_v45 = vsel %vm1931_vm10, %v5384_v15, 0.0  ;;  %vm2137_vm11 = vcmp.eq.s32.totalorder %v5107_v5, %v5442_v4  ;;  %vm2139_vm12 = vcmp.eq.s32.totalorder %v5110_v7, %v5442_v4 }
 0x160   : > { %4580 = vmatpush1.bf16.msra.mxu0 %v4579_v63  ;;  %vm2505_vm13 = vcmp.eq.s32.totalorder %v5079_v43, %v5464_v23  ;;  %vm2507_vm14 = vcmp.eq.s32.totalorder %v5104_v2, %v5464_v23  ;;  %v2065_v50 = vadd.f32 %v2001_v44, %v1857_v26  ;;  %v2209_v0 = vsel %vm2137_vm11, %v5387_v35, 0.0 }
 0x161   : > { %v2067_v61 = vadd.f32 %v2003_v45, %v1859_v29  ;;  %v2211_v25 = vsel %vm2139_vm12, %v5387_v35, 0.0  ;;  %v2577_v12 = vsel %vm2505_vm13, %v5397_v13, 0.0  ;;  %v2579_v6 = vsel %vm2507_vm14, %v5397_v13, 0.0 }
 0x162   : > { %vm2713_vm15 = vcmp.eq.s32.totalorder %v5079_v43, %v5467_v14  ;;  %vm2715_vm0 = vcmp.eq.s32.totalorder %v5104_v2, %v5467_v14  ;;  %v2273_v60 = vadd.f32 %v2209_v0, %v2065_v50  ;;  %vm2921_vm1 = vcmp.eq.s32.totalorder %v5079_v43, %v5470_v9 }
 0x163   : > { %v2275_v27 = vadd.f32 %v2211_v25, %v2067_v61  ;;  %v2785_v1 = vsel %vm2713_vm15, %v5400_v28, 0.0  ;;  %v2787_v41 = vsel %vm2715_vm0, %v5400_v28, 0.0  ;;  %vm2923_vm2 = vcmp.eq.s32.totalorder %v5104_v2, %v5470_v9 }
 0x164   : > { %v2849_v33 = vadd.f32 %v2785_v1, %v2577_v12  ;;  %v2851_v32 = vadd.f32 %v2787_v41, %v2579_v6  ;;  %v2993_v39 = vsel %vm2921_vm1, %v5403_v21, 0.0  ;;  %v2995_v16 = vsel %vm2923_vm2, %v5403_v21, 0.0 }
 0x165   : > { %v4581_v63 = vpack.c.bf16 %v2275_v27, %v2273_v60  ;;  %vm3129_vm3 = vcmp.eq.s32.totalorder %v5079_v43, %v5473_v8  ;;  %vm3131_vm4 = vcmp.eq.s32.totalorder %v5104_v2, %v5473_v8  ;;  %vm2504_vm5 = vcmp.eq.s32.totalorder %v5079_v43, %v5294_v57 }
 0x166   : > { %v3057_v26 = vadd.f32 %v2993_v39, %v2849_v33  ;;  %v3059_v29 = vadd.f32 %v2995_v16, %v2851_v32  ;;  %v3201_v44 = vsel %vm3129_vm3, %v5406_v31, 0.0  ;;  %v3203_v45 = vsel %vm3131_vm4, %v5406_v31, 0.0 }
 0x167   : > { %4582 = vmatprep.subr.bf16.mxu0 %v4581_v63  ;;  %vm2506_vm6 = vcmp.eq.s32.totalorder %v5104_v2, %v5294_v57  ;;  %vm2712_vm7 = vcmp.eq.s32.totalorder %v5079_v43, %v5297_v52  ;;  %v2576_v0 = vsel %vm2504_vm5, %v5234_v47, 0.0  ;;  %vm2714_vm8 = vcmp.eq.s32.totalorder %v5104_v2, %v5297_v52 }
 0x168   : > { %v3265_v50 = vadd.f32 %v3201_v44, %v3057_v26  ;;  %v3267_v61 = vadd.f32 %v3203_v45, %v3059_v29  ;;  %v2578_v25 = vsel %vm2506_vm6, %v5234_v47, 0.0  ;;  %v2784_v12 = vsel %vm2712_vm7, %v5237_v48, 0.0 }
 0x169   : > { %vm2920_vm9 = vcmp.eq.s32.totalorder %v5079_v43, %v5300_v20  ;;  %vm2922_vm10 = vcmp.eq.s32.totalorder %v5104_v2, %v5300_v20  ;;  %v2786_v60 = vsel %vm2714_vm8, %v5237_v48, 0.0  ;;  %v2848_v27 = vadd.f32 %v2784_v12, %v2576_v0 }
 0x16a   : > { %v4705_v6 = vpack.c.bf16 %v3267_v61, %v3265_v50  ;;  %v2992_v1 = vsel %vm2920_vm9, %v5240_v49, 0.0  ;;  %v2850_v41 = vadd.f32 %v2786_v60, %v2578_v25  ;;  %v2994_v33 = vsel %vm2922_vm10, %v5240_v49, 0.0 }
 0x16b   : > { %vm3128_vm11 = vcmp.eq.s32.totalorder %v5079_v43, %v5303_v56  ;;  %vm3130_vm12 = vcmp.eq.s32.totalorder %v5104_v2, %v5303_v56  ;;  %v3056_v32 = vadd.f32 %v2992_v1, %v2848_v27  ;;  %vm2509_vm13 = vcmp.eq.s32.totalorder %v5107_v5, %v5464_v23 }
 0x16c   : > { %4706 = vmatprep.subr.bf16.mxu1 %v4705_v6  ;;  %v3200_v63 = vsel %vm3128_vm11, %v5243_v51, 0.0  ;;  %v3202_v39 = vsel %vm3130_vm12, %v5243_v51, 0.0  ;;  %v3058_v16 = vadd.f32 %v2994_v33, %v2850_v41  ;;  %vm2511_vm14 = vcmp.eq.s32.totalorder %v5110_v7, %v5464_v23 }
 0x16d   : > { %v2581_v26 = vsel %vm2509_vm13, %v5397_v13, 0.0  ;;  %vm2717_vm15 = vcmp.eq.s32.totalorder %v5107_v5, %v5467_v14  ;;  %v3264_v29 = vadd.f32 %v3200_v63, %v3056_v32  ;;  %v2583_v44 = vsel %vm2511_vm14, %v5397_v13, 0.0 }
 0x16e   : > { %vm2719_vm0 = vcmp.eq.s32.totalorder %v5110_v7, %v5467_v14  ;;  %v2789_v45 = vsel %vm2717_vm15, %v5400_v28, 0.0  ;;  %v3266_v50 = vadd.f32 %v3202_v39, %v3058_v16  ;;  %vm2925_vm1 = vcmp.eq.s32.totalorder %v5107_v5, %v5470_v9 }
 0x16f   : > { %v2791_v61 = vsel %vm2719_vm0, %v5400_v28, 0.0  ;;  %v2853_v0 = vadd.f32 %v2789_v45, %v2581_v26  ;;  %vm2927_vm2 = vcmp.eq.s32.totalorder %v5110_v7, %v5470_v9  ;;  %v2997_v12 = vsel %vm2925_vm1, %v5403_v21, 0.0 }
 0x170   : > { %v2855_v25 = vadd.f32 %v2791_v61, %v2583_v44  ;;  %vm3133_vm3 = vcmp.eq.s32.totalorder %v5107_v5, %v5473_v8  ;;  %v4707_v6 = vpack.c.bf16 %v3266_v50, %v3264_v29  ;;  %v2999_v60 = vsel %vm2927_vm2, %v5403_v21, 0.0 }
 0x171   : > { %v3061_v27 = vadd.f32 %v2997_v12, %v2853_v0  ;;  %vm3135_vm4 = vcmp.eq.s32.totalorder %v5110_v7, %v5473_v8  ;;  %v3205_v41 = vsel %vm3133_vm3, %v5406_v31, 0.0  ;;  %vm1512_vm5 = vcmp.eq.s32.totalorder %v5107_v5, %v5268_v40 }
 0x172   : > { %v3063_v1 = vadd.f32 %v2999_v60, %v2855_v25  ;;  %v3207_v33 = vsel %vm3135_vm4, %v5406_v31, 0.0  ;;  %4708 = vmatpush1.bf16.msra.mxu1 %v4707_v6  ;;  %vm1514_vm6 = vcmp.eq.s32.totalorder %v5110_v7, %v5268_v40  ;;  %v1584_v63 = vsel %vm1512_vm5, %v5217_v36, 0.0 }
 0x173   : > { %v3269_v32 = vadd.f32 %v3205_v41, %v3061_v27  ;;  %vm1720_vm7 = vcmp.eq.s32.totalorder %v5107_v5, %v5271_v42  ;;  %v1586_v16 = vsel %vm1514_vm6, %v5217_v36, 0.0  ;;  %vm1722_vm8 = vcmp.eq.s32.totalorder %v5110_v7, %v5271_v42 }
 0x174   : > { %v3271_v39 = vadd.f32 %v3207_v33, %v3063_v1  ;;  %v1792_v26 = vsel %vm1720_vm7, %v5220_v37, 0.0  ;;  %v1794_v29 = vsel %vm1722_vm8, %v5220_v37, 0.0  ;;  %vm1928_vm9 = vcmp.eq.s32.totalorder %v5107_v5, %v5274_v58 }
 0x175   : > { %v1856_v44 = vadd.f32 %v1792_v26, %v1584_v63  ;;  %vm1930_vm10 = vcmp.eq.s32.totalorder %v5110_v7, %v5274_v58  ;;  %v1858_v50 = vadd.f32 %v1794_v29, %v1586_v16  ;;  %v2000_v61 = vsel %vm1928_vm9, %v5223_v38, 0.0 }
 0x176   : > { %v4709_v45 = vpack.c.bf16 %v3271_v39, %v3269_v32  ;;  %v2002_v0 = vsel %vm1930_vm10, %v5223_v38, 0.0  ;;  %vm2136_vm11 = vcmp.eq.s32.totalorder %v5107_v5, %v5277_v46  ;;  %vm2138_vm12 = vcmp.eq.s32.totalorder %v5110_v7, %v5277_v46 }
 0x177   : > { %v2064_v25 = vadd.f32 %v2000_v61, %v1856_v44  ;;  %vm1517_vm13 = vcmp.eq.s32.totalorder %v5113_v10, %v5433_v59  ;;  %v2066_v12 = vadd.f32 %v2002_v0, %v1858_v50  ;;  %v2208_v6 = vsel %vm2136_vm11, %v5226_v17, 0.0 }
 0x178   : > { %4710 = vmatprep.subr.bf16.mxu1 %v4709_v45  ;;  %v2210_v60 = vsel %vm2138_vm12, %v5226_v17, 0.0  ;;  %vm1519_vm14 = vcmp.eq.s32.totalorder %v5116_v11, %v5433_v59  ;;  %v1589_v1 = vsel %vm1517_vm13, %v5378_v30, 0.0  ;;  %vm1725_vm15 = vcmp.eq.s32.totalorder %v5113_v10, %v5436_v54 }
 0x179   : > { %v2272_v27 = vadd.f32 %v2208_v6, %v2064_v25  ;;  %v1591_v41 = vsel %vm1519_vm14, %v5378_v30, 0.0  ;;  %v2274_v33 = vadd.f32 %v2210_v60, %v2066_v12  ;;  %vm1727_vm0 = vcmp.eq.s32.totalorder %v5116_v11, %v5436_v54 }
 0x17a   : > { %v1797_v32 = vsel %vm1725_vm15, %v5381_v34, 0.0  ;;  %vm1933_vm1 = vcmp.eq.s32.totalorder %v5113_v10, %v5439_v53  ;;  %v1799_v63 = vsel %vm1727_vm0, %v5381_v34, 0.0  ;;  %vm1935_vm2 = vcmp.eq.s32.totalorder %v5116_v11, %v5439_v53 }
 0x17b   : > { %v1861_v39 = vadd.f32 %v1797_v32, %v1589_v1  ;;  %v2005_v16 = vsel %vm1933_vm1, %v5384_v15, 0.0  ;;  %v4583_v26 = vpack.c.bf16 %v2274_v33, %v2272_v27  ;;  %v1863_v29 = vadd.f32 %v1799_v63, %v1591_v41 }
 0x17c   : > { %v2007_v44 = vsel %vm1935_vm2, %v5384_v15, 0.0  ;;  %vm2141_vm3 = vcmp.eq.s32.totalorder %v5113_v10, %v5442_v4  ;;  %vm2143_vm4 = vcmp.eq.s32.totalorder %v5116_v11, %v5442_v4  ;;  %vm2508_vm5 = vcmp.eq.s32.totalorder %v5107_v5, %v5294_v57 }
 0x17d   : > { %v2069_v45 = vadd.f32 %v2005_v16, %v1861_v39  ;;  %v2213_v50 = vsel %vm2141_vm3, %v5387_v35, 0.0  ;;  %4584 = vmatpush1.bf16.msra.mxu0 %v4583_v26  ;;  %v2071_v61 = vadd.f32 %v2007_v44, %v1863_v29  ;;  %v2215_v0 = vsel %vm2143_vm4, %v5387_v35, 0.0 }
 0x17e   : > { %vm2510_vm6 = vcmp.eq.s32.totalorder %v5110_v7, %v5294_v57  ;;  %v2580_v25 = vsel %vm2508_vm5, %v5234_v47, 0.0  ;;  %vm2716_vm7 = vcmp.eq.s32.totalorder %v5107_v5, %v5297_v52  ;;  %vm2718_vm8 = vcmp.eq.s32.totalorder %v5110_v7, %v5297_v52 }
 0x17f   : > { %v2277_v12 = vadd.f32 %v2213_v50, %v2069_v45  ;;  %v2582_v6 = vsel %vm2510_vm6, %v5234_v47, 0.0  ;;  %v2279_v60 = vadd.f32 %v2215_v0, %v2071_v61  ;;  %v2788_v27 = vsel %vm2716_vm7, %v5237_v48, 0.0 }
 0x180   : > { %v2790_v1 = vsel %vm2718_vm8, %v5237_v48, 0.0  ;;  %vm2924_vm9 = vcmp.eq.s32.totalorder %v5107_v5, %v5300_v20  ;;  %v2852_v41 = vadd.f32 %v2788_v27, %v2580_v25  ;;  %vm2926_vm10 = vcmp.eq.s32.totalorder %v5110_v7, %v5300_v20 }
 0x181   : > { %v2854_v33 = vadd.f32 %v2790_v1, %v2582_v6  ;;  %v2996_v32 = vsel %vm2924_vm9, %v5240_v49, 0.0  ;;  %v4585_v63 = vpack.c.bf16 %v2279_v60, %v2277_v12  ;;  %v2998_v39 = vsel %vm2926_vm10, %v5240_v49, 0.0 }
 0x182   : > { %vm3132_vm11 = vcmp.eq.s32.totalorder %v5107_v5, %v5303_v56  ;;  %vm3134_vm12 = vcmp.eq.s32.totalorder %v5110_v7, %v5303_v56  ;;  %v3060_v16 = vadd.f32 %v2996_v32, %v2852_v41  ;;  %vm2513_vm13 = vcmp.eq.s32.totalorder %v5113_v10, %v5464_v23 }
 0x183   : > { %v3062_v26 = vadd.f32 %v2998_v39, %v2854_v33  ;;  %v3204_v29 = vsel %vm3132_vm11, %v5243_v51, 0.0  ;;  %v3206_v44 = vsel %vm3134_vm12, %v5243_v51, 0.0  ;;  %4586 = vmatprep.subr.bf16.mxu0 %v4585_v63  ;;  %vm2515_vm14 = vcmp.eq.s32.totalorder %v5116_v11, %v5464_v23 }
 0x184   : > { %vm2721_vm15 = vcmp.eq.s32.totalorder %v5113_v10, %v5467_v14  ;;  %vm2723_vm0 = vcmp.eq.s32.totalorder %v5116_v11, %v5467_v14  ;;  %v3268_v45 = vadd.f32 %v3204_v29, %v3060_v16  ;;  %v2585_v61 = vsel %vm2513_vm13, %v5397_v13, 0.0 }
 0x185   : > { %v3270_v50 = vadd.f32 %v3206_v44, %v3062_v26  ;;  %v2587_v0 = vsel %vm2515_vm14, %v5397_v13, 0.0  ;;  %v2793_v25 = vsel %vm2721_vm15, %v5400_v28, 0.0  ;;  %v2795_v12 = vsel %vm2723_vm0, %v5400_v28, 0.0 }
 0x186   : > { %vm2929_vm1 = vcmp.eq.s32.totalorder %v5113_v10, %v5470_v9  ;;  %vm2931_vm2 = vcmp.eq.s32.totalorder %v5116_v11, %v5470_v9  ;;  %v2857_v60 = vadd.f32 %v2793_v25, %v2585_v61  ;;  %v2859_v27 = vadd.f32 %v2795_v12, %v2587_v0 }
 0x187   : > { %v4711_v6 = vpack.c.bf16 %v3270_v50, %v3268_v45  ;;  %v3001_v1 = vsel %vm2929_vm1, %v5403_v21, 0.0  ;;  %v3003_v41 = vsel %vm2931_vm2, %v5403_v21, 0.0  ;;  %vm3137_vm3 = vcmp.eq.s32.totalorder %v5113_v10, %v5473_v8 }
 0x188   : > { %vm3139_vm4 = vcmp.eq.s32.totalorder %v5116_v11, %v5473_v8  ;;  %vm1516_vm5 = vcmp.eq.s32.totalorder %v5113_v10, %v5268_v40  ;;  %v3065_v33 = vadd.f32 %v3001_v1, %v2857_v60  ;;  %v3067_v32 = vadd.f32 %v3003_v41, %v2859_v27 }
 0x189   : > { %4712 = vmatpush1.bf16.msra.mxu1 %v4711_v6  ;;  %v3209_v63 = vsel %vm3137_vm3, %v5406_v31, 0.0  ;;  %v3211_v39 = vsel %vm3139_vm4, %v5406_v31, 0.0  ;;  %vm1518_vm6 = vcmp.eq.s32.totalorder %v5116_v11, %v5268_v40  ;;  %v1588_v16 = vsel %vm1516_vm5, %v5217_v36, 0.0 }
 0x18a   : > { %vm1724_vm7 = vcmp.eq.s32.totalorder %v5113_v10, %v5271_v42  ;;  %vm1726_vm8 = vcmp.eq.s32.totalorder %v5116_v11, %v5271_v42  ;;  %v3273_v26 = vadd.f32 %v3209_v63, %v3065_v33  ;;  %v3275_v29 = vadd.f32 %v3211_v39, %v3067_v32 }
 0x18b   : > { %v1590_v44 = vsel %vm1518_vm6, %v5217_v36, 0.0  ;;  %v1796_v45 = vsel %vm1724_vm7, %v5220_v37, 0.0  ;;  %v1798_v50 = vsel %vm1726_vm8, %v5220_v37, 0.0  ;;  %vm1932_vm9 = vcmp.eq.s32.totalorder %v5113_v10, %v5274_v58 }
 0x18c   : > { %v1860_v61 = vadd.f32 %v1796_v45, %v1588_v16  ;;  %vm1934_vm10 = vcmp.eq.s32.totalorder %v5116_v11, %v5274_v58  ;;  %v4713_v0 = vpack.c.bf16 %v3275_v29, %v3273_v26  ;;  %v1862_v25 = vadd.f32 %v1798_v50, %v1590_v44 }
 0x18d   : > { %v2004_v12 = vsel %vm1932_vm9, %v5223_v38, 0.0  ;;  %v2006_v6 = vsel %vm1934_vm10, %v5223_v38, 0.0  ;;  %vm2140_vm11 = vcmp.eq.s32.totalorder %v5113_v10, %v5277_v46  ;;  %vm2142_vm12 = vcmp.eq.s32.totalorder %v5116_v11, %v5277_v46 }
 0x18e   : > { %v2068_v60 = vadd.f32 %v2004_v12, %v1860_v61  ;;  %vm1521_vm13 = vcmp.eq.s32.totalorder %v5125_v18, %v5433_v59  ;;  %4714 = vmatprep.subr.bf16.mxu1 %v4713_v0  ;;  %v2070_v27 = vadd.f32 %v2006_v6, %v1862_v25  ;;  %v2212_v1 = vsel %vm2140_vm11, %v5226_v17, 0.0 }
 0x18f   : > { %v2214_v41 = vsel %vm2142_vm12, %v5226_v17, 0.0  ;;  %vm1523_vm14 = vcmp.eq.s32.totalorder %v5128_v19, %v5433_v59  ;;  %v1593_v32 = vsel %vm1521_vm13, %v5378_v30, 0.0  ;;  %vm1729_vm15 = vcmp.eq.s32.totalorder %v5125_v18, %v5436_v54 }
 0x190   : > { %v2276_v33 = vadd.f32 %v2212_v1, %v2068_v60  ;;  %v1595_v63 = vsel %vm1523_vm14, %v5378_v30, 0.0  ;;  %v2278_v39 = vadd.f32 %v2214_v41, %v2070_v27  ;;  %vm1731_vm0 = vcmp.eq.s32.totalorder %v5128_v19, %v5436_v54 }
 0x191   : > { %v1801_v16 = vsel %vm1729_vm15, %v5381_v34, 0.0  ;;  %vm1937_vm1 = vcmp.eq.s32.totalorder %v5125_v18, %v5439_v53  ;;  %v1803_v26 = vsel %vm1731_vm0, %v5381_v34, 0.0  ;;  %vm1939_vm2 = vcmp.eq.s32.totalorder %v5128_v19, %v5439_v53 }
 0x192   : > { %v1865_v29 = vadd.f32 %v1801_v16, %v1593_v32  ;;  %v2009_v44 = vsel %vm1937_vm1, %v5384_v15, 0.0  ;;  %v4587_v45 = vpack.c.bf16 %v2278_v39, %v2276_v33  ;;  %v1867_v50 = vadd.f32 %v1803_v26, %v1595_v63 }
 0x193   : > { %v2011_v61 = vsel %vm1939_vm2, %v5384_v15, 0.0  ;;  %vm2145_vm3 = vcmp.eq.s32.totalorder %v5125_v18, %v5442_v4  ;;  %vm2147_vm4 = vcmp.eq.s32.totalorder %v5128_v19, %v5442_v4  ;;  %vm2512_vm5 = vcmp.eq.s32.totalorder %v5113_v10, %v5294_v57 }
 0x194   : > { %v2073_v0 = vadd.f32 %v2009_v44, %v1865_v29  ;;  %v2217_v25 = vsel %vm2145_vm3, %v5387_v35, 0.0  ;;  %4588 = vmatpush1.bf16.msra.mxu0 %v4587_v45  ;;  %v2075_v12 = vadd.f32 %v2011_v61, %v1867_v50  ;;  %v2219_v6 = vsel %vm2147_vm4, %v5387_v35, 0.0 }
 0x195   : > { %vm2514_vm6 = vcmp.eq.s32.totalorder %v5116_v11, %v5294_v57  ;;  %v2584_v60 = vsel %vm2512_vm5, %v5234_v47, 0.0  ;;  %vm2720_vm7 = vcmp.eq.s32.totalorder %v5113_v10, %v5297_v52  ;;  %vm2722_vm8 = vcmp.eq.s32.totalorder %v5116_v11, %v5297_v52 }
 0x196   : > { %v2281_v27 = vadd.f32 %v2217_v25, %v2073_v0  ;;  %v2586_v1 = vsel %vm2514_vm6, %v5234_v47, 0.0  ;;  %v2283_v41 = vadd.f32 %v2219_v6, %v2075_v12  ;;  %v2792_v33 = vsel %vm2720_vm7, %v5237_v48, 0.0 }
 0x197   : > { %v2794_v32 = vsel %vm2722_vm8, %v5237_v48, 0.0  ;;  %vm2928_vm9 = vcmp.eq.s32.totalorder %v5113_v10, %v5300_v20  ;;  %v2856_v63 = vadd.f32 %v2792_v33, %v2584_v60  ;;  %vm2930_vm10 = vcmp.eq.s32.totalorder %v5116_v11, %v5300_v20 }
 0x198   : > { %v2858_v39 = vadd.f32 %v2794_v32, %v2586_v1  ;;  %v3000_v16 = vsel %vm2928_vm9, %v5240_v49, 0.0  ;;  %v4589_v26 = vpack.c.bf16 %v2283_v41, %v2281_v27  ;;  %v3002_v29 = vsel %vm2930_vm10, %v5240_v49, 0.0 }
 0x199   : > { %vm3136_vm11 = vcmp.eq.s32.totalorder %v5113_v10, %v5303_v56  ;;  %vm3138_vm12 = vcmp.eq.s32.totalorder %v5116_v11, %v5303_v56  ;;  %v3064_v44 = vadd.f32 %v3000_v16, %v2856_v63  ;;  %vm2517_vm13 = vcmp.eq.s32.totalorder %v5125_v18, %v5464_v23 }
 0x19a   : > { %v3066_v45 = vadd.f32 %v3002_v29, %v2858_v39  ;;  %v3208_v50 = vsel %vm3136_vm11, %v5243_v51, 0.0  ;;  %v3210_v61 = vsel %vm3138_vm12, %v5243_v51, 0.0  ;;  %4590 = vmatprep.subr.bf16.mxu0 %v4589_v26  ;;  %vm2519_vm14 = vcmp.eq.s32.totalorder %v5128_v19, %v5464_v23 }
 0x19b   : > { %vm2725_vm15 = vcmp.eq.s32.totalorder %v5125_v18, %v5467_v14  ;;  %vm2727_vm0 = vcmp.eq.s32.totalorder %v5128_v19, %v5467_v14  ;;  %v3272_v0 = vadd.f32 %v3208_v50, %v3064_v44  ;;  %v2589_v12 = vsel %vm2517_vm13, %v5397_v13, 0.0 }
 0x19c   : > { %v3274_v25 = vadd.f32 %v3210_v61, %v3066_v45  ;;  %v2591_v6 = vsel %vm2519_vm14, %v5397_v13, 0.0  ;;  %v2797_v60 = vsel %vm2725_vm15, %v5400_v28, 0.0  ;;  %v2799_v27 = vsel %vm2727_vm0, %v5400_v28, 0.0 }
 0x19d   : > { %vm2933_vm1 = vcmp.eq.s32.totalorder %v5125_v18, %v5470_v9  ;;  %vm2935_vm2 = vcmp.eq.s32.totalorder %v5128_v19, %v5470_v9  ;;  %v2861_v41 = vadd.f32 %v2797_v60, %v2589_v12  ;;  %v2863_v33 = vadd.f32 %v2799_v27, %v2591_v6 }
 0x19e   : > { %v4715_v1 = vpack.c.bf16 %v3274_v25, %v3272_v0  ;;  %v3005_v32 = vsel %vm2933_vm1, %v5403_v21, 0.0  ;;  %v3007_v63 = vsel %vm2935_vm2, %v5403_v21, 0.0  ;;  %vm3141_vm3 = vcmp.eq.s32.totalorder %v5125_v18, %v5473_v8 }
 0x19f   : > { %vm3143_vm4 = vcmp.eq.s32.totalorder %v5128_v19, %v5473_v8  ;;  %vm1520_vm5 = vcmp.eq.s32.totalorder %v5125_v18, %v5268_v40  ;;  %v3069_v39 = vadd.f32 %v3005_v32, %v2861_v41  ;;  %v3071_v16 = vadd.f32 %v3007_v63, %v2863_v33 }
 0x1a0   : > { %4716 = vmatpush1.bf16.msra.mxu1 %v4715_v1  ;;  %v3213_v26 = vsel %vm3141_vm3, %v5406_v31, 0.0  ;;  %v3215_v29 = vsel %vm3143_vm4, %v5406_v31, 0.0  ;;  %vm1522_vm6 = vcmp.eq.s32.totalorder %v5128_v19, %v5268_v40  ;;  %v1592_v44 = vsel %vm1520_vm5, %v5217_v36, 0.0 }
 0x1a1   : > { %vm1728_vm7 = vcmp.eq.s32.totalorder %v5125_v18, %v5271_v42  ;;  %vm1730_vm8 = vcmp.eq.s32.totalorder %v5128_v19, %v5271_v42  ;;  %v3277_v45 = vadd.f32 %v3213_v26, %v3069_v39  ;;  %v3279_v50 = vadd.f32 %v3215_v29, %v3071_v16 }
 0x1a2   : > { %v1594_v61 = vsel %vm1522_vm6, %v5217_v36, 0.0  ;;  %v1800_v0 = vsel %vm1728_vm7, %v5220_v37, 0.0  ;;  %v1802_v25 = vsel %vm1730_vm8, %v5220_v37, 0.0  ;;  %vm1936_vm9 = vcmp.eq.s32.totalorder %v5125_v18, %v5274_v58 }
 0x1a3   : > { %v1864_v12 = vadd.f32 %v1800_v0, %v1592_v44  ;;  %vm1938_vm10 = vcmp.eq.s32.totalorder %v5128_v19, %v5274_v58  ;;  %v4717_v6 = vpack.c.bf16 %v3279_v50, %v3277_v45  ;;  %v1866_v60 = vadd.f32 %v1802_v25, %v1594_v61 }
 0x1a4   : > { %v2008_v27 = vsel %vm1936_vm9, %v5223_v38, 0.0  ;;  %v2010_v1 = vsel %vm1938_vm10, %v5223_v38, 0.0  ;;  %vm2144_vm11 = vcmp.eq.s32.totalorder %v5125_v18, %v5277_v46  ;;  %vm2146_vm12 = vcmp.eq.s32.totalorder %v5128_v19, %v5277_v46 }
 0x1a5   : > { %v2072_v41 = vadd.f32 %v2008_v27, %v1864_v12  ;;  %vm1525_vm13 = vcmp.eq.s32.totalorder %v5135_v22, %v5433_v59  ;;  %4718 = vmatprep.subr.bf16.mxu1 %v4717_v6  ;;  %v2074_v33 = vadd.f32 %v2010_v1, %v1866_v60  ;;  %v2216_v32 = vsel %vm2144_vm11, %v5226_v17, 0.0 }
 0x1a6   : > { %v2218_v63 = vsel %vm2146_vm12, %v5226_v17, 0.0  ;;  %vm1527_vm14 = vcmp.eq.s32.totalorder %v5138_v24, %v5433_v59  ;;  %v1597_v16 = vsel %vm1525_vm13, %v5378_v30, 0.0  ;;  %vm1733_vm15 = vcmp.eq.s32.totalorder %v5135_v22, %v5436_v54 }
 0x1a7   : > { %v2280_v39 = vadd.f32 %v2216_v32, %v2072_v41  ;;  %v1599_v26 = vsel %vm1527_vm14, %v5378_v30, 0.0  ;;  %v2282_v29 = vadd.f32 %v2218_v63, %v2074_v33  ;;  %vm1735_vm0 = vcmp.eq.s32.totalorder %v5138_v24, %v5436_v54 }
 0x1a8   : > { %v1805_v44 = vsel %vm1733_vm15, %v5381_v34, 0.0  ;;  %vm1941_vm1 = vcmp.eq.s32.totalorder %v5135_v22, %v5439_v53  ;;  %v1807_v45 = vsel %vm1735_vm0, %v5381_v34, 0.0  ;;  %vm1943_vm2 = vcmp.eq.s32.totalorder %v5138_v24, %v5439_v53 }
 0x1a9   : > { %v1869_v50 = vadd.f32 %v1805_v44, %v1597_v16  ;;  %v2013_v61 = vsel %vm1941_vm1, %v5384_v15, 0.0  ;;  %v4591_v0 = vpack.c.bf16 %v2282_v29, %v2280_v39  ;;  %v1871_v25 = vadd.f32 %v1807_v45, %v1599_v26 }
 0x1aa   : > { %v2015_v12 = vsel %vm1943_vm2, %v5384_v15, 0.0  ;;  %vm2149_vm3 = vcmp.eq.s32.totalorder %v5135_v22, %v5442_v4  ;;  %vm2151_vm4 = vcmp.eq.s32.totalorder %v5138_v24, %v5442_v4  ;;  %vm2516_vm5 = vcmp.eq.s32.totalorder %v5125_v18, %v5294_v57 }
 0x1ab   : > { %v2077_v6 = vadd.f32 %v2013_v61, %v1869_v50  ;;  %v2221_v60 = vsel %vm2149_vm3, %v5387_v35, 0.0  ;;  %4592 = vmatpush1.bf16.msra.mxu0 %v4591_v0  ;;  %v2079_v27 = vadd.f32 %v2015_v12, %v1871_v25  ;;  %v2223_v1 = vsel %vm2151_vm4, %v5387_v35, 0.0 }
 0x1ac   : > { %vm2518_vm6 = vcmp.eq.s32.totalorder %v5128_v19, %v5294_v57  ;;  %v2588_v41 = vsel %vm2516_vm5, %v5234_v47, 0.0  ;;  %vm2724_vm7 = vcmp.eq.s32.totalorder %v5125_v18, %v5297_v52  ;;  %vm2726_vm8 = vcmp.eq.s32.totalorder %v5128_v19, %v5297_v52 }
 0x1ad   : > { %v2285_v33 = vadd.f32 %v2221_v60, %v2077_v6  ;;  %v2590_v32 = vsel %vm2518_vm6, %v5234_v47, 0.0  ;;  %v2287_v63 = vadd.f32 %v2223_v1, %v2079_v27  ;;  %v2796_v39 = vsel %vm2724_vm7, %v5237_v48, 0.0 }
 0x1ae   : > { %v2798_v16 = vsel %vm2726_vm8, %v5237_v48, 0.0  ;;  %vm2932_vm9 = vcmp.eq.s32.totalorder %v5125_v18, %v5300_v20  ;;  %v2860_v26 = vadd.f32 %v2796_v39, %v2588_v41  ;;  %vm2934_vm10 = vcmp.eq.s32.totalorder %v5128_v19, %v5300_v20 }
 0x1af   : > { %v2862_v29 = vadd.f32 %v2798_v16, %v2590_v32  ;;  %v3004_v44 = vsel %vm2932_vm9, %v5240_v49, 0.0  ;;  %v4593_v45 = vpack.c.bf16 %v2287_v63, %v2285_v33  ;;  %v3006_v50 = vsel %vm2934_vm10, %v5240_v49, 0.0 }
 0x1b0   : > { %vm3140_vm11 = vcmp.eq.s32.totalorder %v5125_v18, %v5303_v56  ;;  %vm3142_vm12 = vcmp.eq.s32.totalorder %v5128_v19, %v5303_v56  ;;  %v3068_v61 = vadd.f32 %v3004_v44, %v2860_v26  ;;  %vm2521_vm13 = vcmp.eq.s32.totalorder %v5135_v22, %v5464_v23 }
 0x1b1   : > { %v3070_v0 = vadd.f32 %v3006_v50, %v2862_v29  ;;  %v3212_v25 = vsel %vm3140_vm11, %v5243_v51, 0.0  ;;  %v3214_v12 = vsel %vm3142_vm12, %v5243_v51, 0.0  ;;  %4594 = vmatprep.subr.bf16.mxu0 %v4593_v45  ;;  %vm2523_vm14 = vcmp.eq.s32.totalorder %v5138_v24, %v5464_v23 }
 0x1b2   : > { %vm2729_vm15 = vcmp.eq.s32.totalorder %v5135_v22, %v5467_v14  ;;  %vm2731_vm0 = vcmp.eq.s32.totalorder %v5138_v24, %v5467_v14  ;;  %v3276_v6 = vadd.f32 %v3212_v25, %v3068_v61  ;;  %v2593_v27 = vsel %vm2521_vm13, %v5397_v13, 0.0 }
 0x1b3   : > { %v3278_v60 = vadd.f32 %v3214_v12, %v3070_v0  ;;  %v2595_v1 = vsel %vm2523_vm14, %v5397_v13, 0.0  ;;  %v2801_v41 = vsel %vm2729_vm15, %v5400_v28, 0.0  ;;  %v2803_v33 = vsel %vm2731_vm0, %v5400_v28, 0.0 }
 0x1b4   : > { %vm2937_vm1 = vcmp.eq.s32.totalorder %v5135_v22, %v5470_v9  ;;  %vm2939_vm2 = vcmp.eq.s32.totalorder %v5138_v24, %v5470_v9  ;;  %v2865_v63 = vadd.f32 %v2801_v41, %v2593_v27  ;;  %v2867_v39 = vadd.f32 %v2803_v33, %v2595_v1 }
 0x1b5   : > { %v4719_v32 = vpack.c.bf16 %v3278_v60, %v3276_v6  ;;  %v3009_v16 = vsel %vm2937_vm1, %v5403_v21, 0.0  ;;  %v3011_v26 = vsel %vm2939_vm2, %v5403_v21, 0.0  ;;  %vm3145_vm3 = vcmp.eq.s32.totalorder %v5135_v22, %v5473_v8 }
 0x1b6   : > { %vm3147_vm4 = vcmp.eq.s32.totalorder %v5138_v24, %v5473_v8  ;;  %vm1524_vm5 = vcmp.eq.s32.totalorder %v5135_v22, %v5268_v40  ;;  %v3073_v29 = vadd.f32 %v3009_v16, %v2865_v63  ;;  %v3075_v44 = vadd.f32 %v3011_v26, %v2867_v39 }
 0x1b7   : > { %4720 = vmatpush1.bf16.msra.mxu1 %v4719_v32  ;;  %v3217_v45 = vsel %vm3145_vm3, %v5406_v31, 0.0  ;;  %v3219_v50 = vsel %vm3147_vm4, %v5406_v31, 0.0  ;;  %vm1526_vm6 = vcmp.eq.s32.totalorder %v5138_v24, %v5268_v40  ;;  %v1596_v61 = vsel %vm1524_vm5, %v5217_v36, 0.0 }
 0x1b8   : > { %vm1732_vm7 = vcmp.eq.s32.totalorder %v5135_v22, %v5271_v42  ;;  %vm1734_vm8 = vcmp.eq.s32.totalorder %v5138_v24, %v5271_v42  ;;  %v3281_v0 = vadd.f32 %v3217_v45, %v3073_v29  ;;  %v3283_v25 = vadd.f32 %v3219_v50, %v3075_v44 }
 0x1b9   : > { %v1598_v12 = vsel %vm1526_vm6, %v5217_v36, 0.0  ;;  %v1804_v6 = vsel %vm1732_vm7, %v5220_v37, 0.0  ;;  %v1806_v60 = vsel %vm1734_vm8, %v5220_v37, 0.0  ;;  %vm1940_vm9 = vcmp.eq.s32.totalorder %v5135_v22, %v5274_v58 }
 0x1ba   : > { %v1868_v27 = vadd.f32 %v1804_v6, %v1596_v61  ;;  %vm1942_vm10 = vcmp.eq.s32.totalorder %v5138_v24, %v5274_v58  ;;  %v4721_v1 = vpack.c.bf16 %v3283_v25, %v3281_v0  ;;  %v1870_v41 = vadd.f32 %v1806_v60, %v1598_v12 }
 0x1bb   : > { %v2012_v33 = vsel %vm1940_vm9, %v5223_v38, 0.0  ;;  %v2014_v32 = vsel %vm1942_vm10, %v5223_v38, 0.0  ;;  %vm2148_vm11 = vcmp.eq.s32.totalorder %v5135_v22, %v5277_v46  ;;  %vm2150_vm12 = vcmp.eq.s32.totalorder %v5138_v24, %v5277_v46 }
 0x1bc   : > { %v2076_v63 = vadd.f32 %v2012_v33, %v1868_v27  ;;  %v5908_v39 = vadd.s32 80, %v5079_v43  ;;  %4722 = vmatprep.subr.bf16.mxu1 %v4721_v1  ;;  %v2078_v16 = vadd.f32 %v2014_v32, %v1870_v41  ;;  %v2220_v26 = vsel %vm2148_vm11, %v5226_v17, 0.0 }
 0x1bd   : > { %v2222_v29 = vsel %vm2150_vm12, %v5226_v17, 0.0  ;;  %v5913_v44 = vadd.s32 88, %v5079_v43  ;;  %vm2520_vm5 = vcmp.eq.s32.totalorder %v5135_v22, %v5294_v57  ;;  %vm2522_vm6 = vcmp.eq.s32.totalorder %v5138_v24, %v5294_v57 }
 0x1be   : > { %8742 = vst [vmem:[#allocation34_spill] sm:$0xff] %v5908_v39  ;;  %v2284_v45 = vadd.f32 %v2220_v26, %v2076_v63  ;;  %vm1529_vm13 = vcmp.eq.s32.totalorder %v5908_v39, %v5433_v59  ;;  %vm1737_vm14 = vcmp.eq.s32.totalorder %v5908_v39, %v5436_v54  ;;  %vm1945_vm15 = vcmp.eq.s32.totalorder %v5908_v39, %v5439_v53 }
 0x1bf   : > { %8743 = vst [vmem:[#allocation35_spill] sm:$0xff] %v5913_v44  ;;  %v2286_v50 = vadd.f32 %v2222_v29, %v2078_v16  ;;  %vm1531_vm0 = vcmp.eq.s32.totalorder %v5913_v44, %v5433_v59  ;;  %v1601_v61 = vsel %vm1529_vm13, %v5378_v30, 0.0  ;;  %vm1739_vm1 = vcmp.eq.s32.totalorder %v5913_v44, %v5436_v54 }
 0x1c0   : > { %v1603_v0 = vsel %vm1531_vm0, %v5378_v30, 0.0  ;;  %v1809_v25 = vsel %vm1737_vm14, %v5381_v34, 0.0  ;;  %v1811_v12 = vsel %vm1739_vm1, %v5381_v34, 0.0  ;;  %vm1947_vm2 = vcmp.eq.s32.totalorder %v5913_v44, %v5439_v53 }
 0x1c1   : > { %v4595_v6 = vpack.c.bf16 %v2286_v50, %v2284_v45  ;;  %v1873_v60 = vadd.f32 %v1809_v25, %v1601_v61  ;;  %v1875_v27 = vadd.f32 %v1811_v12, %v1603_v0  ;;  %v2017_v1 = vsel %vm1945_vm15, %v5384_v15, 0.0 }
 0x1c2   : > { %v2019_v41 = vsel %vm1947_vm2, %v5384_v15, 0.0  ;;  %vm2153_vm3 = vcmp.eq.s32.totalorder %v5908_v39, %v5442_v4  ;;  %vm2155_vm4 = vcmp.eq.s32.totalorder %v5913_v44, %v5442_v4  ;;  %v2592_v26 = vsel %vm2520_vm5, %v5234_v47, 0.0 }
 0x1c3   : > { %4596 = vmatpush1.bf16.msra.mxu0 %v4595_v6  ;;  %v2081_v33 = vadd.f32 %v2017_v1, %v1873_v60  ;;  %v2083_v32 = vadd.f32 %v2019_v41, %v1875_v27  ;;  %v2225_v63 = vsel %vm2153_vm3, %v5387_v35, 0.0  ;;  %v2227_v16 = vsel %vm2155_vm4, %v5387_v35, 0.0 }
 0x1c4   : > { %vm2728_vm7 = vcmp.eq.s32.totalorder %v5135_v22, %v5297_v52  ;;  %vm2730_vm8 = vcmp.eq.s32.totalorder %v5138_v24, %v5297_v52  ;;  %v2594_v50 = vsel %vm2522_vm6, %v5234_v47, 0.0  ;;  %vm2936_vm9 = vcmp.eq.s32.totalorder %v5135_v22, %v5300_v20 }
 0x1c5   : > { %v2289_v29 = vadd.f32 %v2225_v63, %v2081_v33  ;;  %v2291_v45 = vadd.f32 %v2227_v16, %v2083_v32  ;;  %v2800_v61 = vsel %vm2728_vm7, %v5237_v48, 0.0  ;;  %v2802_v0 = vsel %vm2730_vm8, %v5237_v48, 0.0 }
 0x1c6   : > { %v2864_v25 = vadd.f32 %v2800_v61, %v2592_v26  ;;  %vm2938_vm10 = vcmp.eq.s32.totalorder %v5138_v24, %v5300_v20  ;;  %v2866_v6 = vadd.f32 %v2802_v0, %v2594_v50  ;;  %v3008_v60 = vsel %vm2936_vm9, %v5240_v49, 0.0 }
 0x1c7   : > { %v4597_v12 = vpack.c.bf16 %v2291_v45, %v2289_v29  ;;  %v3010_v27 = vsel %vm2938_vm10, %v5240_v49, 0.0  ;;  %vm3144_vm11 = vcmp.eq.s32.totalorder %v5135_v22, %v5303_v56  ;;  %vm3146_vm12 = vcmp.eq.s32.totalorder %v5138_v24, %v5303_v56 }
 0x1c8   : > { %v3072_v1 = vadd.f32 %v3008_v60, %v2864_v25  ;;  %vm2525_vm13 = vcmp.eq.s32.totalorder %v5908_v39, %v5464_v23  ;;  %v3074_v41 = vadd.f32 %v3010_v27, %v2866_v6  ;;  %v3216_v33 = vsel %vm3144_vm11, %v5243_v51, 0.0 }
 0x1c9   : > { %4598 = vmatprep.subr.bf16.mxu0 %v4597_v12  ;;  %v3218_v32 = vsel %vm3146_vm12, %v5243_v51, 0.0  ;;  %vm2527_vm14 = vcmp.eq.s32.totalorder %v5913_v44, %v5464_v23  ;;  %v2597_v16 = vsel %vm2525_vm13, %v5397_v13, 0.0  ;;  %vm2733_vm15 = vcmp.eq.s32.totalorder %v5908_v39, %v5467_v14 }
 0x1ca   : > { %v3280_v63 = vadd.f32 %v3216_v33, %v3072_v1  ;;  %v2599_v26 = vsel %vm2527_vm14, %v5397_v13, 0.0  ;;  %v3282_v29 = vadd.f32 %v3218_v32, %v3074_v41  ;;  %vm2735_vm0 = vcmp.eq.s32.totalorder %v5913_v44, %v5467_v14 }
 0x1cb   : > { %v2805_v45 = vsel %vm2733_vm15, %v5400_v28, 0.0  ;;  %vm2941_vm1 = vcmp.eq.s32.totalorder %v5908_v39, %v5470_v9  ;;  %v2807_v50 = vsel %vm2735_vm0, %v5400_v28, 0.0  ;;  %vm2943_vm2 = vcmp.eq.s32.totalorder %v5913_v44, %v5470_v9 }
 0x1cc   : > { %v2869_v61 = vadd.f32 %v2805_v45, %v2597_v16  ;;  %v3013_v0 = vsel %vm2941_vm1, %v5403_v21, 0.0  ;;  %v4723_v25 = vpack.c.bf16 %v3282_v29, %v3280_v63  ;;  %v2871_v12 = vadd.f32 %v2807_v50, %v2599_v26 }
 0x1cd   : > { %v3015_v6 = vsel %vm2943_vm2, %v5403_v21, 0.0  ;;  %vm3149_vm3 = vcmp.eq.s32.totalorder %v5908_v39, %v5473_v8  ;;  %vm3151_vm4 = vcmp.eq.s32.totalorder %v5913_v44, %v5473_v8  ;;  %vm1528_vm5 = vcmp.eq.s32.totalorder %v5908_v39, %v5268_v40 }
 0x1ce   : > { %v3077_v60 = vadd.f32 %v3013_v0, %v2869_v61  ;;  %v3221_v27 = vsel %vm3149_vm3, %v5406_v31, 0.0  ;;  %4724 = vmatpush1.bf16.msra.mxu1 %v4723_v25  ;;  %v3079_v1 = vadd.f32 %v3015_v6, %v2871_v12  ;;  %v3223_v41 = vsel %vm3151_vm4, %v5406_v31, 0.0 }
 0x1cf   : > { %vm1530_vm6 = vcmp.eq.s32.totalorder %v5913_v44, %v5268_v40  ;;  %v1600_v33 = vsel %vm1528_vm5, %v5217_v36, 0.0  ;;  %vm1736_vm7 = vcmp.eq.s32.totalorder %v5908_v39, %v5271_v42  ;;  %vm1738_vm8 = vcmp.eq.s32.totalorder %v5913_v44, %v5271_v42 }
 0x1d0   : > { %v3285_v32 = vadd.f32 %v3221_v27, %v3077_v60  ;;  %v1602_v63 = vsel %vm1530_vm6, %v5217_v36, 0.0  ;;  %v3287_v16 = vadd.f32 %v3223_v41, %v3079_v1  ;;  %v1808_v26 = vsel %vm1736_vm7, %v5220_v37, 0.0 }
 0x1d1   : > { %v1810_v29 = vsel %vm1738_vm8, %v5220_v37, 0.0  ;;  %vm1944_vm9 = vcmp.eq.s32.totalorder %v5908_v39, %v5274_v58  ;;  %v1872_v45 = vadd.f32 %v1808_v26, %v1600_v33  ;;  %vm1946_vm10 = vcmp.eq.s32.totalorder %v5913_v44, %v5274_v58 }
 0x1d2   : > { %v1874_v50 = vadd.f32 %v1810_v29, %v1602_v63  ;;  %v2016_v61 = vsel %vm1944_vm9, %v5223_v38, 0.0  ;;  %v4725_v0 = vpack.c.bf16 %v3287_v16, %v3285_v32  ;;  %v2018_v25 = vsel %vm1946_vm10, %v5223_v38, 0.0 }
 0x1d3   : > { %vm2152_vm11 = vcmp.eq.s32.totalorder %v5908_v39, %v5277_v46  ;;  %vm2154_vm12 = vcmp.eq.s32.totalorder %v5913_v44, %v5277_v46  ;;  %v2080_v12 = vadd.f32 %v2016_v61, %v1872_v45  ;;  %v6012_v1 = vadd.s32 96, %v5079_v43 }
 0x1d4   : > { %v2082_v6 = vadd.f32 %v2018_v25, %v1874_v50  ;;  %v2224_v60 = vsel %vm2152_vm11, %v5226_v17, 0.0  ;;  %v2226_v27 = vsel %vm2154_vm12, %v5226_v17, 0.0  ;;  %4726 = vmatprep.subr.bf16.mxu1 %v4725_v0  ;;  %v6015_v41 = vadd.s32 104, %v5079_v43 }
 0x1d5   : > { %8744 = vst [vmem:[#allocation36_spill] sm:$0xff] %v6012_v1  ;;  %vm2524_vm13 = vcmp.eq.s32.totalorder %v5908_v39, %v5294_v57  ;;  %vm2526_vm14 = vcmp.eq.s32.totalorder %v5913_v44, %v5294_v57  ;;  %v2288_v33 = vadd.f32 %v2224_v60, %v2080_v12  ;;  %vm1533_vm15 = vcmp.eq.s32.totalorder %v6012_v1, %v5433_v59 }
 0x1d6   : > { %8745 = vst [vmem:[#allocation37_spill] sm:$0xff] %v6015_v41  ;;  %v2290_v32 = vadd.f32 %v2226_v27, %v2082_v6  ;;  %v2596_v63 = vsel %vm2524_vm13, %v5234_v47, 0.0  ;;  %v2598_v16 = vsel %vm2526_vm14, %v5234_v47, 0.0  ;;  %vm1535_vm0 = vcmp.eq.s32.totalorder %v6015_v41, %v5433_v59 }
 0x1d7   : > { %vm1741_vm1 = vcmp.eq.s32.totalorder %v6012_v1, %v5436_v54  ;;  %vm1743_vm2 = vcmp.eq.s32.totalorder %v6015_v41, %v5436_v54  ;;  %v1605_v29 = vsel %vm1533_vm15, %v5378_v30, 0.0  ;;  %v1607_v45 = vsel %vm1535_vm0, %v5378_v30, 0.0 }
 0x1d8   : > { %v4599_v26 = vpack.c.bf16 %v2290_v32, %v2288_v33  ;;  %v1813_v50 = vsel %vm1741_vm1, %v5381_v34, 0.0  ;;  %v1815_v61 = vsel %vm1743_vm2, %v5381_v34, 0.0  ;;  %vm1949_vm3 = vcmp.eq.s32.totalorder %v6012_v1, %v5439_v53 }
 0x1d9   : > { %v1877_v0 = vadd.f32 %v1813_v50, %v1605_v29  ;;  %vm1951_vm4 = vcmp.eq.s32.totalorder %v6015_v41, %v5439_v53  ;;  %v1879_v25 = vadd.f32 %v1815_v61, %v1607_v45  ;;  %v2021_v12 = vsel %vm1949_vm3, %v5384_v15, 0.0 }
 0x1da   : > { %4600 = vmatpush1.bf16.msra.mxu0 %v4599_v26  ;;  %v2023_v6 = vsel %vm1951_vm4, %v5384_v15, 0.0  ;;  %vm2157_vm5 = vcmp.eq.s32.totalorder %v6012_v1, %v5442_v4  ;;  %vm2159_vm6 = vcmp.eq.s32.totalorder %v6015_v41, %v5442_v4  ;;  %vm2732_vm7 = vcmp.eq.s32.totalorder %v5908_v39, %v5297_v52 }
 0x1db   : > { %v2085_v60 = vadd.f32 %v2021_v12, %v1877_v0  ;;  %v2229_v27 = vsel %vm2157_vm5, %v5387_v35, 0.0  ;;  %v2087_v33 = vadd.f32 %v2023_v6, %v1879_v25  ;;  %v2231_v32 = vsel %vm2159_vm6, %v5387_v35, 0.0 }
 0x1dc   : > { %vm2734_vm8 = vcmp.eq.s32.totalorder %v5913_v44, %v5297_v52  ;;  %v2804_v26 = vsel %vm2732_vm7, %v5237_v48, 0.0  ;;  %vm2940_vm9 = vcmp.eq.s32.totalorder %v5908_v39, %v5300_v20  ;;  %vm2942_vm10 = vcmp.eq.s32.totalorder %v5913_v44, %v5300_v20 }
 0x1dd   : > { %v2293_v29 = vadd.f32 %v2229_v27, %v2085_v60  ;;  %v2806_v45 = vsel %vm2734_vm8, %v5237_v48, 0.0  ;;  %v2868_v50 = vadd.f32 %v2804_v26, %v2596_v63  ;;  %v2295_v61 = vadd.f32 %v2231_v32, %v2087_v33 }
 0x1de   : > { %v2870_v0 = vadd.f32 %v2806_v45, %v2598_v16  ;;  %v3012_v25 = vsel %vm2940_vm9, %v5240_v49, 0.0  ;;  %v3014_v12 = vsel %vm2942_vm10, %v5240_v49, 0.0  ;;  %vm3148_vm11 = vcmp.eq.s32.totalorder %v5908_v39, %v5303_v56 }
 0x1df   : > { %v3076_v6 = vadd.f32 %v3012_v25, %v2868_v50  ;;  %vm3150_vm12 = vcmp.eq.s32.totalorder %v5913_v44, %v5303_v56  ;;  %v4601_v63 = vpack.c.bf16 %v2295_v61, %v2293_v29  ;;  %v3220_v27 = vsel %vm3148_vm11, %v5243_v51, 0.0 }
 0x1e0   : > { %v3078_v60 = vadd.f32 %v3014_v12, %v2870_v0  ;;  %v3222_v16 = vsel %vm3150_vm12, %v5243_v51, 0.0  ;;  %vm2529_vm13 = vcmp.eq.s32.totalorder %v6012_v1, %v5464_v23  ;;  %vm2531_vm14 = vcmp.eq.s32.totalorder %v6015_v41, %v5464_v23 }
 0x1e1   : > { %v3284_v33 = vadd.f32 %v3220_v27, %v3076_v6  ;;  %vm2737_vm15 = vcmp.eq.s32.totalorder %v6012_v1, %v5467_v14  ;;  %4602 = vmatprep.subr.bf16.mxu0 %v4601_v63  ;;  %v2601_v26 = vsel %vm2529_vm13, %v5397_v13, 0.0  ;;  %v2603_v29 = vsel %vm2531_vm14, %v5397_v13, 0.0 }
 0x1e2   : > { %v3286_v32 = vadd.f32 %v3222_v16, %v3078_v60  ;;  %vm2739_vm0 = vcmp.eq.s32.totalorder %v6015_v41, %v5467_v14  ;;  %v2809_v45 = vsel %vm2737_vm15, %v5400_v28, 0.0  ;;  %vm2945_vm1 = vcmp.eq.s32.totalorder %v6012_v1, %v5470_v9 }
 0x1e3   : > { %v2811_v50 = vsel %vm2739_vm0, %v5400_v28, 0.0  ;;  %vm2947_vm2 = vcmp.eq.s32.totalorder %v6015_v41, %v5470_v9  ;;  %v2873_v0 = vadd.f32 %v2809_v45, %v2601_v26  ;;  %v3017_v12 = vsel %vm2945_vm1, %v5403_v21, 0.0 }
 0x1e4   : > { %v4727_v61 = vpack.c.bf16 %v3286_v32, %v3284_v33  ;;  %v2875_v25 = vadd.f32 %v2811_v50, %v2603_v29  ;;  %v3019_v6 = vsel %vm2947_vm2, %v5403_v21, 0.0  ;;  %vm3153_vm3 = vcmp.eq.s32.totalorder %v6012_v1, %v5473_v8 }
 0x1e5   : > { %vm3155_vm4 = vcmp.eq.s32.totalorder %v6015_v41, %v5473_v8  ;;  %vm1532_vm5 = vcmp.eq.s32.totalorder %v6012_v1, %v5268_v40  ;;  %v3081_v63 = vadd.f32 %v3017_v12, %v2873_v0  ;;  %v3225_v27 = vsel %vm3153_vm3, %v5406_v31, 0.0 }
 0x1e6   : > { %4728 = vmatpush1.bf16.msra.mxu1 %v4727_v61  ;;  %v3083_v60 = vadd.f32 %v3019_v6, %v2875_v25  ;;  %v3227_v16 = vsel %vm3155_vm4, %v5406_v31, 0.0  ;;  %vm1534_vm6 = vcmp.eq.s32.totalorder %v6015_v41, %v5268_v40  ;;  %v1604_v33 = vsel %vm1532_vm5, %v5217_v36, 0.0 }
 0x1e7   : > { %vm1740_vm7 = vcmp.eq.s32.totalorder %v6012_v1, %v5271_v42  ;;  %vm1742_vm8 = vcmp.eq.s32.totalorder %v6015_v41, %v5271_v42  ;;  %v3289_v32 = vadd.f32 %v3225_v27, %v3081_v63  ;;  %v1606_v29 = vsel %vm1534_vm6, %v5217_v36, 0.0 }
 0x1e8   : > { %v3291_v26 = vadd.f32 %v3227_v16, %v3083_v60  ;;  %v1812_v45 = vsel %vm1740_vm7, %v5220_v37, 0.0  ;;  %v1814_v50 = vsel %vm1742_vm8, %v5220_v37, 0.0  ;;  %vm1948_vm9 = vcmp.eq.s32.totalorder %v6012_v1, %v5274_v58 }
 0x1e9   : > { %v1876_v61 = vadd.f32 %v1812_v45, %v1604_v33  ;;  %vm1950_vm10 = vcmp.eq.s32.totalorder %v6015_v41, %v5274_v58  ;;  %v1878_v25 = vadd.f32 %v1814_v50, %v1606_v29  ;;  %v2020_v12 = vsel %vm1948_vm9, %v5223_v38, 0.0 }
 0x1ea   : > { %v4729_v0 = vpack.c.bf16 %v3291_v26, %v3289_v32  ;;  %v2022_v6 = vsel %vm1950_vm10, %v5223_v38, 0.0  ;;  %vm2156_vm11 = vcmp.eq.s32.totalorder %v6012_v1, %v5277_v46  ;;  %vm2158_vm12 = vcmp.eq.s32.totalorder %v6015_v41, %v5277_v46 }
 0x1eb   : > { %v2084_v63 = vadd.f32 %v2020_v12, %v1876_v61  ;;  %v6112_v60 = vadd.s32 112, %v5079_v43  ;;  %v2086_v27 = vadd.f32 %v2022_v6, %v1878_v25  ;;  %v2228_v16 = vsel %vm2156_vm11, %v5226_v17, 0.0 }
 0x1ec   : > { %4730 = vmatprep.subr.bf16.mxu1 %v4729_v0  ;;  %v2230_v33 = vsel %vm2158_vm12, %v5226_v17, 0.0  ;;  %v6117_v32 = vadd.s32 120, %v5079_v43  ;;  %vm2528_vm5 = vcmp.eq.s32.totalorder %v6012_v1, %v5294_v57  ;;  %vm2530_vm6 = vcmp.eq.s32.totalorder %v6015_v41, %v5294_v57 }
 0x1ed   : > { %8746 = vst [vmem:[#allocation38_spill] sm:$0xff] %v6112_v60  ;;  %v2292_v26 = vadd.f32 %v2228_v16, %v2084_v63  ;;  %vm1537_vm13 = vcmp.eq.s32.totalorder %v6112_v60, %v5433_v59  ;;  %vm1745_vm14 = vcmp.eq.s32.totalorder %v6112_v60, %v5436_v54  ;;  %vm1953_vm15 = vcmp.eq.s32.totalorder %v6112_v60, %v5439_v53 }
 0x1ee   : > { %8747 = vst [vmem:[#allocation39_spill] sm:$0xff] %v6117_v32  ;;  %v2294_v29 = vadd.f32 %v2230_v33, %v2086_v27  ;;  %vm1539_vm0 = vcmp.eq.s32.totalorder %v6117_v32, %v5433_v59  ;;  %v1609_v45 = vsel %vm1537_vm13, %v5378_v30, 0.0  ;;  %vm1747_vm1 = vcmp.eq.s32.totalorder %v6117_v32, %v5436_v54 }
 0x1ef   : > { %v1611_v50 = vsel %vm1539_vm0, %v5378_v30, 0.0  ;;  %v1817_v61 = vsel %vm1745_vm14, %v5381_v34, 0.0  ;;  %v1819_v0 = vsel %vm1747_vm1, %v5381_v34, 0.0  ;;  %vm1955_vm2 = vcmp.eq.s32.totalorder %v6117_v32, %v5439_v53 }
 0x1f0   : > { %v4603_v25 = vpack.c.bf16 %v2294_v29, %v2292_v26  ;;  %v1881_v12 = vadd.f32 %v1817_v61, %v1609_v45  ;;  %v1883_v6 = vadd.f32 %v1819_v0, %v1611_v50  ;;  %v2025_v63 = vsel %vm1953_vm15, %v5384_v15, 0.0 }
 0x1f1   : > { %v2027_v27 = vsel %vm1955_vm2, %v5384_v15, 0.0  ;;  %vm2161_vm3 = vcmp.eq.s32.totalorder %v6112_v60, %v5442_v4  ;;  %vm2163_vm4 = vcmp.eq.s32.totalorder %v6117_v32, %v5442_v4  ;;  %v2600_v45 = vsel %vm2528_vm5, %v5234_v47, 0.0 }
 0x1f2   : > { %4604 = vmatpush1.bf16.msra.mxu0 %v4603_v25  ;;  %v2089_v16 = vadd.f32 %v2025_v63, %v1881_v12  ;;  %v2091_v33 = vadd.f32 %v2027_v27, %v1883_v6  ;;  %v2233_v26 = vsel %vm2161_vm3, %v5387_v35, 0.0  ;;  %v2235_v29 = vsel %vm2163_vm4, %v5387_v35, 0.0 }
 0x1f3   : > { %vm2736_vm7 = vcmp.eq.s32.totalorder %v6012_v1, %v5297_v52  ;;  %vm2738_vm8 = vcmp.eq.s32.totalorder %v6015_v41, %v5297_v52  ;;  %v2602_v0 = vsel %vm2530_vm6, %v5234_v47, 0.0  ;;  %vm2944_vm9 = vcmp.eq.s32.totalorder %v6012_v1, %v5300_v20 }
 0x1f4   : > { %v2297_v50 = vadd.f32 %v2233_v26, %v2089_v16  ;;  %v2299_v61 = vadd.f32 %v2235_v29, %v2091_v33  ;;  %v2808_v25 = vsel %vm2736_vm7, %v5237_v48, 0.0  ;;  %v2810_v12 = vsel %vm2738_vm8, %v5237_v48, 0.0 }
 0x1f5   : > { %v2872_v6 = vadd.f32 %v2808_v25, %v2600_v45  ;;  %vm2946_vm10 = vcmp.eq.s32.totalorder %v6015_v41, %v5300_v20  ;;  %v2874_v27 = vadd.f32 %v2810_v12, %v2602_v0  ;;  %v3016_v44 = vsel %vm2944_vm9, %v5240_v49, 0.0 }
 0x1f6   : > { %v4605_v63 = vpack.c.bf16 %v2299_v61, %v2297_v50  ;;  %v3018_v16 = vsel %vm2946_vm10, %v5240_v49, 0.0  ;;  %vm3152_vm11 = vcmp.eq.s32.totalorder %v6012_v1, %v5303_v56  ;;  %vm3154_vm12 = vcmp.eq.s32.totalorder %v6015_v41, %v5303_v56 }
 0x1f7   : > { %v3080_v33 = vadd.f32 %v3016_v44, %v2872_v6  ;;  %vm2533_vm13 = vcmp.eq.s32.totalorder %v6112_v60, %v5464_v23  ;;  %v3082_v26 = vadd.f32 %v3018_v16, %v2874_v27  ;;  %v3224_v29 = vsel %vm3152_vm11, %v5243_v51, 0.0 }
 0x1f8   : > { %4606 = vmatprep.subr.bf16.mxu0 %v4605_v63  ;;  %v3226_v45 = vsel %vm3154_vm12, %v5243_v51, 0.0  ;;  %vm2535_vm14 = vcmp.eq.s32.totalorder %v6117_v32, %v5464_v23  ;;  %v2605_v44 = vsel %vm2533_vm13, %v5397_v13, 0.0  ;;  %vm2741_vm15 = vcmp.eq.s32.totalorder %v6112_v60, %v5467_v14 }
 0x1f9   : > { %v3288_v50 = vadd.f32 %v3224_v29, %v3080_v33  ;;  %v2607_v61 = vsel %vm2535_vm14, %v5397_v13, 0.0  ;;  %v3290_v0 = vadd.f32 %v3226_v45, %v3082_v26  ;;  %vm2743_vm0 = vcmp.eq.s32.totalorder %v6117_v32, %v5467_v14 }
 0x1fa   : > { %v2813_v25 = vsel %vm2741_vm15, %v5400_v28, 0.0  ;;  %vm2949_vm1 = vcmp.eq.s32.totalorder %v6112_v60, %v5470_v9  ;;  %v2815_v12 = vsel %vm2743_vm0, %v5400_v28, 0.0  ;;  %vm2951_vm2 = vcmp.eq.s32.totalorder %v6117_v32, %v5470_v9 }
 0x1fb   : > { %v2877_v6 = vadd.f32 %v2813_v25, %v2605_v44  ;;  %v3021_v63 = vsel %vm2949_vm1, %v5403_v21, 0.0  ;;  %v4731_v27 = vpack.c.bf16 %v3290_v0, %v3288_v50  ;;  %v2879_v16 = vadd.f32 %v2815_v12, %v2607_v61 }
 0x1fc   : > { %v3023_v33 = vsel %vm2951_vm2, %v5403_v21, 0.0  ;;  %vm3157_vm3 = vcmp.eq.s32.totalorder %v6112_v60, %v5473_v8  ;;  %vm3159_vm4 = vcmp.eq.s32.totalorder %v6117_v32, %v5473_v8  ;;  %vm1536_vm5 = vcmp.eq.s32.totalorder %v6112_v60, %v5268_v40 }
 0x1fd   : > { %v3085_v26 = vadd.f32 %v3021_v63, %v2877_v6  ;;  %v3229_v29 = vsel %vm3157_vm3, %v5406_v31, 0.0  ;;  %4732 = vmatpush1.bf16.msra.mxu1 %v4731_v27  ;;  %v3087_v45 = vadd.f32 %v3023_v33, %v2879_v16  ;;  %v3231_v44 = vsel %vm3159_vm4, %v5406_v31, 0.0 }
 0x1fe   : > { %vm1538_vm6 = vcmp.eq.s32.totalorder %v6117_v32, %v5268_v40  ;;  %v1608_v50 = vsel %vm1536_vm5, %v5217_v36, 0.0  ;;  %vm1744_vm7 = vcmp.eq.s32.totalorder %v6112_v60, %v5271_v42  ;;  %vm1746_vm8 = vcmp.eq.s32.totalorder %v6117_v32, %v5271_v42 }
 0x1ff   : > { %v3293_v61 = vadd.f32 %v3229_v29, %v3085_v26  ;;  %v1610_v0 = vsel %vm1538_vm6, %v5217_v36, 0.0  ;;  %v3295_v25 = vadd.f32 %v3231_v44, %v3087_v45  ;;  %v1816_v12 = vsel %vm1744_vm7, %v5220_v37, 0.0 }
 0x200   : > { %v1818_v6 = vsel %vm1746_vm8, %v5220_v37, 0.0  ;;  %vm1952_vm9 = vcmp.eq.s32.totalorder %v6112_v60, %v5274_v58  ;;  %v1880_v63 = vadd.f32 %v1816_v12, %v1608_v50  ;;  %vm1954_vm10 = vcmp.eq.s32.totalorder %v6117_v32, %v5274_v58 }
 0x201   : > { %v1882_v27 = vadd.f32 %v1818_v6, %v1610_v0  ;;  %v2024_v16 = vsel %vm1952_vm9, %v5223_v38, 0.0  ;;  %v4733_v33 = vpack.c.bf16 %v3295_v25, %v3293_v61  ;;  %v2026_v26 = vsel %vm1954_vm10, %v5223_v38, 0.0 }
 0x202   : > { %vm2160_vm11 = vcmp.eq.s32.totalorder %v6112_v60, %v5277_v46  ;;  %vm2162_vm12 = vcmp.eq.s32.totalorder %v6117_v32, %v5277_v46  ;;  %v2088_v29 = vadd.f32 %v2024_v16, %v1880_v63  ;;  %v6216_v0 = vadd.s32 128, %v5079_v43 }
 0x203   : > { %v2090_v45 = vadd.f32 %v2026_v26, %v1882_v27  ;;  %v2232_v44 = vsel %vm2160_vm11, %v5226_v17, 0.0  ;;  %v2234_v50 = vsel %vm2162_vm12, %v5226_v17, 0.0  ;;  %4734 = vmatprep.subr.bf16.mxu1 %v4733_v33  ;;  %v6219_v61 = vadd.s32 136, %v5079_v43 }
 0x204   : > { %8748 = vst [vmem:[#allocation40_spill] sm:$0xff] %v6216_v0  ;;  %vm2532_vm13 = vcmp.eq.s32.totalorder %v6112_v60, %v5294_v57  ;;  %vm2534_vm14 = vcmp.eq.s32.totalorder %v6117_v32, %v5294_v57  ;;  %v2296_v25 = vadd.f32 %v2232_v44, %v2088_v29  ;;  %vm1541_vm15 = vcmp.eq.s32.totalorder %v6216_v0, %v5433_v59 }
 0x205   : > { %8749 = vst [vmem:[#allocation41_spill] sm:$0xff] %v6219_v61  ;;  %v2298_v12 = vadd.f32 %v2234_v50, %v2090_v45  ;;  %v2604_v6 = vsel %vm2532_vm13, %v5234_v47, 0.0  ;;  %v2606_v63 = vsel %vm2534_vm14, %v5234_v47, 0.0  ;;  %vm1543_vm0 = vcmp.eq.s32.totalorder %v6219_v61, %v5433_v59 }
 0x206   : > { %vm1749_vm1 = vcmp.eq.s32.totalorder %v6216_v0, %v5436_v54  ;;  %vm1751_vm2 = vcmp.eq.s32.totalorder %v6219_v61, %v5436_v54  ;;  %v1613_v16 = vsel %vm1541_vm15, %v5378_v30, 0.0  ;;  %v1615_v33 = vsel %vm1543_vm0, %v5378_v30, 0.0 }
 0x207   : > { %v4607_v27 = vpack.c.bf16 %v2298_v12, %v2296_v25  ;;  %v1821_v26 = vsel %vm1749_vm1, %v5381_v34, 0.0  ;;  %v1823_v29 = vsel %vm1751_vm2, %v5381_v34, 0.0  ;;  %vm1957_vm3 = vcmp.eq.s32.totalorder %v6216_v0, %v5439_v53 }
 0x208   : > { %v1885_v45 = vadd.f32 %v1821_v26, %v1613_v16  ;;  %vm1959_vm4 = vcmp.eq.s32.totalorder %v6219_v61, %v5439_v53  ;;  %v1887_v44 = vadd.f32 %v1823_v29, %v1615_v33  ;;  %v2029_v50 = vsel %vm1957_vm3, %v5384_v15, 0.0 }
 0x209   : > { %4608 = vmatpush1.bf16.msra.mxu0 %v4607_v27  ;;  %v2031_v25 = vsel %vm1959_vm4, %v5384_v15, 0.0  ;;  %vm2165_vm5 = vcmp.eq.s32.totalorder %v6216_v0, %v5442_v4  ;;  %vm2167_vm6 = vcmp.eq.s32.totalorder %v6219_v61, %v5442_v4  ;;  %vm2740_vm7 = vcmp.eq.s32.totalorder %v6112_v60, %v5297_v52 }
 0x20a   : > { %v2093_v12 = vadd.f32 %v2029_v50, %v1885_v45  ;;  %v2237_v16 = vsel %vm2165_vm5, %v5387_v35, 0.0  ;;  %v2095_v26 = vadd.f32 %v2031_v25, %v1887_v44  ;;  %v2239_v27 = vsel %vm2167_vm6, %v5387_v35, 0.0 }
 0x20b   : > { %vm2742_vm8 = vcmp.eq.s32.totalorder %v6117_v32, %v5297_v52  ;;  %v2812_v33 = vsel %vm2740_vm7, %v5237_v48, 0.0  ;;  %vm2948_vm9 = vcmp.eq.s32.totalorder %v6112_v60, %v5300_v20  ;;  %vm2950_vm10 = vcmp.eq.s32.totalorder %v6117_v32, %v5300_v20 }
 0x20c   : > { %v2301_v29 = vadd.f32 %v2237_v16, %v2093_v12  ;;  %v2814_v41 = vsel %vm2742_vm8, %v5237_v48, 0.0  ;;  %v2876_v45 = vadd.f32 %v2812_v33, %v2604_v6  ;;  %v2303_v50 = vadd.f32 %v2239_v27, %v2095_v26 }
 0x20d   : > { %v2878_v1 = vadd.f32 %v2814_v41, %v2606_v63  ;;  %v3020_v44 = vsel %vm2948_vm9, %v5240_v49, 0.0  ;;  %v3022_v25 = vsel %vm2950_vm10, %v5240_v49, 0.0  ;;  %vm3156_vm11 = vcmp.eq.s32.totalorder %v6112_v60, %v5303_v56 }
 0x20e   : > { %v3084_v39 = vadd.f32 %v3020_v44, %v2876_v45  ;;  %vm3158_vm12 = vcmp.eq.s32.totalorder %v6117_v32, %v5303_v56  ;;  %v4609_v6 = vpack.c.bf16 %v2303_v50, %v2301_v29  ;;  %v3228_v16 = vsel %vm3156_vm11, %v5243_v51, 0.0 }
 0x20f   : > { %v3086_v12 = vadd.f32 %v3022_v25, %v2878_v1  ;;  %v3230_v41 = vsel %vm3158_vm12, %v5243_v51, 0.0  ;;  %vm2537_vm13 = vcmp.eq.s32.totalorder %v6216_v0, %v5464_v23  ;;  %vm2539_vm14 = vcmp.eq.s32.totalorder %v6219_v61, %v5464_v23 }
 0x210   : > { %v3292_v63 = vadd.f32 %v3228_v16, %v3084_v39  ;;  %vm2745_vm15 = vcmp.eq.s32.totalorder %v6216_v0, %v5467_v14  ;;  %4610 = vmatprep.subr.bf16.mxu0 %v4609_v6  ;;  %v2609_v27 = vsel %vm2537_vm13, %v5397_v13, 0.0  ;;  %v2611_v1 = vsel %vm2539_vm14, %v5397_v13, 0.0 }
 0x211   : > { %v3294_v26 = vadd.f32 %v3230_v41, %v3086_v12  ;;  %vm2747_vm0 = vcmp.eq.s32.totalorder %v6219_v61, %v5467_v14  ;;  %v2817_v39 = vsel %vm2745_vm15, %v5400_v28, 0.0  ;;  %vm2953_vm1 = vcmp.eq.s32.totalorder %v6216_v0, %v5470_v9 }
 0x212   : > { %v2819_v33 = vsel %vm2747_vm0, %v5400_v28, 0.0  ;;  %vm2955_vm2 = vcmp.eq.s32.totalorder %v6219_v61, %v5470_v9  ;;  %v2881_v45 = vadd.f32 %v2817_v39, %v2609_v27  ;;  %v3025_v44 = vsel %vm2953_vm1, %v5403_v21, 0.0 }
 0x213   : > { %v4735_v29 = vpack.c.bf16 %v3294_v26, %v3292_v63  ;;  %v2883_v50 = vadd.f32 %v2819_v33, %v2611_v1  ;;  %v3027_v25 = vsel %vm2955_vm2, %v5403_v21, 0.0  ;;  %vm3161_vm3 = vcmp.eq.s32.totalorder %v6216_v0, %v5473_v8 }
 0x214   : > { %vm3163_vm4 = vcmp.eq.s32.totalorder %v6219_v61, %v5473_v8  ;;  %vm1540_vm5 = vcmp.eq.s32.totalorder %v6216_v0, %v5268_v40  ;;  %v3089_v6 = vadd.f32 %v3025_v44, %v2881_v45  ;;  %v3233_v16 = vsel %vm3161_vm3, %v5406_v31, 0.0 }
 0x215   : > { %4736 = vmatpush1.bf16.msra.mxu1 %v4735_v29  ;;  %v3091_v12 = vadd.f32 %v3027_v25, %v2883_v50  ;;  %v3235_v41 = vsel %vm3163_vm4, %v5406_v31, 0.0  ;;  %vm1542_vm6 = vcmp.eq.s32.totalorder %v6219_v61, %v5268_v40  ;;  %v1612_v63 = vsel %vm1540_vm5, %v5217_v36, 0.0 }
 0x216   : > { %vm1748_vm7 = vcmp.eq.s32.totalorder %v6216_v0, %v5271_v42  ;;  %vm1750_vm8 = vcmp.eq.s32.totalorder %v6219_v61, %v5271_v42  ;;  %v3297_v26 = vadd.f32 %v3233_v16, %v3089_v6  ;;  %v1614_v1 = vsel %vm1542_vm6, %v5217_v36, 0.0 }
 0x217   : > { %v3299_v27 = vadd.f32 %v3235_v41, %v3091_v12  ;;  %v1820_v39 = vsel %vm1748_vm7, %v5220_v37, 0.0  ;;  %v1822_v33 = vsel %vm1750_vm8, %v5220_v37, 0.0  ;;  %vm1956_vm9 = vcmp.eq.s32.totalorder %v6216_v0, %v5274_v58 }
 0x218   : > { %v1884_v29 = vadd.f32 %v1820_v39, %v1612_v63  ;;  %vm1958_vm10 = vcmp.eq.s32.totalorder %v6219_v61, %v5274_v58  ;;  %v1886_v50 = vadd.f32 %v1822_v33, %v1614_v1  ;;  %v2028_v44 = vsel %vm1956_vm9, %v5223_v38, 0.0 }
 0x219   : > { %v4737_v45 = vpack.c.bf16 %v3299_v27, %v3297_v26  ;;  %v2030_v25 = vsel %vm1958_vm10, %v5223_v38, 0.0  ;;  %vm2164_vm11 = vcmp.eq.s32.totalorder %v6216_v0, %v5277_v46  ;;  %vm2166_vm12 = vcmp.eq.s32.totalorder %v6219_v61, %v5277_v46 }
 0x21a   : > { %v2092_v6 = vadd.f32 %v2028_v44, %v1884_v29  ;;  %v6316_v12 = vadd.s32 144, %v5079_v43  ;;  %v2094_v16 = vadd.f32 %v2030_v25, %v1886_v50  ;;  %v2236_v41 = vsel %vm2164_vm11, %v5226_v17, 0.0 }
 0x21b   : > { %4738 = vmatprep.subr.bf16.mxu1 %v4737_v45  ;;  %v2238_v63 = vsel %vm2166_vm12, %v5226_v17, 0.0  ;;  %v6321_v26 = vadd.s32 152, %v5079_v43  ;;  %vm2536_vm5 = vcmp.eq.s32.totalorder %v6216_v0, %v5294_v57  ;;  %vm2538_vm6 = vcmp.eq.s32.totalorder %v6219_v61, %v5294_v57 }
 0x21c   : > { %8750 = vst [vmem:[#allocation42_spill] sm:$0xff] %v6316_v12  ;;  %v2300_v27 = vadd.f32 %v2236_v41, %v2092_v6  ;;  %vm1545_vm13 = vcmp.eq.s32.totalorder %v6316_v12, %v5433_v59  ;;  %vm1753_vm14 = vcmp.eq.s32.totalorder %v6316_v12, %v5436_v54  ;;  %vm1961_vm15 = vcmp.eq.s32.totalorder %v6316_v12, %v5439_v53 }
 0x21d   : > { %8751 = vst [vmem:[#allocation43_spill] sm:$0xff] %v6321_v26  ;;  %v2302_v1 = vadd.f32 %v2238_v63, %v2094_v16  ;;  %vm1547_vm0 = vcmp.eq.s32.totalorder %v6321_v26, %v5433_v59  ;;  %v1617_v39 = vsel %vm1545_vm13, %v5378_v30, 0.0  ;;  %vm1755_vm1 = vcmp.eq.s32.totalorder %v6321_v26, %v5436_v54 }
 0x21e   : > { %v1619_v33 = vsel %vm1547_vm0, %v5378_v30, 0.0  ;;  %v1825_v29 = vsel %vm1753_vm14, %v5381_v34, 0.0  ;;  %v1827_v45 = vsel %vm1755_vm1, %v5381_v34, 0.0  ;;  %vm1963_vm2 = vcmp.eq.s32.totalorder %v6321_v26, %v5439_v53 }
 0x21f   : > { %v4611_v50 = vpack.c.bf16 %v2302_v1, %v2300_v27  ;;  %v1889_v44 = vadd.f32 %v1825_v29, %v1617_v39  ;;  %v1891_v25 = vadd.f32 %v1827_v45, %v1619_v33  ;;  %v2033_v6 = vsel %vm1961_vm15, %v5384_v15, 0.0 }
 0x220   : > { %v2035_v16 = vsel %vm1963_vm2, %v5384_v15, 0.0  ;;  %vm2169_vm3 = vcmp.eq.s32.totalorder %v6316_v12, %v5442_v4  ;;  %vm2171_vm4 = vcmp.eq.s32.totalorder %v6321_v26, %v5442_v4  ;;  %v2608_v39 = vsel %vm2536_vm5, %v5234_v47, 0.0 }
 0x221   : > { %4612 = vmatpush1.bf16.msra.mxu0 %v4611_v50  ;;  %v2097_v41 = vadd.f32 %v2033_v6, %v1889_v44  ;;  %v2099_v63 = vadd.f32 %v2035_v16, %v1891_v25  ;;  %v2241_v27 = vsel %vm2169_vm3, %v5387_v35, 0.0  ;;  %v2243_v1 = vsel %vm2171_vm4, %v5387_v35, 0.0 }
 0x222   : > { %vm2744_vm7 = vcmp.eq.s32.totalorder %v6216_v0, %v5297_v52  ;;  %vm2746_vm8 = vcmp.eq.s32.totalorder %v6219_v61, %v5297_v52  ;;  %v2610_v45 = vsel %vm2538_vm6, %v5234_v47, 0.0  ;;  %vm2952_vm9 = vcmp.eq.s32.totalorder %v6216_v0, %v5300_v20 }
 0x223   : > { %v2305_v33 = vadd.f32 %v2241_v27, %v2097_v41  ;;  %v2307_v29 = vadd.f32 %v2243_v1, %v2099_v63  ;;  %v2816_v50 = vsel %vm2744_vm7, %v5237_v48, 0.0  ;;  %v2818_v44 = vsel %vm2746_vm8, %v5237_v48, 0.0 }
 0x224   : > { %v2880_v25 = vadd.f32 %v2816_v50, %v2608_v39  ;;  %vm2954_vm10 = vcmp.eq.s32.totalorder %v6219_v61, %v5300_v20  ;;  %v2882_v16 = vadd.f32 %v2818_v44, %v2610_v45  ;;  %v3024_v32 = vsel %vm2952_vm9, %v5240_v49, 0.0 }
 0x225   : > { %v4613_v6 = vpack.c.bf16 %v2307_v29, %v2305_v33  ;;  %v3026_v41 = vsel %vm2954_vm10, %v5240_v49, 0.0  ;;  %vm3160_vm11 = vcmp.eq.s32.totalorder %v6216_v0, %v5303_v56  ;;  %vm3162_vm12 = vcmp.eq.s32.totalorder %v6219_v61, %v5303_v56 }
 0x226   : > { %v3088_v63 = vadd.f32 %v3024_v32, %v2880_v25  ;;  %vm2541_vm13 = vcmp.eq.s32.totalorder %v6316_v12, %v5464_v23  ;;  %v3090_v27 = vadd.f32 %v3026_v41, %v2882_v16  ;;  %v3232_v1 = vsel %vm3160_vm11, %v5243_v51, 0.0 }
 0x227   : > { %4614 = vmatprep.subr.bf16.mxu0 %v4613_v6  ;;  %v3234_v39 = vsel %vm3162_vm12, %v5243_v51, 0.0  ;;  %vm2543_vm14 = vcmp.eq.s32.totalorder %v6321_v26, %v5464_v23  ;;  %v2613_v32 = vsel %vm2541_vm13, %v5397_v13, 0.0  ;;  %vm2749_vm15 = vcmp.eq.s32.totalorder %v6316_v12, %v5467_v14 }
 0x228   : > { %v3296_v33 = vadd.f32 %v3232_v1, %v3088_v63  ;;  %v2615_v29 = vsel %vm2543_vm14, %v5397_v13, 0.0  ;;  %v3298_v45 = vadd.f32 %v3234_v39, %v3090_v27  ;;  %vm2751_vm0 = vcmp.eq.s32.totalorder %v6321_v26, %v5467_v14 }
 0x229   : > { %v2821_v50 = vsel %vm2749_vm15, %v5400_v28, 0.0  ;;  %vm2957_vm1 = vcmp.eq.s32.totalorder %v6316_v12, %v5470_v9  ;;  %v2823_v44 = vsel %vm2751_vm0, %v5400_v28, 0.0  ;;  %vm2959_vm2 = vcmp.eq.s32.totalorder %v6321_v26, %v5470_v9 }
 0x22a   : > { %v2885_v25 = vadd.f32 %v2821_v50, %v2613_v32  ;;  %v3029_v6 = vsel %vm2957_vm1, %v5403_v21, 0.0  ;;  %v4739_v16 = vpack.c.bf16 %v3298_v45, %v3296_v33  ;;  %v2887_v41 = vadd.f32 %v2823_v44, %v2615_v29 }
 0x22b   : > { %v3031_v63 = vsel %vm2959_vm2, %v5403_v21, 0.0  ;;  %vm3165_vm3 = vcmp.eq.s32.totalorder %v6316_v12, %v5473_v8  ;;  %vm3167_vm4 = vcmp.eq.s32.totalorder %v6321_v26, %v5473_v8  ;;  %vm1544_vm5 = vcmp.eq.s32.totalorder %v6316_v12, %v5268_v40 }
 0x22c   : > { %v3093_v27 = vadd.f32 %v3029_v6, %v2885_v25  ;;  %v3237_v1 = vsel %vm3165_vm3, %v5406_v31, 0.0  ;;  %4740 = vmatpush1.bf16.msra.mxu1 %v4739_v16  ;;  %v3095_v39 = vadd.f32 %v3031_v63, %v2887_v41  ;;  %v3239_v32 = vsel %vm3167_vm4, %v5406_v31, 0.0 }
 0x22d   : > { %vm1546_vm6 = vcmp.eq.s32.totalorder %v6321_v26, %v5268_v40  ;;  %v1616_v33 = vsel %vm1544_vm5, %v5217_v36, 0.0  ;;  %vm1752_vm7 = vcmp.eq.s32.totalorder %v6316_v12, %v5271_v42  ;;  %vm1754_vm8 = vcmp.eq.s32.totalorder %v6321_v26, %v5271_v42 }
 0x22e   : > { %v3301_v29 = vadd.f32 %v3237_v1, %v3093_v27  ;;  %v1618_v45 = vsel %vm1546_vm6, %v5217_v36, 0.0  ;;  %v3303_v50 = vadd.f32 %v3239_v32, %v3095_v39  ;;  %v1824_v44 = vsel %vm1752_vm7, %v5220_v37, 0.0 }
 0x22f   : > { %v1826_v25 = vsel %vm1754_vm8, %v5220_v37, 0.0  ;;  %vm1960_vm9 = vcmp.eq.s32.totalorder %v6316_v12, %v5274_v58  ;;  %v1888_v6 = vadd.f32 %v1824_v44, %v1616_v33  ;;  %vm1962_vm10 = vcmp.eq.s32.totalorder %v6321_v26, %v5274_v58 }
 0x230   : > { %v1890_v16 = vadd.f32 %v1826_v25, %v1618_v45  ;;  %v2032_v41 = vsel %vm1960_vm9, %v5223_v38, 0.0  ;;  %v4741_v63 = vpack.c.bf16 %v3303_v50, %v3301_v29  ;;  %v2034_v27 = vsel %vm1962_vm10, %v5223_v38, 0.0 }
 0x231   : > { %vm2168_vm11 = vcmp.eq.s32.totalorder %v6316_v12, %v5277_v46  ;;  %vm2170_vm12 = vcmp.eq.s32.totalorder %v6321_v26, %v5277_v46  ;;  %v2096_v1 = vadd.f32 %v2032_v41, %v1888_v6  ;;  %v6420_v45 = vadd.s32 160, %v5079_v43 }
 0x232   : > { %v2098_v39 = vadd.f32 %v2034_v27, %v1890_v16  ;;  %v2240_v32 = vsel %vm2168_vm11, %v5226_v17, 0.0  ;;  %v2242_v33 = vsel %vm2170_vm12, %v5226_v17, 0.0  ;;  %4742 = vmatprep.subr.bf16.mxu1 %v4741_v63  ;;  %v6423_v29 = vadd.s32 168, %v5079_v43 }
 0x233   : > { %8752 = vst [vmem:[#allocation44_spill] sm:$0xff] %v6420_v45  ;;  %vm2540_vm13 = vcmp.eq.s32.totalorder %v6316_v12, %v5294_v57  ;;  %vm2542_vm14 = vcmp.eq.s32.totalorder %v6321_v26, %v5294_v57  ;;  %v2304_v50 = vadd.f32 %v2240_v32, %v2096_v1  ;;  %vm1549_vm15 = vcmp.eq.s32.totalorder %v6420_v45, %v5433_v59 }
 0x234   : > { %8753 = vst [vmem:[#allocation45_spill] sm:$0xff] %v6423_v29  ;;  %v2306_v44 = vadd.f32 %v2242_v33, %v2098_v39  ;;  %v2612_v25 = vsel %vm2540_vm13, %v5234_v47, 0.0  ;;  %v2614_v6 = vsel %vm2542_vm14, %v5234_v47, 0.0  ;;  %vm1551_vm0 = vcmp.eq.s32.totalorder %v6423_v29, %v5433_v59 }
 0x235   : > { %vm1757_vm1 = vcmp.eq.s32.totalorder %v6420_v45, %v5436_v54  ;;  %vm1759_vm2 = vcmp.eq.s32.totalorder %v6423_v29, %v5436_v54  ;;  %v1621_v41 = vsel %vm1549_vm15, %v5378_v30, 0.0  ;;  %v1623_v63 = vsel %vm1551_vm0, %v5378_v30, 0.0 }
 0x236   : > { %v4615_v16 = vpack.c.bf16 %v2306_v44, %v2304_v50  ;;  %v1829_v27 = vsel %vm1757_vm1, %v5381_v34, 0.0  ;;  %v1831_v1 = vsel %vm1759_vm2, %v5381_v34, 0.0  ;;  %vm1965_vm3 = vcmp.eq.s32.totalorder %v6420_v45, %v5439_v53 }
 0x237   : > { %v1893_v39 = vadd.f32 %v1829_v27, %v1621_v41  ;;  %vm1967_vm4 = vcmp.eq.s32.totalorder %v6423_v29, %v5439_v53  ;;  %v1895_v32 = vadd.f32 %v1831_v1, %v1623_v63  ;;  %v2037_v33 = vsel %vm1965_vm3, %v5384_v15, 0.0 }
 0x238   : > { %4616 = vmatpush1.bf16.msra.mxu0 %v4615_v16  ;;  %v2039_v50 = vsel %vm1967_vm4, %v5384_v15, 0.0  ;;  %vm2173_vm5 = vcmp.eq.s32.totalorder %v6420_v45, %v5442_v4  ;;  %vm2175_vm6 = vcmp.eq.s32.totalorder %v6423_v29, %v5442_v4  ;;  %vm2748_vm7 = vcmp.eq.s32.totalorder %v6316_v12, %v5297_v52 }
 0x239   : > { %v2101_v44 = vadd.f32 %v2037_v33, %v1893_v39  ;;  %v2245_v41 = vsel %vm2173_vm5, %v5387_v35, 0.0  ;;  %v2103_v27 = vadd.f32 %v2039_v50, %v1895_v32  ;;  %v2247_v16 = vsel %vm2175_vm6, %v5387_v35, 0.0 }
 0x23a   : > { %vm2750_vm8 = vcmp.eq.s32.totalorder %v6321_v26, %v5297_v52  ;;  %v2820_v63 = vsel %vm2748_vm7, %v5237_v48, 0.0  ;;  %vm2956_vm9 = vcmp.eq.s32.totalorder %v6316_v12, %v5300_v20  ;;  %vm2958_vm10 = vcmp.eq.s32.totalorder %v6321_v26, %v5300_v20 }
 0x23b   : > { %v2309_v1 = vadd.f32 %v2245_v41, %v2101_v44  ;;  %v2822_v61 = vsel %vm2750_vm8, %v5237_v48, 0.0  ;;  %v2884_v39 = vadd.f32 %v2820_v63, %v2612_v25  ;;  %v2311_v33 = vadd.f32 %v2247_v16, %v2103_v27 }
 0x23c   : > { %v2886_v0 = vadd.f32 %v2822_v61, %v2614_v6  ;;  %v3028_v32 = vsel %vm2956_vm9, %v5240_v49, 0.0  ;;  %v3030_v50 = vsel %vm2958_vm10, %v5240_v49, 0.0  ;;  %vm3164_vm11 = vcmp.eq.s32.totalorder %v6316_v12, %v5303_v56 }
 0x23d   : > { %v3092_v60 = vadd.f32 %v3028_v32, %v2884_v39  ;;  %vm3166_vm12 = vcmp.eq.s32.totalorder %v6321_v26, %v5303_v56  ;;  %v4617_v25 = vpack.c.bf16 %v2311_v33, %v2309_v1  ;;  %v3236_v41 = vsel %vm3164_vm11, %v5243_v51, 0.0 }
 0x23e   : > { %v3094_v44 = vadd.f32 %v3030_v50, %v2886_v0  ;;  %v3238_v61 = vsel %vm3166_vm12, %v5243_v51, 0.0  ;;  %vm2545_vm13 = vcmp.eq.s32.totalorder %v6420_v45, %v5464_v23  ;;  %vm2547_vm14 = vcmp.eq.s32.totalorder %v6423_v29, %v5464_v23 }
 0x23f   : > { %v3300_v6 = vadd.f32 %v3236_v41, %v3092_v60  ;;  %vm2753_vm15 = vcmp.eq.s32.totalorder %v6420_v45, %v5467_v14  ;;  %4618 = vmatprep.subr.bf16.mxu0 %v4617_v25  ;;  %v2617_v16 = vsel %vm2545_vm13, %v5397_v13, 0.0  ;;  %v2619_v0 = vsel %vm2547_vm14, %v5397_v13, 0.0 }
 0x240   : > { %v3302_v27 = vadd.f32 %v3238_v61, %v3094_v44  ;;  %vm2755_vm0 = vcmp.eq.s32.totalorder %v6423_v29, %v5467_v14  ;;  %v2825_v60 = vsel %vm2753_vm15, %v5400_v28, 0.0  ;;  %vm2961_vm1 = vcmp.eq.s32.totalorder %v6420_v45, %v5470_v9 }
 0x241   : > { %v2827_v63 = vsel %vm2755_vm0, %v5400_v28, 0.0  ;;  %vm2963_vm2 = vcmp.eq.s32.totalorder %v6423_v29, %v5470_v9  ;;  %v2889_v39 = vadd.f32 %v2825_v60, %v2617_v16  ;;  %v3033_v32 = vsel %vm2961_vm1, %v5403_v21, 0.0 }
 0x242   : > { %v4743_v1 = vpack.c.bf16 %v3302_v27, %v3300_v6  ;;  %v2891_v33 = vadd.f32 %v2827_v63, %v2619_v0  ;;  %v3035_v50 = vsel %vm2963_vm2, %v5403_v21, 0.0  ;;  %vm3169_vm3 = vcmp.eq.s32.totalorder %v6420_v45, %v5473_v8 }
 0x243   : > { %vm3171_vm4 = vcmp.eq.s32.totalorder %v6423_v29, %v5473_v8  ;;  %vm1548_vm5 = vcmp.eq.s32.totalorder %v6420_v45, %v5268_v40  ;;  %v3097_v25 = vadd.f32 %v3033_v32, %v2889_v39  ;;  %v3241_v41 = vsel %vm3169_vm3, %v5406_v31, 0.0 }
 0x244   : > { %4744 = vmatpush1.bf16.msra.mxu1 %v4743_v1  ;;  %v3099_v44 = vadd.f32 %v3035_v50, %v2891_v33  ;;  %v3243_v61 = vsel %vm3171_vm4, %v5406_v31, 0.0  ;;  %vm1550_vm6 = vcmp.eq.s32.totalorder %v6423_v29, %v5268_v40  ;;  %v1620_v6 = vsel %vm1548_vm5, %v5217_v36, 0.0 }
 0x245   : > { %vm1756_vm7 = vcmp.eq.s32.totalorder %v6420_v45, %v5271_v42  ;;  %vm1758_vm8 = vcmp.eq.s32.totalorder %v6423_v29, %v5271_v42  ;;  %v3305_v27 = vadd.f32 %v3241_v41, %v3097_v25  ;;  %v1622_v0 = vsel %vm1550_vm6, %v5217_v36, 0.0 }
 0x246   : > { %v3307_v16 = vadd.f32 %v3243_v61, %v3099_v44  ;;  %v1828_v60 = vsel %vm1756_vm7, %v5220_v37, 0.0  ;;  %v1830_v63 = vsel %vm1758_vm8, %v5220_v37, 0.0  ;;  %vm1964_vm9 = vcmp.eq.s32.totalorder %v6420_v45, %v5274_v58 }
 0x247   : > { %v1892_v1 = vadd.f32 %v1828_v60, %v1620_v6  ;;  %vm1966_vm10 = vcmp.eq.s32.totalorder %v6423_v29, %v5274_v58  ;;  %v1894_v33 = vadd.f32 %v1830_v63, %v1622_v0  ;;  %v2036_v32 = vsel %vm1964_vm9, %v5223_v38, 0.0 }
 0x248   : > { %v4745_v39 = vpack.c.bf16 %v3307_v16, %v3305_v27  ;;  %v2038_v50 = vsel %vm1966_vm10, %v5223_v38, 0.0  ;;  %vm2172_vm11 = vcmp.eq.s32.totalorder %v6420_v45, %v5277_v46  ;;  %vm2174_vm12 = vcmp.eq.s32.totalorder %v6423_v29, %v5277_v46 }
 0x249   : > { %v2100_v25 = vadd.f32 %v2036_v32, %v1892_v1  ;;  %v6520_v44 = vadd.s32 176, %v5079_v43  ;;  %v2102_v41 = vadd.f32 %v2038_v50, %v1894_v33  ;;  %v2244_v61 = vsel %vm2172_vm11, %v5226_v17, 0.0 }
 0x24a   : > { %4746 = vmatprep.subr.bf16.mxu1 %v4745_v39  ;;  %v2246_v6 = vsel %vm2174_vm12, %v5226_v17, 0.0  ;;  %v6525_v27 = vadd.s32 184, %v5079_v43  ;;  %vm2544_vm5 = vcmp.eq.s32.totalorder %v6420_v45, %v5294_v57  ;;  %vm2546_vm6 = vcmp.eq.s32.totalorder %v6423_v29, %v5294_v57 }
 0x24b   : > { %8754 = vst [vmem:[#allocation46_spill] sm:$0xff] %v6520_v44  ;;  %v2308_v16 = vadd.f32 %v2244_v61, %v2100_v25  ;;  %vm1553_vm13 = vcmp.eq.s32.totalorder %v6520_v44, %v5433_v59  ;;  %vm1761_vm14 = vcmp.eq.s32.totalorder %v6520_v44, %v5436_v54  ;;  %vm1969_vm15 = vcmp.eq.s32.totalorder %v6520_v44, %v5439_v53 }
 0x24c   : > { %8755 = vst [vmem:[#allocation47_spill] sm:$0xff] %v6525_v27  ;;  %v2310_v0 = vadd.f32 %v2246_v6, %v2102_v41  ;;  %vm1555_vm0 = vcmp.eq.s32.totalorder %v6525_v27, %v5433_v59  ;;  %v1625_v60 = vsel %vm1553_vm13, %v5378_v30, 0.0  ;;  %vm1763_vm1 = vcmp.eq.s32.totalorder %v6525_v27, %v5436_v54 }
 0x24d   : > { %v1627_v63 = vsel %vm1555_vm0, %v5378_v30, 0.0  ;;  %v1833_v1 = vsel %vm1761_vm14, %v5381_v34, 0.0  ;;  %v1835_v39 = vsel %vm1763_vm1, %v5381_v34, 0.0  ;;  %vm1971_vm2 = vcmp.eq.s32.totalorder %v6525_v27, %v5439_v53 }
 0x24e   : > { %v4619_v33 = vpack.c.bf16 %v2310_v0, %v2308_v16  ;;  %v1897_v32 = vadd.f32 %v1833_v1, %v1625_v60  ;;  %v1899_v50 = vadd.f32 %v1835_v39, %v1627_v63  ;;  %v2041_v25 = vsel %vm1969_vm15, %v5384_v15, 0.0 }
 0x24f   : > { %v2043_v41 = vsel %vm1971_vm2, %v5384_v15, 0.0  ;;  %vm2177_vm3 = vcmp.eq.s32.totalorder %v6520_v44, %v5442_v4  ;;  %vm2179_vm4 = vcmp.eq.s32.totalorder %v6525_v27, %v5442_v4  ;;  %v2616_v60 = vsel %vm2544_vm5, %v5234_v47, 0.0 }
 0x250   : > { %4620 = vmatpush1.bf16.msra.mxu0 %v4619_v33  ;;  %v2105_v61 = vadd.f32 %v2041_v25, %v1897_v32  ;;  %v2107_v6 = vadd.f32 %v2043_v41, %v1899_v50  ;;  %v2249_v16 = vsel %vm2177_vm3, %v5387_v35, 0.0  ;;  %v2251_v0 = vsel %vm2179_vm4, %v5387_v35, 0.0 }
 0x251   : > { %vm2752_vm7 = vcmp.eq.s32.totalorder %v6420_v45, %v5297_v52  ;;  %vm2754_vm8 = vcmp.eq.s32.totalorder %v6423_v29, %v5297_v52  ;;  %v2618_v39 = vsel %vm2546_vm6, %v5234_v47, 0.0  ;;  %vm2960_vm9 = vcmp.eq.s32.totalorder %v6420_v45, %v5300_v20 }
 0x252   : > { %v2313_v63 = vadd.f32 %v2249_v16, %v2105_v61  ;;  %v2315_v1 = vadd.f32 %v2251_v0, %v2107_v6  ;;  %v2824_v33 = vsel %vm2752_vm7, %v5237_v48, 0.0  ;;  %v2826_v32 = vsel %vm2754_vm8, %v5237_v48, 0.0 }
 0x253   : > { %v2888_v50 = vadd.f32 %v2824_v33, %v2616_v60  ;;  %vm2962_vm10 = vcmp.eq.s32.totalorder %v6423_v29, %v5300_v20  ;;  %v2890_v41 = vadd.f32 %v2826_v32, %v2618_v39  ;;  %v3032_v26 = vsel %vm2960_vm9, %v5240_v49, 0.0 }
 0x254   : > { %v4621_v25 = vpack.c.bf16 %v2315_v1, %v2313_v63  ;;  %v3034_v61 = vsel %vm2962_vm10, %v5240_v49, 0.0  ;;  %vm3168_vm11 = vcmp.eq.s32.totalorder %v6420_v45, %v5303_v56  ;;  %vm3170_vm12 = vcmp.eq.s32.totalorder %v6423_v29, %v5303_v56 }
 0x255   : > { %v3096_v6 = vadd.f32 %v3032_v26, %v2888_v50  ;;  %vm2549_vm13 = vcmp.eq.s32.totalorder %v6520_v44, %v5464_v23  ;;  %v3098_v16 = vadd.f32 %v3034_v61, %v2890_v41  ;;  %v3240_v0 = vsel %vm3168_vm11, %v5243_v51, 0.0 }
 0x256   : > { %4622 = vmatprep.subr.bf16.mxu0 %v4621_v25  ;;  %v3242_v60 = vsel %vm3170_vm12, %v5243_v51, 0.0  ;;  %vm2551_vm14 = vcmp.eq.s32.totalorder %v6525_v27, %v5464_v23  ;;  %v2621_v26 = vsel %vm2549_vm13, %v5397_v13, 0.0  ;;  %vm2757_vm15 = vcmp.eq.s32.totalorder %v6520_v44, %v5467_v14 }
 0x257   : > { %v3304_v63 = vadd.f32 %v3240_v0, %v3096_v6  ;;  %v2623_v1 = vsel %vm2551_vm14, %v5397_v13, 0.0  ;;  %v3306_v39 = vadd.f32 %v3242_v60, %v3098_v16  ;;  %vm2759_vm0 = vcmp.eq.s32.totalorder %v6525_v27, %v5467_v14 }
 0x258   : > { %v2829_v33 = vsel %vm2757_vm15, %v5400_v28, 0.0  ;;  %vm2965_vm1 = vcmp.eq.s32.totalorder %v6520_v44, %v5470_v9  ;;  %v2831_v32 = vsel %vm2759_vm0, %v5400_v28, 0.0  ;;  %vm2967_vm2 = vcmp.eq.s32.totalorder %v6525_v27, %v5470_v9 }
 0x259   : > { %v2893_v50 = vadd.f32 %v2829_v33, %v2621_v26  ;;  %v3037_v25 = vsel %vm2965_vm1, %v5403_v21, 0.0  ;;  %v4747_v41 = vpack.c.bf16 %v3306_v39, %v3304_v63  ;;  %v2895_v61 = vadd.f32 %v2831_v32, %v2623_v1 }
 0x25a   : > { %v3039_v6 = vsel %vm2967_vm2, %v5403_v21, 0.0  ;;  %vm3173_vm3 = vcmp.eq.s32.totalorder %v6520_v44, %v5473_v8  ;;  %vm3175_vm4 = vcmp.eq.s32.totalorder %v6525_v27, %v5473_v8  ;;  %vm1552_vm5 = vcmp.eq.s32.totalorder %v6520_v44, %v5268_v40 }
 0x25b   : > { %v3101_v16 = vadd.f32 %v3037_v25, %v2893_v50  ;;  %v3245_v0 = vsel %vm3173_vm3, %v5406_v31, 0.0  ;;  %4748 = vmatpush1.bf16.msra.mxu1 %v4747_v41  ;;  %v3103_v60 = vadd.f32 %v3039_v6, %v2895_v61  ;;  %v3247_v26 = vsel %vm3175_vm4, %v5406_v31, 0.0 }
 0x25c   : > { %vm1554_vm6 = vcmp.eq.s32.totalorder %v6525_v27, %v5268_v40  ;;  %v1624_v63 = vsel %vm1552_vm5, %v5217_v36, 0.0  ;;  %vm1760_vm7 = vcmp.eq.s32.totalorder %v6520_v44, %v5271_v42  ;;  %vm1762_vm8 = vcmp.eq.s32.totalorder %v6525_v27, %v5271_v42 }
 0x25d   : > { %v3309_v1 = vadd.f32 %v3245_v0, %v3101_v16  ;;  %v1626_v39 = vsel %vm1554_vm6, %v5217_v36, 0.0  ;;  %v3311_v33 = vadd.f32 %v3247_v26, %v3103_v60  ;;  %v1832_v32 = vsel %vm1760_vm7, %v5220_v37, 0.0 }
 0x25e   : > { %v1834_v50 = vsel %vm1762_vm8, %v5220_v37, 0.0  ;;  %vm1968_vm9 = vcmp.eq.s32.totalorder %v6520_v44, %v5274_v58  ;;  %v1896_v25 = vadd.f32 %v1832_v32, %v1624_v63  ;;  %vm1970_vm10 = vcmp.eq.s32.totalorder %v6525_v27, %v5274_v58 }
 0x25f   : > { %v1898_v41 = vadd.f32 %v1834_v50, %v1626_v39  ;;  %v2040_v61 = vsel %vm1968_vm9, %v5223_v38, 0.0  ;;  %v4749_v6 = vpack.c.bf16 %v3311_v33, %v3309_v1  ;;  %v2042_v16 = vsel %vm1970_vm10, %v5223_v38, 0.0 }
 0x260   : > { %vm2176_vm11 = vcmp.eq.s32.totalorder %v6520_v44, %v5277_v46  ;;  %vm2178_vm12 = vcmp.eq.s32.totalorder %v6525_v27, %v5277_v46  ;;  %v2104_v0 = vadd.f32 %v2040_v61, %v1896_v25  ;;  %v6624_v39 = vadd.s32 192, %v5079_v43 }
 0x261   : > { %v2106_v60 = vadd.f32 %v2042_v16, %v1898_v41  ;;  %v2248_v26 = vsel %vm2176_vm11, %v5226_v17, 0.0  ;;  %v2250_v63 = vsel %vm2178_vm12, %v5226_v17, 0.0  ;;  %4750 = vmatprep.subr.bf16.mxu1 %v4749_v6  ;;  %v6627_v1 = vadd.s32 200, %v5079_v43 }
 0x262   : > { %8756 = vst [vmem:[#allocation48_spill] sm:$0xff] %v6624_v39  ;;  %vm2548_vm13 = vcmp.eq.s32.totalorder %v6520_v44, %v5294_v57  ;;  %vm2550_vm14 = vcmp.eq.s32.totalorder %v6525_v27, %v5294_v57  ;;  %v2312_v33 = vadd.f32 %v2248_v26, %v2104_v0  ;;  %vm1557_vm15 = vcmp.eq.s32.totalorder %v6624_v39, %v5433_v59 }
 0x263   : > { %8757 = vst [vmem:[#allocation49_spill] sm:$0xff] %v6627_v1  ;;  %v2314_v32 = vadd.f32 %v2250_v63, %v2106_v60  ;;  %v2620_v50 = vsel %vm2548_vm13, %v5234_v47, 0.0  ;;  %v2622_v25 = vsel %vm2550_vm14, %v5234_v47, 0.0  ;;  %vm1559_vm0 = vcmp.eq.s32.totalorder %v6627_v1, %v5433_v59 }
 0x264   : > { %vm1765_vm1 = vcmp.eq.s32.totalorder %v6624_v39, %v5436_v54  ;;  %vm1767_vm2 = vcmp.eq.s32.totalorder %v6627_v1, %v5436_v54  ;;  %v1629_v61 = vsel %vm1557_vm15, %v5378_v30, 0.0  ;;  %v1631_v6 = vsel %vm1559_vm0, %v5378_v30, 0.0 }
 0x265   : > { %v4623_v41 = vpack.c.bf16 %v2314_v32, %v2312_v33  ;;  %v1837_v16 = vsel %vm1765_vm1, %v5381_v34, 0.0  ;;  %v1839_v0 = vsel %vm1767_vm2, %v5381_v34, 0.0  ;;  %vm1973_vm3 = vcmp.eq.s32.totalorder %v6624_v39, %v5439_v53 }
 0x266   : > { %v1901_v60 = vadd.f32 %v1837_v16, %v1629_v61  ;;  %vm1975_vm4 = vcmp.eq.s32.totalorder %v6627_v1, %v5439_v53  ;;  %v1903_v26 = vadd.f32 %v1839_v0, %v1631_v6  ;;  %v2045_v63 = vsel %vm1973_vm3, %v5384_v15, 0.0 }
 0x267   : > { %4624 = vmatpush1.bf16.msra.mxu0 %v4623_v41  ;;  %v2047_v33 = vsel %vm1975_vm4, %v5384_v15, 0.0  ;;  %vm2181_vm5 = vcmp.eq.s32.totalorder %v6624_v39, %v5442_v4  ;;  %vm2183_vm6 = vcmp.eq.s32.totalorder %v6627_v1, %v5442_v4  ;;  %vm2756_vm7 = vcmp.eq.s32.totalorder %v6520_v44, %v5297_v52 }
 0x268   : > { %v2109_v32 = vadd.f32 %v2045_v63, %v1901_v60  ;;  %v2253_v61 = vsel %vm2181_vm5, %v5387_v35, 0.0  ;;  %v2111_v16 = vadd.f32 %v2047_v33, %v1903_v26  ;;  %v2255_v41 = vsel %vm2183_vm6, %v5387_v35, 0.0 }
 0x269   : > { %vm2758_vm8 = vcmp.eq.s32.totalorder %v6525_v27, %v5297_v52  ;;  %v2828_v6 = vsel %vm2756_vm7, %v5237_v48, 0.0  ;;  %vm2964_vm9 = vcmp.eq.s32.totalorder %v6520_v44, %v5300_v20  ;;  %vm2966_vm10 = vcmp.eq.s32.totalorder %v6525_v27, %v5300_v20 }
 0x26a   : > { %v2317_v0 = vadd.f32 %v2253_v61, %v2109_v32  ;;  %v2830_v29 = vsel %vm2758_vm8, %v5237_v48, 0.0  ;;  %v2892_v60 = vadd.f32 %v2828_v6, %v2620_v50  ;;  %v2319_v63 = vadd.f32 %v2255_v41, %v2111_v16 }
 0x26b   : > { %v2894_v45 = vadd.f32 %v2830_v29, %v2622_v25  ;;  %v3036_v26 = vsel %vm2964_vm9, %v5240_v49, 0.0  ;;  %v3038_v33 = vsel %vm2966_vm10, %v5240_v49, 0.0  ;;  %vm3172_vm11 = vcmp.eq.s32.totalorder %v6520_v44, %v5303_v56 }
 0x26c   : > { %v3100_v12 = vadd.f32 %v3036_v26, %v2892_v60  ;;  %vm3174_vm12 = vcmp.eq.s32.totalorder %v6525_v27, %v5303_v56  ;;  %v4625_v50 = vpack.c.bf16 %v2319_v63, %v2317_v0  ;;  %v3244_v61 = vsel %vm3172_vm11, %v5243_v51, 0.0 }
 0x26d   : > { %v3102_v32 = vadd.f32 %v3038_v33, %v2894_v45  ;;  %v3246_v29 = vsel %vm3174_vm12, %v5243_v51, 0.0  ;;  %vm2553_vm13 = vcmp.eq.s32.totalorder %v6624_v39, %v5464_v23  ;;  %vm2555_vm14 = vcmp.eq.s32.totalorder %v6627_v1, %v5464_v23 }
 0x26e   : > { %v3308_v25 = vadd.f32 %v3244_v61, %v3100_v12  ;;  %vm2761_vm15 = vcmp.eq.s32.totalorder %v6624_v39, %v5467_v14  ;;  %4626 = vmatprep.subr.bf16.mxu0 %v4625_v50  ;;  %v2625_v41 = vsel %vm2553_vm13, %v5397_v13, 0.0  ;;  %v2627_v45 = vsel %vm2555_vm14, %v5397_v13, 0.0 }
 0x26f   : > { %v3310_v16 = vadd.f32 %v3246_v29, %v3102_v32  ;;  %vm2763_vm0 = vcmp.eq.s32.totalorder %v6627_v1, %v5467_v14  ;;  %v2833_v12 = vsel %vm2761_vm15, %v5400_v28, 0.0  ;;  %vm2969_vm1 = vcmp.eq.s32.totalorder %v6624_v39, %v5470_v9 }
 0x270   : > { %v2835_v6 = vsel %vm2763_vm0, %v5400_v28, 0.0  ;;  %vm2971_vm2 = vcmp.eq.s32.totalorder %v6627_v1, %v5470_v9  ;;  %v2897_v60 = vadd.f32 %v2833_v12, %v2625_v41  ;;  %v3041_v26 = vsel %vm2969_vm1, %v5403_v21, 0.0 }
 0x271   : > { %v4751_v0 = vpack.c.bf16 %v3310_v16, %v3308_v25  ;;  %v2899_v63 = vadd.f32 %v2835_v6, %v2627_v45  ;;  %v3043_v33 = vsel %vm2971_vm2, %v5403_v21, 0.0  ;;  %vm3177_vm3 = vcmp.eq.s32.totalorder %v6624_v39, %v5473_v8 }
 0x272   : > { %vm3179_vm4 = vcmp.eq.s32.totalorder %v6627_v1, %v5473_v8  ;;  %vm1556_vm5 = vcmp.eq.s32.totalorder %v6624_v39, %v5268_v40  ;;  %v3105_v50 = vadd.f32 %v3041_v26, %v2897_v60  ;;  %v3249_v61 = vsel %vm3177_vm3, %v5406_v31, 0.0 }
 0x273   : > { %4752 = vmatpush1.bf16.msra.mxu1 %v4751_v0  ;;  %v3107_v32 = vadd.f32 %v3043_v33, %v2899_v63  ;;  %v3251_v29 = vsel %vm3179_vm4, %v5406_v31, 0.0  ;;  %vm1558_vm6 = vcmp.eq.s32.totalorder %v6627_v1, %v5268_v40  ;;  %v1628_v25 = vsel %vm1556_vm5, %v5217_v36, 0.0 }
 0x274   : > { %vm1764_vm7 = vcmp.eq.s32.totalorder %v6624_v39, %v5271_v42  ;;  %vm1766_vm8 = vcmp.eq.s32.totalorder %v6627_v1, %v5271_v42  ;;  %v3313_v16 = vadd.f32 %v3249_v61, %v3105_v50  ;;  %v1630_v45 = vsel %vm1558_vm6, %v5217_v36, 0.0 }
 0x275   : > { %v3315_v41 = vadd.f32 %v3251_v29, %v3107_v32  ;;  %v1836_v12 = vsel %vm1764_vm7, %v5220_v37, 0.0  ;;  %v1838_v6 = vsel %vm1766_vm8, %v5220_v37, 0.0  ;;  %vm1972_vm9 = vcmp.eq.s32.totalorder %v6624_v39, %v5274_v58 }
 0x276   : > { %v1900_v0 = vadd.f32 %v1836_v12, %v1628_v25  ;;  %vm1974_vm10 = vcmp.eq.s32.totalorder %v6627_v1, %v5274_v58  ;;  %v1902_v63 = vadd.f32 %v1838_v6, %v1630_v45  ;;  %v2044_v26 = vsel %vm1972_vm9, %v5223_v38, 0.0 }
 0x277   : > { %v4753_v60 = vpack.c.bf16 %v3315_v41, %v3313_v16  ;;  %v2046_v33 = vsel %vm1974_vm10, %v5223_v38, 0.0  ;;  %vm2180_vm11 = vcmp.eq.s32.totalorder %v6624_v39, %v5277_v46  ;;  %vm2182_vm12 = vcmp.eq.s32.totalorder %v6627_v1, %v5277_v46 }
 0x278   : > { %v2108_v50 = vadd.f32 %v2044_v26, %v1900_v0  ;;  %v6724_v32 = vadd.s32 208, %v5079_v43  ;;  %v2110_v61 = vadd.f32 %v2046_v33, %v1902_v63  ;;  %v2252_v29 = vsel %vm2180_vm11, %v5226_v17, 0.0 }
 0x279   : > { %4754 = vmatprep.subr.bf16.mxu1 %v4753_v60  ;;  %v2254_v25 = vsel %vm2182_vm12, %v5226_v17, 0.0  ;;  %v6729_v16 = vadd.s32 216, %v5079_v43  ;;  %vm2552_vm5 = vcmp.eq.s32.totalorder %v6624_v39, %v5294_v57  ;;  %vm2554_vm6 = vcmp.eq.s32.totalorder %v6627_v1, %v5294_v57 }
 0x27a   : > { %v2316_v41 = vadd.f32 %v2252_v29, %v2108_v50  ;;  %vm1561_vm13 = vcmp.eq.s32.totalorder %v6724_v32, %v5433_v59  ;;  %vm1769_vm14 = vcmp.eq.s32.totalorder %v6724_v32, %v5436_v54  ;;  %vm1977_vm15 = vcmp.eq.s32.totalorder %v6724_v32, %v5439_v53 }
 0x27b   : > { %v2318_v45 = vadd.f32 %v2254_v25, %v2110_v61  ;;  %vm1563_vm0 = vcmp.eq.s32.totalorder %v6729_v16, %v5433_v59  ;;  %v1633_v12 = vsel %vm1561_vm13, %v5378_v30, 0.0  ;;  %vm1771_vm1 = vcmp.eq.s32.totalorder %v6729_v16, %v5436_v54 }
 0x27c   : > { %v1635_v6 = vsel %vm1563_vm0, %v5378_v30, 0.0  ;;  %v1841_v0 = vsel %vm1769_vm14, %v5381_v34, 0.0  ;;  %v1843_v60 = vsel %vm1771_vm1, %v5381_v34, 0.0  ;;  %vm1979_vm2 = vcmp.eq.s32.totalorder %v6729_v16, %v5439_v53 }
 0x27d   : > { %v4627_v63 = vpack.c.bf16 %v2318_v45, %v2316_v41  ;;  %v1905_v26 = vadd.f32 %v1841_v0, %v1633_v12  ;;  %v1907_v33 = vadd.f32 %v1843_v60, %v1635_v6  ;;  %v2049_v50 = vsel %vm1977_vm15, %v5384_v15, 0.0 }
 0x27e   : > { %v2051_v61 = vsel %vm1979_vm2, %v5384_v15, 0.0  ;;  %vm2185_vm3 = vcmp.eq.s32.totalorder %v6724_v32, %v5442_v4  ;;  %vm2187_vm4 = vcmp.eq.s32.totalorder %v6729_v16, %v5442_v4  ;;  %v2624_v12 = vsel %vm2552_vm5, %v5234_v47, 0.0 }
 0x27f   : > { %4628 = vmatpush1.bf16.msra.mxu0 %v4627_v63  ;;  %v2113_v29 = vadd.f32 %v2049_v50, %v1905_v26  ;;  %v2115_v25 = vadd.f32 %v2051_v61, %v1907_v33  ;;  %v2257_v41 = vsel %vm2185_vm3, %v5387_v35, 0.0  ;;  %v2259_v45 = vsel %vm2187_vm4, %v5387_v35, 0.0 }
 0x280   : > { %vm2760_vm7 = vcmp.eq.s32.totalorder %v6624_v39, %v5297_v52  ;;  %vm2762_vm8 = vcmp.eq.s32.totalorder %v6627_v1, %v5297_v52  ;;  %v2626_v60 = vsel %vm2554_vm6, %v5234_v47, 0.0  ;;  %vm2968_vm9 = vcmp.eq.s32.totalorder %v6624_v39, %v5300_v20 }
 0x281   : > { %v2321_v6 = vadd.f32 %v2257_v41, %v2113_v29  ;;  %v2323_v0 = vadd.f32 %v2259_v45, %v2115_v25  ;;  %v2832_v63 = vsel %vm2760_vm7, %v5237_v48, 0.0  ;;  %v2834_v26 = vsel %vm2762_vm8, %v5237_v48, 0.0 }
 0x282   : > { %v2896_v33 = vadd.f32 %v2832_v63, %v2624_v12  ;;  %vm2970_vm10 = vcmp.eq.s32.totalorder %v6627_v1, %v5300_v20  ;;  %v2898_v61 = vadd.f32 %v2834_v26, %v2626_v60  ;;  %v3040_v27 = vsel %vm2968_vm9, %v5240_v49, 0.0 }
 0x283   : > { %v4629_v50 = vpack.c.bf16 %v2323_v0, %v2321_v6  ;;  %v3042_v29 = vsel %vm2970_vm10, %v5240_v49, 0.0  ;;  %vm3176_vm11 = vcmp.eq.s32.totalorder %v6624_v39, %v5303_v56  ;;  %vm3178_vm12 = vcmp.eq.s32.totalorder %v6627_v1, %v5303_v56 }
 0x284   : > { %v3104_v25 = vadd.f32 %v3040_v27, %v2896_v33  ;;  %vm2557_vm13 = vcmp.eq.s32.totalorder %v6724_v32, %v5464_v23  ;;  %v3106_v41 = vadd.f32 %v3042_v29, %v2898_v61  ;;  %v3248_v45 = vsel %vm3176_vm11, %v5243_v51, 0.0 }
 0x285   : > { %4630 = vmatprep.subr.bf16.mxu0 %v4629_v50  ;;  %v3250_v12 = vsel %vm3178_vm12, %v5243_v51, 0.0  ;;  %vm2559_vm14 = vcmp.eq.s32.totalorder %v6729_v16, %v5464_v23  ;;  %v2629_v27 = vsel %vm2557_vm13, %v5397_v13, 0.0  ;;  %vm2765_vm15 = vcmp.eq.s32.totalorder %v6724_v32, %v5467_v14 }
 0x286   : > { %v3312_v6 = vadd.f32 %v3248_v45, %v3104_v25  ;;  %v2631_v0 = vsel %vm2559_vm14, %v5397_v13, 0.0  ;;  %v3314_v60 = vadd.f32 %v3250_v12, %v3106_v41  ;;  %vm2767_vm0 = vcmp.eq.s32.totalorder %v6729_v16, %v5467_v14 }
 0x287   : > { %v2837_v63 = vsel %vm2765_vm15, %v5400_v28, 0.0  ;;  %vm2973_vm1 = vcmp.eq.s32.totalorder %v6724_v32, %v5470_v9  ;;  %v2839_v26 = vsel %vm2767_vm0, %v5400_v28, 0.0  ;;  %vm2975_vm2 = vcmp.eq.s32.totalorder %v6729_v16, %v5470_v9 }
 0x288   : > { %v2901_v33 = vadd.f32 %v2837_v63, %v2629_v27  ;;  %v3045_v50 = vsel %vm2973_vm1, %v5403_v21, 0.0  ;;  %v4755_v61 = vpack.c.bf16 %v3314_v60, %v3312_v6  ;;  %v2903_v29 = vadd.f32 %v2839_v26, %v2631_v0 }
 0x289   : > { %v3047_v25 = vsel %vm2975_vm2, %v5403_v21, 0.0  ;;  %vm3181_vm3 = vcmp.eq.s32.totalorder %v6724_v32, %v5473_v8  ;;  %vm3183_vm4 = vcmp.eq.s32.totalorder %v6729_v16, %v5473_v8  ;;  %vm1560_vm5 = vcmp.eq.s32.totalorder %v6724_v32, %v5268_v40 }
 0x28a   : > { %v3109_v41 = vadd.f32 %v3045_v50, %v2901_v33  ;;  %v3253_v45 = vsel %vm3181_vm3, %v5406_v31, 0.0  ;;  %4756 = vmatpush1.bf16.msra.mxu1 %v4755_v61  ;;  %v3111_v12 = vadd.f32 %v3047_v25, %v2903_v29  ;;  %v3255_v27 = vsel %vm3183_vm4, %v5406_v31, 0.0 }
 0x28b   : > { %vm1562_vm6 = vcmp.eq.s32.totalorder %v6729_v16, %v5268_v40  ;;  %v1632_v6 = vsel %vm1560_vm5, %v5217_v36, 0.0  ;;  %vm1768_vm7 = vcmp.eq.s32.totalorder %v6724_v32, %v5271_v42  ;;  %vm1770_vm8 = vcmp.eq.s32.totalorder %v6729_v16, %v5271_v42 }
 0x28c   : > { %v3317_v0 = vadd.f32 %v3253_v45, %v3109_v41  ;;  %v1634_v60 = vsel %vm1562_vm6, %v5217_v36, 0.0  ;;  %v3319_v63 = vadd.f32 %v3255_v27, %v3111_v12  ;;  %v1840_v26 = vsel %vm1768_vm7, %v5220_v37, 0.0 }
 0x28d   : > { %v1842_v33 = vsel %vm1770_vm8, %v5220_v37, 0.0  ;;  %vm1976_vm9 = vcmp.eq.s32.totalorder %v6724_v32, %v5274_v58  ;;  %v1904_v50 = vadd.f32 %v1840_v26, %v1632_v6  ;;  %vm1978_vm10 = vcmp.eq.s32.totalorder %v6729_v16, %v5274_v58 }
 0x28e   : > { %v1906_v61 = vadd.f32 %v1842_v33, %v1634_v60  ;;  %v2048_v29 = vsel %vm1976_vm9, %v5223_v38, 0.0  ;;  %v4757_v25 = vpack.c.bf16 %v3319_v63, %v3317_v0  ;;  %v2050_v41 = vsel %vm1978_vm10, %v5223_v38, 0.0 }
 0x28f   : > { %vm2184_vm11 = vcmp.eq.s32.totalorder %v6724_v32, %v5277_v46  ;;  %vm2186_vm12 = vcmp.eq.s32.totalorder %v6729_v16, %v5277_v46  ;;  %v2112_v45 = vadd.f32 %v2048_v29, %v1904_v50  ;;  %v6828_v60 = vadd.s32 224, %v5079_v43 }
 0x290   : > { %v2114_v12 = vadd.f32 %v2050_v41, %v1906_v61  ;;  %v2256_v27 = vsel %vm2184_vm11, %v5226_v17, 0.0  ;;  %v2258_v6 = vsel %vm2186_vm12, %v5226_v17, 0.0  ;;  %4758 = vmatprep.subr.bf16.mxu1 %v4757_v25  ;;  %v6831_v0 = vadd.s32 232, %v5079_v43 }
 0x291   : > { %vm2556_vm13 = vcmp.eq.s32.totalorder %v6724_v32, %v5294_v57  ;;  %vm2558_vm14 = vcmp.eq.s32.totalorder %v6729_v16, %v5294_v57  ;;  %v2320_v63 = vadd.f32 %v2256_v27, %v2112_v45  ;;  %vm1565_vm15 = vcmp.eq.s32.totalorder %v6828_v60, %v5433_v59 }
 0x292   : > { %v2322_v26 = vadd.f32 %v2258_v6, %v2114_v12  ;;  %v2628_v33 = vsel %vm2556_vm13, %v5234_v47, 0.0  ;;  %v2630_v50 = vsel %vm2558_vm14, %v5234_v47, 0.0  ;;  %vm1567_vm0 = vcmp.eq.s32.totalorder %v6831_v0, %v5433_v59 }
 0x293   : > { %vm1773_vm1 = vcmp.eq.s32.totalorder %v6828_v60, %v5436_v54  ;;  %vm1775_vm2 = vcmp.eq.s32.totalorder %v6831_v0, %v5436_v54  ;;  %v1637_v29 = vsel %vm1565_vm15, %v5378_v30, 0.0  ;;  %v1639_v25 = vsel %vm1567_vm0, %v5378_v30, 0.0 }
 0x294   : > { %v4631_v61 = vpack.c.bf16 %v2322_v26, %v2320_v63  ;;  %v1845_v41 = vsel %vm1773_vm1, %v5381_v34, 0.0  ;;  %v1847_v45 = vsel %vm1775_vm2, %v5381_v34, 0.0  ;;  %vm1981_vm3 = vcmp.eq.s32.totalorder %v6828_v60, %v5439_v53 }
 0x295   : > { %v1909_v12 = vadd.f32 %v1845_v41, %v1637_v29  ;;  %vm1983_vm4 = vcmp.eq.s32.totalorder %v6831_v0, %v5439_v53  ;;  %v1911_v27 = vadd.f32 %v1847_v45, %v1639_v25  ;;  %v2053_v6 = vsel %vm1981_vm3, %v5384_v15, 0.0 }
 0x296   : > { %4632 = vmatpush1.bf16.msra.mxu0 %v4631_v61  ;;  %v2055_v63 = vsel %vm1983_vm4, %v5384_v15, 0.0  ;;  %vm2189_vm5 = vcmp.eq.s32.totalorder %v6828_v60, %v5442_v4  ;;  %vm2191_vm6 = vcmp.eq.s32.totalorder %v6831_v0, %v5442_v4  ;;  %vm2764_vm7 = vcmp.eq.s32.totalorder %v6724_v32, %v5297_v52 }
 0x297   : > { %v2117_v26 = vadd.f32 %v2053_v6, %v1909_v12  ;;  %v2261_v29 = vsel %vm2189_vm5, %v5387_v35, 0.0  ;;  %v2119_v41 = vadd.f32 %v2055_v63, %v1911_v27  ;;  %v2263_v61 = vsel %vm2191_vm6, %v5387_v35, 0.0 }
 0x298   : > { %vm2766_vm8 = vcmp.eq.s32.totalorder %v6729_v16, %v5297_v52  ;;  %v2836_v25 = vsel %vm2764_vm7, %v5237_v48, 0.0  ;;  %vm2972_vm9 = vcmp.eq.s32.totalorder %v6724_v32, %v5300_v20  ;;  %vm2974_vm10 = vcmp.eq.s32.totalorder %v6729_v16, %v5300_v20 }
 0x299   : > { %v2325_v45 = vadd.f32 %v2261_v29, %v2117_v26  ;;  %v2838_v1 = vsel %vm2766_vm8, %v5237_v48, 0.0  ;;  %v2900_v12 = vadd.f32 %v2836_v25, %v2628_v33  ;;  %v2327_v6 = vadd.f32 %v2263_v61, %v2119_v41 }
 0x29a   : > { %v2902_v39 = vadd.f32 %v2838_v1, %v2630_v50  ;;  %v3044_v27 = vsel %vm2972_vm9, %v5240_v49, 0.0  ;;  %v3046_v63 = vsel %vm2974_vm10, %v5240_v49, 0.0  ;;  %vm3180_vm11 = vcmp.eq.s32.totalorder %v6724_v32, %v5303_v56 }
 0x29b   : > { %v3108_v44 = vadd.f32 %v3044_v27, %v2900_v12  ;;  %vm3182_vm12 = vcmp.eq.s32.totalorder %v6729_v16, %v5303_v56  ;;  %v4633_v33 = vpack.c.bf16 %v2327_v6, %v2325_v45  ;;  %v3252_v29 = vsel %vm3180_vm11, %v5243_v51, 0.0 }
 0x29c   : > { %v3110_v26 = vadd.f32 %v3046_v63, %v2902_v39  ;;  %v3254_v1 = vsel %vm3182_vm12, %v5243_v51, 0.0  ;;  %vm2561_vm13 = vcmp.eq.s32.totalorder %v6828_v60, %v5464_v23  ;;  %vm2563_vm14 = vcmp.eq.s32.totalorder %v6831_v0, %v5464_v23 }
 0x29d   : > { %v3316_v50 = vadd.f32 %v3252_v29, %v3108_v44  ;;  %vm2769_vm15 = vcmp.eq.s32.totalorder %v6828_v60, %v5467_v14  ;;  %4634 = vmatprep.subr.bf16.mxu0 %v4633_v33  ;;  %v2633_v61 = vsel %vm2561_vm13, %v5397_v13, 0.0  ;;  %v2635_v39 = vsel %vm2563_vm14, %v5397_v13, 0.0 }
 0x29e   : > { %v3318_v41 = vadd.f32 %v3254_v1, %v3110_v26  ;;  %vm2771_vm0 = vcmp.eq.s32.totalorder %v6831_v0, %v5467_v14  ;;  %v2841_v44 = vsel %vm2769_vm15, %v5400_v28, 0.0  ;;  %vm2977_vm1 = vcmp.eq.s32.totalorder %v6828_v60, %v5470_v9 }
 0x29f   : > { %v2843_v25 = vsel %vm2771_vm0, %v5400_v28, 0.0  ;;  %vm2979_vm2 = vcmp.eq.s32.totalorder %v6831_v0, %v5470_v9  ;;  %v2905_v12 = vadd.f32 %v2841_v44, %v2633_v61  ;;  %v3049_v27 = vsel %vm2977_vm1, %v5403_v21, 0.0 }
 0x2a0   : > { %v4759_v45 = vpack.c.bf16 %v3318_v41, %v3316_v50  ;;  %v2907_v6 = vadd.f32 %v2843_v25, %v2635_v39  ;;  %v3051_v63 = vsel %vm2979_vm2, %v5403_v21, 0.0  ;;  %vm3185_vm3 = vcmp.eq.s32.totalorder %v6828_v60, %v5473_v8 }
 0x2a1   : > { %vm3187_vm4 = vcmp.eq.s32.totalorder %v6831_v0, %v5473_v8  ;;  %vm1564_vm5 = vcmp.eq.s32.totalorder %v6828_v60, %v5268_v40  ;;  %v3113_v33 = vadd.f32 %v3049_v27, %v2905_v12  ;;  %v3257_v29 = vsel %vm3185_vm3, %v5406_v31, 0.0 }
 0x2a2   : > { %4760 = vmatpush1.bf16.msra.mxu1 %v4759_v45  ;;  %v3115_v26 = vadd.f32 %v3051_v63, %v2907_v6  ;;  %v3259_v1 = vsel %vm3187_vm4, %v5406_v31, 0.0  ;;  %vm1566_vm6 = vcmp.eq.s32.totalorder %v6831_v0, %v5268_v40  ;;  %v1636_v50 = vsel %vm1564_vm5, %v5217_v36, 0.0 }
 0x2a3   : > { %vm1772_vm7 = vcmp.eq.s32.totalorder %v6828_v60, %v5271_v42  ;;  %vm1774_vm8 = vcmp.eq.s32.totalorder %v6831_v0, %v5271_v42  ;;  %v3321_v41 = vadd.f32 %v3257_v29, %v3113_v33  ;;  %v1638_v39 = vsel %vm1566_vm6, %v5217_v36, 0.0 }
 0x2a4   : > { %v3323_v61 = vadd.f32 %v3259_v1, %v3115_v26  ;;  %v1844_v44 = vsel %vm1772_vm7, %v5220_v37, 0.0  ;;  %v1846_v25 = vsel %vm1774_vm8, %v5220_v37, 0.0  ;;  %vm1980_vm9 = vcmp.eq.s32.totalorder %v6828_v60, %v5274_v58 }
 0x2a5   : > { %v1908_v45 = vadd.f32 %v1844_v44, %v1636_v50  ;;  %vm1982_vm10 = vcmp.eq.s32.totalorder %v6831_v0, %v5274_v58  ;;  %v1910_v6 = vadd.f32 %v1846_v25, %v1638_v39  ;;  %v2052_v27 = vsel %vm1980_vm9, %v5223_v38, 0.0 }
 0x2a6   : > { %v4761_v12 = vpack.c.bf16 %v3323_v61, %v3321_v41  ;;  %v2054_v63 = vsel %vm1982_vm10, %v5223_v38, 0.0  ;;  %vm2188_vm11 = vcmp.eq.s32.totalorder %v6828_v60, %v5277_v46  ;;  %vm2190_vm12 = vcmp.eq.s32.totalorder %v6831_v0, %v5277_v46 }
 0x2a7   : > { %v2116_v33 = vadd.f32 %v2052_v27, %v1908_v45  ;;  %v6928_v26 = vadd.s32 240, %v5079_v43  ;;  %v2118_v29 = vadd.f32 %v2054_v63, %v1910_v6  ;;  %v2260_v1 = vsel %vm2188_vm11, %v5226_v17, 0.0 }
 0x2a8   : > { %4762 = vmatprep.subr.bf16.mxu1 %v4761_v12  ;;  %v2262_v50 = vsel %vm2190_vm12, %v5226_v17, 0.0  ;;  %v6933_v41 = vadd.s32 248, %v5079_v43  ;;  %vm2560_vm5 = vcmp.eq.s32.totalorder %v6828_v60, %v5294_v57  ;;  %vm2562_vm6 = vcmp.eq.s32.totalorder %v6831_v0, %v5294_v57 }
 0x2a9   : > { %v2324_v61 = vadd.f32 %v2260_v1, %v2116_v33  ;;  %vm1569_vm13 = vcmp.eq.s32.totalorder %v6928_v26, %v5433_v59  ;;  %vm1777_vm14 = vcmp.eq.s32.totalorder %v6928_v26, %v5436_v54  ;;  %vm1985_vm15 = vcmp.eq.s32.totalorder %v6928_v26, %v5439_v53 }
 0x2aa   : > { %v2326_v39 = vadd.f32 %v2262_v50, %v2118_v29  ;;  %vm1571_vm0 = vcmp.eq.s32.totalorder %v6933_v41, %v5433_v59  ;;  %v1641_v44 = vsel %vm1569_vm13, %v5378_v30, 0.0  ;;  %vm1779_vm1 = vcmp.eq.s32.totalorder %v6933_v41, %v5436_v54 }
 0x2ab   : > { %v1643_v25 = vsel %vm1571_vm0, %v5378_v30, 0.0  ;;  %v1849_v45 = vsel %vm1777_vm14, %v5381_v34, 0.0  ;;  %v1851_v12 = vsel %vm1779_vm1, %v5381_v34, 0.0  ;;  %vm1987_vm2 = vcmp.eq.s32.totalorder %v6933_v41, %v5439_v53 }
 0x2ac   : > { %v4635_v6 = vpack.c.bf16 %v2326_v39, %v2324_v61  ;;  %v1913_v27 = vadd.f32 %v1849_v45, %v1641_v44  ;;  %v1915_v63 = vadd.f32 %v1851_v12, %v1643_v25  ;;  %v2057_v33 = vsel %vm1985_vm15, %v5384_v15, 0.0 }
 0x2ad   : > { %v2059_v59 = vsel %vm1987_vm2, %v5384_v15, 0.0  ;;  %vm2193_vm3 = vcmp.eq.s32.totalorder %v6928_v26, %v5442_v4  ;;  %vm2195_vm4 = vcmp.eq.s32.totalorder %v6933_v41, %v5442_v4  ;;  %v2632_v15 = vsel %vm2560_vm5, %v5234_v47, 0.0 }
 0x2ae   : > { %4636 = vmatpush1.bf16.msra.mxu0 %v4635_v6  ;;  %v2121_v30 = vadd.f32 %v2057_v33, %v1913_v27  ;;  %v2123_v34 = vadd.f32 %v2059_v59, %v1915_v63  ;;  %v2265_v54 = vsel %vm2193_vm3, %v5387_v35, 0.0  ;;  %v2267_v53 = vsel %vm2195_vm4, %v5387_v35, 0.0 }
 0x2af   : > { %vm2768_vm7 = vcmp.eq.s32.totalorder %v6828_v60, %v5297_v52  ;;  %vm2770_vm8 = vcmp.eq.s32.totalorder %v6831_v0, %v5297_v52  ;;  %v2634_v1 = vsel %vm2562_vm6, %v5234_v47, 0.0  ;;  %vm2976_vm9 = vcmp.eq.s32.totalorder %v6828_v60, %v5300_v20 }
 0x2b0   : > { %v2329_v4 = vadd.f32 %v2265_v54, %v2121_v30  ;;  %v2331_v29 = vadd.f32 %v2267_v53, %v2123_v34  ;;  %v2840_v50 = vsel %vm2768_vm7, %v5237_v48, 0.0  ;;  %v2842_v61 = vsel %vm2770_vm8, %v5237_v48, 0.0 }
 0x2b1   : > { %v2904_v35 = vadd.f32 %v2840_v50, %v2632_v15  ;;  %vm2978_vm10 = vcmp.eq.s32.totalorder %v6831_v0, %v5300_v20  ;;  %v2906_v44 = vadd.f32 %v2842_v61, %v2634_v1  ;;  %v3048_v25 = vsel %vm2976_vm9, %v5240_v49, 0.0 }
 0x2b2   : > { %v4637_v39 = vpack.c.bf16 %v2331_v29, %v2329_v4  ;;  %v3050_v45 = vsel %vm2978_vm10, %v5240_v49, 0.0  ;;  %vm3184_vm11 = vcmp.eq.s32.totalorder %v6828_v60, %v5303_v56  ;;  %vm3186_vm12 = vcmp.eq.s32.totalorder %v6831_v0, %v5303_v56 }
 0x2b3   : > { %v3112_v12 = vadd.f32 %v3048_v25, %v2904_v35  ;;  %vm2565_vm13 = vcmp.eq.s32.totalorder %v6928_v26, %v5464_v23  ;;  %v3114_v6 = vadd.f32 %v3050_v45, %v2906_v44  ;;  %v3256_v27 = vsel %vm3184_vm11, %v5243_v51, 0.0 }
 0x2b4   : > { %4638 = vmatprep.subr.bf16.mxu0 %v4637_v39  ;;  %v3258_v63 = vsel %vm3186_vm12, %v5243_v51, 0.0  ;;  %vm2567_vm14 = vcmp.eq.s32.totalorder %v6933_v41, %v5464_v23  ;;  %v2637_v59 = vsel %vm2565_vm13, %v5397_v13, 0.0  ;;  %vm2773_vm15 = vcmp.eq.s32.totalorder %v6928_v26, %v5467_v14 }
 0x2b5   : > { %v3320_v33 = vadd.f32 %v3256_v27, %v3112_v12  ;;  %v2639_v30 = vsel %vm2567_vm14, %v5397_v13, 0.0  ;;  %v3322_v34 = vadd.f32 %v3258_v63, %v3114_v6  ;;  %vm2775_vm0 = vcmp.eq.s32.totalorder %v6933_v41, %v5467_v14  ;;  %v8758_v6 = vld [vmem:[#allocation25_spill] sm:$0xff] }
 0x2b6   : > { %v2845_v54 = vsel %vm2773_vm15, %v5400_v28, 0.0  ;;  %vm2981_vm1 = vcmp.eq.s32.totalorder %v6928_v26, %v5470_v9  ;;  %v2847_v53 = vsel %vm2775_vm0, %v5400_v28, 0.0  ;;  %vm2983_vm2 = vcmp.eq.s32.totalorder %v6933_v41, %v5470_v9  ;;  %v8760_v27 = vld [vmem:[#allocation21_spill] sm:$0xff] }
 0x2b7   : > { %v2909_v23 = vadd.f32 %v2845_v54, %v2637_v59  ;;  %v3053_v13 = vsel %vm2981_vm1, %v5403_v21, 0.0  ;;  %v4763_v15 = vpack.c.bf16 %v3322_v34, %v3320_v33  ;;  %v2911_v4 = vadd.f32 %v2847_v53, %v2639_v30  ;;  %v8762_v34 = vld [vmem:[#allocation27_spill] sm:$0xff] }
 0x2b8   : > { %v3055_v29 = vsel %vm2983_vm2, %v5403_v21, 0.0  ;;  %vm3189_vm3 = vcmp.eq.s32.totalorder %v6928_v26, %v5473_v8  ;;  %vm3191_vm4 = vcmp.eq.s32.totalorder %v6933_v41, %v5473_v8  ;;  %vm1568_vm5 = vcmp.eq.s32.totalorder %v6928_v26, %v5268_v40 }
 0x2b9   : > { %v3117_v14 = vadd.f32 %v3053_v13, %v2909_v23  ;;  %v3261_v1 = vsel %vm3189_vm3, %v5406_v31, 0.0  ;;  %4764 = vmatpush1.bf16.msra.mxu1 %v4763_v15  ;;  %v3119_v28 = vadd.f32 %v3055_v29, %v2911_v4  ;;  %v3263_v9 = vsel %vm3191_vm4, %v5406_v31, 0.0  ;;  %v8763_v13 = vld [vmem:[#allocation23_spill] sm:$0xff]  ;;  %v8764_v29 = vld [vmem:[#allocation28_spill] sm:$0xff] }
 0x2ba   : > { %vm1570_vm6 = vcmp.eq.s32.totalorder %v6933_v41, %v5268_v40  ;;  %v1640_v21 = vsel %vm1568_vm5, %v5217_v36, 0.0  ;;  %vm1776_vm7 = vcmp.eq.s32.totalorder %v6928_v26, %v5271_v42  ;;  %vm1778_vm8 = vcmp.eq.s32.totalorder %v6933_v41, %v5271_v42 }
 0x2bb   : > { %v3325_v50 = vadd.f32 %v3261_v1, %v3117_v14  ;;  %v1642_v61 = vsel %vm1570_vm6, %v5217_v36, 0.0  ;;  %v3327_v8 = vadd.f32 %v3263_v9, %v3119_v28  ;;  %v1848_v35 = vsel %vm1776_vm7, %v5220_v37, 0.0  ;;  %v8765_v28 = vld [vmem:[#allocation24_spill] sm:$0xff] }
 0x2bc   : > { %v1850_v39 = vsel %vm1778_vm8, %v5220_v37, 0.0  ;;  %vm1984_vm9 = vcmp.eq.s32.totalorder %v6928_v26, %v5274_v58  ;;  %v1912_v40 = vadd.f32 %v1848_v35, %v1640_v21  ;;  %vm1986_vm10 = vcmp.eq.s32.totalorder %v6933_v41, %v5274_v58 }
 0x2bd   : > { %v1914_v31 = vadd.f32 %v1850_v39, %v1642_v61  ;;  %v2056_v36 = vsel %vm1984_vm9, %v5223_v38, 0.0  ;;  %v4765_v44 = vpack.c.bf16 %v3327_v8, %v3325_v50  ;;  %v2058_v25 = vsel %vm1986_vm10, %v5223_v38, 0.0  ;;  %v8759_v38 = vld [vmem:[#allocation26_spill] sm:$0xff] }
 0x2be   : > { %vm2192_vm11 = vcmp.eq.s32.totalorder %v6928_v26, %v5277_v46  ;;  %vm2194_vm12 = vcmp.eq.s32.totalorder %v6933_v41, %v5277_v46  ;;  %v2120_v37 = vadd.f32 %v2056_v36, %v1912_v40  ;;  %vm655_vm13 = vcmp.eq.s32.totalorder %v5079_v43, %v8758_v6 }
 0x2bf   : > { %v2122_v42 = vadd.f32 %v2058_v25, %v1914_v31  ;;  %v2264_v45 = vsel %vm2192_vm11, %v5226_v17, 0.0  ;;  %v2266_v12 = vsel %vm2194_vm12, %v5226_v17, 0.0  ;;  %4766 = vmatprep.subr.bf16.mxu1 %v4765_v44  ;;  %vm657_vm14 = vcmp.eq.s32.totalorder %v5104_v2, %v8758_v6  ;;  %v8761_v17 = vld [vmem:[#allocation22_spill] sm:$0xff] }
 0x2c0   : > { %vm863_vm15 = vcmp.eq.s32.totalorder %v5079_v43, %v8759_v38  ;;  %vm865_vm0 = vcmp.eq.s32.totalorder %v5104_v2, %v8759_v38  ;;  %v2328_v58 = vadd.f32 %v2264_v45, %v2120_v37  ;;  %v727_v63 = vsel %vm655_vm13, %v8760_v27, 0.0  ;;  %v8768_v45 = vld [vmem:[#allocation29_spill] sm:$0xff] }
 0x2c1   : > { %v2330_v46 = vadd.f32 %v2266_v12, %v2122_v42  ;;  %v729_v33 = vsel %vm657_vm14, %v8760_v27, 0.0  ;;  %v935_v59 = vsel %vm863_vm15, %v8761_v17, 0.0  ;;  %v937_v30 = vsel %vm865_vm0, %v8761_v17, 0.0 }
 0x2c2   : > { %vm1071_vm1 = vcmp.eq.s32.totalorder %v5079_v43, %v8762_v34  ;;  %vm1073_vm2 = vcmp.eq.s32.totalorder %v5104_v2, %v8762_v34  ;;  %v999_v53 = vadd.f32 %v935_v59, %v727_v63  ;;  %v1001_v23 = vadd.f32 %v937_v30, %v729_v33  ;;  %v8770_v33 = vld [vmem:[#allocation33_spill] sm:$0xff]  ;;  %v8771_v30 = vld [vmem:[#allocation31_spill] sm:$0xff] }
 0x2c3   : > { %v4639_v54 = vpack.c.bf16 %v2330_v46, %v2328_v58  ;;  %v1143_v15 = vsel %vm1071_vm1, %v8763_v13, 0.0  ;;  %v1145_v4 = vsel %vm1073_vm2, %v8763_v13, 0.0  ;;  %vm1279_vm3 = vcmp.eq.s32.totalorder %v5079_v43, %v8764_v29  ;;  %v8769_v46 = vld [vmem:[#allocation30_spill] sm:$0xff] }
 0x2c4   : > { %vm1281_vm4 = vcmp.eq.s32.totalorder %v5104_v2, %v8764_v29  ;;  %vm2564_vm5 = vcmp.eq.s32.totalorder %v6928_v26, %v5294_v57  ;;  %v1207_v14 = vadd.f32 %v1143_v15, %v999_v53  ;;  %v1209_v1 = vadd.f32 %v1145_v4, %v1001_v23 }
 0x2c5   : > { %4640 = vmatpush1.bf16.msra.mxu0 %v4639_v54  ;;  %v1351_v9 = vsel %vm1279_vm3, %v8765_v28, 0.0  ;;  %v1353_v21 = vsel %vm1281_vm4, %v8765_v28, 0.0  ;;  %vm2566_vm6 = vcmp.eq.s32.totalorder %v6933_v41, %v5294_v57  ;;  %v2636_v50 = vsel %vm2564_vm5, %v5234_v47, 0.0  ;;  %v8766_v57 = vld [vmem:[#allocation3_spill] sm:$0xff] }
 0x2c6   : > { %vm2772_vm7 = vcmp.eq.s32.totalorder %v6928_v26, %v5297_v52  ;;  %vm2774_vm8 = vcmp.eq.s32.totalorder %v6933_v41, %v5297_v52  ;;  %v1415_v61 = vadd.f32 %v1351_v9, %v1207_v14  ;;  %v1417_v8 = vadd.f32 %v1353_v21, %v1209_v1  ;;  %v8772_v14 = vld [vmem:[#allocation32_spill] sm:$0xff]  ;;  %v8773_v9 = vld [vmem:[#allocation9_spill] sm:$0xff] }
 0x2c7   : > { %v2638_v35 = vsel %vm2566_vm6, %v5234_v47, 0.0  ;;  %v2844_v39 = vsel %vm2772_vm7, %v5237_v48, 0.0  ;;  %v2846_v40 = vsel %vm2774_vm8, %v5237_v48, 0.0  ;;  %vm2980_vm9 = vcmp.eq.s32.totalorder %v6928_v26, %v5300_v20  ;;  %v8767_v47 = vld [vmem:[#allocation4_spill] sm:$0xff] }
 0x2c8   : > { %v2908_v31 = vadd.f32 %v2844_v39, %v2636_v50  ;;  %vm2982_vm10 = vcmp.eq.s32.totalorder %v6933_v41, %v5300_v20  ;;  %2397 = vmatmul.mubr.f32.vlgmr.msra.gmra.mrb[0].mxu0 %v8766_v57  ;;  %v4641_v36 = vpack.c.bf16 %v1417_v8, %v1415_v61  ;;  %v2910_v44 = vadd.f32 %v2846_v40, %v2638_v35  ;;  %v8774_v61 = vld [vmem:[#allocation5_spill] sm:$0xff]  ;;  %v8775_v40 = vld [vmem:[#allocation10_spill] sm:$0xff] }
 0x2c9   : > { %v3052_v52 = vsel %vm2980_vm9, %v5240_v49, 0.0  ;;  %v3054_v25 = vsel %vm2982_vm10, %v5240_v49, 0.0  ;;  %2467 = vmatprep.mubr.f32.mxu0 %v8767_v47  ;;  %vm3188_vm11 = vcmp.eq.s32.totalorder %v6928_v26, %v5303_v56  ;;  %vm3190_vm12 = vcmp.eq.s32.totalorder %v6933_v41, %v5303_v56 }
 0x2ca   : > { %v3116_v37 = vadd.f32 %v3052_v52, %v2908_v31  ;;  %vm3420_vm13 = vcmp.eq.s32.totalorder %v5079_v43, %v5476_v55  ;;  %4642 = vmatprep.subr.bf16.mxu0 %v4641_v36  ;;  %v3118_v48 = vadd.f32 %v3054_v25, %v2910_v44  ;;  %v3260_v20 = vsel %vm3188_vm11, %v5243_v51, 0.0  ;;  %v8776_v36 = vld [vmem:[#allocation6_spill] sm:$0xff]  ;;  %v8777_v25 = vld [vmem:[#allocation11_spill] sm:$0xff] }
 0x2cb   : > { %v3262_v42 = vsel %vm3190_vm12, %v5243_v51, 0.0  ;;  %vm3422_vm14 = vcmp.eq.s32.totalorder %v5104_v2, %v5476_v55  ;;  %v3492_v12 = vsel %vm3420_vm13, %v8768_v45, 0.0  ;;  %vm3628_vm15 = vcmp.eq.s32.totalorder %v5079_v43, %v5479_v62 }
 0x2cc   : > { %v3324_v49 = vadd.f32 %v3260_v20, %v3116_v37  ;;  %v3494_v58 = vsel %vm3422_vm14, %v8768_v45, 0.0  ;;  %v3326_v56 = vadd.f32 %v3262_v42, %v3118_v48  ;;  %vm3630_vm0 = vcmp.eq.s32.totalorder %v5104_v2, %v5479_v62  ;;  %v8778_v20 = vld [vmem:[#allocation7_spill] sm:$0xff] }
 0x2cd   : > { %v3700_v63 = vsel %vm3628_vm15, %v8769_v46, 0.0  ;;  %vm3836_vm1 = vcmp.eq.s32.totalorder %v5079_v43, %v8770_v33  ;;  %v3702_v51 = vsel %vm3630_vm0, %v8769_v46, 0.0  ;;  %vm3838_vm2 = vcmp.eq.s32.totalorder %v5104_v2, %v8770_v33 }
 0x2ce   : > { %v3764_v59 = vadd.f32 %v3700_v63, %v3492_v12  ;;  %v3908_v54 = vsel %vm3836_vm1, %v8771_v30, 0.0  ;;  %v4767_v53 = vpack.c.bf16 %v3326_v56, %v3324_v49  ;;  %v3766_v23 = vadd.f32 %v3702_v51, %v3494_v58  ;;  %v8779_v58 = vld [vmem:[#allocation12_spill] sm:$0xff] }
 0x2cf   : > { %v3910_v15 = vsel %vm3838_vm2, %v8771_v30, 0.0  ;;  %vm4044_vm3 = vcmp.eq.s32.totalorder %v5079_v43, %v5485_v3  ;;  %vm4046_vm4 = vcmp.eq.s32.totalorder %v5104_v2, %v5485_v3  ;;  %vm654_vm5 = vcmp.eq.s32.totalorder %v5079_v43, %v8773_v9  ;;  %v8780_v51 = vld [vmem:[#allocation8_spill] sm:$0xff] }
 0x2d0   : > { %v3972_v4 = vadd.f32 %v3908_v54, %v3764_v59  ;;  %v4116_v1 = vsel %vm4044_vm3, %v8772_v14, 0.0  ;;  %4768 = vmatpush1.bf16.msra.mxu1 %v4767_v53  ;;  %v3974_v21 = vadd.f32 %v3910_v15, %v3766_v23  ;;  %v4118_v50 = vsel %vm4046_vm4, %v8772_v14, 0.0 }
 0x2d1   : > { %vm656_vm6 = vcmp.eq.s32.totalorder %v5104_v2, %v8773_v9  ;;  %v726_v8 = vsel %vm654_vm5, %v8774_v61, 0.0  ;;  %vm862_vm7 = vcmp.eq.s32.totalorder %v5079_v43, %v8775_v40  ;;  %vm864_vm8 = vcmp.eq.s32.totalorder %v5104_v2, %v8775_v40 }
 0x2d2   : > { %v4180_v35 = vadd.f32 %v4116_v1, %v3972_v4  ;;  %v728_v39 = vsel %vm656_vm6, %v8774_v61, 0.0  ;;  %v4182_v31 = vadd.f32 %v4118_v50, %v3974_v21  ;;  %v934_v44 = vsel %vm862_vm7, %v8776_v36, 0.0 }
 0x2d3   : > { %v936_v52 = vsel %vm864_vm8, %v8776_v36, 0.0  ;;  %vm1070_vm9 = vcmp.eq.s32.totalorder %v5079_v43, %v8777_v25  ;;  %v998_v37 = vadd.f32 %v934_v44, %v726_v8  ;;  %vm1072_vm10 = vcmp.eq.s32.totalorder %v5104_v2, %v8777_v25  ;;  %3393 = vmatmul.mubr.f32.vlgmr.msra.gmra.mrb[10].mxu1 %v8766_v57 }
 0x2d4   : > { %v1000_v48 = vadd.f32 %v936_v52, %v728_v39  ;;  %v1142_v42 = vsel %vm1070_vm9, %v8778_v20, 0.0  ;;  %v4769_v49 = vpack.c.bf16 %v4182_v31, %v4180_v35  ;;  %v1144_v12 = vsel %vm1072_vm10, %v8778_v20, 0.0  ;;  %4307 = vmatprep.mubr.f32.mxu1 %v8767_v47  ;;  %v8781_v31 = vld [vmem:[#allocation17_spill] sm:$0xff] }
 0x2d5   : > { %vm1278_vm11 = vcmp.eq.s32.totalorder %v5079_v43, %v8779_v58  ;;  %vm1280_vm12 = vcmp.eq.s32.totalorder %v5104_v2, %v8779_v58  ;;  %v1206_v56 = vadd.f32 %v1142_v42, %v998_v37  ;;  %vm659_vm13 = vcmp.eq.s32.totalorder %v5107_v5, %v8758_v6  ;;  %v8782_v42 = vld [vmem:[#allocation13_spill] sm:$0xff] }
 0x2d6   : > { %v1208_v63 = vadd.f32 %v1144_v12, %v1000_v48  ;;  %v1350_v59 = vsel %vm1278_vm11, %v8780_v51, 0.0  ;;  %v1352_v54 = vsel %vm1280_vm12, %v8780_v51, 0.0  ;;  %4770 = vmatprep.subr.bf16.mxu1 %v4769_v49  ;;  %vm661_vm14 = vcmp.eq.s32.totalorder %v5110_v7, %v8758_v6  ;;  %v8783_v12 = vld [vmem:[#allocation18_spill] sm:$0xff] }
 0x2d7   : > { %vm867_vm15 = vcmp.eq.s32.totalorder %v5107_v5, %v8759_v38  ;;  %vm869_vm0 = vcmp.eq.s32.totalorder %v5110_v7, %v8759_v38  ;;  %v1414_v47 = vadd.f32 %v1350_v59, %v1206_v56  ;;  %v731_v23 = vsel %vm659_vm13, %v8760_v27, 0.0 }
 0x2d8   : > { %v1416_v53 = vadd.f32 %v1352_v54, %v1208_v63  ;;  %v733_v15 = vsel %vm661_vm14, %v8760_v27, 0.0  ;;  %v939_v4 = vsel %vm867_vm15, %v8761_v17, 0.0  ;;  %v941_v1 = vsel %vm869_vm0, %v8761_v17, 0.0  ;;  %v8784_v54 = vld [vmem:[#allocation14_spill] sm:$0xff] }
 0x2d9   : > { %vm1075_vm1 = vcmp.eq.s32.totalorder %v5107_v5, %v8762_v34  ;;  %vm1077_vm2 = vcmp.eq.s32.totalorder %v5110_v7, %v8762_v34  ;;  %v1003_v50 = vadd.f32 %v939_v4, %v731_v23  ;;  %v1005_v8 = vadd.f32 %v941_v1, %v733_v15  ;;  %v8785_v15 = vld [vmem:[#allocation19_spill] sm:$0xff] }
 0x2da   : > { %v4643_v21 = vpack.c.bf16 %v1416_v53, %v1414_v47  ;;  %v1147_v35 = vsel %vm1075_vm1, %v8763_v13, 0.0  ;;  %v1149_v39 = vsel %vm1077_vm2, %v8763_v13, 0.0  ;;  %vm1283_vm3 = vcmp.eq.s32.totalorder %v5107_v5, %v8764_v29 }
 0x2db   : > { %vm1285_vm4 = vcmp.eq.s32.totalorder %v5110_v7, %v8764_v29  ;;  %vm3419_vm5 = vcmp.eq.s32.totalorder %v5079_v43, %v8781_v31  ;;  %v1211_v44 = vadd.f32 %v1147_v35, %v1003_v50  ;;  %v1213_v52 = vadd.f32 %v1149_v39, %v1005_v8  ;;  %v8787_v39 = vld [vmem:[#allocation20_spill] sm:$0xff] }
 0x2dc   : > { %4644 = vmatpush1.bf16.msra.mxu0 %v4643_v21  ;;  %v1355_v37 = vsel %vm1283_vm3, %v8765_v28, 0.0  ;;  %v1357_v48 = vsel %vm1285_vm4, %v8765_v28, 0.0  ;;  %vm3421_vm6 = vcmp.eq.s32.totalorder %v5104_v2, %v8781_v31  ;;  %v3491_v49 = vsel %vm3419_vm5, %v8782_v42, 0.0  ;;  %v8786_v21 = vld [vmem:[#allocation15_spill] sm:$0xff] }
 0x2dd   : > { %vm3627_vm7 = vcmp.eq.s32.totalorder %v5079_v43, %v8783_v12  ;;  %vm3629_vm8 = vcmp.eq.s32.totalorder %v5104_v2, %v8783_v12  ;;  %v1419_v56 = vadd.f32 %v1355_v37, %v1211_v44  ;;  %v1421_v63 = vadd.f32 %v1357_v48, %v1213_v52  ;;  %v8788_v52 = vld [vmem:[#allocation16_spill] sm:$0xff] }
 0x2de   : > { %v3493_v59 = vsel %vm3421_vm6, %v8782_v42, 0.0  ;;  %v3699_v47 = vsel %vm3627_vm7, %v8784_v54, 0.0  ;;  %v3701_v53 = vsel %vm3629_vm8, %v8784_v54, 0.0  ;;  %vm3835_vm9 = vcmp.eq.s32.totalorder %v5079_v43, %v8785_v15 }
 0x2df   : > { %v3763_v23 = vadd.f32 %v3699_v47, %v3491_v49  ;;  %vm3837_vm10 = vcmp.eq.s32.totalorder %v5104_v2, %v8785_v15  ;;  %v4645_v4 = vpack.c.bf16 %v1421_v63, %v1419_v56  ;;  %v3765_v1 = vadd.f32 %v3701_v53, %v3493_v59 }
 0x2e0   : > { %v3907_v50 = vsel %vm3835_vm9, %v8786_v21, 0.0  ;;  %v3909_v8 = vsel %vm3837_vm10, %v8786_v21, 0.0  ;;  %vm4043_vm11 = vcmp.eq.s32.totalorder %v5079_v43, %v8787_v39  ;;  %vm4045_vm12 = vcmp.eq.s32.totalorder %v5104_v2, %v8787_v39 }
 0x2e1   : > { %v3971_v35 = vadd.f32 %v3907_v50, %v3763_v23  ;;  %vm3424_vm13 = vcmp.eq.s32.totalorder %v5107_v5, %v5476_v55  ;;  %4646 = vmatprep.subr.bf16.mxu0 %v4645_v4  ;;  %v3973_v44 = vadd.f32 %v3909_v8, %v3765_v1  ;;  %v4115_v37 = vsel %vm4043_vm11, %v8788_v52, 0.0 }
 0x2e2   : > { %v4117_v48 = vsel %vm4045_vm12, %v8788_v52, 0.0  ;;  %vm3426_vm14 = vcmp.eq.s32.totalorder %v5110_v7, %v5476_v55  ;;  %v3496_v56 = vsel %vm3424_vm13, %v8768_v45, 0.0  ;;  %vm3632_vm15 = vcmp.eq.s32.totalorder %v5107_v5, %v5479_v62 }
 0x2e3   : > { %v4179_v49 = vadd.f32 %v4115_v37, %v3971_v35  ;;  %v3498_v43 = vsel %vm3426_vm14, %v8768_v45, 0.0  ;;  %v4181_v2 = vadd.f32 %v4117_v48, %v3973_v44  ;;  %vm3634_vm0 = vcmp.eq.s32.totalorder %v5110_v7, %v5479_v62 }
 0x2e4   : > { %v3704_v63 = vsel %vm3632_vm15, %v8769_v46, 0.0  ;;  %vm3840_vm1 = vcmp.eq.s32.totalorder %v5107_v5, %v8770_v33  ;;  %v3706_v59 = vsel %vm3634_vm0, %v8769_v46, 0.0  ;;  %vm3842_vm2 = vcmp.eq.s32.totalorder %v5110_v7, %v8770_v33 }
 0x2e5   : > { %v3768_v47 = vadd.f32 %v3704_v63, %v3496_v56  ;;  %v3912_v53 = vsel %vm3840_vm1, %v8771_v30, 0.0  ;;  %v4771_v23 = vpack.c.bf16 %v4181_v2, %v4179_v49  ;;  %v3770_v4 = vadd.f32 %v3706_v59, %v3498_v43 }
 0x2e6   : > { %v3914_v1 = vsel %vm3842_vm2, %v8771_v30, 0.0  ;;  %vm4048_vm3 = vcmp.eq.s32.totalorder %v5107_v5, %v5485_v3  ;;  %vm4050_vm4 = vcmp.eq.s32.totalorder %v5110_v7, %v5485_v3  ;;  %vm658_vm5 = vcmp.eq.s32.totalorder %v5107_v5, %v8773_v9 }
 0x2e7   : > { %v3976_v50 = vadd.f32 %v3912_v53, %v3768_v47  ;;  %v4120_v8 = vsel %vm4048_vm3, %v8772_v14, 0.0  ;;  %4772 = vmatpush1.bf16.msra.mxu1 %v4771_v23  ;;  %v3978_v35 = vadd.f32 %v3914_v1, %v3770_v4  ;;  %v4122_v44 = vsel %vm4050_vm4, %v8772_v14, 0.0 }
 0x2e8   : > { %vm660_vm6 = vcmp.eq.s32.totalorder %v5110_v7, %v8773_v9  ;;  %v730_v37 = vsel %vm658_vm5, %v8774_v61, 0.0  ;;  %vm866_vm7 = vcmp.eq.s32.totalorder %v5107_v5, %v8775_v40  ;;  %vm868_vm8 = vcmp.eq.s32.totalorder %v5110_v7, %v8775_v40 }
 0x2e9   : > { %v4184_v48 = vadd.f32 %v4120_v8, %v3976_v50  ;;  %v732_v49 = vsel %vm660_vm6, %v8774_v61, 0.0  ;;  %v4186_v56 = vadd.f32 %v4122_v44, %v3978_v35  ;;  %v938_v43 = vsel %vm866_vm7, %v8776_v36, 0.0 }
 0x2ea   : > { %v940_v2 = vsel %vm868_vm8, %v8776_v36, 0.0  ;;  %vm1074_vm9 = vcmp.eq.s32.totalorder %v5107_v5, %v8777_v25  ;;  %v1002_v63 = vadd.f32 %v938_v43, %v730_v37  ;;  %vm1076_vm10 = vcmp.eq.s32.totalorder %v5110_v7, %v8777_v25 }
 0x2eb   : > { %v1004_v59 = vadd.f32 %v940_v2, %v732_v49  ;;  %v1146_v47 = vsel %vm1074_vm9, %v8778_v20, 0.0  ;;  %v4773_v53 = vpack.c.bf16 %v4186_v56, %v4184_v48  ;;  %v1148_v23 = vsel %vm1076_vm10, %v8778_v20, 0.0 }
 0x2ec   : > { %vm1282_vm11 = vcmp.eq.s32.totalorder %v5107_v5, %v8779_v58  ;;  %vm1284_vm12 = vcmp.eq.s32.totalorder %v5110_v7, %v8779_v58  ;;  %v1210_v4 = vadd.f32 %v1146_v47, %v1002_v63  ;;  %vm663_vm13 = vcmp.eq.s32.totalorder %v5113_v10, %v8758_v6 }
 0x2ed   : > { %v1212_v1 = vadd.f32 %v1148_v23, %v1004_v59  ;;  %v1354_v50 = vsel %vm1282_vm11, %v8780_v51, 0.0  ;;  %v1356_v8 = vsel %vm1284_vm12, %v8780_v51, 0.0  ;;  %4774 = vmatprep.subr.bf16.mxu1 %v4773_v53  ;;  %vm665_vm14 = vcmp.eq.s32.totalorder %v5116_v11, %v8758_v6 }
 0x2ee   : > { %vm871_vm15 = vcmp.eq.s32.totalorder %v5113_v10, %v8759_v38  ;;  %vm873_vm0 = vcmp.eq.s32.totalorder %v5116_v11, %v8759_v38  ;;  %v1418_v35 = vadd.f32 %v1354_v50, %v1210_v4  ;;  %v735_v37 = vsel %vm663_vm13, %v8760_v27, 0.0 }
 0x2ef   : > { %v1420_v44 = vadd.f32 %v1356_v8, %v1212_v1  ;;  %v737_v48 = vsel %vm665_vm14, %v8760_v27, 0.0  ;;  %v943_v49 = vsel %vm871_vm15, %v8761_v17, 0.0  ;;  %v945_v56 = vsel %vm873_vm0, %v8761_v17, 0.0 }
 0x2f0   : > { %vm1079_vm1 = vcmp.eq.s32.totalorder %v5113_v10, %v8762_v34  ;;  %vm1081_vm2 = vcmp.eq.s32.totalorder %v5116_v11, %v8762_v34  ;;  %v1007_v2 = vadd.f32 %v943_v49, %v735_v37  ;;  %v1009_v63 = vadd.f32 %v945_v56, %v737_v48 }
 0x2f1   : > { %v4647_v43 = vpack.c.bf16 %v1420_v44, %v1418_v35  ;;  %v1151_v59 = vsel %vm1079_vm1, %v8763_v13, 0.0  ;;  %v1153_v47 = vsel %vm1081_vm2, %v8763_v13, 0.0  ;;  %vm1287_vm3 = vcmp.eq.s32.totalorder %v5113_v10, %v8764_v29 }
 0x2f2   : > { %vm1289_vm4 = vcmp.eq.s32.totalorder %v5116_v11, %v8764_v29  ;;  %vm3423_vm5 = vcmp.eq.s32.totalorder %v5107_v5, %v8781_v31  ;;  %v1215_v53 = vadd.f32 %v1151_v59, %v1007_v2  ;;  %v1217_v23 = vadd.f32 %v1153_v47, %v1009_v63 }
 0x2f3   : > { %4648 = vmatpush1.bf16.msra.mxu0 %v4647_v43  ;;  %v1359_v4 = vsel %vm1287_vm3, %v8765_v28, 0.0  ;;  %v1361_v1 = vsel %vm1289_vm4, %v8765_v28, 0.0  ;;  %vm3425_vm6 = vcmp.eq.s32.totalorder %v5110_v7, %v8781_v31  ;;  %v3495_v50 = vsel %vm3423_vm5, %v8782_v42, 0.0 }
 0x2f4   : > { %vm3631_vm7 = vcmp.eq.s32.totalorder %v5107_v5, %v8783_v12  ;;  %vm3633_vm8 = vcmp.eq.s32.totalorder %v5110_v7, %v8783_v12  ;;  %v1423_v8 = vadd.f32 %v1359_v4, %v1215_v53  ;;  %v1425_v35 = vadd.f32 %v1361_v1, %v1217_v23 }
 0x2f5   : > { %v3497_v44 = vsel %vm3425_vm6, %v8782_v42, 0.0  ;;  %v3703_v37 = vsel %vm3631_vm7, %v8784_v54, 0.0  ;;  %v3705_v48 = vsel %vm3633_vm8, %v8784_v54, 0.0  ;;  %vm3839_vm9 = vcmp.eq.s32.totalorder %v5107_v5, %v8785_v15 }
 0x2f6   : > { %v3767_v49 = vadd.f32 %v3703_v37, %v3495_v50  ;;  %vm3841_vm10 = vcmp.eq.s32.totalorder %v5110_v7, %v8785_v15  ;;  %v4649_v56 = vpack.c.bf16 %v1425_v35, %v1423_v8  ;;  %v3769_v43 = vadd.f32 %v3705_v48, %v3497_v44 }
 0x2f7   : > { %v3911_v2 = vsel %vm3839_vm9, %v8786_v21, 0.0  ;;  %v3913_v63 = vsel %vm3841_vm10, %v8786_v21, 0.0  ;;  %vm4047_vm11 = vcmp.eq.s32.totalorder %v5107_v5, %v8787_v39  ;;  %vm4049_vm12 = vcmp.eq.s32.totalorder %v5110_v7, %v8787_v39 }
 0x2f8   : > { %v3975_v59 = vadd.f32 %v3911_v2, %v3767_v49  ;;  %vm3428_vm13 = vcmp.eq.s32.totalorder %v5113_v10, %v5476_v55  ;;  %4650 = vmatprep.subr.bf16.mxu0 %v4649_v56  ;;  %v3977_v47 = vadd.f32 %v3913_v63, %v3769_v43  ;;  %v4119_v53 = vsel %vm4047_vm11, %v8788_v52, 0.0 }
 0x2f9   : > { %v4121_v23 = vsel %vm4049_vm12, %v8788_v52, 0.0  ;;  %vm3430_vm14 = vcmp.eq.s32.totalorder %v5116_v11, %v5476_v55  ;;  %v3500_v1 = vsel %vm3428_vm13, %v8768_v45, 0.0  ;;  %vm3636_vm15 = vcmp.eq.s32.totalorder %v5113_v10, %v5479_v62 }
 0x2fa   : > { %v4183_v4 = vadd.f32 %v4119_v53, %v3975_v59  ;;  %v3502_v5 = vsel %vm3430_vm14, %v8768_v45, 0.0  ;;  %v4185_v7 = vadd.f32 %v4121_v23, %v3977_v47  ;;  %vm3638_vm0 = vcmp.eq.s32.totalorder %v5116_v11, %v5479_v62 }
 0x2fb   : > { %v3708_v50 = vsel %vm3636_vm15, %v8769_v46, 0.0  ;;  %vm3844_vm1 = vcmp.eq.s32.totalorder %v5113_v10, %v8770_v33  ;;  %v3710_v8 = vsel %vm3638_vm0, %v8769_v46, 0.0  ;;  %vm3846_vm2 = vcmp.eq.s32.totalorder %v5116_v11, %v8770_v33 }
 0x2fc   : > { %v3772_v35 = vadd.f32 %v3708_v50, %v3500_v1  ;;  %v3916_v44 = vsel %vm3844_vm1, %v8771_v30, 0.0  ;;  %v4775_v37 = vpack.c.bf16 %v4185_v7, %v4183_v4  ;;  %v3774_v48 = vadd.f32 %v3710_v8, %v3502_v5 }
 0x2fd   : > { %v3918_v49 = vsel %vm3846_vm2, %v8771_v30, 0.0  ;;  %vm4052_vm3 = vcmp.eq.s32.totalorder %v5113_v10, %v5485_v3  ;;  %vm4054_vm4 = vcmp.eq.s32.totalorder %v5116_v11, %v5485_v3  ;;  %vm662_vm5 = vcmp.eq.s32.totalorder %v5113_v10, %v8773_v9 }
 0x2fe   : > { %v3980_v56 = vadd.f32 %v3916_v44, %v3772_v35  ;;  %v4124_v43 = vsel %vm4052_vm3, %v8772_v14, 0.0  ;;  %4776 = vmatpush1.bf16.msra.mxu1 %v4775_v37  ;;  %v3982_v2 = vadd.f32 %v3918_v49, %v3774_v48  ;;  %v4126_v63 = vsel %vm4054_vm4, %v8772_v14, 0.0 }
 0x2ff   : > { %vm664_vm6 = vcmp.eq.s32.totalorder %v5116_v11, %v8773_v9  ;;  %v734_v59 = vsel %vm662_vm5, %v8774_v61, 0.0  ;;  %vm870_vm7 = vcmp.eq.s32.totalorder %v5113_v10, %v8775_v40  ;;  %vm872_vm8 = vcmp.eq.s32.totalorder %v5116_v11, %v8775_v40 }
 0x300   : > { %v4188_v47 = vadd.f32 %v4124_v43, %v3980_v56  ;;  %v736_v53 = vsel %vm664_vm6, %v8774_v61, 0.0  ;;  %v4190_v23 = vadd.f32 %v4126_v63, %v3982_v2  ;;  %v942_v4 = vsel %vm870_vm7, %v8776_v36, 0.0 }
 0x301   : > { %v944_v1 = vsel %vm872_vm8, %v8776_v36, 0.0  ;;  %vm1078_vm9 = vcmp.eq.s32.totalorder %v5113_v10, %v8777_v25  ;;  %v1006_v5 = vadd.f32 %v942_v4, %v734_v59  ;;  %vm1080_vm10 = vcmp.eq.s32.totalorder %v5116_v11, %v8777_v25 }
 0x302   : > { %v1008_v7 = vadd.f32 %v944_v1, %v736_v53  ;;  %v1150_v50 = vsel %vm1078_vm9, %v8778_v20, 0.0  ;;  %v4777_v8 = vpack.c.bf16 %v4190_v23, %v4188_v47  ;;  %v1152_v35 = vsel %vm1080_vm10, %v8778_v20, 0.0 }
 0x303   : > { %vm1286_vm11 = vcmp.eq.s32.totalorder %v5113_v10, %v8779_v58  ;;  %vm1288_vm12 = vcmp.eq.s32.totalorder %v5116_v11, %v8779_v58  ;;  %v1214_v44 = vadd.f32 %v1150_v50, %v1006_v5  ;;  %vm667_vm13 = vcmp.eq.s32.totalorder %v5125_v18, %v8758_v6 }
 0x304   : > { %v1216_v37 = vadd.f32 %v1152_v35, %v1008_v7  ;;  %v1358_v48 = vsel %vm1286_vm11, %v8780_v51, 0.0  ;;  %v1360_v49 = vsel %vm1288_vm12, %v8780_v51, 0.0  ;;  %4778 = vmatprep.subr.bf16.mxu1 %v4777_v8  ;;  %vm669_vm14 = vcmp.eq.s32.totalorder %v5128_v19, %v8758_v6 }
 0x305   : > { %vm875_vm15 = vcmp.eq.s32.totalorder %v5125_v18, %v8759_v38  ;;  %vm877_vm0 = vcmp.eq.s32.totalorder %v5128_v19, %v8759_v38  ;;  %v1422_v56 = vadd.f32 %v1358_v48, %v1214_v44  ;;  %v739_v2 = vsel %vm667_vm13, %v8760_v27, 0.0 }
 0x306   : > { %v1424_v43 = vadd.f32 %v1360_v49, %v1216_v37  ;;  %v741_v63 = vsel %vm669_vm14, %v8760_v27, 0.0  ;;  %v947_v59 = vsel %vm875_vm15, %v8761_v17, 0.0  ;;  %v949_v47 = vsel %vm877_vm0, %v8761_v17, 0.0 }
 0x307   : > { %vm1083_vm1 = vcmp.eq.s32.totalorder %v5125_v18, %v8762_v34  ;;  %vm1085_vm2 = vcmp.eq.s32.totalorder %v5128_v19, %v8762_v34  ;;  %v1011_v23 = vadd.f32 %v947_v59, %v739_v2  ;;  %v1013_v4 = vadd.f32 %v949_v47, %v741_v63 }
 0x308   : > { %v4651_v53 = vpack.c.bf16 %v1424_v43, %v1422_v56  ;;  %v1155_v1 = vsel %vm1083_vm1, %v8763_v13, 0.0  ;;  %v1157_v5 = vsel %vm1085_vm2, %v8763_v13, 0.0  ;;  %vm1291_vm3 = vcmp.eq.s32.totalorder %v5125_v18, %v8764_v29 }
 0x309   : > { %vm1293_vm4 = vcmp.eq.s32.totalorder %v5128_v19, %v8764_v29  ;;  %vm3427_vm5 = vcmp.eq.s32.totalorder %v5113_v10, %v8781_v31  ;;  %v1219_v7 = vadd.f32 %v1155_v1, %v1011_v23  ;;  %v1221_v50 = vadd.f32 %v1157_v5, %v1013_v4 }
 0x30a   : > { %4652 = vmatpush1.bf16.msra.mxu0 %v4651_v53  ;;  %v1363_v8 = vsel %vm1291_vm3, %v8765_v28, 0.0  ;;  %v1365_v35 = vsel %vm1293_vm4, %v8765_v28, 0.0  ;;  %vm3429_vm6 = vcmp.eq.s32.totalorder %v5116_v11, %v8781_v31  ;;  %v3499_v44 = vsel %vm3427_vm5, %v8782_v42, 0.0 }
 0x30b   : > { %vm3635_vm7 = vcmp.eq.s32.totalorder %v5113_v10, %v8783_v12  ;;  %vm3637_vm8 = vcmp.eq.s32.totalorder %v5116_v11, %v8783_v12  ;;  %v1427_v37 = vadd.f32 %v1363_v8, %v1219_v7  ;;  %v1429_v48 = vadd.f32 %v1365_v35, %v1221_v50 }
 0x30c   : > { %v3501_v49 = vsel %vm3429_vm6, %v8782_v42, 0.0  ;;  %v3707_v56 = vsel %vm3635_vm7, %v8784_v54, 0.0  ;;  %v3709_v43 = vsel %vm3637_vm8, %v8784_v54, 0.0  ;;  %vm3843_vm9 = vcmp.eq.s32.totalorder %v5113_v10, %v8785_v15 }
 0x30d   : > { %v3771_v2 = vadd.f32 %v3707_v56, %v3499_v44  ;;  %vm3845_vm10 = vcmp.eq.s32.totalorder %v5116_v11, %v8785_v15  ;;  %v4653_v63 = vpack.c.bf16 %v1429_v48, %v1427_v37  ;;  %v3773_v59 = vadd.f32 %v3709_v43, %v3501_v49 }
 0x30e   : > { %v3915_v47 = vsel %vm3843_vm9, %v8786_v21, 0.0  ;;  %v3917_v53 = vsel %vm3845_vm10, %v8786_v21, 0.0  ;;  %vm4051_vm11 = vcmp.eq.s32.totalorder %v5113_v10, %v8787_v39  ;;  %vm4053_vm12 = vcmp.eq.s32.totalorder %v5116_v11, %v8787_v39 }
 0x30f   : > { %v3979_v23 = vadd.f32 %v3915_v47, %v3771_v2  ;;  %vm3432_vm13 = vcmp.eq.s32.totalorder %v5125_v18, %v5476_v55  ;;  %4654 = vmatprep.subr.bf16.mxu0 %v4653_v63  ;;  %v3981_v4 = vadd.f32 %v3917_v53, %v3773_v59  ;;  %v4123_v1 = vsel %vm4051_vm11, %v8788_v52, 0.0 }
 0x310   : > { %v4125_v5 = vsel %vm4053_vm12, %v8788_v52, 0.0  ;;  %vm3434_vm14 = vcmp.eq.s32.totalorder %v5128_v19, %v5476_v55  ;;  %v3504_v50 = vsel %vm3432_vm13, %v8768_v45, 0.0  ;;  %vm3640_vm15 = vcmp.eq.s32.totalorder %v5125_v18, %v5479_v62 }
 0x311   : > { %v4187_v7 = vadd.f32 %v4123_v1, %v3979_v23  ;;  %v3506_v10 = vsel %vm3434_vm14, %v8768_v45, 0.0  ;;  %v4189_v11 = vadd.f32 %v4125_v5, %v3981_v4  ;;  %vm3642_vm0 = vcmp.eq.s32.totalorder %v5128_v19, %v5479_v62 }
 0x312   : > { %v3712_v8 = vsel %vm3640_vm15, %v8769_v46, 0.0  ;;  %vm3848_vm1 = vcmp.eq.s32.totalorder %v5125_v18, %v8770_v33  ;;  %v3714_v35 = vsel %vm3642_vm0, %v8769_v46, 0.0  ;;  %vm3850_vm2 = vcmp.eq.s32.totalorder %v5128_v19, %v8770_v33 }
 0x313   : > { %v3776_v44 = vadd.f32 %v3712_v8, %v3504_v50  ;;  %v3920_v37 = vsel %vm3848_vm1, %v8771_v30, 0.0  ;;  %v4779_v48 = vpack.c.bf16 %v4189_v11, %v4187_v7  ;;  %v3778_v49 = vadd.f32 %v3714_v35, %v3506_v10 }
 0x314   : > { %v3922_v56 = vsel %vm3850_vm2, %v8771_v30, 0.0  ;;  %vm4056_vm3 = vcmp.eq.s32.totalorder %v5125_v18, %v5485_v3  ;;  %vm4058_vm4 = vcmp.eq.s32.totalorder %v5128_v19, %v5485_v3  ;;  %vm666_vm5 = vcmp.eq.s32.totalorder %v5125_v18, %v8773_v9 }
 0x315   : > { %v3984_v43 = vadd.f32 %v3920_v37, %v3776_v44  ;;  %v4128_v2 = vsel %vm4056_vm3, %v8772_v14, 0.0  ;;  %4780 = vmatpush1.bf16.msra.mxu1 %v4779_v48  ;;  %v3986_v63 = vadd.f32 %v3922_v56, %v3778_v49  ;;  %v4130_v59 = vsel %vm4058_vm4, %v8772_v14, 0.0 }
 0x316   : > { %vm668_vm6 = vcmp.eq.s32.totalorder %v5128_v19, %v8773_v9  ;;  %v738_v47 = vsel %vm666_vm5, %v8774_v61, 0.0  ;;  %vm874_vm7 = vcmp.eq.s32.totalorder %v5125_v18, %v8775_v40  ;;  %vm876_vm8 = vcmp.eq.s32.totalorder %v5128_v19, %v8775_v40 }
 0x317   : > { %v4192_v53 = vadd.f32 %v4128_v2, %v3984_v43  ;;  %v740_v23 = vsel %vm668_vm6, %v8774_v61, 0.0  ;;  %v4194_v4 = vadd.f32 %v4130_v59, %v3986_v63  ;;  %v946_v1 = vsel %vm874_vm7, %v8776_v36, 0.0 }
 0x318   : > { %v948_v5 = vsel %vm876_vm8, %v8776_v36, 0.0  ;;  %vm1082_vm9 = vcmp.eq.s32.totalorder %v5125_v18, %v8777_v25  ;;  %v1010_v7 = vadd.f32 %v946_v1, %v738_v47  ;;  %vm1084_vm10 = vcmp.eq.s32.totalorder %v5128_v19, %v8777_v25 }
 0x319   : > { %v1012_v50 = vadd.f32 %v948_v5, %v740_v23  ;;  %v1154_v10 = vsel %vm1082_vm9, %v8778_v20, 0.0  ;;  %v4781_v11 = vpack.c.bf16 %v4194_v4, %v4192_v53  ;;  %v1156_v8 = vsel %vm1084_vm10, %v8778_v20, 0.0 }
 0x31a   : > { %vm1290_vm11 = vcmp.eq.s32.totalorder %v5125_v18, %v8779_v58  ;;  %vm1292_vm12 = vcmp.eq.s32.totalorder %v5128_v19, %v8779_v58  ;;  %v1218_v35 = vadd.f32 %v1154_v10, %v1010_v7  ;;  %vm671_vm13 = vcmp.eq.s32.totalorder %v5135_v22, %v8758_v6 }
 0x31b   : > { %v1220_v44 = vadd.f32 %v1156_v8, %v1012_v50  ;;  %v1362_v37 = vsel %vm1290_vm11, %v8780_v51, 0.0  ;;  %v1364_v48 = vsel %vm1292_vm12, %v8780_v51, 0.0  ;;  %4782 = vmatprep.subr.bf16.mxu1 %v4781_v11  ;;  %vm673_vm14 = vcmp.eq.s32.totalorder %v5138_v24, %v8758_v6 }
 0x31c   : > { %vm879_vm15 = vcmp.eq.s32.totalorder %v5135_v22, %v8759_v38  ;;  %vm881_vm0 = vcmp.eq.s32.totalorder %v5138_v24, %v8759_v38  ;;  %v1426_v49 = vadd.f32 %v1362_v37, %v1218_v35  ;;  %v743_v43 = vsel %vm671_vm13, %v8760_v27, 0.0 }
 0x31d   : > { %v1428_v56 = vadd.f32 %v1364_v48, %v1220_v44  ;;  %v745_v2 = vsel %vm673_vm14, %v8760_v27, 0.0  ;;  %v951_v63 = vsel %vm879_vm15, %v8761_v17, 0.0  ;;  %v953_v59 = vsel %vm881_vm0, %v8761_v17, 0.0 }
 0x31e   : > { %vm1087_vm1 = vcmp.eq.s32.totalorder %v5135_v22, %v8762_v34  ;;  %vm1089_vm2 = vcmp.eq.s32.totalorder %v5138_v24, %v8762_v34  ;;  %v1015_v53 = vadd.f32 %v951_v63, %v743_v43  ;;  %v1017_v23 = vadd.f32 %v953_v59, %v745_v2 }
 0x31f   : > { %v4655_v47 = vpack.c.bf16 %v1428_v56, %v1426_v49  ;;  %v1159_v4 = vsel %vm1087_vm1, %v8763_v13, 0.0  ;;  %v1161_v1 = vsel %vm1089_vm2, %v8763_v13, 0.0  ;;  %vm1295_vm3 = vcmp.eq.s32.totalorder %v5135_v22, %v8764_v29 }
 0x320   : > { %vm1297_vm4 = vcmp.eq.s32.totalorder %v5138_v24, %v8764_v29  ;;  %vm3431_vm5 = vcmp.eq.s32.totalorder %v5125_v18, %v8781_v31  ;;  %v1223_v5 = vadd.f32 %v1159_v4, %v1015_v53  ;;  %v1225_v7 = vadd.f32 %v1161_v1, %v1017_v23 }
 0x321   : > { %4656 = vmatpush1.bf16.msra.mxu0 %v4655_v47  ;;  %v1367_v50 = vsel %vm1295_vm3, %v8765_v28, 0.0  ;;  %v1369_v10 = vsel %vm1297_vm4, %v8765_v28, 0.0  ;;  %vm3433_vm6 = vcmp.eq.s32.totalorder %v5128_v19, %v8781_v31  ;;  %v3503_v11 = vsel %vm3431_vm5, %v8782_v42, 0.0 }
 0x322   : > { %vm3639_vm7 = vcmp.eq.s32.totalorder %v5125_v18, %v8783_v12  ;;  %vm3641_vm8 = vcmp.eq.s32.totalorder %v5128_v19, %v8783_v12  ;;  %v1431_v8 = vadd.f32 %v1367_v50, %v1223_v5  ;;  %v1433_v35 = vadd.f32 %v1369_v10, %v1225_v7 }
 0x323   : > { %v3505_v44 = vsel %vm3433_vm6, %v8782_v42, 0.0  ;;  %v3711_v37 = vsel %vm3639_vm7, %v8784_v54, 0.0  ;;  %v3713_v48 = vsel %vm3641_vm8, %v8784_v54, 0.0  ;;  %vm3847_vm9 = vcmp.eq.s32.totalorder %v5125_v18, %v8785_v15 }
 0x324   : > { %v3775_v49 = vadd.f32 %v3711_v37, %v3503_v11  ;;  %vm3849_vm10 = vcmp.eq.s32.totalorder %v5128_v19, %v8785_v15  ;;  %v4657_v56 = vpack.c.bf16 %v1433_v35, %v1431_v8  ;;  %v3777_v43 = vadd.f32 %v3713_v48, %v3505_v44 }
 0x325   : > { %v3919_v2 = vsel %vm3847_vm9, %v8786_v21, 0.0  ;;  %v3921_v63 = vsel %vm3849_vm10, %v8786_v21, 0.0  ;;  %vm4055_vm11 = vcmp.eq.s32.totalorder %v5125_v18, %v8787_v39  ;;  %vm4057_vm12 = vcmp.eq.s32.totalorder %v5128_v19, %v8787_v39 }
 0x326   : > { %v3983_v59 = vadd.f32 %v3919_v2, %v3775_v49  ;;  %vm3436_vm13 = vcmp.eq.s32.totalorder %v5135_v22, %v5476_v55  ;;  %4658 = vmatprep.subr.bf16.mxu0 %v4657_v56  ;;  %v3985_v47 = vadd.f32 %v3921_v63, %v3777_v43  ;;  %v4127_v53 = vsel %vm4055_vm11, %v8788_v52, 0.0 }
 0x327   : > { %v4129_v23 = vsel %vm4057_vm12, %v8788_v52, 0.0  ;;  %vm3438_vm14 = vcmp.eq.s32.totalorder %v5138_v24, %v5476_v55  ;;  %v3508_v1 = vsel %vm3436_vm13, %v8768_v45, 0.0  ;;  %vm3644_vm15 = vcmp.eq.s32.totalorder %v5135_v22, %v5479_v62 }
 0x328   : > { %v4191_v4 = vadd.f32 %v4127_v53, %v3983_v59  ;;  %v3510_v18 = vsel %vm3438_vm14, %v8768_v45, 0.0  ;;  %v4193_v19 = vadd.f32 %v4129_v23, %v3985_v47  ;;  %vm3646_vm0 = vcmp.eq.s32.totalorder %v5138_v24, %v5479_v62 }
 0x329   : > { %v3716_v5 = vsel %vm3644_vm15, %v8769_v46, 0.0  ;;  %vm3852_vm1 = vcmp.eq.s32.totalorder %v5135_v22, %v8770_v33  ;;  %v3718_v7 = vsel %vm3646_vm0, %v8769_v46, 0.0  ;;  %vm3854_vm2 = vcmp.eq.s32.totalorder %v5138_v24, %v8770_v33 }
 0x32a   : > { %v3780_v50 = vadd.f32 %v3716_v5, %v3508_v1  ;;  %v3924_v10 = vsel %vm3852_vm1, %v8771_v30, 0.0  ;;  %v4783_v11 = vpack.c.bf16 %v4193_v19, %v4191_v4  ;;  %v3782_v8 = vadd.f32 %v3718_v7, %v3510_v18 }
 0x32b   : > { %v3926_v35 = vsel %vm3854_vm2, %v8771_v30, 0.0  ;;  %vm4060_vm3 = vcmp.eq.s32.totalorder %v5135_v22, %v5485_v3  ;;  %vm4062_vm4 = vcmp.eq.s32.totalorder %v5138_v24, %v5485_v3  ;;  %vm670_vm5 = vcmp.eq.s32.totalorder %v5135_v22, %v8773_v9 }
 0x32c   : > { %v3988_v44 = vadd.f32 %v3924_v10, %v3780_v50  ;;  %v4132_v37 = vsel %vm4060_vm3, %v8772_v14, 0.0  ;;  %4784 = vmatpush1.bf16.msra.mxu1 %v4783_v11  ;;  %v3990_v48 = vadd.f32 %v3926_v35, %v3782_v8  ;;  %v4134_v49 = vsel %vm4062_vm4, %v8772_v14, 0.0  ;;  %v8789_v10 = vld [vmem:[#allocation34_spill] sm:$0xff]  ;;  %v8790_v11 = vld [vmem:[#allocation35_spill] sm:$0xff] }
 0x32d   : > { %vm672_vm6 = vcmp.eq.s32.totalorder %v5138_v24, %v8773_v9  ;;  %v742_v56 = vsel %vm670_vm5, %v8774_v61, 0.0  ;;  %vm878_vm7 = vcmp.eq.s32.totalorder %v5135_v22, %v8775_v40  ;;  %vm880_vm8 = vcmp.eq.s32.totalorder %v5138_v24, %v8775_v40 }
 0x32e   : > { %v4196_v43 = vadd.f32 %v4132_v37, %v3988_v44  ;;  %v744_v2 = vsel %vm672_vm6, %v8774_v61, 0.0  ;;  %v4198_v63 = vadd.f32 %v4134_v49, %v3990_v48  ;;  %v950_v59 = vsel %vm878_vm7, %v8776_v36, 0.0 }
 0x32f   : > { %v952_v47 = vsel %vm880_vm8, %v8776_v36, 0.0  ;;  %vm1086_vm9 = vcmp.eq.s32.totalorder %v5135_v22, %v8777_v25  ;;  %v1014_v53 = vadd.f32 %v950_v59, %v742_v56  ;;  %vm1088_vm10 = vcmp.eq.s32.totalorder %v5138_v24, %v8777_v25 }
 0x330   : > { %v1016_v23 = vadd.f32 %v952_v47, %v744_v2  ;;  %v1158_v4 = vsel %vm1086_vm9, %v8778_v20, 0.0  ;;  %v4785_v1 = vpack.c.bf16 %v4198_v63, %v4196_v43  ;;  %v1160_v18 = vsel %vm1088_vm10, %v8778_v20, 0.0 }
 0x331   : > { %vm1294_vm11 = vcmp.eq.s32.totalorder %v5135_v22, %v8779_v58  ;;  %vm1296_vm12 = vcmp.eq.s32.totalorder %v5138_v24, %v8779_v58  ;;  %v1222_v19 = vadd.f32 %v1158_v4, %v1014_v53  ;;  %vm675_vm13 = vcmp.eq.s32.totalorder %v8789_v10, %v8758_v6 }
 0x332   : > { %v1224_v5 = vadd.f32 %v1160_v18, %v1016_v23  ;;  %v1366_v7 = vsel %vm1294_vm11, %v8780_v51, 0.0  ;;  %v1368_v50 = vsel %vm1296_vm12, %v8780_v51, 0.0  ;;  %4786 = vmatprep.subr.bf16.mxu1 %v4785_v1  ;;  %vm677_vm14 = vcmp.eq.s32.totalorder %v8790_v11, %v8758_v6 }
 0x333   : > { %vm883_vm15 = vcmp.eq.s32.totalorder %v8789_v10, %v8759_v38  ;;  %vm885_vm0 = vcmp.eq.s32.totalorder %v8790_v11, %v8759_v38  ;;  %v1430_v8 = vadd.f32 %v1366_v7, %v1222_v19  ;;  %v747_v44 = vsel %vm675_vm13, %v8760_v27, 0.0 }
 0x334   : > { %v1432_v35 = vadd.f32 %v1368_v50, %v1224_v5  ;;  %v749_v37 = vsel %vm677_vm14, %v8760_v27, 0.0  ;;  %v955_v48 = vsel %vm883_vm15, %v8761_v17, 0.0  ;;  %v957_v49 = vsel %vm885_vm0, %v8761_v17, 0.0 }
 0x335   : > { %vm1091_vm1 = vcmp.eq.s32.totalorder %v8789_v10, %v8762_v34  ;;  %vm1093_vm2 = vcmp.eq.s32.totalorder %v8790_v11, %v8762_v34  ;;  %v1019_v43 = vadd.f32 %v955_v48, %v747_v44  ;;  %v1021_v2 = vadd.f32 %v957_v49, %v749_v37 }
 0x336   : > { %v4659_v56 = vpack.c.bf16 %v1432_v35, %v1430_v8  ;;  %v1163_v63 = vsel %vm1091_vm1, %v8763_v13, 0.0  ;;  %v1165_v59 = vsel %vm1093_vm2, %v8763_v13, 0.0  ;;  %vm1299_vm3 = vcmp.eq.s32.totalorder %v8789_v10, %v8764_v29 }
 0x337   : > { %vm1301_vm4 = vcmp.eq.s32.totalorder %v8790_v11, %v8764_v29  ;;  %vm3435_vm5 = vcmp.eq.s32.totalorder %v5135_v22, %v8781_v31  ;;  %v1227_v47 = vadd.f32 %v1163_v63, %v1019_v43  ;;  %v1229_v53 = vadd.f32 %v1165_v59, %v1021_v2 }
 0x338   : > { %4660 = vmatpush1.bf16.msra.mxu0 %v4659_v56  ;;  %v1371_v23 = vsel %vm1299_vm3, %v8765_v28, 0.0  ;;  %v1373_v4 = vsel %vm1301_vm4, %v8765_v28, 0.0  ;;  %vm3437_vm6 = vcmp.eq.s32.totalorder %v5138_v24, %v8781_v31  ;;  %v3507_v1 = vsel %vm3435_vm5, %v8782_v42, 0.0 }
 0x339   : > { %vm3643_vm7 = vcmp.eq.s32.totalorder %v5135_v22, %v8783_v12  ;;  %vm3645_vm8 = vcmp.eq.s32.totalorder %v5138_v24, %v8783_v12  ;;  %v1435_v18 = vadd.f32 %v1371_v23, %v1227_v47  ;;  %v1437_v19 = vadd.f32 %v1373_v4, %v1229_v53 }
 0x33a   : > { %v3509_v5 = vsel %vm3437_vm6, %v8782_v42, 0.0  ;;  %v3715_v7 = vsel %vm3643_vm7, %v8784_v54, 0.0  ;;  %v3717_v50 = vsel %vm3645_vm8, %v8784_v54, 0.0  ;;  %vm3851_vm9 = vcmp.eq.s32.totalorder %v5135_v22, %v8785_v15 }
 0x33b   : > { %v3779_v8 = vadd.f32 %v3715_v7, %v3507_v1  ;;  %vm3853_vm10 = vcmp.eq.s32.totalorder %v5138_v24, %v8785_v15  ;;  %v4661_v35 = vpack.c.bf16 %v1437_v19, %v1435_v18  ;;  %v3781_v44 = vadd.f32 %v3717_v50, %v3509_v5 }
 0x33c   : > { %v3923_v37 = vsel %vm3851_vm9, %v8786_v21, 0.0  ;;  %v3925_v48 = vsel %vm3853_vm10, %v8786_v21, 0.0  ;;  %vm4059_vm11 = vcmp.eq.s32.totalorder %v5135_v22, %v8787_v39  ;;  %vm4061_vm12 = vcmp.eq.s32.totalorder %v5138_v24, %v8787_v39 }
 0x33d   : > { %v3987_v49 = vadd.f32 %v3923_v37, %v3779_v8  ;;  %vm3440_vm13 = vcmp.eq.s32.totalorder %v8789_v10, %v5476_v55  ;;  %4662 = vmatprep.subr.bf16.mxu0 %v4661_v35  ;;  %v3989_v56 = vadd.f32 %v3925_v48, %v3781_v44  ;;  %v4131_v43 = vsel %vm4059_vm11, %v8788_v52, 0.0 }
 0x33e   : > { %v4133_v2 = vsel %vm4061_vm12, %v8788_v52, 0.0  ;;  %vm3442_vm14 = vcmp.eq.s32.totalorder %v8790_v11, %v5476_v55  ;;  %v3512_v59 = vsel %vm3440_vm13, %v8768_v45, 0.0  ;;  %vm3648_vm15 = vcmp.eq.s32.totalorder %v8789_v10, %v5479_v62 }
 0x33f   : > { %v4195_v63 = vadd.f32 %v4131_v43, %v3987_v49  ;;  %v3514_v22 = vsel %vm3442_vm14, %v8768_v45, 0.0  ;;  %v4197_v24 = vadd.f32 %v4133_v2, %v3989_v56  ;;  %vm3650_vm0 = vcmp.eq.s32.totalorder %v8790_v11, %v5479_v62 }
 0x340   : > { %v3720_v47 = vsel %vm3648_vm15, %v8769_v46, 0.0  ;;  %vm3856_vm1 = vcmp.eq.s32.totalorder %v8789_v10, %v8770_v33  ;;  %v3722_v53 = vsel %vm3650_vm0, %v8769_v46, 0.0  ;;  %vm3858_vm2 = vcmp.eq.s32.totalorder %v8790_v11, %v8770_v33 }
 0x341   : > { %v3784_v23 = vadd.f32 %v3720_v47, %v3512_v59  ;;  %v3928_v4 = vsel %vm3856_vm1, %v8771_v30, 0.0  ;;  %v4787_v1 = vpack.c.bf16 %v4197_v24, %v4195_v63  ;;  %v3786_v18 = vadd.f32 %v3722_v53, %v3514_v22 }
 0x342   : > { %v3930_v19 = vsel %vm3858_vm2, %v8771_v30, 0.0  ;;  %vm4064_vm3 = vcmp.eq.s32.totalorder %v8789_v10, %v5485_v3  ;;  %vm4066_vm4 = vcmp.eq.s32.totalorder %v8790_v11, %v5485_v3  ;;  %vm674_vm5 = vcmp.eq.s32.totalorder %v8789_v10, %v8773_v9 }
 0x343   : > { %v3992_v5 = vadd.f32 %v3928_v4, %v3784_v23  ;;  %v4136_v7 = vsel %vm4064_vm3, %v8772_v14, 0.0  ;;  %4788 = vmatpush1.bf16.msra.mxu1 %v4787_v1  ;;  %v3994_v50 = vadd.f32 %v3930_v19, %v3786_v18  ;;  %v4138_v8 = vsel %vm4066_vm4, %v8772_v14, 0.0  ;;  %v8791_v4 = vld [vmem:[#allocation36_spill] sm:$0xff]  ;;  %v8792_v1 = vld [vmem:[#allocation37_spill] sm:$0xff] }
 0x344   : > { %vm676_vm6 = vcmp.eq.s32.totalorder %v8790_v11, %v8773_v9  ;;  %v746_v35 = vsel %vm674_vm5, %v8774_v61, 0.0  ;;  %vm882_vm7 = vcmp.eq.s32.totalorder %v8789_v10, %v8775_v40  ;;  %vm884_vm8 = vcmp.eq.s32.totalorder %v8790_v11, %v8775_v40 }
 0x345   : > { %v4200_v44 = vadd.f32 %v4136_v7, %v3992_v5  ;;  %v748_v37 = vsel %vm676_vm6, %v8774_v61, 0.0  ;;  %v4202_v48 = vadd.f32 %v4138_v8, %v3994_v50  ;;  %v954_v49 = vsel %vm882_vm7, %v8776_v36, 0.0 }
 0x346   : > { %v956_v56 = vsel %vm884_vm8, %v8776_v36, 0.0  ;;  %vm1090_vm9 = vcmp.eq.s32.totalorder %v8789_v10, %v8777_v25  ;;  %v1018_v43 = vadd.f32 %v954_v49, %v746_v35  ;;  %vm1092_vm10 = vcmp.eq.s32.totalorder %v8790_v11, %v8777_v25 }
 0x347   : > { %v1020_v2 = vadd.f32 %v956_v56, %v748_v37  ;;  %v1162_v63 = vsel %vm1090_vm9, %v8778_v20, 0.0  ;;  %v4789_v59 = vpack.c.bf16 %v4202_v48, %v4200_v44  ;;  %v1164_v22 = vsel %vm1092_vm10, %v8778_v20, 0.0 }
 0x348   : > { %vm1298_vm11 = vcmp.eq.s32.totalorder %v8789_v10, %v8779_v58  ;;  %vm1300_vm12 = vcmp.eq.s32.totalorder %v8790_v11, %v8779_v58  ;;  %v1226_v24 = vadd.f32 %v1162_v63, %v1018_v43  ;;  %vm679_vm13 = vcmp.eq.s32.totalorder %v8791_v4, %v8758_v6 }
 0x349   : > { %v1228_v47 = vadd.f32 %v1164_v22, %v1020_v2  ;;  %v1370_v53 = vsel %vm1298_vm11, %v8780_v51, 0.0  ;;  %v1372_v23 = vsel %vm1300_vm12, %v8780_v51, 0.0  ;;  %4790 = vmatprep.subr.bf16.mxu1 %v4789_v59  ;;  %vm681_vm14 = vcmp.eq.s32.totalorder %v8792_v1, %v8758_v6 }
 0x34a   : > { %vm887_vm15 = vcmp.eq.s32.totalorder %v8791_v4, %v8759_v38  ;;  %vm889_vm0 = vcmp.eq.s32.totalorder %v8792_v1, %v8759_v38  ;;  %v1434_v18 = vadd.f32 %v1370_v53, %v1226_v24  ;;  %v751_v5 = vsel %vm679_vm13, %v8760_v27, 0.0 }
 0x34b   : > { %v1436_v19 = vadd.f32 %v1372_v23, %v1228_v47  ;;  %v753_v7 = vsel %vm681_vm14, %v8760_v27, 0.0  ;;  %v959_v50 = vsel %vm887_vm15, %v8761_v17, 0.0  ;;  %v961_v8 = vsel %vm889_vm0, %v8761_v17, 0.0 }
 0x34c   : > { %vm1095_vm1 = vcmp.eq.s32.totalorder %v8791_v4, %v8762_v34  ;;  %vm1097_vm2 = vcmp.eq.s32.totalorder %v8792_v1, %v8762_v34  ;;  %v1023_v44 = vadd.f32 %v959_v50, %v751_v5  ;;  %v1025_v37 = vadd.f32 %v961_v8, %v753_v7 }
 0x34d   : > { %v4663_v35 = vpack.c.bf16 %v1436_v19, %v1434_v18  ;;  %v1167_v48 = vsel %vm1095_vm1, %v8763_v13, 0.0  ;;  %v1169_v49 = vsel %vm1097_vm2, %v8763_v13, 0.0  ;;  %vm1303_vm3 = vcmp.eq.s32.totalorder %v8791_v4, %v8764_v29 }
 0x34e   : > { %vm1305_vm4 = vcmp.eq.s32.totalorder %v8792_v1, %v8764_v29  ;;  %vm3439_vm5 = vcmp.eq.s32.totalorder %v8789_v10, %v8781_v31  ;;  %v1231_v56 = vadd.f32 %v1167_v48, %v1023_v44  ;;  %v1233_v43 = vadd.f32 %v1169_v49, %v1025_v37 }
 0x34f   : > { %4664 = vmatpush1.bf16.msra.mxu0 %v4663_v35  ;;  %v1375_v2 = vsel %vm1303_vm3, %v8765_v28, 0.0  ;;  %v1377_v63 = vsel %vm1305_vm4, %v8765_v28, 0.0  ;;  %vm3441_vm6 = vcmp.eq.s32.totalorder %v8790_v11, %v8781_v31  ;;  %v3511_v59 = vsel %vm3439_vm5, %v8782_v42, 0.0 }
 0x350   : > { %vm3647_vm7 = vcmp.eq.s32.totalorder %v8789_v10, %v8783_v12  ;;  %vm3649_vm8 = vcmp.eq.s32.totalorder %v8790_v11, %v8783_v12  ;;  %v1439_v22 = vadd.f32 %v1375_v2, %v1231_v56  ;;  %v1441_v24 = vadd.f32 %v1377_v63, %v1233_v43 }
 0x351   : > { %v3513_v47 = vsel %vm3441_vm6, %v8782_v42, 0.0  ;;  %v3719_v53 = vsel %vm3647_vm7, %v8784_v54, 0.0  ;;  %v3721_v23 = vsel %vm3649_vm8, %v8784_v54, 0.0  ;;  %vm3855_vm9 = vcmp.eq.s32.totalorder %v8789_v10, %v8785_v15 }
 0x352   : > { %v3783_v18 = vadd.f32 %v3719_v53, %v3511_v59  ;;  %vm3857_vm10 = vcmp.eq.s32.totalorder %v8790_v11, %v8785_v15  ;;  %v4665_v19 = vpack.c.bf16 %v1441_v24, %v1439_v22  ;;  %v3785_v5 = vadd.f32 %v3721_v23, %v3513_v47 }
 0x353   : > { %v3927_v7 = vsel %vm3855_vm9, %v8786_v21, 0.0  ;;  %v3929_v50 = vsel %vm3857_vm10, %v8786_v21, 0.0  ;;  %vm4063_vm11 = vcmp.eq.s32.totalorder %v8789_v10, %v8787_v39  ;;  %vm4065_vm12 = vcmp.eq.s32.totalorder %v8790_v11, %v8787_v39 }
 0x354   : > { %v3991_v8 = vadd.f32 %v3927_v7, %v3783_v18  ;;  %vm3444_vm13 = vcmp.eq.s32.totalorder %v8791_v4, %v5476_v55  ;;  %4666 = vmatprep.subr.bf16.mxu0 %v4665_v19  ;;  %v3993_v35 = vadd.f32 %v3929_v50, %v3785_v5  ;;  %v4135_v44 = vsel %vm4063_vm11, %v8788_v52, 0.0 }
 0x355   : > { %v4137_v37 = vsel %vm4065_vm12, %v8788_v52, 0.0  ;;  %vm3446_vm14 = vcmp.eq.s32.totalorder %v8792_v1, %v5476_v55  ;;  %v3516_v49 = vsel %vm3444_vm13, %v8768_v45, 0.0  ;;  %vm3652_vm15 = vcmp.eq.s32.totalorder %v8791_v4, %v5479_v62 }
 0x356   : > { %v4199_v48 = vadd.f32 %v4135_v44, %v3991_v8  ;;  %v3518_v10 = vsel %vm3446_vm14, %v8768_v45, 0.0  ;;  %v4201_v11 = vadd.f32 %v4137_v37, %v3993_v35  ;;  %vm3654_vm0 = vcmp.eq.s32.totalorder %v8792_v1, %v5479_v62 }
 0x357   : > { %v3724_v56 = vsel %vm3652_vm15, %v8769_v46, 0.0  ;;  %vm3860_vm1 = vcmp.eq.s32.totalorder %v8791_v4, %v8770_v33  ;;  %v3726_v43 = vsel %vm3654_vm0, %v8769_v46, 0.0  ;;  %vm3862_vm2 = vcmp.eq.s32.totalorder %v8792_v1, %v8770_v33 }
 0x358   : > { %v3788_v2 = vadd.f32 %v3724_v56, %v3516_v49  ;;  %v3932_v63 = vsel %vm3860_vm1, %v8771_v30, 0.0  ;;  %v4791_v59 = vpack.c.bf16 %v4201_v11, %v4199_v48  ;;  %v3790_v22 = vadd.f32 %v3726_v43, %v3518_v10 }
 0x359   : > { %v3934_v24 = vsel %vm3862_vm2, %v8771_v30, 0.0  ;;  %vm4068_vm3 = vcmp.eq.s32.totalorder %v8791_v4, %v5485_v3  ;;  %vm4070_vm4 = vcmp.eq.s32.totalorder %v8792_v1, %v5485_v3  ;;  %vm678_vm5 = vcmp.eq.s32.totalorder %v8791_v4, %v8773_v9 }
 0x35a   : > { %v3996_v47 = vadd.f32 %v3932_v63, %v3788_v2  ;;  %v4140_v53 = vsel %vm4068_vm3, %v8772_v14, 0.0  ;;  %4792 = vmatpush1.bf16.msra.mxu1 %v4791_v59  ;;  %v3998_v23 = vadd.f32 %v3934_v24, %v3790_v22  ;;  %v4142_v18 = vsel %vm4070_vm4, %v8772_v14, 0.0  ;;  %v8793_v63 = vld [vmem:[#allocation38_spill] sm:$0xff]  ;;  %v8794_v59 = vld [vmem:[#allocation39_spill] sm:$0xff] }
 0x35b   : > { %vm680_vm6 = vcmp.eq.s32.totalorder %v8792_v1, %v8773_v9  ;;  %v750_v19 = vsel %vm678_vm5, %v8774_v61, 0.0  ;;  %vm886_vm7 = vcmp.eq.s32.totalorder %v8791_v4, %v8775_v40  ;;  %vm888_vm8 = vcmp.eq.s32.totalorder %v8792_v1, %v8775_v40 }
 0x35c   : > { %v4204_v5 = vadd.f32 %v4140_v53, %v3996_v47  ;;  %v752_v7 = vsel %vm680_vm6, %v8774_v61, 0.0  ;;  %v4206_v50 = vadd.f32 %v4142_v18, %v3998_v23  ;;  %v958_v8 = vsel %vm886_vm7, %v8776_v36, 0.0 }
 0x35d   : > { %v960_v35 = vsel %vm888_vm8, %v8776_v36, 0.0  ;;  %vm1094_vm9 = vcmp.eq.s32.totalorder %v8791_v4, %v8777_v25  ;;  %v1022_v44 = vadd.f32 %v958_v8, %v750_v19  ;;  %vm1096_vm10 = vcmp.eq.s32.totalorder %v8792_v1, %v8777_v25 }
 0x35e   : > { %v1024_v37 = vadd.f32 %v960_v35, %v752_v7  ;;  %v1166_v48 = vsel %vm1094_vm9, %v8778_v20, 0.0  ;;  %v4793_v49 = vpack.c.bf16 %v4206_v50, %v4204_v5  ;;  %v1168_v10 = vsel %vm1096_vm10, %v8778_v20, 0.0 }
 0x35f   : > { %vm1302_vm11 = vcmp.eq.s32.totalorder %v8791_v4, %v8779_v58  ;;  %vm1304_vm12 = vcmp.eq.s32.totalorder %v8792_v1, %v8779_v58  ;;  %v1230_v11 = vadd.f32 %v1166_v48, %v1022_v44  ;;  %vm683_vm13 = vcmp.eq.s32.totalorder %v8793_v63, %v8758_v6 }
 0x360   : > { %v1232_v56 = vadd.f32 %v1168_v10, %v1024_v37  ;;  %v1374_v43 = vsel %vm1302_vm11, %v8780_v51, 0.0  ;;  %v1376_v2 = vsel %vm1304_vm12, %v8780_v51, 0.0  ;;  %4794 = vmatprep.subr.bf16.mxu1 %v4793_v49  ;;  %vm685_vm14 = vcmp.eq.s32.totalorder %v8794_v59, %v8758_v6 }
 0x361   : > { %vm891_vm15 = vcmp.eq.s32.totalorder %v8793_v63, %v8759_v38  ;;  %vm893_vm0 = vcmp.eq.s32.totalorder %v8794_v59, %v8759_v38  ;;  %v1438_v22 = vadd.f32 %v1374_v43, %v1230_v11  ;;  %v755_v47 = vsel %vm683_vm13, %v8760_v27, 0.0 }
 0x362   : > { %v1440_v24 = vadd.f32 %v1376_v2, %v1232_v56  ;;  %v757_v53 = vsel %vm685_vm14, %v8760_v27, 0.0  ;;  %v963_v23 = vsel %vm891_vm15, %v8761_v17, 0.0  ;;  %v965_v18 = vsel %vm893_vm0, %v8761_v17, 0.0 }
 0x363   : > { %vm1099_vm1 = vcmp.eq.s32.totalorder %v8793_v63, %v8762_v34  ;;  %vm1101_vm2 = vcmp.eq.s32.totalorder %v8794_v59, %v8762_v34  ;;  %v1027_v5 = vadd.f32 %v963_v23, %v755_v47  ;;  %v1029_v7 = vadd.f32 %v965_v18, %v757_v53 }
 0x364   : > { %v4667_v19 = vpack.c.bf16 %v1440_v24, %v1438_v22  ;;  %v1171_v50 = vsel %vm1099_vm1, %v8763_v13, 0.0  ;;  %v1173_v8 = vsel %vm1101_vm2, %v8763_v13, 0.0  ;;  %vm1307_vm3 = vcmp.eq.s32.totalorder %v8793_v63, %v8764_v29 }
 0x365   : > { %vm1309_vm4 = vcmp.eq.s32.totalorder %v8794_v59, %v8764_v29  ;;  %vm3443_vm5 = vcmp.eq.s32.totalorder %v8791_v4, %v8781_v31  ;;  %v1235_v35 = vadd.f32 %v1171_v50, %v1027_v5  ;;  %v1237_v44 = vadd.f32 %v1173_v8, %v1029_v7 }
 0x366   : > { %4668 = vmatpush1.bf16.msra.mxu0 %v4667_v19  ;;  %v1379_v37 = vsel %vm1307_vm3, %v8765_v28, 0.0  ;;  %v1381_v48 = vsel %vm1309_vm4, %v8765_v28, 0.0  ;;  %vm3445_vm6 = vcmp.eq.s32.totalorder %v8792_v1, %v8781_v31  ;;  %v3515_v49 = vsel %vm3443_vm5, %v8782_v42, 0.0 }
 0x367   : > { %vm3651_vm7 = vcmp.eq.s32.totalorder %v8791_v4, %v8783_v12  ;;  %vm3653_vm8 = vcmp.eq.s32.totalorder %v8792_v1, %v8783_v12  ;;  %v1443_v10 = vadd.f32 %v1379_v37, %v1235_v35  ;;  %v1445_v11 = vadd.f32 %v1381_v48, %v1237_v44 }
 0x368   : > { %v3517_v56 = vsel %vm3445_vm6, %v8782_v42, 0.0  ;;  %v3723_v43 = vsel %vm3651_vm7, %v8784_v54, 0.0  ;;  %v3725_v2 = vsel %vm3653_vm8, %v8784_v54, 0.0  ;;  %vm3859_vm9 = vcmp.eq.s32.totalorder %v8791_v4, %v8785_v15 }
 0x369   : > { %v3787_v22 = vadd.f32 %v3723_v43, %v3515_v49  ;;  %vm3861_vm10 = vcmp.eq.s32.totalorder %v8792_v1, %v8785_v15  ;;  %v4669_v24 = vpack.c.bf16 %v1445_v11, %v1443_v10  ;;  %v3789_v47 = vadd.f32 %v3725_v2, %v3517_v56 }
 0x36a   : > { %v3931_v53 = vsel %vm3859_vm9, %v8786_v21, 0.0  ;;  %v3933_v23 = vsel %vm3861_vm10, %v8786_v21, 0.0  ;;  %vm4067_vm11 = vcmp.eq.s32.totalorder %v8791_v4, %v8787_v39  ;;  %vm4069_vm12 = vcmp.eq.s32.totalorder %v8792_v1, %v8787_v39 }
 0x36b   : > { %v3995_v18 = vadd.f32 %v3931_v53, %v3787_v22  ;;  %vm3448_vm13 = vcmp.eq.s32.totalorder %v8793_v63, %v5476_v55  ;;  %4670 = vmatprep.subr.bf16.mxu0 %v4669_v24  ;;  %v3997_v19 = vadd.f32 %v3933_v23, %v3789_v47  ;;  %v4139_v5 = vsel %vm4067_vm11, %v8788_v52, 0.0 }
 0x36c   : > { %v4141_v7 = vsel %vm4069_vm12, %v8788_v52, 0.0  ;;  %vm3450_vm14 = vcmp.eq.s32.totalorder %v8794_v59, %v5476_v55  ;;  %v3520_v8 = vsel %vm3448_vm13, %v8768_v45, 0.0  ;;  %vm3656_vm15 = vcmp.eq.s32.totalorder %v8793_v63, %v5479_v62 }
 0x36d   : > { %v4203_v50 = vadd.f32 %v4139_v5, %v3995_v18  ;;  %v3522_v4 = vsel %vm3450_vm14, %v8768_v45, 0.0  ;;  %v4205_v1 = vadd.f32 %v4141_v7, %v3997_v19  ;;  %vm3658_vm0 = vcmp.eq.s32.totalorder %v8794_v59, %v5479_v62 }
 0x36e   : > { %v3728_v35 = vsel %vm3656_vm15, %v8769_v46, 0.0  ;;  %vm3864_vm1 = vcmp.eq.s32.totalorder %v8793_v63, %v8770_v33  ;;  %v3730_v44 = vsel %vm3658_vm0, %v8769_v46, 0.0  ;;  %vm3866_vm2 = vcmp.eq.s32.totalorder %v8794_v59, %v8770_v33 }
 0x36f   : > { %v3792_v37 = vadd.f32 %v3728_v35, %v3520_v8  ;;  %v3936_v48 = vsel %vm3864_vm1, %v8771_v30, 0.0  ;;  %v4795_v49 = vpack.c.bf16 %v4205_v1, %v4203_v50  ;;  %v3794_v10 = vadd.f32 %v3730_v44, %v3522_v4 }
 0x370   : > { %v3938_v11 = vsel %vm3866_vm2, %v8771_v30, 0.0  ;;  %vm4072_vm3 = vcmp.eq.s32.totalorder %v8793_v63, %v5485_v3  ;;  %vm4074_vm4 = vcmp.eq.s32.totalorder %v8794_v59, %v5485_v3  ;;  %vm682_vm5 = vcmp.eq.s32.totalorder %v8793_v63, %v8773_v9 }
 0x371   : > { %v4000_v56 = vadd.f32 %v3936_v48, %v3792_v37  ;;  %v4144_v43 = vsel %vm4072_vm3, %v8772_v14, 0.0  ;;  %4796 = vmatpush1.bf16.msra.mxu1 %v4795_v49  ;;  %v4002_v2 = vadd.f32 %v3938_v11, %v3794_v10  ;;  %v4146_v22 = vsel %vm4074_vm4, %v8772_v14, 0.0  ;;  %v8795_v48 = vld [vmem:[#allocation40_spill] sm:$0xff]  ;;  %v8796_v49 = vld [vmem:[#allocation41_spill] sm:$0xff] }
 0x372   : > { %vm684_vm6 = vcmp.eq.s32.totalorder %v8794_v59, %v8773_v9  ;;  %v754_v24 = vsel %vm682_vm5, %v8774_v61, 0.0  ;;  %vm890_vm7 = vcmp.eq.s32.totalorder %v8793_v63, %v8775_v40  ;;  %vm892_vm8 = vcmp.eq.s32.totalorder %v8794_v59, %v8775_v40 }
 0x373   : > { %v4208_v47 = vadd.f32 %v4144_v43, %v4000_v56  ;;  %v756_v53 = vsel %vm684_vm6, %v8774_v61, 0.0  ;;  %v4210_v23 = vadd.f32 %v4146_v22, %v4002_v2  ;;  %v962_v18 = vsel %vm890_vm7, %v8776_v36, 0.0 }
 0x374   : > { %v964_v19 = vsel %vm892_vm8, %v8776_v36, 0.0  ;;  %vm1098_vm9 = vcmp.eq.s32.totalorder %v8793_v63, %v8777_v25  ;;  %v1026_v5 = vadd.f32 %v962_v18, %v754_v24  ;;  %vm1100_vm10 = vcmp.eq.s32.totalorder %v8794_v59, %v8777_v25 }
 0x375   : > { %v1028_v7 = vadd.f32 %v964_v19, %v756_v53  ;;  %v1170_v50 = vsel %vm1098_vm9, %v8778_v20, 0.0  ;;  %v4797_v8 = vpack.c.bf16 %v4210_v23, %v4208_v47  ;;  %v1172_v4 = vsel %vm1100_vm10, %v8778_v20, 0.0 }
 0x376   : > { %vm1306_vm11 = vcmp.eq.s32.totalorder %v8793_v63, %v8779_v58  ;;  %vm1308_vm12 = vcmp.eq.s32.totalorder %v8794_v59, %v8779_v58  ;;  %v1234_v1 = vadd.f32 %v1170_v50, %v1026_v5  ;;  %vm687_vm13 = vcmp.eq.s32.totalorder %v8795_v48, %v8758_v6 }
 0x377   : > { %v1236_v35 = vadd.f32 %v1172_v4, %v1028_v7  ;;  %v1378_v44 = vsel %vm1306_vm11, %v8780_v51, 0.0  ;;  %v1380_v37 = vsel %vm1308_vm12, %v8780_v51, 0.0  ;;  %4798 = vmatprep.subr.bf16.mxu1 %v4797_v8  ;;  %vm689_vm14 = vcmp.eq.s32.totalorder %v8796_v49, %v8758_v6 }
 0x378   : > { %vm895_vm15 = vcmp.eq.s32.totalorder %v8795_v48, %v8759_v38  ;;  %vm897_vm0 = vcmp.eq.s32.totalorder %v8796_v49, %v8759_v38  ;;  %v1442_v10 = vadd.f32 %v1378_v44, %v1234_v1  ;;  %v759_v56 = vsel %vm687_vm13, %v8760_v27, 0.0 }
 0x379   : > { %v1444_v11 = vadd.f32 %v1380_v37, %v1236_v35  ;;  %v761_v43 = vsel %vm689_vm14, %v8760_v27, 0.0  ;;  %v967_v2 = vsel %vm895_vm15, %v8761_v17, 0.0  ;;  %v969_v22 = vsel %vm897_vm0, %v8761_v17, 0.0 }
 0x37a   : > { %vm1103_vm1 = vcmp.eq.s32.totalorder %v8795_v48, %v8762_v34  ;;  %vm1105_vm2 = vcmp.eq.s32.totalorder %v8796_v49, %v8762_v34  ;;  %v1031_v47 = vadd.f32 %v967_v2, %v759_v56  ;;  %v1033_v53 = vadd.f32 %v969_v22, %v761_v43 }
 0x37b   : > { %v4671_v24 = vpack.c.bf16 %v1444_v11, %v1442_v10  ;;  %v1175_v23 = vsel %vm1103_vm1, %v8763_v13, 0.0  ;;  %v1177_v18 = vsel %vm1105_vm2, %v8763_v13, 0.0  ;;  %vm1311_vm3 = vcmp.eq.s32.totalorder %v8795_v48, %v8764_v29 }
 0x37c   : > { %vm1313_vm4 = vcmp.eq.s32.totalorder %v8796_v49, %v8764_v29  ;;  %vm3447_vm5 = vcmp.eq.s32.totalorder %v8793_v63, %v8781_v31  ;;  %v1239_v19 = vadd.f32 %v1175_v23, %v1031_v47  ;;  %v1241_v5 = vadd.f32 %v1177_v18, %v1033_v53 }
 0x37d   : > { %4672 = vmatpush1.bf16.msra.mxu0 %v4671_v24  ;;  %v1383_v7 = vsel %vm1311_vm3, %v8765_v28, 0.0  ;;  %v1385_v50 = vsel %vm1313_vm4, %v8765_v28, 0.0  ;;  %vm3449_vm6 = vcmp.eq.s32.totalorder %v8794_v59, %v8781_v31  ;;  %v3519_v8 = vsel %vm3447_vm5, %v8782_v42, 0.0 }
 0x37e   : > { %vm3655_vm7 = vcmp.eq.s32.totalorder %v8793_v63, %v8783_v12  ;;  %vm3657_vm8 = vcmp.eq.s32.totalorder %v8794_v59, %v8783_v12  ;;  %v1447_v4 = vadd.f32 %v1383_v7, %v1239_v19  ;;  %v1449_v1 = vadd.f32 %v1385_v50, %v1241_v5 }
 0x37f   : > { %v3521_v35 = vsel %vm3449_vm6, %v8782_v42, 0.0  ;;  %v3727_v44 = vsel %vm3655_vm7, %v8784_v54, 0.0  ;;  %v3729_v37 = vsel %vm3657_vm8, %v8784_v54, 0.0  ;;  %vm3863_vm9 = vcmp.eq.s32.totalorder %v8793_v63, %v8785_v15 }
 0x380   : > { %v3791_v10 = vadd.f32 %v3727_v44, %v3519_v8  ;;  %vm3865_vm10 = vcmp.eq.s32.totalorder %v8794_v59, %v8785_v15  ;;  %v4673_v11 = vpack.c.bf16 %v1449_v1, %v1447_v4  ;;  %v3793_v56 = vadd.f32 %v3729_v37, %v3521_v35 }
 0x381   : > { %v3935_v43 = vsel %vm3863_vm9, %v8786_v21, 0.0  ;;  %v3937_v2 = vsel %vm3865_vm10, %v8786_v21, 0.0  ;;  %vm4071_vm11 = vcmp.eq.s32.totalorder %v8793_v63, %v8787_v39  ;;  %vm4073_vm12 = vcmp.eq.s32.totalorder %v8794_v59, %v8787_v39 }
 0x382   : > { %v3999_v22 = vadd.f32 %v3935_v43, %v3791_v10  ;;  %vm3452_vm13 = vcmp.eq.s32.totalorder %v8795_v48, %v5476_v55  ;;  %4674 = vmatprep.subr.bf16.mxu0 %v4673_v11  ;;  %v4001_v24 = vadd.f32 %v3937_v2, %v3793_v56  ;;  %v4143_v47 = vsel %vm4071_vm11, %v8788_v52, 0.0 }
 0x383   : > { %v4145_v53 = vsel %vm4073_vm12, %v8788_v52, 0.0  ;;  %vm3454_vm14 = vcmp.eq.s32.totalorder %v8796_v49, %v5476_v55  ;;  %v3524_v18 = vsel %vm3452_vm13, %v8768_v45, 0.0  ;;  %vm3660_vm15 = vcmp.eq.s32.totalorder %v8795_v48, %v5479_v62 }
 0x384   : > { %v4207_v23 = vadd.f32 %v4143_v47, %v3999_v22  ;;  %v3526_v63 = vsel %vm3454_vm14, %v8768_v45, 0.0  ;;  %v4209_v59 = vadd.f32 %v4145_v53, %v4001_v24  ;;  %vm3662_vm0 = vcmp.eq.s32.totalorder %v8796_v49, %v5479_v62 }
 0x385   : > { %v3732_v19 = vsel %vm3660_vm15, %v8769_v46, 0.0  ;;  %vm3868_vm1 = vcmp.eq.s32.totalorder %v8795_v48, %v8770_v33  ;;  %v3734_v5 = vsel %vm3662_vm0, %v8769_v46, 0.0  ;;  %vm3870_vm2 = vcmp.eq.s32.totalorder %v8796_v49, %v8770_v33 }
 0x386   : > { %v3796_v7 = vadd.f32 %v3732_v19, %v3524_v18  ;;  %v3940_v50 = vsel %vm3868_vm1, %v8771_v30, 0.0  ;;  %v4799_v8 = vpack.c.bf16 %v4209_v59, %v4207_v23  ;;  %v3798_v4 = vadd.f32 %v3734_v5, %v3526_v63 }
 0x387   : > { %v3942_v1 = vsel %vm3870_vm2, %v8771_v30, 0.0  ;;  %vm4076_vm3 = vcmp.eq.s32.totalorder %v8795_v48, %v5485_v3  ;;  %vm4078_vm4 = vcmp.eq.s32.totalorder %v8796_v49, %v5485_v3  ;;  %vm686_vm5 = vcmp.eq.s32.totalorder %v8795_v48, %v8773_v9 }
 0x388   : > { %v4004_v35 = vadd.f32 %v3940_v50, %v3796_v7  ;;  %v4148_v44 = vsel %vm4076_vm3, %v8772_v14, 0.0  ;;  %4800 = vmatpush1.bf16.msra.mxu1 %v4799_v8  ;;  %v4006_v37 = vadd.f32 %v3942_v1, %v3798_v4  ;;  %v4150_v10 = vsel %vm4078_vm4, %v8772_v14, 0.0  ;;  %v8797_v50 = vld [vmem:[#allocation42_spill] sm:$0xff]  ;;  %v8798_v8 = vld [vmem:[#allocation43_spill] sm:$0xff] }
 0x389   : > { %vm688_vm6 = vcmp.eq.s32.totalorder %v8796_v49, %v8773_v9  ;;  %v758_v11 = vsel %vm686_vm5, %v8774_v61, 0.0  ;;  %vm894_vm7 = vcmp.eq.s32.totalorder %v8795_v48, %v8775_v40  ;;  %vm896_vm8 = vcmp.eq.s32.totalorder %v8796_v49, %v8775_v40 }
 0x38a   : > { %v4212_v56 = vadd.f32 %v4148_v44, %v4004_v35  ;;  %v760_v43 = vsel %vm688_vm6, %v8774_v61, 0.0  ;;  %v4214_v2 = vadd.f32 %v4150_v10, %v4006_v37  ;;  %v966_v22 = vsel %vm894_vm7, %v8776_v36, 0.0 }
 0x38b   : > { %v968_v24 = vsel %vm896_vm8, %v8776_v36, 0.0  ;;  %vm1102_vm9 = vcmp.eq.s32.totalorder %v8795_v48, %v8777_v25  ;;  %v1030_v47 = vadd.f32 %v966_v22, %v758_v11  ;;  %vm1104_vm10 = vcmp.eq.s32.totalorder %v8796_v49, %v8777_v25 }
 0x38c   : > { %v1032_v53 = vadd.f32 %v968_v24, %v760_v43  ;;  %v1174_v23 = vsel %vm1102_vm9, %v8778_v20, 0.0  ;;  %v4801_v18 = vpack.c.bf16 %v4214_v2, %v4212_v56  ;;  %v1176_v63 = vsel %vm1104_vm10, %v8778_v20, 0.0 }
 0x38d   : > { %vm1310_vm11 = vcmp.eq.s32.totalorder %v8795_v48, %v8779_v58  ;;  %vm1312_vm12 = vcmp.eq.s32.totalorder %v8796_v49, %v8779_v58  ;;  %v1238_v59 = vadd.f32 %v1174_v23, %v1030_v47  ;;  %vm691_vm13 = vcmp.eq.s32.totalorder %v8797_v50, %v8758_v6 }
 0x38e   : > { %v1240_v19 = vadd.f32 %v1176_v63, %v1032_v53  ;;  %v1382_v5 = vsel %vm1310_vm11, %v8780_v51, 0.0  ;;  %v1384_v7 = vsel %vm1312_vm12, %v8780_v51, 0.0  ;;  %4802 = vmatprep.subr.bf16.mxu1 %v4801_v18  ;;  %vm693_vm14 = vcmp.eq.s32.totalorder %v8798_v8, %v8758_v6 }
 0x38f   : > { %vm899_vm15 = vcmp.eq.s32.totalorder %v8797_v50, %v8759_v38  ;;  %vm901_vm0 = vcmp.eq.s32.totalorder %v8798_v8, %v8759_v38  ;;  %v1446_v4 = vadd.f32 %v1382_v5, %v1238_v59  ;;  %v763_v35 = vsel %vm691_vm13, %v8760_v27, 0.0 }
 0x390   : > { %v1448_v1 = vadd.f32 %v1384_v7, %v1240_v19  ;;  %v765_v44 = vsel %vm693_vm14, %v8760_v27, 0.0  ;;  %v971_v37 = vsel %vm899_vm15, %v8761_v17, 0.0  ;;  %v973_v10 = vsel %vm901_vm0, %v8761_v17, 0.0 }
 0x391   : > { %vm1107_vm1 = vcmp.eq.s32.totalorder %v8797_v50, %v8762_v34  ;;  %vm1109_vm2 = vcmp.eq.s32.totalorder %v8798_v8, %v8762_v34  ;;  %v1035_v56 = vadd.f32 %v971_v37, %v763_v35  ;;  %v1037_v43 = vadd.f32 %v973_v10, %v765_v44 }
 0x392   : > { %v4675_v11 = vpack.c.bf16 %v1448_v1, %v1446_v4  ;;  %v1179_v2 = vsel %vm1107_vm1, %v8763_v13, 0.0  ;;  %v1181_v22 = vsel %vm1109_vm2, %v8763_v13, 0.0  ;;  %vm1315_vm3 = vcmp.eq.s32.totalorder %v8797_v50, %v8764_v29 }
 0x393   : > { %vm1317_vm4 = vcmp.eq.s32.totalorder %v8798_v8, %v8764_v29  ;;  %vm3451_vm5 = vcmp.eq.s32.totalorder %v8795_v48, %v8781_v31  ;;  %v1243_v24 = vadd.f32 %v1179_v2, %v1035_v56  ;;  %v1245_v47 = vadd.f32 %v1181_v22, %v1037_v43 }
 0x394   : > { %4676 = vmatpush1.bf16.msra.mxu0 %v4675_v11  ;;  %v1387_v53 = vsel %vm1315_vm3, %v8765_v28, 0.0  ;;  %v1389_v23 = vsel %vm1317_vm4, %v8765_v28, 0.0  ;;  %vm3453_vm6 = vcmp.eq.s32.totalorder %v8796_v49, %v8781_v31  ;;  %v3523_v18 = vsel %vm3451_vm5, %v8782_v42, 0.0 }
 0x395   : > { %vm3659_vm7 = vcmp.eq.s32.totalorder %v8795_v48, %v8783_v12  ;;  %vm3661_vm8 = vcmp.eq.s32.totalorder %v8796_v49, %v8783_v12  ;;  %v1451_v63 = vadd.f32 %v1387_v53, %v1243_v24  ;;  %v1453_v59 = vadd.f32 %v1389_v23, %v1245_v47 }
 0x396   : > { %v3525_v19 = vsel %vm3453_vm6, %v8782_v42, 0.0  ;;  %v3731_v5 = vsel %vm3659_vm7, %v8784_v54, 0.0  ;;  %v3733_v7 = vsel %vm3661_vm8, %v8784_v54, 0.0  ;;  %vm3867_vm9 = vcmp.eq.s32.totalorder %v8795_v48, %v8785_v15 }
 0x397   : > { %v3795_v4 = vadd.f32 %v3731_v5, %v3523_v18  ;;  %vm3869_vm10 = vcmp.eq.s32.totalorder %v8796_v49, %v8785_v15  ;;  %v4677_v1 = vpack.c.bf16 %v1453_v59, %v1451_v63  ;;  %v3797_v35 = vadd.f32 %v3733_v7, %v3525_v19 }
 0x398   : > { %v3939_v44 = vsel %vm3867_vm9, %v8786_v21, 0.0  ;;  %v3941_v37 = vsel %vm3869_vm10, %v8786_v21, 0.0  ;;  %vm4075_vm11 = vcmp.eq.s32.totalorder %v8795_v48, %v8787_v39  ;;  %vm4077_vm12 = vcmp.eq.s32.totalorder %v8796_v49, %v8787_v39 }
 0x399   : > { %v4003_v10 = vadd.f32 %v3939_v44, %v3795_v4  ;;  %vm3456_vm13 = vcmp.eq.s32.totalorder %v8797_v50, %v5476_v55  ;;  %4678 = vmatprep.subr.bf16.mxu0 %v4677_v1  ;;  %v4005_v11 = vadd.f32 %v3941_v37, %v3797_v35  ;;  %v4147_v56 = vsel %vm4075_vm11, %v8788_v52, 0.0 }
 0x39a   : > { %v4149_v43 = vsel %vm4077_vm12, %v8788_v52, 0.0  ;;  %vm3458_vm14 = vcmp.eq.s32.totalorder %v8798_v8, %v5476_v55  ;;  %v3528_v22 = vsel %vm3456_vm13, %v8768_v45, 0.0  ;;  %vm3664_vm15 = vcmp.eq.s32.totalorder %v8797_v50, %v5479_v62 }
 0x39b   : > { %v4211_v2 = vadd.f32 %v4147_v56, %v4003_v10  ;;  %v3530_v48 = vsel %vm3458_vm14, %v8768_v45, 0.0  ;;  %v4213_v49 = vadd.f32 %v4149_v43, %v4005_v11  ;;  %vm3666_vm0 = vcmp.eq.s32.totalorder %v8798_v8, %v5479_v62 }
 0x39c   : > { %v3736_v24 = vsel %vm3664_vm15, %v8769_v46, 0.0  ;;  %vm3872_vm1 = vcmp.eq.s32.totalorder %v8797_v50, %v8770_v33  ;;  %v3738_v47 = vsel %vm3666_vm0, %v8769_v46, 0.0  ;;  %vm3874_vm2 = vcmp.eq.s32.totalorder %v8798_v8, %v8770_v33 }
 0x39d   : > { %v3800_v53 = vadd.f32 %v3736_v24, %v3528_v22  ;;  %v3944_v23 = vsel %vm3872_vm1, %v8771_v30, 0.0  ;;  %v4803_v18 = vpack.c.bf16 %v4213_v49, %v4211_v2  ;;  %v3802_v63 = vadd.f32 %v3738_v47, %v3530_v48 }
 0x39e   : > { %v3946_v59 = vsel %vm3874_vm2, %v8771_v30, 0.0  ;;  %vm4080_vm3 = vcmp.eq.s32.totalorder %v8797_v50, %v5485_v3  ;;  %vm4082_vm4 = vcmp.eq.s32.totalorder %v8798_v8, %v5485_v3  ;;  %vm690_vm5 = vcmp.eq.s32.totalorder %v8797_v50, %v8773_v9 }
 0x39f   : > { %v4008_v19 = vadd.f32 %v3944_v23, %v3800_v53  ;;  %v4152_v5 = vsel %vm4080_vm3, %v8772_v14, 0.0  ;;  %4804 = vmatpush1.bf16.msra.mxu1 %v4803_v18  ;;  %v4010_v7 = vadd.f32 %v3946_v59, %v3802_v63  ;;  %v4154_v4 = vsel %vm4082_vm4, %v8772_v14, 0.0  ;;  %v8799_v23 = vld [vmem:[#allocation44_spill] sm:$0xff]  ;;  %v8800_v18 = vld [vmem:[#allocation45_spill] sm:$0xff] }
 0x3a0   : > { %vm692_vm6 = vcmp.eq.s32.totalorder %v8798_v8, %v8773_v9  ;;  %v762_v1 = vsel %vm690_vm5, %v8774_v61, 0.0  ;;  %vm898_vm7 = vcmp.eq.s32.totalorder %v8797_v50, %v8775_v40  ;;  %vm900_vm8 = vcmp.eq.s32.totalorder %v8798_v8, %v8775_v40 }
 0x3a1   : > { %v4216_v35 = vadd.f32 %v4152_v5, %v4008_v19  ;;  %v764_v44 = vsel %vm692_vm6, %v8774_v61, 0.0  ;;  %v4218_v37 = vadd.f32 %v4154_v4, %v4010_v7  ;;  %v970_v10 = vsel %vm898_vm7, %v8776_v36, 0.0 }
 0x3a2   : > { %v972_v11 = vsel %vm900_vm8, %v8776_v36, 0.0  ;;  %vm1106_vm9 = vcmp.eq.s32.totalorder %v8797_v50, %v8777_v25  ;;  %v1034_v56 = vadd.f32 %v970_v10, %v762_v1  ;;  %vm1108_vm10 = vcmp.eq.s32.totalorder %v8798_v8, %v8777_v25 }
 0x3a3   : > { %v1036_v43 = vadd.f32 %v972_v11, %v764_v44  ;;  %v1178_v2 = vsel %vm1106_vm9, %v8778_v20, 0.0  ;;  %v4805_v22 = vpack.c.bf16 %v4218_v37, %v4216_v35  ;;  %v1180_v48 = vsel %vm1108_vm10, %v8778_v20, 0.0 }
 0x3a4   : > { %vm1314_vm11 = vcmp.eq.s32.totalorder %v8797_v50, %v8779_v58  ;;  %vm1316_vm12 = vcmp.eq.s32.totalorder %v8798_v8, %v8779_v58  ;;  %v1242_v49 = vadd.f32 %v1178_v2, %v1034_v56  ;;  %vm695_vm13 = vcmp.eq.s32.totalorder %v8799_v23, %v8758_v6 }
 0x3a5   : > { %v1244_v24 = vadd.f32 %v1180_v48, %v1036_v43  ;;  %v1386_v47 = vsel %vm1314_vm11, %v8780_v51, 0.0  ;;  %v1388_v53 = vsel %vm1316_vm12, %v8780_v51, 0.0  ;;  %4806 = vmatprep.subr.bf16.mxu1 %v4805_v22  ;;  %vm697_vm14 = vcmp.eq.s32.totalorder %v8800_v18, %v8758_v6 }
 0x3a6   : > { %vm903_vm15 = vcmp.eq.s32.totalorder %v8799_v23, %v8759_v38  ;;  %vm905_vm0 = vcmp.eq.s32.totalorder %v8800_v18, %v8759_v38  ;;  %v1450_v63 = vadd.f32 %v1386_v47, %v1242_v49  ;;  %v767_v19 = vsel %vm695_vm13, %v8760_v27, 0.0 }
 0x3a7   : > { %v1452_v59 = vadd.f32 %v1388_v53, %v1244_v24  ;;  %v769_v5 = vsel %vm697_vm14, %v8760_v27, 0.0  ;;  %v975_v7 = vsel %vm903_vm15, %v8761_v17, 0.0  ;;  %v977_v4 = vsel %vm905_vm0, %v8761_v17, 0.0 }
 0x3a8   : > { %vm1111_vm1 = vcmp.eq.s32.totalorder %v8799_v23, %v8762_v34  ;;  %vm1113_vm2 = vcmp.eq.s32.totalorder %v8800_v18, %v8762_v34  ;;  %v1039_v35 = vadd.f32 %v975_v7, %v767_v19  ;;  %v1041_v44 = vadd.f32 %v977_v4, %v769_v5 }
 0x3a9   : > { %v4679_v1 = vpack.c.bf16 %v1452_v59, %v1450_v63  ;;  %v1183_v37 = vsel %vm1111_vm1, %v8763_v13, 0.0  ;;  %v1185_v10 = vsel %vm1113_vm2, %v8763_v13, 0.0  ;;  %vm1319_vm3 = vcmp.eq.s32.totalorder %v8799_v23, %v8764_v29 }
 0x3aa   : > { %vm1321_vm4 = vcmp.eq.s32.totalorder %v8800_v18, %v8764_v29  ;;  %vm3455_vm5 = vcmp.eq.s32.totalorder %v8797_v50, %v8781_v31  ;;  %v1247_v11 = vadd.f32 %v1183_v37, %v1039_v35  ;;  %v1249_v56 = vadd.f32 %v1185_v10, %v1041_v44 }
 0x3ab   : > { %4680 = vmatpush1.bf16.msra.mxu0 %v4679_v1  ;;  %v1391_v43 = vsel %vm1319_vm3, %v8765_v28, 0.0  ;;  %v1393_v2 = vsel %vm1321_vm4, %v8765_v28, 0.0  ;;  %vm3457_vm6 = vcmp.eq.s32.totalorder %v8798_v8, %v8781_v31  ;;  %v3527_v22 = vsel %vm3455_vm5, %v8782_v42, 0.0 }
 0x3ac   : > { %vm3663_vm7 = vcmp.eq.s32.totalorder %v8797_v50, %v8783_v12  ;;  %vm3665_vm8 = vcmp.eq.s32.totalorder %v8798_v8, %v8783_v12  ;;  %v1455_v48 = vadd.f32 %v1391_v43, %v1247_v11  ;;  %v1457_v49 = vadd.f32 %v1393_v2, %v1249_v56 }
 0x3ad   : > { %v3529_v24 = vsel %vm3457_vm6, %v8782_v42, 0.0  ;;  %v3735_v47 = vsel %vm3663_vm7, %v8784_v54, 0.0  ;;  %v3737_v53 = vsel %vm3665_vm8, %v8784_v54, 0.0  ;;  %vm3871_vm9 = vcmp.eq.s32.totalorder %v8797_v50, %v8785_v15 }
 0x3ae   : > { %v3799_v63 = vadd.f32 %v3735_v47, %v3527_v22  ;;  %vm3873_vm10 = vcmp.eq.s32.totalorder %v8798_v8, %v8785_v15  ;;  %v4681_v59 = vpack.c.bf16 %v1457_v49, %v1455_v48  ;;  %v3801_v19 = vadd.f32 %v3737_v53, %v3529_v24 }
 0x3af   : > { %v3943_v5 = vsel %vm3871_vm9, %v8786_v21, 0.0  ;;  %v3945_v7 = vsel %vm3873_vm10, %v8786_v21, 0.0  ;;  %vm4079_vm11 = vcmp.eq.s32.totalorder %v8797_v50, %v8787_v39  ;;  %vm4081_vm12 = vcmp.eq.s32.totalorder %v8798_v8, %v8787_v39 }
 0x3b0   : > { %v4007_v4 = vadd.f32 %v3943_v5, %v3799_v63  ;;  %vm3460_vm13 = vcmp.eq.s32.totalorder %v8799_v23, %v5476_v55  ;;  %4682 = vmatprep.subr.bf16.mxu0 %v4681_v59  ;;  %v4009_v1 = vadd.f32 %v3945_v7, %v3801_v19  ;;  %v4151_v35 = vsel %vm4079_vm11, %v8788_v52, 0.0 }
 0x3b1   : > { %v4153_v44 = vsel %vm4081_vm12, %v8788_v52, 0.0  ;;  %vm3462_vm14 = vcmp.eq.s32.totalorder %v8800_v18, %v5476_v55  ;;  %v3532_v10 = vsel %vm3460_vm13, %v8768_v45, 0.0  ;;  %vm3668_vm15 = vcmp.eq.s32.totalorder %v8799_v23, %v5479_v62 }
 0x3b2   : > { %v4215_v37 = vadd.f32 %v4151_v35, %v4007_v4  ;;  %v3534_v50 = vsel %vm3462_vm14, %v8768_v45, 0.0  ;;  %v4217_v8 = vadd.f32 %v4153_v44, %v4009_v1  ;;  %vm3670_vm0 = vcmp.eq.s32.totalorder %v8800_v18, %v5479_v62 }
 0x3b3   : > { %v3740_v11 = vsel %vm3668_vm15, %v8769_v46, 0.0  ;;  %vm3876_vm1 = vcmp.eq.s32.totalorder %v8799_v23, %v8770_v33  ;;  %v3742_v56 = vsel %vm3670_vm0, %v8769_v46, 0.0  ;;  %vm3878_vm2 = vcmp.eq.s32.totalorder %v8800_v18, %v8770_v33 }
 0x3b4   : > { %v3804_v43 = vadd.f32 %v3740_v11, %v3532_v10  ;;  %v3948_v2 = vsel %vm3876_vm1, %v8771_v30, 0.0  ;;  %v4807_v22 = vpack.c.bf16 %v4217_v8, %v4215_v37  ;;  %v3806_v48 = vadd.f32 %v3742_v56, %v3534_v50 }
 0x3b5   : > { %v3950_v49 = vsel %vm3878_vm2, %v8771_v30, 0.0  ;;  %vm4084_vm3 = vcmp.eq.s32.totalorder %v8799_v23, %v5485_v3  ;;  %vm4086_vm4 = vcmp.eq.s32.totalorder %v8800_v18, %v5485_v3  ;;  %vm694_vm5 = vcmp.eq.s32.totalorder %v8799_v23, %v8773_v9 }
 0x3b6   : > { %v4012_v24 = vadd.f32 %v3948_v2, %v3804_v43  ;;  %v4156_v47 = vsel %vm4084_vm3, %v8772_v14, 0.0  ;;  %4808 = vmatpush1.bf16.msra.mxu1 %v4807_v22  ;;  %v4014_v53 = vadd.f32 %v3950_v49, %v3806_v48  ;;  %v4158_v63 = vsel %vm4086_vm4, %v8772_v14, 0.0  ;;  %v8801_v2 = vld [vmem:[#allocation46_spill] sm:$0xff]  ;;  %v8802_v22 = vld [vmem:[#allocation47_spill] sm:$0xff] }
 0x3b7   : > { %vm696_vm6 = vcmp.eq.s32.totalorder %v8800_v18, %v8773_v9  ;;  %v766_v59 = vsel %vm694_vm5, %v8774_v61, 0.0  ;;  %vm902_vm7 = vcmp.eq.s32.totalorder %v8799_v23, %v8775_v40  ;;  %vm904_vm8 = vcmp.eq.s32.totalorder %v8800_v18, %v8775_v40 }
 0x3b8   : > { %v4220_v19 = vadd.f32 %v4156_v47, %v4012_v24  ;;  %v768_v5 = vsel %vm696_vm6, %v8774_v61, 0.0  ;;  %v4222_v7 = vadd.f32 %v4158_v63, %v4014_v53  ;;  %v974_v4 = vsel %vm902_vm7, %v8776_v36, 0.0 }
 0x3b9   : > { %v976_v1 = vsel %vm904_vm8, %v8776_v36, 0.0  ;;  %vm1110_vm9 = vcmp.eq.s32.totalorder %v8799_v23, %v8777_v25  ;;  %v1038_v35 = vadd.f32 %v974_v4, %v766_v59  ;;  %vm1112_vm10 = vcmp.eq.s32.totalorder %v8800_v18, %v8777_v25 }
 0x3ba   : > { %v1040_v44 = vadd.f32 %v976_v1, %v768_v5  ;;  %v1182_v37 = vsel %vm1110_vm9, %v8778_v20, 0.0  ;;  %v4809_v10 = vpack.c.bf16 %v4222_v7, %v4220_v19  ;;  %v1184_v50 = vsel %vm1112_vm10, %v8778_v20, 0.0 }
 0x3bb   : > { %vm1318_vm11 = vcmp.eq.s32.totalorder %v8799_v23, %v8779_v58  ;;  %vm1320_vm12 = vcmp.eq.s32.totalorder %v8800_v18, %v8779_v58  ;;  %v1246_v8 = vadd.f32 %v1182_v37, %v1038_v35  ;;  %vm699_vm13 = vcmp.eq.s32.totalorder %v8801_v2, %v8758_v6 }
 0x3bc   : > { %v1248_v11 = vadd.f32 %v1184_v50, %v1040_v44  ;;  %v1390_v56 = vsel %vm1318_vm11, %v8780_v51, 0.0  ;;  %v1392_v43 = vsel %vm1320_vm12, %v8780_v51, 0.0  ;;  %4810 = vmatprep.subr.bf16.mxu1 %v4809_v10  ;;  %vm701_vm14 = vcmp.eq.s32.totalorder %v8802_v22, %v8758_v6 }
 0x3bd   : > { %vm907_vm15 = vcmp.eq.s32.totalorder %v8801_v2, %v8759_v38  ;;  %vm909_vm0 = vcmp.eq.s32.totalorder %v8802_v22, %v8759_v38  ;;  %v1454_v48 = vadd.f32 %v1390_v56, %v1246_v8  ;;  %v771_v24 = vsel %vm699_vm13, %v8760_v27, 0.0 }
 0x3be   : > { %v1456_v49 = vadd.f32 %v1392_v43, %v1248_v11  ;;  %v773_v47 = vsel %vm701_vm14, %v8760_v27, 0.0  ;;  %v979_v53 = vsel %vm907_vm15, %v8761_v17, 0.0  ;;  %v981_v63 = vsel %vm909_vm0, %v8761_v17, 0.0 }
 0x3bf   : > { %vm1115_vm1 = vcmp.eq.s32.totalorder %v8801_v2, %v8762_v34  ;;  %vm1117_vm2 = vcmp.eq.s32.totalorder %v8802_v22, %v8762_v34  ;;  %v1043_v19 = vadd.f32 %v979_v53, %v771_v24  ;;  %v1045_v5 = vadd.f32 %v981_v63, %v773_v47 }
 0x3c0   : > { %v4683_v59 = vpack.c.bf16 %v1456_v49, %v1454_v48  ;;  %v1187_v7 = vsel %vm1115_vm1, %v8763_v13, 0.0  ;;  %v1189_v4 = vsel %vm1117_vm2, %v8763_v13, 0.0  ;;  %vm1323_vm3 = vcmp.eq.s32.totalorder %v8801_v2, %v8764_v29 }
 0x3c1   : > { %vm1325_vm4 = vcmp.eq.s32.totalorder %v8802_v22, %v8764_v29  ;;  %vm3459_vm5 = vcmp.eq.s32.totalorder %v8799_v23, %v8781_v31  ;;  %v1251_v1 = vadd.f32 %v1187_v7, %v1043_v19  ;;  %v1253_v35 = vadd.f32 %v1189_v4, %v1045_v5 }
 0x3c2   : > { %4684 = vmatpush1.bf16.msra.mxu0 %v4683_v59  ;;  %v1395_v44 = vsel %vm1323_vm3, %v8765_v28, 0.0  ;;  %v1397_v37 = vsel %vm1325_vm4, %v8765_v28, 0.0  ;;  %vm3461_vm6 = vcmp.eq.s32.totalorder %v8800_v18, %v8781_v31  ;;  %v3531_v10 = vsel %vm3459_vm5, %v8782_v42, 0.0 }
 0x3c3   : > { %vm3667_vm7 = vcmp.eq.s32.totalorder %v8799_v23, %v8783_v12  ;;  %vm3669_vm8 = vcmp.eq.s32.totalorder %v8800_v18, %v8783_v12  ;;  %v1459_v50 = vadd.f32 %v1395_v44, %v1251_v1  ;;  %v1461_v8 = vadd.f32 %v1397_v37, %v1253_v35 }
 0x3c4   : > { %v3533_v11 = vsel %vm3461_vm6, %v8782_v42, 0.0  ;;  %v3739_v56 = vsel %vm3667_vm7, %v8784_v54, 0.0  ;;  %v3741_v43 = vsel %vm3669_vm8, %v8784_v54, 0.0  ;;  %vm3875_vm9 = vcmp.eq.s32.totalorder %v8799_v23, %v8785_v15 }
 0x3c5   : > { %v3803_v48 = vadd.f32 %v3739_v56, %v3531_v10  ;;  %vm3877_vm10 = vcmp.eq.s32.totalorder %v8800_v18, %v8785_v15  ;;  %v4685_v49 = vpack.c.bf16 %v1461_v8, %v1459_v50  ;;  %v3805_v24 = vadd.f32 %v3741_v43, %v3533_v11 }
 0x3c6   : > { %v3947_v47 = vsel %vm3875_vm9, %v8786_v21, 0.0  ;;  %v3949_v53 = vsel %vm3877_vm10, %v8786_v21, 0.0  ;;  %vm4083_vm11 = vcmp.eq.s32.totalorder %v8799_v23, %v8787_v39  ;;  %vm4085_vm12 = vcmp.eq.s32.totalorder %v8800_v18, %v8787_v39 }
 0x3c7   : > { %v4011_v63 = vadd.f32 %v3947_v47, %v3803_v48  ;;  %vm3464_vm13 = vcmp.eq.s32.totalorder %v8801_v2, %v5476_v55  ;;  %4686 = vmatprep.subr.bf16.mxu0 %v4685_v49  ;;  %v4013_v59 = vadd.f32 %v3949_v53, %v3805_v24  ;;  %v4155_v19 = vsel %vm4083_vm11, %v8788_v52, 0.0 }
 0x3c8   : > { %v4157_v5 = vsel %vm4085_vm12, %v8788_v52, 0.0  ;;  %vm3466_vm14 = vcmp.eq.s32.totalorder %v8802_v22, %v5476_v55  ;;  %v3536_v4 = vsel %vm3464_vm13, %v8768_v45, 0.0  ;;  %vm3672_vm15 = vcmp.eq.s32.totalorder %v8801_v2, %v5479_v62 }
 0x3c9   : > { %v4219_v7 = vadd.f32 %v4155_v19, %v4011_v63  ;;  %v3538_v23 = vsel %vm3466_vm14, %v8768_v45, 0.0  ;;  %v4221_v18 = vadd.f32 %v4157_v5, %v4013_v59  ;;  %vm3674_vm0 = vcmp.eq.s32.totalorder %v8802_v22, %v5479_v62 }
 0x3ca   : > { %v3744_v1 = vsel %vm3672_vm15, %v8769_v46, 0.0  ;;  %vm3880_vm1 = vcmp.eq.s32.totalorder %v8801_v2, %v8770_v33  ;;  %v3746_v35 = vsel %vm3674_vm0, %v8769_v46, 0.0  ;;  %vm3882_vm2 = vcmp.eq.s32.totalorder %v8802_v22, %v8770_v33 }
 0x3cb   : > { %v3808_v44 = vadd.f32 %v3744_v1, %v3536_v4  ;;  %v3952_v37 = vsel %vm3880_vm1, %v8771_v30, 0.0  ;;  %v4811_v10 = vpack.c.bf16 %v4221_v18, %v4219_v7  ;;  %v3810_v50 = vadd.f32 %v3746_v35, %v3538_v23 }
 0x3cc   : > { %v3954_v8 = vsel %vm3882_vm2, %v8771_v30, 0.0  ;;  %vm4088_vm3 = vcmp.eq.s32.totalorder %v8801_v2, %v5485_v3  ;;  %vm4090_vm4 = vcmp.eq.s32.totalorder %v8802_v22, %v5485_v3  ;;  %vm698_vm5 = vcmp.eq.s32.totalorder %v8801_v2, %v8773_v9 }
 0x3cd   : > { %v4016_v11 = vadd.f32 %v3952_v37, %v3808_v44  ;;  %v4160_v56 = vsel %vm4088_vm3, %v8772_v14, 0.0  ;;  %4812 = vmatpush1.bf16.msra.mxu1 %v4811_v10  ;;  %v4018_v43 = vadd.f32 %v3954_v8, %v3810_v50  ;;  %v4162_v48 = vsel %vm4090_vm4, %v8772_v14, 0.0  ;;  %v8803_v37 = vld [vmem:[#allocation48_spill] sm:$0xff]  ;;  %v8804_v10 = vld [vmem:[#allocation49_spill] sm:$0xff] }
 0x3ce   : > { %vm700_vm6 = vcmp.eq.s32.totalorder %v8802_v22, %v8773_v9  ;;  %v770_v49 = vsel %vm698_vm5, %v8774_v61, 0.0  ;;  %vm906_vm7 = vcmp.eq.s32.totalorder %v8801_v2, %v8775_v40  ;;  %vm908_vm8 = vcmp.eq.s32.totalorder %v8802_v22, %v8775_v40 }
 0x3cf   : > { %v4224_v24 = vadd.f32 %v4160_v56, %v4016_v11  ;;  %v772_v47 = vsel %vm700_vm6, %v8774_v61, 0.0  ;;  %v4226_v53 = vadd.f32 %v4162_v48, %v4018_v43  ;;  %v978_v63 = vsel %vm906_vm7, %v8776_v36, 0.0 }
 0x3d0   : > { %v980_v59 = vsel %vm908_vm8, %v8776_v36, 0.0  ;;  %vm1114_vm9 = vcmp.eq.s32.totalorder %v8801_v2, %v8777_v25  ;;  %v1042_v19 = vadd.f32 %v978_v63, %v770_v49  ;;  %vm1116_vm10 = vcmp.eq.s32.totalorder %v8802_v22, %v8777_v25 }
 0x3d1   : > { %v1044_v5 = vadd.f32 %v980_v59, %v772_v47  ;;  %v1186_v7 = vsel %vm1114_vm9, %v8778_v20, 0.0  ;;  %v4813_v4 = vpack.c.bf16 %v4226_v53, %v4224_v24  ;;  %v1188_v23 = vsel %vm1116_vm10, %v8778_v20, 0.0 }
 0x3d2   : > { %vm1322_vm11 = vcmp.eq.s32.totalorder %v8801_v2, %v8779_v58  ;;  %vm1324_vm12 = vcmp.eq.s32.totalorder %v8802_v22, %v8779_v58  ;;  %v1250_v18 = vadd.f32 %v1186_v7, %v1042_v19  ;;  %vm703_vm13 = vcmp.eq.s32.totalorder %v8803_v37, %v8758_v6 }
 0x3d3   : > { %v1252_v1 = vadd.f32 %v1188_v23, %v1044_v5  ;;  %v1394_v35 = vsel %vm1322_vm11, %v8780_v51, 0.0  ;;  %v1396_v44 = vsel %vm1324_vm12, %v8780_v51, 0.0  ;;  %4814 = vmatprep.subr.bf16.mxu1 %v4813_v4  ;;  %vm705_vm14 = vcmp.eq.s32.totalorder %v8804_v10, %v8758_v6 }
 0x3d4   : > { %vm911_vm15 = vcmp.eq.s32.totalorder %v8803_v37, %v8759_v38  ;;  %vm913_vm0 = vcmp.eq.s32.totalorder %v8804_v10, %v8759_v38  ;;  %v1458_v50 = vadd.f32 %v1394_v35, %v1250_v18  ;;  %v775_v11 = vsel %vm703_vm13, %v8760_v27, 0.0 }
 0x3d5   : > { %v1460_v8 = vadd.f32 %v1396_v44, %v1252_v1  ;;  %v777_v56 = vsel %vm705_vm14, %v8760_v27, 0.0  ;;  %v983_v43 = vsel %vm911_vm15, %v8761_v17, 0.0  ;;  %v985_v48 = vsel %vm913_vm0, %v8761_v17, 0.0 }
 0x3d6   : > { %vm1119_vm1 = vcmp.eq.s32.totalorder %v8803_v37, %v8762_v34  ;;  %vm1121_vm2 = vcmp.eq.s32.totalorder %v8804_v10, %v8762_v34  ;;  %v1047_v24 = vadd.f32 %v983_v43, %v775_v11  ;;  %v1049_v47 = vadd.f32 %v985_v48, %v777_v56 }
 0x3d7   : > { %v4687_v49 = vpack.c.bf16 %v1460_v8, %v1458_v50  ;;  %v1191_v53 = vsel %vm1119_vm1, %v8763_v13, 0.0  ;;  %v1193_v63 = vsel %vm1121_vm2, %v8763_v13, 0.0  ;;  %vm1327_vm3 = vcmp.eq.s32.totalorder %v8803_v37, %v8764_v29 }
 0x3d8   : > { %vm1329_vm4 = vcmp.eq.s32.totalorder %v8804_v10, %v8764_v29  ;;  %vm3463_vm5 = vcmp.eq.s32.totalorder %v8801_v2, %v8781_v31  ;;  %v1255_v59 = vadd.f32 %v1191_v53, %v1047_v24  ;;  %v1257_v19 = vadd.f32 %v1193_v63, %v1049_v47 }
 0x3d9   : > { %4688 = vmatpush1.bf16.msra.mxu0 %v4687_v49  ;;  %v1399_v5 = vsel %vm1327_vm3, %v8765_v28, 0.0  ;;  %v1401_v7 = vsel %vm1329_vm4, %v8765_v28, 0.0  ;;  %vm3465_vm6 = vcmp.eq.s32.totalorder %v8802_v22, %v8781_v31  ;;  %v3535_v4 = vsel %vm3463_vm5, %v8782_v42, 0.0 }
 0x3da   : > { %vm3671_vm7 = vcmp.eq.s32.totalorder %v8801_v2, %v8783_v12  ;;  %vm3673_vm8 = vcmp.eq.s32.totalorder %v8802_v22, %v8783_v12  ;;  %v1463_v23 = vadd.f32 %v1399_v5, %v1255_v59  ;;  %v1465_v18 = vadd.f32 %v1401_v7, %v1257_v19 }
 0x3db   : > { %v3537_v1 = vsel %vm3465_vm6, %v8782_v42, 0.0  ;;  %v3743_v35 = vsel %vm3671_vm7, %v8784_v54, 0.0  ;;  %v3745_v44 = vsel %vm3673_vm8, %v8784_v54, 0.0  ;;  %vm3879_vm9 = vcmp.eq.s32.totalorder %v8801_v2, %v8785_v15 }
 0x3dc   : > { %v3807_v50 = vadd.f32 %v3743_v35, %v3535_v4  ;;  %vm3881_vm10 = vcmp.eq.s32.totalorder %v8802_v22, %v8785_v15  ;;  %v4689_v8 = vpack.c.bf16 %v1465_v18, %v1463_v23  ;;  %v3809_v11 = vadd.f32 %v3745_v44, %v3537_v1 }
 0x3dd   : > { %v3951_v56 = vsel %vm3879_vm9, %v8786_v21, 0.0  ;;  %v3953_v43 = vsel %vm3881_vm10, %v8786_v21, 0.0  ;;  %vm4087_vm11 = vcmp.eq.s32.totalorder %v8801_v2, %v8787_v39  ;;  %vm4089_vm12 = vcmp.eq.s32.totalorder %v8802_v22, %v8787_v39 }
 0x3de   : > { %v4015_v48 = vadd.f32 %v3951_v56, %v3807_v50  ;;  %vm3468_vm13 = vcmp.eq.s32.totalorder %v8803_v37, %v5476_v55  ;;  %4690 = vmatprep.subr.bf16.mxu0 %v4689_v8  ;;  %v4017_v49 = vadd.f32 %v3953_v43, %v3809_v11  ;;  %v4159_v24 = vsel %vm4087_vm11, %v8788_v52, 0.0 }
 0x3df   : > { %v4161_v47 = vsel %vm4089_vm12, %v8788_v52, 0.0  ;;  %vm3470_vm14 = vcmp.eq.s32.totalorder %v8804_v10, %v5476_v55  ;;  %v3540_v63 = vsel %vm3468_vm13, %v8768_v45, 0.0  ;;  %vm3676_vm15 = vcmp.eq.s32.totalorder %v8803_v37, %v5479_v62 }
 0x3e0   : > { %v4223_v53 = vadd.f32 %v4159_v24, %v4015_v48  ;;  %v3542_v2 = vsel %vm3470_vm14, %v8768_v45, 0.0  ;;  %v4225_v22 = vadd.f32 %v4161_v47, %v4017_v49  ;;  %vm3678_vm0 = vcmp.eq.s32.totalorder %v8804_v10, %v5479_v62 }
 0x3e1   : > { %v3748_v59 = vsel %vm3676_vm15, %v8769_v46, 0.0  ;;  %vm3884_vm1 = vcmp.eq.s32.totalorder %v8803_v37, %v8770_v33  ;;  %v3750_v19 = vsel %vm3678_vm0, %v8769_v46, 0.0  ;;  %vm3886_vm2 = vcmp.eq.s32.totalorder %v8804_v10, %v8770_v33 }
 0x3e2   : > { %v3812_v5 = vadd.f32 %v3748_v59, %v3540_v63  ;;  %v3956_v7 = vsel %vm3884_vm1, %v8771_v30, 0.0  ;;  %v4815_v4 = vpack.c.bf16 %v4225_v22, %v4223_v53  ;;  %v3814_v23 = vadd.f32 %v3750_v19, %v3542_v2 }
 0x3e3   : > { %v3958_v18 = vsel %vm3886_vm2, %v8771_v30, 0.0  ;;  %vm4092_vm3 = vcmp.eq.s32.totalorder %v8803_v37, %v5485_v3  ;;  %vm4094_vm4 = vcmp.eq.s32.totalorder %v8804_v10, %v5485_v3  ;;  %vm702_vm5 = vcmp.eq.s32.totalorder %v8803_v37, %v8773_v9 }
 0x3e4   : > { %v4020_v1 = vadd.f32 %v3956_v7, %v3812_v5  ;;  %v4164_v35 = vsel %vm4092_vm3, %v8772_v14, 0.0  ;;  %4816 = vmatpush1.bf16.msra.mxu1 %v4815_v4  ;;  %v4022_v44 = vadd.f32 %v3958_v18, %v3814_v23  ;;  %v4166_v50 = vsel %vm4094_vm4, %v8772_v14, 0.0 }
 0x3e5   : > { %vm704_vm6 = vcmp.eq.s32.totalorder %v8804_v10, %v8773_v9  ;;  %v774_v8 = vsel %vm702_vm5, %v8774_v61, 0.0  ;;  %vm910_vm7 = vcmp.eq.s32.totalorder %v8803_v37, %v8775_v40  ;;  %vm912_vm8 = vcmp.eq.s32.totalorder %v8804_v10, %v8775_v40 }
 0x3e6   : > { %v4228_v11 = vadd.f32 %v4164_v35, %v4020_v1  ;;  %v776_v56 = vsel %vm704_vm6, %v8774_v61, 0.0  ;;  %v4230_v43 = vadd.f32 %v4166_v50, %v4022_v44  ;;  %v982_v48 = vsel %vm910_vm7, %v8776_v36, 0.0 }
 0x3e7   : > { %v984_v49 = vsel %vm912_vm8, %v8776_v36, 0.0  ;;  %vm1118_vm9 = vcmp.eq.s32.totalorder %v8803_v37, %v8777_v25  ;;  %v1046_v24 = vadd.f32 %v982_v48, %v774_v8  ;;  %vm1120_vm10 = vcmp.eq.s32.totalorder %v8804_v10, %v8777_v25 }
 0x3e8   : > { %v1048_v47 = vadd.f32 %v984_v49, %v776_v56  ;;  %v1190_v53 = vsel %vm1118_vm9, %v8778_v20, 0.0  ;;  %v4817_v63 = vpack.c.bf16 %v4230_v43, %v4228_v11  ;;  %v1192_v2 = vsel %vm1120_vm10, %v8778_v20, 0.0 }
 0x3e9   : > { %vm1326_vm11 = vcmp.eq.s32.totalorder %v8803_v37, %v8779_v58  ;;  %vm1328_vm12 = vcmp.eq.s32.totalorder %v8804_v10, %v8779_v58  ;;  %v1254_v22 = vadd.f32 %v1190_v53, %v1046_v24  ;;  %vm707_vm13 = vcmp.eq.s32.totalorder %v6724_v32, %v8758_v6 }
 0x3ea   : > { %v1256_v59 = vadd.f32 %v1192_v2, %v1048_v47  ;;  %v1398_v19 = vsel %vm1326_vm11, %v8780_v51, 0.0  ;;  %v1400_v5 = vsel %vm1328_vm12, %v8780_v51, 0.0  ;;  %4818 = vmatprep.subr.bf16.mxu1 %v4817_v63  ;;  %vm709_vm14 = vcmp.eq.s32.totalorder %v6729_v16, %v8758_v6 }
 0x3eb   : > { %vm915_vm15 = vcmp.eq.s32.totalorder %v6724_v32, %v8759_v38  ;;  %vm917_vm0 = vcmp.eq.s32.totalorder %v6729_v16, %v8759_v38  ;;  %v1462_v7 = vadd.f32 %v1398_v19, %v1254_v22  ;;  %v779_v23 = vsel %vm707_vm13, %v8760_v27, 0.0 }
 0x3ec   : > { %v1464_v4 = vadd.f32 %v1400_v5, %v1256_v59  ;;  %v781_v18 = vsel %vm709_vm14, %v8760_v27, 0.0  ;;  %v987_v1 = vsel %vm915_vm15, %v8761_v17, 0.0  ;;  %v989_v35 = vsel %vm917_vm0, %v8761_v17, 0.0 }
 0x3ed   : > { %vm1123_vm1 = vcmp.eq.s32.totalorder %v6724_v32, %v8762_v34  ;;  %vm1125_vm2 = vcmp.eq.s32.totalorder %v6729_v16, %v8762_v34  ;;  %v1051_v50 = vadd.f32 %v987_v1, %v779_v23  ;;  %v1053_v8 = vadd.f32 %v989_v35, %v781_v18 }
 0x3ee   : > { %v4691_v44 = vpack.c.bf16 %v1464_v4, %v1462_v7  ;;  %v1195_v11 = vsel %vm1123_vm1, %v8763_v13, 0.0  ;;  %v1197_v56 = vsel %vm1125_vm2, %v8763_v13, 0.0  ;;  %vm1331_vm3 = vcmp.eq.s32.totalorder %v6724_v32, %v8764_v29 }
 0x3ef   : > { %vm1333_vm4 = vcmp.eq.s32.totalorder %v6729_v16, %v8764_v29  ;;  %vm3467_vm5 = vcmp.eq.s32.totalorder %v8803_v37, %v8781_v31  ;;  %v1259_v43 = vadd.f32 %v1195_v11, %v1051_v50  ;;  %v1261_v48 = vadd.f32 %v1197_v56, %v1053_v8 }
 0x3f0   : > { %4692 = vmatpush1.bf16.msra.mxu0 %v4691_v44  ;;  %v1403_v49 = vsel %vm1331_vm3, %v8765_v28, 0.0  ;;  %v1405_v24 = vsel %vm1333_vm4, %v8765_v28, 0.0  ;;  %vm3469_vm6 = vcmp.eq.s32.totalorder %v8804_v10, %v8781_v31  ;;  %v3539_v47 = vsel %vm3467_vm5, %v8782_v42, 0.0 }
 0x3f1   : > { %vm3675_vm7 = vcmp.eq.s32.totalorder %v8803_v37, %v8783_v12  ;;  %vm3677_vm8 = vcmp.eq.s32.totalorder %v8804_v10, %v8783_v12  ;;  %v1467_v53 = vadd.f32 %v1403_v49, %v1259_v43  ;;  %v1469_v63 = vadd.f32 %v1405_v24, %v1261_v48 }
 0x3f2   : > { %v3541_v2 = vsel %vm3469_vm6, %v8782_v42, 0.0  ;;  %v3747_v22 = vsel %vm3675_vm7, %v8784_v54, 0.0  ;;  %v3749_v59 = vsel %vm3677_vm8, %v8784_v54, 0.0  ;;  %vm3883_vm9 = vcmp.eq.s32.totalorder %v8803_v37, %v8785_v15 }
 0x3f3   : > { %v3811_v19 = vadd.f32 %v3747_v22, %v3539_v47  ;;  %vm3885_vm10 = vcmp.eq.s32.totalorder %v8804_v10, %v8785_v15  ;;  %v4693_v5 = vpack.c.bf16 %v1469_v63, %v1467_v53  ;;  %v3813_v7 = vadd.f32 %v3749_v59, %v3541_v2 }
 0x3f4   : > { %v3955_v4 = vsel %vm3883_vm9, %v8786_v21, 0.0  ;;  %v3957_v23 = vsel %vm3885_vm10, %v8786_v21, 0.0  ;;  %vm4091_vm11 = vcmp.eq.s32.totalorder %v8803_v37, %v8787_v39  ;;  %vm4093_vm12 = vcmp.eq.s32.totalorder %v8804_v10, %v8787_v39 }
 0x3f5   : > { %v4019_v18 = vadd.f32 %v3955_v4, %v3811_v19  ;;  %vm3472_vm13 = vcmp.eq.s32.totalorder %v6724_v32, %v5476_v55  ;;  %4694 = vmatprep.subr.bf16.mxu0 %v4693_v5  ;;  %v4021_v1 = vadd.f32 %v3957_v23, %v3813_v7  ;;  %v4163_v35 = vsel %vm4091_vm11, %v8788_v52, 0.0 }
 0x3f6   : > { %v4165_v44 = vsel %vm4093_vm12, %v8788_v52, 0.0  ;;  %vm3474_vm14 = vcmp.eq.s32.totalorder %v6729_v16, %v5476_v55  ;;  %v3544_v8 = vsel %vm3472_vm13, %v8768_v45, 0.0  ;;  %vm3680_vm15 = vcmp.eq.s32.totalorder %v6724_v32, %v5479_v62 }
 0x3f7   : > { %v4227_v50 = vadd.f32 %v4163_v35, %v4019_v18  ;;  %v3546_v37 = vsel %vm3474_vm14, %v8768_v45, 0.0  ;;  %v4229_v10 = vadd.f32 %v4165_v44, %v4021_v1  ;;  %vm3682_vm0 = vcmp.eq.s32.totalorder %v6729_v16, %v5479_v62 }
 0x3f8   : > { %v3752_v11 = vsel %vm3680_vm15, %v8769_v46, 0.0  ;;  %vm3888_vm1 = vcmp.eq.s32.totalorder %v6724_v32, %v8770_v33  ;;  %v3754_v56 = vsel %vm3682_vm0, %v8769_v46, 0.0  ;;  %vm3890_vm2 = vcmp.eq.s32.totalorder %v6729_v16, %v8770_v33 }
 0x3f9   : > { %v3816_v43 = vadd.f32 %v3752_v11, %v3544_v8  ;;  %v3960_v48 = vsel %vm3888_vm1, %v8771_v30, 0.0  ;;  %v4819_v49 = vpack.c.bf16 %v4229_v10, %v4227_v50  ;;  %v3818_v24 = vadd.f32 %v3754_v56, %v3546_v37 }
 0x3fa   : > { %v3962_v47 = vsel %vm3890_vm2, %v8771_v30, 0.0  ;;  %vm4096_vm3 = vcmp.eq.s32.totalorder %v6724_v32, %v5485_v3  ;;  %vm4098_vm4 = vcmp.eq.s32.totalorder %v6729_v16, %v5485_v3  ;;  %vm706_vm5 = vcmp.eq.s32.totalorder %v6724_v32, %v8773_v9 }
 0x3fb   : > { %v4024_v53 = vadd.f32 %v3960_v48, %v3816_v43  ;;  %v4168_v63 = vsel %vm4096_vm3, %v8772_v14, 0.0  ;;  %4820 = vmatpush1.bf16.msra.mxu1 %v4819_v49  ;;  %v4026_v2 = vadd.f32 %v3962_v47, %v3818_v24  ;;  %v4170_v22 = vsel %vm4098_vm4, %v8772_v14, 0.0 }
 0x3fc   : > { %vm708_vm6 = vcmp.eq.s32.totalorder %v6729_v16, %v8773_v9  ;;  %v778_v59 = vsel %vm706_vm5, %v8774_v61, 0.0  ;;  %vm914_vm7 = vcmp.eq.s32.totalorder %v6724_v32, %v8775_v40  ;;  %vm916_vm8 = vcmp.eq.s32.totalorder %v6729_v16, %v8775_v40 }
 0x3fd   : > { %v4232_v19 = vadd.f32 %v4168_v63, %v4024_v53  ;;  %v780_v5 = vsel %vm708_vm6, %v8774_v61, 0.0  ;;  %v4234_v7 = vadd.f32 %v4170_v22, %v4026_v2  ;;  %v986_v4 = vsel %vm914_vm7, %v8776_v36, 0.0 }
 0x3fe   : > { %v988_v23 = vsel %vm916_vm8, %v8776_v36, 0.0  ;;  %vm1122_vm9 = vcmp.eq.s32.totalorder %v6724_v32, %v8777_v25  ;;  %v1050_v18 = vadd.f32 %v986_v4, %v778_v59  ;;  %vm1124_vm10 = vcmp.eq.s32.totalorder %v6729_v16, %v8777_v25 }
 0x3ff   : > { %v1052_v1 = vadd.f32 %v988_v23, %v780_v5  ;;  %v1194_v35 = vsel %vm1122_vm9, %v8778_v20, 0.0  ;;  %v4821_v44 = vpack.c.bf16 %v4234_v7, %v4232_v19  ;;  %v1196_v50 = vsel %vm1124_vm10, %v8778_v20, 0.0 }
 0x400   : > { %vm1330_vm11 = vcmp.eq.s32.totalorder %v6724_v32, %v8779_v58  ;;  %vm1332_vm12 = vcmp.eq.s32.totalorder %v6729_v16, %v8779_v58  ;;  %v1258_v8 = vadd.f32 %v1194_v35, %v1050_v18  ;;  %vm711_vm13 = vcmp.eq.s32.totalorder %v6828_v60, %v8758_v6 }
 0x401   : > { %v1260_v37 = vadd.f32 %v1196_v50, %v1052_v1  ;;  %v1402_v10 = vsel %vm1330_vm11, %v8780_v51, 0.0  ;;  %v1404_v11 = vsel %vm1332_vm12, %v8780_v51, 0.0  ;;  %4822 = vmatprep.subr.bf16.mxu1 %v4821_v44  ;;  %vm713_vm14 = vcmp.eq.s32.totalorder %v6831_v0, %v8758_v6 }
 0x402   : > { %vm919_vm15 = vcmp.eq.s32.totalorder %v6828_v60, %v8759_v38  ;;  %vm921_vm0 = vcmp.eq.s32.totalorder %v6831_v0, %v8759_v38  ;;  %v1466_v56 = vadd.f32 %v1402_v10, %v1258_v8  ;;  %v783_v48 = vsel %vm711_vm13, %v8760_v27, 0.0 }
 0x403   : > { %v1468_v43 = vadd.f32 %v1404_v11, %v1260_v37  ;;  %v785_v49 = vsel %vm713_vm14, %v8760_v27, 0.0  ;;  %v991_v24 = vsel %vm919_vm15, %v8761_v17, 0.0  ;;  %v993_v47 = vsel %vm921_vm0, %v8761_v17, 0.0 }
 0x404   : > { %vm1127_vm1 = vcmp.eq.s32.totalorder %v6828_v60, %v8762_v34  ;;  %vm1129_vm2 = vcmp.eq.s32.totalorder %v6831_v0, %v8762_v34  ;;  %v1055_v63 = vadd.f32 %v991_v24, %v783_v48  ;;  %v1057_v2 = vadd.f32 %v993_v47, %v785_v49 }
 0x405   : > { %v4695_v53 = vpack.c.bf16 %v1468_v43, %v1466_v56  ;;  %v1199_v22 = vsel %vm1127_vm1, %v8763_v13, 0.0  ;;  %v1201_v59 = vsel %vm1129_vm2, %v8763_v13, 0.0  ;;  %vm1335_vm3 = vcmp.eq.s32.totalorder %v6828_v60, %v8764_v29 }
 0x406   : > { %vm1337_vm4 = vcmp.eq.s32.totalorder %v6831_v0, %v8764_v29  ;;  %vm3471_vm5 = vcmp.eq.s32.totalorder %v6724_v32, %v8781_v31  ;;  %v1263_v19 = vadd.f32 %v1199_v22, %v1055_v63  ;;  %v1265_v5 = vadd.f32 %v1201_v59, %v1057_v2 }
 0x407   : > { %4696 = vmatpush1.bf16.msra.mxu0 %v4695_v53  ;;  %v1407_v7 = vsel %vm1335_vm3, %v8765_v28, 0.0  ;;  %v1409_v4 = vsel %vm1337_vm4, %v8765_v28, 0.0  ;;  %vm3473_vm6 = vcmp.eq.s32.totalorder %v6729_v16, %v8781_v31  ;;  %v3543_v23 = vsel %vm3471_vm5, %v8782_v42, 0.0 }
 0x408   : > { %vm3679_vm7 = vcmp.eq.s32.totalorder %v6724_v32, %v8783_v12  ;;  %vm3681_vm8 = vcmp.eq.s32.totalorder %v6729_v16, %v8783_v12  ;;  %v1471_v18 = vadd.f32 %v1407_v7, %v1263_v19  ;;  %v1473_v1 = vadd.f32 %v1409_v4, %v1265_v5 }
 0x409   : > { %v3545_v35 = vsel %vm3473_vm6, %v8782_v42, 0.0  ;;  %v3751_v44 = vsel %vm3679_vm7, %v8784_v54, 0.0  ;;  %v3753_v50 = vsel %vm3681_vm8, %v8784_v54, 0.0  ;;  %vm3887_vm9 = vcmp.eq.s32.totalorder %v6724_v32, %v8785_v15 }
 0x40a   : > { %v3815_v8 = vadd.f32 %v3751_v44, %v3543_v23  ;;  %vm3889_vm10 = vcmp.eq.s32.totalorder %v6729_v16, %v8785_v15  ;;  %v4697_v37 = vpack.c.bf16 %v1473_v1, %v1471_v18  ;;  %v3817_v10 = vadd.f32 %v3753_v50, %v3545_v35 }
 0x40b   : > { %v3959_v11 = vsel %vm3887_vm9, %v8786_v21, 0.0  ;;  %v3961_v56 = vsel %vm3889_vm10, %v8786_v21, 0.0  ;;  %vm4095_vm11 = vcmp.eq.s32.totalorder %v6724_v32, %v8787_v39  ;;  %vm4097_vm12 = vcmp.eq.s32.totalorder %v6729_v16, %v8787_v39 }
 0x40c   : > { %v4023_v43 = vadd.f32 %v3959_v11, %v3815_v8  ;;  %vm3476_vm13 = vcmp.eq.s32.totalorder %v6828_v60, %v5476_v55  ;;  %4698 = vmatprep.subr.bf16.mxu0 %v4697_v37  ;;  %v4025_v48 = vadd.f32 %v3961_v56, %v3817_v10  ;;  %v4167_v49 = vsel %vm4095_vm11, %v8788_v52, 0.0 }
 0x40d   : > { %v4169_v24 = vsel %vm4097_vm12, %v8788_v52, 0.0  ;;  %vm3478_vm14 = vcmp.eq.s32.totalorder %v6831_v0, %v5476_v55  ;;  %v3548_v53 = vsel %vm3476_vm13, %v8768_v45, 0.0  ;;  %vm3684_vm15 = vcmp.eq.s32.totalorder %v6828_v60, %v5479_v62 }
 0x40e   : > { %v4231_v47 = vadd.f32 %v4167_v49, %v4023_v43  ;;  %v3550_v32 = vsel %vm3478_vm14, %v8768_v45, 0.0  ;;  %v4233_v16 = vadd.f32 %v4169_v24, %v4025_v48  ;;  %vm3686_vm0 = vcmp.eq.s32.totalorder %v6831_v0, %v5479_v62 }
 0x40f   : > { %v3756_v63 = vsel %vm3684_vm15, %v8769_v46, 0.0  ;;  %vm3892_vm1 = vcmp.eq.s32.totalorder %v6828_v60, %v8770_v33  ;;  %v3758_v2 = vsel %vm3686_vm0, %v8769_v46, 0.0  ;;  %vm3894_vm2 = vcmp.eq.s32.totalorder %v6831_v0, %v8770_v33 }
 0x410   : > { %v3820_v22 = vadd.f32 %v3756_v63, %v3548_v53  ;;  %v3964_v59 = vsel %vm3892_vm1, %v8771_v30, 0.0  ;;  %v4823_v19 = vpack.c.bf16 %v4233_v16, %v4231_v47  ;;  %v3822_v5 = vadd.f32 %v3758_v2, %v3550_v32 }
 0x411   : > { %v3966_v7 = vsel %vm3894_vm2, %v8771_v30, 0.0  ;;  %vm4100_vm3 = vcmp.eq.s32.totalorder %v6828_v60, %v5485_v3  ;;  %vm4102_vm4 = vcmp.eq.s32.totalorder %v6831_v0, %v5485_v3  ;;  %vm710_vm5 = vcmp.eq.s32.totalorder %v6828_v60, %v8773_v9 }
 0x412   : > { %v4028_v4 = vadd.f32 %v3964_v59, %v3820_v22  ;;  %v4172_v23 = vsel %vm4100_vm3, %v8772_v14, 0.0  ;;  %4824 = vmatpush1.bf16.msra.mxu1 %v4823_v19  ;;  %v4030_v18 = vadd.f32 %v3966_v7, %v3822_v5  ;;  %v4174_v1 = vsel %vm4102_vm4, %v8772_v14, 0.0 }
 0x413   : > { %vm712_vm6 = vcmp.eq.s32.totalorder %v6831_v0, %v8773_v9  ;;  %v782_v35 = vsel %vm710_vm5, %v8774_v61, 0.0  ;;  %vm918_vm7 = vcmp.eq.s32.totalorder %v6828_v60, %v8775_v40  ;;  %vm920_vm8 = vcmp.eq.s32.totalorder %v6831_v0, %v8775_v40 }
 0x414   : > { %v4236_v44 = vadd.f32 %v4172_v23, %v4028_v4  ;;  %v784_v50 = vsel %vm712_vm6, %v8774_v61, 0.0  ;;  %v4238_v8 = vadd.f32 %v4174_v1, %v4030_v18  ;;  %v990_v37 = vsel %vm918_vm7, %v8776_v36, 0.0 }
 0x415   : > { %v992_v10 = vsel %vm920_vm8, %v8776_v36, 0.0  ;;  %vm1126_vm9 = vcmp.eq.s32.totalorder %v6828_v60, %v8777_v25  ;;  %v1054_v11 = vadd.f32 %v990_v37, %v782_v35  ;;  %vm1128_vm10 = vcmp.eq.s32.totalorder %v6831_v0, %v8777_v25 }
 0x416   : > { %v1056_v56 = vadd.f32 %v992_v10, %v784_v50  ;;  %v1198_v43 = vsel %vm1126_vm9, %v8778_v20, 0.0  ;;  %v4825_v48 = vpack.c.bf16 %v4238_v8, %v4236_v44  ;;  %v1200_v49 = vsel %vm1128_vm10, %v8778_v20, 0.0 }
 0x417   : > { %vm1334_vm11 = vcmp.eq.s32.totalorder %v6828_v60, %v8779_v58  ;;  %vm1336_vm12 = vcmp.eq.s32.totalorder %v6831_v0, %v8779_v58  ;;  %v1262_v24 = vadd.f32 %v1198_v43, %v1054_v11  ;;  %vm715_vm13 = vcmp.eq.s32.totalorder %v6928_v26, %v8758_v6 }
 0x418   : > { %v1264_v47 = vadd.f32 %v1200_v49, %v1056_v56  ;;  %v1406_v53 = vsel %vm1334_vm11, %v8780_v51, 0.0  ;;  %v1408_v32 = vsel %vm1336_vm12, %v8780_v51, 0.0  ;;  %4826 = vmatprep.subr.bf16.mxu1 %v4825_v48  ;;  %vm717_vm14 = vcmp.eq.s32.totalorder %v6933_v41, %v8758_v6 }
 0x419   : > { %vm923_vm15 = vcmp.eq.s32.totalorder %v6928_v26, %v8759_v38  ;;  %vm925_vm0 = vcmp.eq.s32.totalorder %v6933_v41, %v8759_v38  ;;  %v1470_v16 = vadd.f32 %v1406_v53, %v1262_v24  ;;  %v787_v2 = vsel %vm715_vm13, %v8760_v27, 0.0 }
 0x41a   : > { %v1472_v63 = vadd.f32 %v1408_v32, %v1264_v47  ;;  %v789_v22 = vsel %vm717_vm14, %v8760_v27, 0.0  ;;  %v995_v59 = vsel %vm923_vm15, %v8761_v17, 0.0  ;;  %v997_v19 = vsel %vm925_vm0, %v8761_v17, 0.0 }
 0x41b   : > { %vm1131_vm1 = vcmp.eq.s32.totalorder %v6928_v26, %v8762_v34  ;;  %vm1133_vm2 = vcmp.eq.s32.totalorder %v6933_v41, %v8762_v34  ;;  %v1059_v5 = vadd.f32 %v995_v59, %v787_v2  ;;  %v1061_v7 = vadd.f32 %v997_v19, %v789_v22 }
 0x41c   : > { %v4699_v6 = vpack.c.bf16 %v1472_v63, %v1470_v16  ;;  %v1203_v38 = vsel %vm1131_vm1, %v8763_v13, 0.0  ;;  %v1205_v4 = vsel %vm1133_vm2, %v8763_v13, 0.0  ;;  %vm1339_vm3 = vcmp.eq.s32.totalorder %v6928_v26, %v8764_v29 }
 0x41d   : > { %vm1341_vm4 = vcmp.eq.s32.totalorder %v6933_v41, %v8764_v29  ;;  %vm3475_vm5 = vcmp.eq.s32.totalorder %v6828_v60, %v8781_v31  ;;  %v1267_v27 = vadd.f32 %v1203_v38, %v1059_v5  ;;  %v1269_v17 = vadd.f32 %v1205_v4, %v1061_v7 }
 0x41e   : > { %4700 = vmatpush1.bf16.msra.mxu0 %v4699_v6  ;;  %v1411_v34 = vsel %vm1339_vm3, %v8765_v28, 0.0  ;;  %v1413_v23 = vsel %vm1341_vm4, %v8765_v28, 0.0  ;;  %vm3477_vm6 = vcmp.eq.s32.totalorder %v6831_v0, %v8781_v31  ;;  %v3547_v13 = vsel %vm3475_vm5, %v8782_v42, 0.0 }
 0x41f   : > { %vm3683_vm7 = vcmp.eq.s32.totalorder %v6828_v60, %v8783_v12  ;;  %vm3685_vm8 = vcmp.eq.s32.totalorder %v6831_v0, %v8783_v12  ;;  %v1475_v29 = vadd.f32 %v1411_v34, %v1267_v27  ;;  %v1477_v18 = vadd.f32 %v1413_v23, %v1269_v17 }
 0x420   : > { %v3549_v1 = vsel %vm3477_vm6, %v8782_v42, 0.0  ;;  %v3755_v35 = vsel %vm3683_vm7, %v8784_v54, 0.0  ;;  %v3757_v44 = vsel %vm3685_vm8, %v8784_v54, 0.0  ;;  %vm3891_vm9 = vcmp.eq.s32.totalorder %v6828_v60, %v8785_v15 }
 0x421   : > { %v3819_v28 = vadd.f32 %v3755_v35, %v3547_v13  ;;  %vm3893_vm10 = vcmp.eq.s32.totalorder %v6831_v0, %v8785_v15  ;;  %v4701_v50 = vpack.c.bf16 %v1477_v18, %v1475_v29  ;;  %v3821_v8 = vadd.f32 %v3757_v44, %v3549_v1 }
 0x422   : > { %v3963_v37 = vsel %vm3891_vm9, %v8786_v21, 0.0  ;;  %v3965_v10 = vsel %vm3893_vm10, %v8786_v21, 0.0  ;;  %vm4099_vm11 = vcmp.eq.s32.totalorder %v6828_v60, %v8787_v39  ;;  %vm4101_vm12 = vcmp.eq.s32.totalorder %v6831_v0, %v8787_v39 }
 0x423   : > { %v4027_v11 = vadd.f32 %v3963_v37, %v3819_v28  ;;  %vm3480_vm13 = vcmp.eq.s32.totalorder %v6928_v26, %v5476_v55  ;;  %4702 = vmatprep.subr.bf16.mxu0 %v4701_v50  ;;  %v4029_v56 = vadd.f32 %v3965_v10, %v3821_v8  ;;  %v4171_v43 = vsel %vm4099_vm11, %v8788_v52, 0.0  ;;  %v4320_v8 = vld [vmem:[%s5032_s14] sm:$0xff]  ;;  %v4317_v10 = vld [vmem:[#allocation2 + $0x8] sm:$0xff] }
 0x424   : > { %v4173_v48 = vsel %vm4101_vm12, %v8788_v52, 0.0  ;;  %vm3482_vm14 = vcmp.eq.s32.totalorder %v6933_v41, %v5476_v55  ;;  %v3552_v24 = vsel %vm3480_vm13, %v8768_v45, 0.0  ;;  %vm3688_vm15 = vcmp.eq.s32.totalorder %v6928_v26, %v5479_v62  ;;  %v4316_v37 = vld [vmem:[#allocation2] sm:$0xff] }
 0x425   : > { %v4235_v49 = vadd.f32 %v4171_v43, %v4027_v11  ;;  %v3554_v60 = vsel %vm3482_vm14, %v8768_v45, 0.0  ;;  %v4237_v0 = vadd.f32 %v4173_v48, %v4029_v56  ;;  %vm3690_vm0 = vcmp.eq.s32.totalorder %v6933_v41, %v5479_v62  ;;  %v4318_v48 = vld [vmem:[#allocation2 + $0x10] sm:$0xff] }
 0x426   : > { %v3760_v47 = vsel %vm3688_vm15, %v8769_v46, 0.0  ;;  %vm3896_vm1 = vcmp.eq.s32.totalorder %v6928_v26, %v8770_v33  ;;  %v3762_v53 = vsel %vm3690_vm0, %v8769_v46, 0.0  ;;  %vm3898_vm2 = vcmp.eq.s32.totalorder %v6933_v41, %v8770_v33 }
 0x427   : > { %v3824_v55 = vadd.f32 %v3760_v47, %v3552_v24  ;;  %v3968_v45 = vsel %vm3896_vm1, %v8771_v30, 0.0  ;;  %v4827_v32 = vpack.c.bf16 %v4237_v0, %v4235_v49  ;;  %v3826_v16 = vadd.f32 %v3762_v53, %v3554_v60  ;;  %v4319_v49 = vld [vmem:[#allocation2 + $0x18] sm:$0xff]  ;;  %v4422_v53 = vld [vmem:[%s8633_s6] sm:$0xff] (!%p4567_p8) }
 0x428   : > { %v3970_v63 = vsel %vm3898_vm2, %v8771_v30, 0.0  ;;  %vm4104_vm3 = vcmp.eq.s32.totalorder %v6928_v26, %v5485_v3  ;;  %vm4106_vm4 = vcmp.eq.s32.totalorder %v6933_v41, %v5485_v3  ;;  %vm714_vm5 = vcmp.eq.s32.totalorder %v6928_v26, %v8773_v9 }
 0x429   : > { %v4032_v62 = vadd.f32 %v3968_v45, %v3824_v55  ;;  %v4176_v2 = vsel %vm4104_vm3, %v8772_v14, 0.0  ;;  %4828 = vmatpush1.bf16.msra.mxu1 %v4827_v32  ;;  %v4034_v46 = vadd.f32 %v3970_v63, %v3826_v16  ;;  %v4178_v33 = vsel %vm4106_vm4, %v8772_v14, 0.0  ;;  %v4423_v45 = vld [vmem:[%s8633_s6 + $0x8] sm:$0xff] (!%p4567_p8) }
 0x42a   : > { %vm716_vm6 = vcmp.eq.s32.totalorder %v6933_v41, %v8773_v9  ;;  %v786_v30 = vsel %vm714_vm5, %v8774_v61, 0.0  ;;  %vm922_vm7 = vcmp.eq.s32.totalorder %v6928_v26, %v8775_v40  ;;  %vm924_vm8 = vcmp.eq.s32.totalorder %v6933_v41, %v8775_v40 }
 0x42b   : > { %v4240_v22 = vadd.f32 %v4176_v2, %v4032_v62  ;;  %v788_v59 = vsel %vm716_vm6, %v8774_v61, 0.0  ;;  %v4242_v3 = vadd.f32 %v4178_v33, %v4034_v46  ;;  %v994_v19 = vsel %vm922_vm7, %v8776_v36, 0.0 }
 0x42c   : > { %v996_v6 = vsel %vm924_vm8, %v8776_v36, 0.0  ;;  %vm1130_vm9 = vcmp.eq.s32.totalorder %v6928_v26, %v8777_v25  ;;  %v1058_v14 = vadd.f32 %v994_v19, %v786_v30  ;;  %vm1132_vm10 = vcmp.eq.s32.totalorder %v6933_v41, %v8777_v25 }
 0x42d   : > { %v1060_v9 = vadd.f32 %v996_v6, %v788_v59  ;;  %v1202_v61 = vsel %vm1130_vm9, %v8778_v20, 0.0  ;;  %v4829_v5 = vpack.c.bf16 %v4242_v3, %v4240_v22  ;;  %v1204_v7 = vsel %vm1132_vm10, %v8778_v20, 0.0 }
 0x42e   : > { %vm1338_vm11 = vcmp.eq.s32.totalorder %v6928_v26, %v8779_v58  ;;  %vm1340_vm12 = vcmp.eq.s32.totalorder %v6933_v41, %v8779_v58  ;;  %v1266_v40 = vadd.f32 %v1202_v61, %v1058_v14  ;;  %vm3479_vm13 = vcmp.eq.s32.totalorder %v6928_v26, %v8781_v31 }
 0x42f   : > { %v1268_v36 = vadd.f32 %v1204_v7, %v1060_v9  ;;  %v1410_v38 = vsel %vm1338_vm11, %v8780_v51, 0.0  ;;  %v1412_v4 = vsel %vm1340_vm12, %v8780_v51, 0.0  ;;  %4830 = vmatprep.subr.bf16.mxu1 %v4829_v5  ;;  %vm3481_vm14 = vcmp.eq.s32.totalorder %v6933_v41, %v8781_v31 }
 0x430   : > { %vm3687_vm15 = vcmp.eq.s32.totalorder %v6928_v26, %v8783_v12  ;;  %vm3689_vm0 = vcmp.eq.s32.totalorder %v6933_v41, %v8783_v12  ;;  %v1474_v25 = vadd.f32 %v1410_v38, %v1266_v40  ;;  %v3551_v58 = vsel %vm3479_vm13, %v8782_v42, 0.0 }
 0x431   : > { %v1476_v20 = vadd.f32 %v1412_v4, %v1268_v36  ;;  %v3553_v27 = vsel %vm3481_vm14, %v8782_v42, 0.0  ;;  %v3759_v51 = vsel %vm3687_vm15, %v8784_v54, 0.0  ;;  %v3761_v17 = vsel %vm3689_vm0, %v8784_v54, 0.0 }
 0x432   : > { %vm3895_vm1 = vcmp.eq.s32.totalorder %v6928_v26, %v8785_v15  ;;  %vm3897_vm2 = vcmp.eq.s32.totalorder %v6933_v41, %v8785_v15  ;;  %v3823_v34 = vadd.f32 %v3759_v51, %v3551_v58  ;;  %v3825_v23 = vadd.f32 %v3761_v17, %v3553_v27 }
 0x433   : > { %v4703_v31 = vpack.c.bf16 %v1476_v20, %v1474_v25  ;;  %v3967_v12 = vsel %vm3895_vm1, %v8786_v21, 0.0  ;;  %v3969_v13 = vsel %vm3897_vm2, %v8786_v21, 0.0  ;;  %vm4103_vm3 = vcmp.eq.s32.totalorder %v6928_v26, %v8787_v39 }
 0x434   : > { %vm4105_vm4 = vcmp.eq.s32.totalorder %v6933_v41, %v8787_v39  ;;  %v4031_v42 = vadd.f32 %v3967_v12, %v3823_v34  ;;  %v4033_v54 = vadd.f32 %v3969_v13, %v3825_v23  ;;  %v4175_v29 = vsel %vm4103_vm3, %v8788_v52, 0.0 }
 0x435   : > { %4704 = vmatpush1.bf16.msra.mxu0 %v4703_v31  ;;  %v4177_v15 = vsel %vm4105_vm4, %v8788_v52, 0.0  ;;  %v8805_v21 = vmov 0.0   ;;  %vm4322_vm5 = vcmask 64512   ;;  %v4321_v52 = vld [vmem:[%s5032_s14 + $0x8] sm:$0xff]  ;;  %v4954_v55 = vmov (!%p4567_p8), 0  }
 0x436   : > { %v4239_v18 = vadd.f32 %v4175_v29, %v4031_v42  ;;  %v4241_v1 = vadd.f32 %v4177_v15, %v4033_v54  ;;  %4910 = vset.pattern.permute.xlu0 (!%p4567_p8), %v4954_v55 }
 0x437   : > { %4426 = vperm.xlu0 (!%p4567_p8), %4910, %v4422_v53  }
 0x438   : > { %2468 = vmatmul.mubr.f32.vlgmr.msra.gmra.mrb[0].mxu0 %v8766_v57  ;;  %v4831_v35 = vpack.c.bf16 %v4241_v1, %v4239_v18 }
 0x439   : > { %4393 = vmatprep.mubr.f32.mxu0 %v8805_v21 }
 0x43a   : > { %4832 = vmatpush1.bf16.msra.mxu1 %v4831_v35 }
 0x43b   : > { %4431 = vperm.xlu0 (!%p4567_p8), %4910, %v4423_v45  }
 0x43d   : > { %4308 = vmatmul.mubr.f32.vlgmr.msra.gmra.mrb[10].mxu1 %v8766_v57 }
 0x4b6   : > { %v4427_v63 = vpop.permute.xlu0 (!%p4567_p8), %4426 }
 0x4ba   : > { %v4432_v30 = vpop.permute.xlu0 (!%p4567_p8), %4431 }
 0x50b   : > { %v2469_v26 = vpop.f32.mrb[0].mxu0 }
 0x50c   : > { %v2471_v41 = vpop.f32.mrb[1].mxu0 }
 0x510   : > { %v4309_v39 = vpop.f32.mrb[10].mxu1 }
 0x511   : > { %v4833_v44 = vadd.f32 %v4309_v39, %v2469_v26  ;;  %v4311_v28 = vpop.f32.mrb[11].mxu1 }
 0x512   : > { %v4834_v50 = vadd.f32 %v4311_v28, %v2471_v41 }
 0x514   : > { %4329 = vmatprep.subr.mxu0 %v4834_v50 }
 0x515   : > { %4330 = vmatpush1.msra.mxu0 %v4833_v44 }
 0x516   : > { %4565 = vmatmul.mubr.msk.f32.vlgmr.msra.gmra.mrb[2].mxu0 %vm4322_vm5, %v4320_v8 }
 0x517   : > { %4399 = vmatprep.mubr.f32.mxu0 %v8805_v21 }
 0x51a   : > { %4566 = vmatmul.mubr.msk.f32.gmra.mrb[4].mxu0 %vm4322_vm5, %v4321_v52 }
 0x5e9   : > { %v4395_v11 = vpop.f32.mrb[2].mxu0 }
 0x5ea   : > { %v4406_v56 = vadd.f32 %v4395_v11, %v4316_v37  ;;  %v4397_v57 = vpop.f32.mrb[3].mxu0 }
 0x5eb   : > { %v4407_v43 = vadd.f32 %v4397_v57, %v4317_v10  ;;  %4417 = sbr.rel (%p4567_p8) target bundleno = 1532 (0x5fc), region = 56 }
 0x5ec   : > { %4410 = vst [vmem:[#allocation2] sm:$0xff] %v4406_v56 }
 0x5ed   : > { %4411 = vst [vmem:[#allocation2 + $0x8] sm:$0xff] %v4407_v43  ;;  %v4401_v24 = vpop.f32.mrb[4].mxu0 }
 0x5ee   : > { %v4408_v60 = vadd.f32 %v4401_v24, %v4318_v48  ;;  %v4403_v0 = vpop.f32.mrb[5].mxu0 }
 0x5ef   : > { %v4409_v47 = vadd.f32 %v4403_v0, %v4319_v49 }
 0x5f0   : > { %4412 = vst [vmem:[#allocation2 + $0x10] sm:$0xff] %v4408_v60 }
 0x5f1   : > { %4413 = vst [vmem:[#allocation2 + $0x18] sm:$0xff] %v4409_v47 }
 0x5f3   : > { %v4418_v32 = vld [vmem:[#allocation2] sm:$0xff] }
 0x5f4   : > { %v4419_v16 = vld [vmem:[#allocation2 + $0x8] sm:$0xff]  ;;  %v4434_v62 = vadd.f32 %v4427_v63, %v4418_v32 }
 0x5f5   : > { %v4435_v2 = vadd.f32 %v4427_v63, %v4419_v16 }
 0x5f6   : > { %4438 = vst [vmem:[%s5050_s12] sm:$0xff] %v4434_v62 }
 0x5f7   : > { %v4420_v46 = vld [vmem:[#allocation2 + $0x10] sm:$0xff]  ;;  %4439 = vst [vmem:[%s5050_s12 + $0x8] sm:$0xff] %v4435_v2 }
 0x5f8   : > { %v4421_v33 = vld [vmem:[#allocation2 + $0x18] sm:$0xff]  ;;  %v4436_v22 = vadd.f32 %v4432_v30, %v4420_v46 }
 0x5f9   : > { %v4437_v59 = vadd.f32 %v4432_v30, %v4421_v33 }
 0x5fa   : > { %4440 = vst [vmem:[%s5050_s12 + $0x10] sm:$0xff] %v4436_v22 }
 0x5fb   : > { %4441 = vst [vmem:[%s5050_s12 + $0x18] sm:$0xff] %v4437_v59 }
 0x5fc PF: > { %s17_s28 = sadd.s32 1, %s4949_s28   ;;  %s8806_s24 = smov %s4941_s26 }
 0x5fd   : > { %p14_p9 = scmp.ge.s32.totalorder %s17_s28, 10   ;;  %s8807_s25 = smov %s4945_s27 }
 0x5fe   : > { %s8808_s26 = smov %s8811_s29  ;;  %s8809_s27 = smov %s8815_s30 }
 0x5ff   :  { %16 = sbr.rel (!%p14_p9) target bundleno = 3 (0x3), region = 95 }

</bundles_post_ra>
